<compile_context>
chip_gen: v7x
topology: tpu7x:2x2x1
jax: 0.10.0
libtpu: 0.0.40
codegen_flags: <defaults>
</compile_context>

<pallas_src>
import functools
import math

import jax
import jax.numpy as jnp
import numpy as np
from jax.experimental import pallas as pl
from jax.experimental.pallas import tpu as pltpu

F32 = jnp.float32
LN_EPS = 1e-5


def _round_up(x, m):
    return ((x + m - 1) // m) * m


# ----------------------------------------------------------------------------
# Kernel 1: LayerNorm + stacked ConvLSTM + conv1/ReLU, fused over the time loop
# ----------------------------------------------------------------------------
def _make_convlstm_kernel(*, lstm_layers, hidden, Wp, M, Lim):
    # 3x3 tap offsets in padded-flat pixel coordinates.
    offs = [(dy - 1) * Wp + (dx - 1) for dy in range(3) for dx in range(3)]

    def kernel(*refs):
        it = iter(refs)
        ln_g, ln_b, mask, x_seq = next(it), next(it), next(it), next(it)
        wx, wh, bg = [], [], []
        for _ in range(lstm_layers):
            wx.append(next(it)); wh.append(next(it)); bg.append(next(it))
        wc1, bc1 = next(it), next(it)
        y_out = next(it)
        hs, cs = [], []
        for _ in range(lstm_layers):
            hs.append(next(it)); cs.append(next(it))

        t = pl.program_id(1)

        # ---- reset recurrent state at the first timestep of each image ----
        @pl.when(t == 0)
        def _init():
            for l in range(lstm_layers):
                hs[l][...] = jnp.zeros_like(hs[l])
                cs[l][...] = jnp.zeros_like(cs[l])

        # ---- LayerNorm over channels (sublane axis); zero the pad lanes ----
        x = x_seq[0, 0].astype(F32)                         # (C, LT)
        mu = jnp.mean(x, axis=0, keepdims=True)
        var = jnp.mean((x - mu) ** 2, axis=0, keepdims=True)
        xn = (x - mu) * jax.lax.rsqrt(var + LN_EPS)
        xn = (xn * ln_g[...] + ln_b[...]) * mask[...]        # (C, LT)

        mask_c = mask[:, M:M + Lim]                          # (1, Lim)

        def conv3x3(read, w_ref):
            # sum over 9 taps of (out_ch, in_ch) @ (in_ch, Lim) MXU matmuls.
            acc = None
            for k, off in enumerate(offs):
                term = jnp.dot(w_ref[k], read(M + off),
                               preferred_element_type=F32)
                acc = term if acc is None else acc + term
            return acc

        # ---- stacked ConvLSTM cells (gate order i, f, o, g) ----
        for l in range(lstm_layers):
            if l == 0:
                read_x = lambda s: xn[:, s:s + Lim]
            else:
                read_x = lambda s, r=hs[l - 1]: r[:, s:s + Lim]
            read_h = lambda s, r=hs[l]: r[:, s:s + Lim]

            z = conv3x3(read_x, wx[l]) + conv3x3(read_h, wh[l]) + bg[l][...]
            i_g = jax.nn.sigmoid(z[0 * hidden:1 * hidden])
            f_g = jax.nn.sigmoid(z[1 * hidden:2 * hidden])
            o_g = jax.nn.sigmoid(z[2 * hidden:3 * hidden])
            g_g = jnp.tanh(z[3 * hidden:4 * hidden])
            c_new = f_g * cs[l][...] + i_g * g_g
            h_new = o_g * jnp.tanh(c_new) * mask_c           # keep pad lanes 0
            cs[l][...] = c_new
            hs[l][:, M:M + Lim] = h_new                      # margins stay 0

        # ---- at the last timestep: conv1 + ReLU on the final hidden state ----
        @pl.when(t == pl.num_programs(1) - 1)
        def _tail():
            read_last = lambda s, r=hs[lstm_layers - 1]: r[:, s:s + Lim]
            y = jnp.maximum(conv3x3(read_last, wc1) + bc1[...], 0.0)
            y_out[0] = y

    return kernel


def _convlstm_stack(x_seq, mask, ln_g, ln_b, lstm_wx, lstm_wh, lstm_b,
                    wc1, bc1, *, hidden, lstm_layers, Wp, M, Lim, LT):
    B, T, C, _ = x_seq.shape
    kernel = _make_convlstm_kernel(lstm_layers=lstm_layers, hidden=hidden,
                                   Wp=Wp, M=M, Lim=Lim)

    def fullspec(shape):
        nd = len(shape)
        return pl.BlockSpec(shape, lambda b, t, nd=nd: (0,) * nd)

    in_specs = [fullspec(ln_g.shape), fullspec(ln_b.shape), fullspec(mask.shape),
                pl.BlockSpec((1, 1, C, LT), lambda b, t: (b, t, 0, 0))]
    args = [ln_g, ln_b, mask, x_seq]
    for l in range(lstm_layers):
        in_specs += [fullspec(lstm_wx[l].shape), fullspec(lstm_wh[l].shape),
                     fullspec(lstm_b[l].shape)]
        args += [lstm_wx[l], lstm_wh[l], lstm_b[l]]
    in_specs += [fullspec(wc1.shape), fullspec(bc1.shape)]
    args += [wc1, bc1]

    scratch = []
    for _ in range(lstm_layers):
        scratch += [pltpu.VMEM((hidden, LT), F32),    # h (with lane margins)
                    pltpu.VMEM((hidden, Lim), F32)]   # c

    return pl.pallas_call(
        kernel,
        grid=(B, T),
        in_specs=in_specs,
        out_specs=pl.BlockSpec((1, hidden, Lim), lambda b, t: (b, 0, 0)),
        out_shape=jax.ShapeDtypeStruct((B, hidden, Lim), F32),
        scratch_shapes=scratch,
        compiler_params=pltpu.CompilerParams(
            dimension_semantics=("parallel", "arbitrary"),   # batch -> 2 TCs on v7x
            vmem_limit_bytes=32 * 1024 * 1024),
    )(*args)


# ----------------------------------------------------------------------------
# Kernel 2: max-pool (4 corner slabs) + MLP head + log_softmax
# ----------------------------------------------------------------------------
def _head_kernel(c00, c01, c10, c11, w1, b1, w2, b2, w3, b3, o_ref):
    pooled = jnp.maximum(jnp.maximum(c00[...], c01[...]),
                         jnp.maximum(c10[...], c11[...]))
    h1 = jnp.maximum(
        jnp.dot(pooled, w1[...], preferred_element_type=F32) + b1[...], 0.0)
    h2 = jnp.maximum(
        jnp.dot(h1, w2[...], preferred_element_type=F32) + b2[...], 0.0)
    logits = jnp.dot(h2, w3[...], preferred_element_type=F32) + b3[...]
    m = jnp.max(logits, axis=-1, keepdims=True)
    lse = m + jnp.log(jnp.sum(jnp.exp(logits - m), axis=-1, keepdims=True))
    o_ref[...] = logits - lse


# ----------------------------------------------------------------------------
# Parameters + forward wrapper
# ----------------------------------------------------------------------------
def init_params(key, input_dim, hidden, lstm_layers):
    ks = iter(jax.random.split(key, 4 * lstm_layers + 16))
    nrm = lambda shape: (0.05 * jax.random.normal(next(ks), shape)).astype(F32)
    p = {
        "ln_g": jnp.ones((input_dim,), F32),
        "ln_b": jnp.zeros((input_dim,), F32),
        "lstm_w": [], "lstm_b": [],
        "conv1_w": nrm((3, 3, hidden, hidden)),       # HWIO
        "conv1_b": nrm((hidden,)),
    }
    for l in range(lstm_layers):
        cin = input_dim if l == 0 else hidden
        p["lstm_w"].append(nrm((3, 3, cin + hidden, 4 * hidden)))   # HWIO
        p["lstm_b"].append(nrm((4 * hidden,)))
    fc1_in = (25 // 2) * (25 // 2) * hidden            # module's hard-coded 25x25
    p["fc1_w"] = nrm((fc1_in, 2 * hidden))
    p["fc1_b"] = nrm((2 * hidden,))
    p["fc2_w"] = nrm((2 * hidden, hidden))
    p["fc2_b"] = nrm((hidden,))
    p["fc3_w"] = nrm((hidden, 2))
    p["fc3_b"] = nrm((2,))
    return p


def simple_convlstm_forward(params, x, *, hidden, lstm_layers):
    # x: (B, T, C, H, W), float32 — same convention as the PyTorch module.
    B, T, C, H, W = x.shape
    x = x.astype(F32)

    # ---- padded-flat spatial layout (pixels on the lane axis) ----
    Wp = _round_up(W + 2, 32)                       # >= W+2, keeps Lim % 128 == 0
    Hp = _round_up(H + 2, 128 // math.gcd(Wp, 128))
    Lim = Hp * Wp                                   # per-image flat length (k*128)
    M = _round_up(Wp + 1, 128)                      # lane margin for 3x3 tap slices
    LT = Lim + 2 * M

    xp = jnp.pad(x, ((0, 0), (0, 0), (0, 0), (1, Hp - H - 1), (1, Wp - W - 1)))
    x_seq = jnp.pad(xp.reshape(B, T, C, Lim), ((0, 0), (0, 0), (0, 0), (M, M)))

    m_np = np.zeros((Hp, Wp), np.float32)
    m_np[1:H + 1, 1:W + 1] = 1.0                    # 1 at real pixels, 0 at padding
    mask_np = np.zeros((1, LT), np.float32)
    mask_np[0, M:M + Lim] = m_np.reshape(-1)
    mask = jnp.asarray(mask_np)

    # ---- weights rearranged for the (channels, pixels) layout ----
    ln_g = params["ln_g"].reshape(C, 1)
    ln_b = params["ln_b"].reshape(C, 1)
    lstm_wx, lstm_wh, lstm_b = [], [], []
    for l in range(lstm_layers):
        cin = C if l == 0 else hidden
        w = jnp.transpose(params["lstm_w"][l], (0, 1, 3, 2))   # (3,3,4h,cin+h)
        w = w.reshape(9, 4 * hidden, cin + hidden)             # tap-major
        lstm_wx.append(w[:, :, :cin])
        lstm_wh.append(w[:, :, cin:])
        lstm_b.append(params["lstm_b"][l].reshape(4 * hidden, 1))
    wc1 = jnp.transpose(params["conv1_w"], (0, 1, 3, 2)).reshape(9, hidden, hidden)
    bc1 = params["conv1_b"].reshape(hidden, 1)

    # ---- fused LayerNorm + ConvLSTM stack + conv1/ReLU (one pallas_call) ----
    y = _convlstm_stack(x_seq, mask, ln_g, ln_b, lstm_wx, lstm_wh, lstm_b,
                        wc1, bc1, hidden=hidden, lstm_layers=lstm_layers,
                        Wp=Wp, M=M, Lim=Lim, LT=LT)            # (B, hidden, Lim)

    # ---- 2x2 max-pool corners (tiny glue) + MLP head (one pallas_call) ----
    y_sp = y.reshape(B, hidden, Hp, Wp)[:, :, 1:H + 1, 1:W + 1]  # (B, h, H, W)
    Hc, Wc = H // 2, W // 2

    def corner(di, dj):
        # NCHW flatten order, matching torch.flatten(x, 1)
        return y_sp[:, :, di:2 * Hc:2, dj:2 * Wc:2].reshape(B, hidden * Hc * Wc)

    c00, c01, c10, c11 = corner(0, 0), corner(0, 1), corner(1, 0), corner(1, 1)
    # TODO(synk): nn.Dropout after fc1/fc2 is evaluated in eval mode (identity).
    out = pl.pallas_call(
        _head_kernel,
        out_shape=jax.ShapeDtypeStruct((B, 2), F32),
    )(c00, c01, c10, c11,
      params["fc1_w"], params["fc1_b"].reshape(1, -1),
      params["fc2_w"], params["fc2_b"].reshape(1, -1),
      params["fc3_w"], params["fc3_b"].reshape(1, -1))
    return out                                                  # log-probs, (B, 2)


if __name__ == "__main__":
    # hparams implied by the module: input_dim = |static| + |dynamic| (clc != 'vec')
    hparams = dict(static_features=["a", "b"], dynamic_features=["c", "d"],
                   clc="raw", hidden_size=8, lstm_layers=2, dropout=0.1)
    input_dim = len(hparams["static_features"]) + len(hparams["dynamic_features"])
    hidden = hparams["hidden_size"]
    lstm_layers = hparams["lstm_layers"]

    B, T, H, W = 2, 4, 25, 25       # H=W=25 is required by the module's fc1 sizing
    key = jax.random.PRNGKey(0)
    kp, kx = jax.random.split(key)
    params = init_params(kp, input_dim, hidden, lstm_layers)
    x = jax.random.normal(kx, (B, T, input_dim, H, W), dtype=F32)

    fwd = jax.jit(functools.partial(simple_convlstm_forward,
                                    hidden=hidden, lstm_layers=lstm_layers))
    out = fwd(params, x)
    jax.block_until_ready(out)
    assert out.shape == (B, 2)
    assert bool(jnp.all(jnp.isfinite(out)))
    print("KERNEL_OK")
</pallas_src>

<mosaic_0001>
module attributes {stable_mosaic.version = 11 : i64} {
  func.func @kernel(%arg0: i32, %arg1: i32, %arg2: memref<4x1xf32, #tpu.memory_space<vmem>>, %arg3: memref<4x1xf32, #tpu.memory_space<vmem>>, %arg4: memref<1x1152xf32, #tpu.memory_space<vmem>>, %arg5: memref<1x1x4x1152xf32, #tpu.memory_space<vmem>>, %arg6: memref<9x32x4xf32, #tpu.memory_space<vmem>>, %arg7: memref<9x32x8xf32, #tpu.memory_space<vmem>>, %arg8: memref<32x1xf32, #tpu.memory_space<vmem>>, %arg9: memref<9x32x8xf32, #tpu.memory_space<vmem>>, %arg10: memref<9x32x8xf32, #tpu.memory_space<vmem>>, %arg11: memref<32x1xf32, #tpu.memory_space<vmem>>, %arg12: memref<9x8x8xf32, #tpu.memory_space<vmem>>, %arg13: memref<8x1xf32, #tpu.memory_space<vmem>>, %arg14: memref<1x8x896xf32, #tpu.memory_space<vmem>>, %arg15: memref<8x1152xf32, #tpu.memory_space<vmem>>, %arg16: memref<8x896xf32, #tpu.memory_space<vmem>>, %arg17: memref<8x1152xf32, #tpu.memory_space<vmem>>, %arg18: memref<8x896xf32, #tpu.memory_space<vmem>>) attributes {dimension_semantics = [#tpu.dimension_semantics<parallel>, #tpu.dimension_semantics<arbitrary>], iteration_bounds = array<i64: 2, 4>, scalar_prefetch = 0 : i64, scratch_operands = 4 : i64, tpu.core_type = #tpu.core_type<tc>, window_params = [{pipeline_mode = #tpu.pipeline_mode<synchronous>, transform_indices = @transform_0, window_bounds = array<i64: 4, 1>}, {pipeline_mode = #tpu.pipeline_mode<synchronous>, transform_indices = @transform_1, window_bounds = array<i64: 4, 1>}, {pipeline_mode = #tpu.pipeline_mode<synchronous>, transform_indices = @transform_2, window_bounds = array<i64: 1, 1152>}, {transform_indices = @transform_3, window_bounds = array<i64: 1, 1, 4, 1152>}, {pipeline_mode = #tpu.pipeline_mode<synchronous>, transform_indices = @transform_4, window_bounds = array<i64: 9, 32, 4>}, {pipeline_mode = #tpu.pipeline_mode<synchronous>, transform_indices = @transform_5, window_bounds = array<i64: 9, 32, 8>}, {pipeline_mode = #tpu.pipeline_mode<synchronous>, transform_indices = @transform_6, window_bounds = array<i64: 32, 1>}, {pipeline_mode = #tpu.pipeline_mode<synchronous>, transform_indices = @transform_7, window_bounds = array<i64: 9, 32, 8>}, {pipeline_mode = #tpu.pipeline_mode<synchronous>, transform_indices = @transform_8, window_bounds = array<i64: 9, 32, 8>}, {pipeline_mode = #tpu.pipeline_mode<synchronous>, transform_indices = @transform_9, window_bounds = array<i64: 32, 1>}, {pipeline_mode = #tpu.pipeline_mode<synchronous>, transform_indices = @transform_10, window_bounds = array<i64: 9, 8, 8>}, {pipeline_mode = #tpu.pipeline_mode<synchronous>, transform_indices = @transform_11, window_bounds = array<i64: 8, 1>}, {transform_indices = @transform_12, window_bounds = array<i64: 1, 8, 896>}]} {
    %c0_i32 = arith.constant 0 : i32
    %0 = arith.cmpi eq, %arg1, %c0_i32 : i32
    %1 = arith.extui %0 : i1 to i32
    %c0_i32_0 = arith.constant 0 : i32
    %2 = arith.cmpi ne, %1, %c0_i32_0 : i32
    scf.if %2 {
      %cst_220 = arith.constant 0.000000e+00 : f32
      %280 = vector.broadcast %cst_220 : f32 to vector<8x1152xf32>
      %c0_221 = arith.constant 0 : index
      %c0_222 = arith.constant 0 : index
      %281 = vector.load %arg15[%c0_221, %c0_222] : memref<8x1152xf32, #tpu.memory_space<vmem>>, vector<8x1152xf32>
      tpu.vector_store %arg15[%c0_221, %c0_222], %280 {strides = array<i32>} : memref<8x1152xf32, #tpu.memory_space<vmem>>, vector<8x1152xf32>,
      %cst_223 = arith.constant 0.000000e+00 : f32
      %282 = vector.broadcast %cst_223 : f32 to vector<8x896xf32>
      %c0_224 = arith.constant 0 : index
      %c0_225 = arith.constant 0 : index
      %283 = vector.load %arg16[%c0_224, %c0_225] : memref<8x896xf32, #tpu.memory_space<vmem>>, vector<8x896xf32>
      tpu.vector_store %arg16[%c0_224, %c0_225], %282 {strides = array<i32>} : memref<8x896xf32, #tpu.memory_space<vmem>>, vector<8x896xf32>,
      %cst_226 = arith.constant 0.000000e+00 : f32
      %284 = vector.broadcast %cst_226 : f32 to vector<8x1152xf32>
      %c0_227 = arith.constant 0 : index
      %c0_228 = arith.constant 0 : index
      %285 = vector.load %arg17[%c0_227, %c0_228] : memref<8x1152xf32, #tpu.memory_space<vmem>>, vector<8x1152xf32>
      tpu.vector_store %arg17[%c0_227, %c0_228], %284 {strides = array<i32>} : memref<8x1152xf32, #tpu.memory_space<vmem>>, vector<8x1152xf32>,
      %cst_229 = arith.constant 0.000000e+00 : f32
      %286 = vector.broadcast %cst_229 : f32 to vector<8x896xf32>
      %c0_230 = arith.constant 0 : index
      %c0_231 = arith.constant 0 : index
      %287 = vector.load %arg18[%c0_230, %c0_231] : memref<8x896xf32, #tpu.memory_space<vmem>>, vector<8x896xf32>
      tpu.vector_store %arg18[%c0_230, %c0_231], %286 {strides = array<i32>} : memref<8x896xf32, #tpu.memory_space<vmem>>, vector<8x896xf32>,
    } else {
    }
    %c0 = arith.constant 0 : index
    %c0_1 = arith.constant 0 : index
    %c0_2 = arith.constant 0 : index
    %c0_3 = arith.constant 0 : index
    %3 = vector.load %arg5[%c0, %c0_1, %c0_2, %c0_3] : memref<1x1x4x1152xf32, #tpu.memory_space<vmem>>, vector<1x1x4x1152xf32>
    %4 = vector.shape_cast %3 : vector<1x1x4x1152xf32> to vector<4x1152xf32>
    %cst = arith.constant dense<0.000000e+00> : vector<1152xf32>
    %5 = vector.multi_reduction <add>, %4, %cst [0] : vector<4x1152xf32> to vector<1152xf32>
    %6 = vector.shape_cast %5 : vector<1152xf32> to vector<1x1152xf32>
    %cst_4 = arith.constant 4.000000e+00 : f32
    %7 = vector.broadcast %cst_4 : f32 to vector<1x1152xf32>
    %8 = arith.divf %6, %7 : vector<1x1152xf32>
    %9 = vector.broadcast %8 : vector<1x1152xf32> to vector<4x1152xf32>
    %10 = arith.subf %4, %9 : vector<4x1152xf32>
    %11 = arith.mulf %10, %10 : vector<4x1152xf32>
    %cst_5 = arith.constant dense<0.000000e+00> : vector<1152xf32>
    %12 = vector.multi_reduction <add>, %11, %cst_5 [0] : vector<4x1152xf32> to vector<1152xf32>
    %13 = vector.shape_cast %12 : vector<1152xf32> to vector<1x1152xf32>
    %cst_6 = arith.constant 4.000000e+00 : f32
    %14 = vector.broadcast %cst_6 : f32 to vector<1x1152xf32>
    %15 = arith.divf %13, %14 : vector<1x1152xf32>
    %16 = vector.broadcast %8 : vector<1x1152xf32> to vector<4x1152xf32>
    %17 = arith.subf %4, %16 : vector<4x1152xf32>
    %cst_7 = arith.constant 9.99999974E-6 : f32
    %18 = vector.broadcast %cst_7 : f32 to vector<1x1152xf32>
    %19 = arith.addf %15, %18 : vector<1x1152xf32>
    %20 = math.rsqrt %19 : vector<1x1152xf32>
    %21 = vector.broadcast %20 : vector<1x1152xf32> to vector<4x1152xf32>
    %22 = arith.mulf %17, %21 : vector<4x1152xf32>
    %c0_8 = arith.constant 0 : index
    %c0_9 = arith.constant 0 : index
    %23 = vector.load %arg2[%c0_8, %c0_9] : memref<4x1xf32, #tpu.memory_space<vmem>>, vector<4x1xf32>
    %24 = vector.broadcast %23 : vector<4x1xf32> to vector<4x1152xf32>
    %25 = arith.mulf %22, %24 : vector<4x1152xf32>
    %c0_10 = arith.constant 0 : index
    %c0_11 = arith.constant 0 : index
    %26 = vector.load %arg3[%c0_10, %c0_11] : memref<4x1xf32, #tpu.memory_space<vmem>>, vector<4x1xf32>
    %27 = vector.broadcast %26 : vector<4x1xf32> to vector<4x1152xf32>
    %28 = arith.addf %25, %27 : vector<4x1152xf32>
    %c0_12 = arith.constant 0 : index
    %c0_13 = arith.constant 0 : index
    %29 = vector.load %arg4[%c0_12, %c0_13] : memref<1x1152xf32, #tpu.memory_space<vmem>>, vector<1x1152xf32>
    %30 = vector.broadcast %29 : vector<1x1152xf32> to vector<4x1152xf32>
    %31 = arith.mulf %28, %30 : vector<4x1152xf32>
    %c0_14 = arith.constant 0 : index
    %c128 = arith.constant 128 : index
    %32 = vector.load %arg4[%c0_14, %c128] : memref<1x1152xf32, #tpu.memory_space<vmem>>, vector<1x896xf32>
    %c0_15 = arith.constant 0 : index
    %c0_16 = arith.constant 0 : index
    %c0_17 = arith.constant 0 : index
    %33 = vector.load %arg6[%c0_15, %c0_16, %c0_17] : memref<9x32x4xf32, #tpu.memory_space<vmem>>, vector<1x32x4xf32>
    %34 = vector.shape_cast %33 : vector<1x32x4xf32> to vector<32x4xf32>
    %35 = vector.extract_strided_slice %31 {offsets = [0, 95], sizes = [4, 896], strides = [1, 1]} : vector<4x1152xf32> to vector<4x896xf32>
    %cst_18 = arith.constant dense<0.000000e+00> : vector<32x896xf32>
    %36 = tpu.matmul %34, %35, %cst_18 {dimension_numbers = #tpu.dot_dimension_numbers<[1], [0], [0], [1], [0, 0, 1, 1], [], []>} : vector<32x4xf32>, vector<4x896xf32>, vector<32x896xf32> -> vector<32x896xf32>
    %c1 = arith.constant 1 : index
    %c0_19 = arith.constant 0 : index
    %c0_20 = arith.constant 0 : index
    %37 = vector.load %arg6[%c1, %c0_19, %c0_20] : memref<9x32x4xf32, #tpu.memory_space<vmem>>, vector<1x32x4xf32>
    %38 = vector.shape_cast %37 : vector<1x32x4xf32> to vector<32x4xf32>
    %39 = vector.extract_strided_slice %31 {offsets = [0, 96], sizes = [4, 896], strides = [1, 1]} : vector<4x1152xf32> to vector<4x896xf32>
    %cst_21 = arith.constant dense<0.000000e+00> : vector<32x896xf32>
    %40 = tpu.matmul %38, %39, %cst_21 {dimension_numbers = #tpu.dot_dimension_numbers<[1], [0], [0], [1], [0, 0, 1, 1], [], []>} : vector<32x4xf32>, vector<4x896xf32>, vector<32x896xf32> -> vector<32x896xf32>
    %41 = arith.addf %36, %40 : vector<32x896xf32>
    %c2 = arith.constant 2 : index
    %c0_22 = arith.constant 0 : index
    %c0_23 = arith.constant 0 : index
    %42 = vector.load %arg6[%c2, %c0_22, %c0_23] : memref<9x32x4xf32, #tpu.memory_space<vmem>>, vector<1x32x4xf32>
    %43 = vector.shape_cast %42 : vector<1x32x4xf32> to vector<32x4xf32>
    %44 = vector.extract_strided_slice %31 {offsets = [0, 97], sizes = [4, 896], strides = [1, 1]} : vector<4x1152xf32> to vector<4x896xf32>
    %cst_24 = arith.constant dense<0.000000e+00> : vector<32x896xf32>
    %45 = tpu.matmul %43, %44, %cst_24 {dimension_numbers = #tpu.dot_dimension_numbers<[1], [0], [0], [1], [0, 0, 1, 1], [], []>} : vector<32x4xf32>, vector<4x896xf32>, vector<32x896xf32> -> vector<32x896xf32>
    %46 = arith.addf %41, %45 : vector<32x896xf32>
    %c3 = arith.constant 3 : index
    %c0_25 = arith.constant 0 : index
    %c0_26 = arith.constant 0 : index
    %47 = vector.load %arg6[%c3, %c0_25, %c0_26] : memref<9x32x4xf32, #tpu.memory_space<vmem>>, vector<1x32x4xf32>
    %48 = vector.shape_cast %47 : vector<1x32x4xf32> to vector<32x4xf32>
    %49 = vector.extract_strided_slice %31 {offsets = [0, 127], sizes = [4, 896], strides = [1, 1]} : vector<4x1152xf32> to vector<4x896xf32>
    %cst_27 = arith.constant dense<0.000000e+00> : vector<32x896xf32>
    %50 = tpu.matmul %48, %49, %cst_27 {dimension_numbers = #tpu.dot_dimension_numbers<[1], [0], [0], [1], [0, 0, 1, 1], [], []>} : vector<32x4xf32>, vector<4x896xf32>, vector<32x896xf32> -> vector<32x896xf32>
    %51 = arith.addf %46, %50 : vector<32x896xf32>
    %c4 = arith.constant 4 : index
    %c0_28 = arith.constant 0 : index
    %c0_29 = arith.constant 0 : index
    %52 = vector.load %arg6[%c4, %c0_28, %c0_29] : memref<9x32x4xf32, #tpu.memory_space<vmem>>, vector<1x32x4xf32>
    %53 = vector.shape_cast %52 : vector<1x32x4xf32> to vector<32x4xf32>
    %54 = vector.extract_strided_slice %31 {offsets = [0, 128], sizes = [4, 896], strides = [1, 1]} : vector<4x1152xf32> to vector<4x896xf32>
    %cst_30 = arith.constant dense<0.000000e+00> : vector<32x896xf32>
    %55 = tpu.matmul %53, %54, %cst_30 {dimension_numbers = #tpu.dot_dimension_numbers<[1], [0], [0], [1], [0, 0, 1, 1], [], []>} : vector<32x4xf32>, vector<4x896xf32>, vector<32x896xf32> -> vector<32x896xf32>
    %56 = arith.addf %51, %55 : vector<32x896xf32>
    %c5 = arith.constant 5 : index
    %c0_31 = arith.constant 0 : index
    %c0_32 = arith.constant 0 : index
    %57 = vector.load %arg6[%c5, %c0_31, %c0_32] : memref<9x32x4xf32, #tpu.memory_space<vmem>>, vector<1x32x4xf32>
    %58 = vector.shape_cast %57 : vector<1x32x4xf32> to vector<32x4xf32>
    %59 = vector.extract_strided_slice %31 {offsets = [0, 129], sizes = [4, 896], strides = [1, 1]} : vector<4x1152xf32> to vector<4x896xf32>
    %cst_33 = arith.constant dense<0.000000e+00> : vector<32x896xf32>
    %60 = tpu.matmul %58, %59, %cst_33 {dimension_numbers = #tpu.dot_dimension_numbers<[1], [0], [0], [1], [0, 0, 1, 1], [], []>} : vector<32x4xf32>, vector<4x896xf32>, vector<32x896xf32> -> vector<32x896xf32>
    %61 = arith.addf %56, %60 : vector<32x896xf32>
    %c6 = arith.constant 6 : index
    %c0_34 = arith.constant 0 : index
    %c0_35 = arith.constant 0 : index
    %62 = vector.load %arg6[%c6, %c0_34, %c0_35] : memref<9x32x4xf32, #tpu.memory_space<vmem>>, vector<1x32x4xf32>
    %63 = vector.shape_cast %62 : vector<1x32x4xf32> to vector<32x4xf32>
    %64 = vector.extract_strided_slice %31 {offsets = [0, 159], sizes = [4, 896], strides = [1, 1]} : vector<4x1152xf32> to vector<4x896xf32>
    %cst_36 = arith.constant dense<0.000000e+00> : vector<32x896xf32>
    %65 = tpu.matmul %63, %64, %cst_36 {dimension_numbers = #tpu.dot_dimension_numbers<[1], [0], [0], [1], [0, 0, 1, 1], [], []>} : vector<32x4xf32>, vector<4x896xf32>, vector<32x896xf32> -> vector<32x896xf32>
    %66 = arith.addf %61, %65 : vector<32x896xf32>
    %c7 = arith.constant 7 : index
    %c0_37 = arith.constant 0 : index
    %c0_38 = arith.constant 0 : index
    %67 = vector.load %arg6[%c7, %c0_37, %c0_38] : memref<9x32x4xf32, #tpu.memory_space<vmem>>, vector<1x32x4xf32>
    %68 = vector.shape_cast %67 : vector<1x32x4xf32> to vector<32x4xf32>
    %69 = vector.extract_strided_slice %31 {offsets = [0, 160], sizes = [4, 896], strides = [1, 1]} : vector<4x1152xf32> to vector<4x896xf32>
    %cst_39 = arith.constant dense<0.000000e+00> : vector<32x896xf32>
    %70 = tpu.matmul %68, %69, %cst_39 {dimension_numbers = #tpu.dot_dimension_numbers<[1], [0], [0], [1], [0, 0, 1, 1], [], []>} : vector<32x4xf32>, vector<4x896xf32>, vector<32x896xf32> -> vector<32x896xf32>
    %71 = arith.addf %66, %70 : vector<32x896xf32>
    %c8 = arith.constant 8 : index
    %c0_40 = arith.constant 0 : index
    %c0_41 = arith.constant 0 : index
    %72 = vector.load %arg6[%c8, %c0_40, %c0_41] : memref<9x32x4xf32, #tpu.memory_space<vmem>>, vector<1x32x4xf32>
    %73 = vector.shape_cast %72 : vector<1x32x4xf32> to vector<32x4xf32>
    %74 = vector.extract_strided_slice %31 {offsets = [0, 161], sizes = [4, 896], strides = [1, 1]} : vector<4x1152xf32> to vector<4x896xf32>
    %cst_42 = arith.constant dense<0.000000e+00> : vector<32x896xf32>
    %75 = tpu.matmul %73, %74, %cst_42 {dimension_numbers = #tpu.dot_dimension_numbers<[1], [0], [0], [1], [0, 0, 1, 1], [], []>} : vector<32x4xf32>, vector<4x896xf32>, vector<32x896xf32> -> vector<32x896xf32>
    %76 = arith.addf %71, %75 : vector<32x896xf32>
    %c0_43 = arith.constant 0 : index
    %c0_44 = arith.constant 0 : index
    %c0_45 = arith.constant 0 : index
    %77 = vector.load %arg7[%c0_43, %c0_44, %c0_45] : memref<9x32x8xf32, #tpu.memory_space<vmem>>, vector<1x32x8xf32>
    %78 = vector.shape_cast %77 : vector<1x32x8xf32> to vector<32x8xf32>
    %c0_46 = arith.constant 0 : index
    %c95 = arith.constant 95 : index
    %79 = vector.load %arg15[%c0_46, %c95] : memref<8x1152xf32, #tpu.memory_space<vmem>>, vector<8x896xf32>
    %cst_47 = arith.constant dense<0.000000e+00> : vector<32x896xf32>
    %80 = tpu.matmul %78, %79, %cst_47 {dimension_numbers = #tpu.dot_dimension_numbers<[1], [0], [0], [1], [0, 0, 1, 1], [], []>} : vector<32x8xf32>, vector<8x896xf32>, vector<32x896xf32> -> vector<32x896xf32>
    %c1_48 = arith.constant 1 : index
    %c0_49 = arith.constant 0 : index
    %c0_50 = arith.constant 0 : index
    %81 = vector.load %arg7[%c1_48, %c0_49, %c0_50] : memref<9x32x8xf32, #tpu.memory_space<vmem>>, vector<1x32x8xf32>
    %82 = vector.shape_cast %81 : vector<1x32x8xf32> to vector<32x8xf32>
    %c0_51 = arith.constant 0 : index
    %c96 = arith.constant 96 : index
    %83 = vector.load %arg15[%c0_51, %c96] : memref<8x1152xf32, #tpu.memory_space<vmem>>, vector<8x896xf32>
    %cst_52 = arith.constant dense<0.000000e+00> : vector<32x896xf32>
    %84 = tpu.matmul %82, %83, %cst_52 {dimension_numbers = #tpu.dot_dimension_numbers<[1], [0], [0], [1], [0, 0, 1, 1], [], []>} : vector<32x8xf32>, vector<8x896xf32>, vector<32x896xf32> -> vector<32x896xf32>
    %85 = arith.addf %80, %84 : vector<32x896xf32>
    %c2_53 = arith.constant 2 : index
    %c0_54 = arith.constant 0 : index
    %c0_55 = arith.constant 0 : index
    %86 = vector.load %arg7[%c2_53, %c0_54, %c0_55] : memref<9x32x8xf32, #tpu.memory_space<vmem>>, vector<1x32x8xf32>
    %87 = vector.shape_cast %86 : vector<1x32x8xf32> to vector<32x8xf32>
    %c0_56 = arith.constant 0 : index
    %c97 = arith.constant 97 : index
    %88 = vector.load %arg15[%c0_56, %c97] : memref<8x1152xf32, #tpu.memory_space<vmem>>, vector<8x896xf32>
    %cst_57 = arith.constant dense<0.000000e+00> : vector<32x896xf32>
    %89 = tpu.matmul %87, %88, %cst_57 {dimension_numbers = #tpu.dot_dimension_numbers<[1], [0], [0], [1], [0, 0, 1, 1], [], []>} : vector<32x8xf32>, vector<8x896xf32>, vector<32x896xf32> -> vector<32x896xf32>
    %90 = arith.addf %85, %89 : vector<32x896xf32>
    %c3_58 = arith.constant 3 : index
    %c0_59 = arith.constant 0 : index
    %c0_60 = arith.constant 0 : index
    %91 = vector.load %arg7[%c3_58, %c0_59, %c0_60] : memref<9x32x8xf32, #tpu.memory_space<vmem>>, vector<1x32x8xf32>
    %92 = vector.shape_cast %91 : vector<1x32x8xf32> to vector<32x8xf32>
    %c0_61 = arith.constant 0 : index
    %c127 = arith.constant 127 : index
    %93 = vector.load %arg15[%c0_61, %c127] : memref<8x1152xf32, #tpu.memory_space<vmem>>, vector<8x896xf32>
    %cst_62 = arith.constant dense<0.000000e+00> : vector<32x896xf32>
    %94 = tpu.matmul %92, %93, %cst_62 {dimension_numbers = #tpu.dot_dimension_numbers<[1], [0], [0], [1], [0, 0, 1, 1], [], []>} : vector<32x8xf32>, vector<8x896xf32>, vector<32x896xf32> -> vector<32x896xf32>
    %95 = arith.addf %90, %94 : vector<32x896xf32>
    %c4_63 = arith.constant 4 : index
    %c0_64 = arith.constant 0 : index
    %c0_65 = arith.constant 0 : index
    %96 = vector.load %arg7[%c4_63, %c0_64, %c0_65] : memref<9x32x8xf32, #tpu.memory_space<vmem>>, vector<1x32x8xf32>
    %97 = vector.shape_cast %96 : vector<1x32x8xf32> to vector<32x8xf32>
    %c0_66 = arith.constant 0 : index
    %c128_67 = arith.constant 128 : index
    %98 = vector.load %arg15[%c0_66, %c128_67] : memref<8x1152xf32, #tpu.memory_space<vmem>>, vector<8x896xf32>
    %cst_68 = arith.constant dense<0.000000e+00> : vector<32x896xf32>
    %99 = tpu.matmul %97, %98, %cst_68 {dimension_numbers = #tpu.dot_dimension_numbers<[1], [0], [0], [1], [0, 0, 1, 1], [], []>} : vector<32x8xf32>, vector<8x896xf32>, vector<32x896xf32> -> vector<32x896xf32>
    %100 = arith.addf %95, %99 : vector<32x896xf32>
    %c5_69 = arith.constant 5 : index
    %c0_70 = arith.constant 0 : index
    %c0_71 = arith.constant 0 : index
    %101 = vector.load %arg7[%c5_69, %c0_70, %c0_71] : memref<9x32x8xf32, #tpu.memory_space<vmem>>, vector<1x32x8xf32>
    %102 = vector.shape_cast %101 : vector<1x32x8xf32> to vector<32x8xf32>
    %c0_72 = arith.constant 0 : index
    %c129 = arith.constant 129 : index
    %103 = vector.load %arg15[%c0_72, %c129] : memref<8x1152xf32, #tpu.memory_space<vmem>>, vector<8x896xf32>
    %cst_73 = arith.constant dense<0.000000e+00> : vector<32x896xf32>
    %104 = tpu.matmul %102, %103, %cst_73 {dimension_numbers = #tpu.dot_dimension_numbers<[1], [0], [0], [1], [0, 0, 1, 1], [], []>} : vector<32x8xf32>, vector<8x896xf32>, vector<32x896xf32> -> vector<32x896xf32>
    %105 = arith.addf %100, %104 : vector<32x896xf32>
    %c6_74 = arith.constant 6 : index
    %c0_75 = arith.constant 0 : index
    %c0_76 = arith.constant 0 : index
    %106 = vector.load %arg7[%c6_74, %c0_75, %c0_76] : memref<9x32x8xf32, #tpu.memory_space<vmem>>, vector<1x32x8xf32>
    %107 = vector.shape_cast %106 : vector<1x32x8xf32> to vector<32x8xf32>
    %c0_77 = arith.constant 0 : index
    %c159 = arith.constant 159 : index
    %108 = vector.load %arg15[%c0_77, %c159] : memref<8x1152xf32, #tpu.memory_space<vmem>>, vector<8x896xf32>
    %cst_78 = arith.constant dense<0.000000e+00> : vector<32x896xf32>
    %109 = tpu.matmul %107, %108, %cst_78 {dimension_numbers = #tpu.dot_dimension_numbers<[1], [0], [0], [1], [0, 0, 1, 1], [], []>} : vector<32x8xf32>, vector<8x896xf32>, vector<32x896xf32> -> vector<32x896xf32>
    %110 = arith.addf %105, %109 : vector<32x896xf32>
    %c7_79 = arith.constant 7 : index
    %c0_80 = arith.constant 0 : index
    %c0_81 = arith.constant 0 : index
    %111 = vector.load %arg7[%c7_79, %c0_80, %c0_81] : memref<9x32x8xf32, #tpu.memory_space<vmem>>, vector<1x32x8xf32>
    %112 = vector.shape_cast %111 : vector<1x32x8xf32> to vector<32x8xf32>
    %c0_82 = arith.constant 0 : index
    %c160 = arith.constant 160 : index
    %113 = vector.load %arg15[%c0_82, %c160] : memref<8x1152xf32, #tpu.memory_space<vmem>>, vector<8x896xf32>
    %cst_83 = arith.constant dense<0.000000e+00> : vector<32x896xf32>
    %114 = tpu.matmul %112, %113, %cst_83 {dimension_numbers = #tpu.dot_dimension_numbers<[1], [0], [0], [1], [0, 0, 1, 1], [], []>} : vector<32x8xf32>, vector<8x896xf32>, vector<32x896xf32> -> vector<32x896xf32>
    %115 = arith.addf %110, %114 : vector<32x896xf32>
    %c8_84 = arith.constant 8 : index
    %c0_85 = arith.constant 0 : index
    %c0_86 = arith.constant 0 : index
    %116 = vector.load %arg7[%c8_84, %c0_85, %c0_86] : memref<9x32x8xf32, #tpu.memory_space<vmem>>, vector<1x32x8xf32>
    %117 = vector.shape_cast %116 : vector<1x32x8xf32> to vector<32x8xf32>
    %c0_87 = arith.constant 0 : index
    %c161 = arith.constant 161 : index
    %118 = vector.load %arg15[%c0_87, %c161] : memref<8x1152xf32, #tpu.memory_space<vmem>>, vector<8x896xf32>
    %cst_88 = arith.constant dense<0.000000e+00> : vector<32x896xf32>
    %119 = tpu.matmul %117, %118, %cst_88 {dimension_numbers = #tpu.dot_dimension_numbers<[1], [0], [0], [1], [0, 0, 1, 1], [], []>} : vector<32x8xf32>, vector<8x896xf32>, vector<32x896xf32> -> vector<32x896xf32>
    %120 = arith.addf %115, %119 : vector<32x896xf32>
    %121 = arith.addf %76, %120 : vector<32x896xf32>
    %c0_89 = arith.constant 0 : index
    %c0_90 = arith.constant 0 : index
    %122 = vector.load %arg8[%c0_89, %c0_90] : memref<32x1xf32, #tpu.memory_space<vmem>>, vector<32x1xf32>
    %123 = vector.broadcast %122 : vector<32x1xf32> to vector<32x896xf32>
    %124 = arith.addf %121, %123 : vector<32x896xf32>
    %125 = vector.extract_strided_slice %124 {offsets = [0, 0], sizes = [8, 896], strides = [1, 1]} : vector<32x896xf32> to vector<8x896xf32>
    %126 = arith.negf %125 : vector<8x896xf32>
    %127 = math.exp %126 : vector<8x896xf32>
    %cst_91 = arith.constant 1.000000e+00 : f32
    %128 = vector.broadcast %cst_91 : f32 to vector<8x896xf32>
    %129 = arith.addf %128, %127 : vector<8x896xf32>
    %130 = arith.divf %128, %129 : vector<8x896xf32>
    %131 = vector.extract_strided_slice %124 {offsets = [8, 0], sizes = [8, 896], strides = [1, 1]} : vector<32x896xf32> to vector<8x896xf32>
    %132 = arith.negf %131 : vector<8x896xf32>
    %133 = math.exp %132 : vector<8x896xf32>
    %cst_92 = arith.constant 1.000000e+00 : f32
    %134 = vector.broadcast %cst_92 : f32 to vector<8x896xf32>
    %135 = arith.addf %134, %133 : vector<8x896xf32>
    %136 = arith.divf %134, %135 : vector<8x896xf32>
    %137 = vector.extract_strided_slice %124 {offsets = [16, 0], sizes = [8, 896], strides = [1, 1]} : vector<32x896xf32> to vector<8x896xf32>
    %138 = arith.negf %137 : vector<8x896xf32>
    %139 = math.exp %138 : vector<8x896xf32>
    %cst_93 = arith.constant 1.000000e+00 : f32
    %140 = vector.broadcast %cst_93 : f32 to vector<8x896xf32>
    %141 = arith.addf %140, %139 : vector<8x896xf32>
    %142 = arith.divf %140, %141 : vector<8x896xf32>
    %143 = vector.extract_strided_slice %124 {offsets = [24, 0], sizes = [8, 896], strides = [1, 1]} : vector<32x896xf32> to vector<8x896xf32>
    %144 = math.tanh %143 : vector<8x896xf32>
    %c0_94 = arith.constant 0 : index
    %c0_95 = arith.constant 0 : index
    %145 = vector.load %arg16[%c0_94, %c0_95] : memref<8x896xf32, #tpu.memory_space<vmem>>, vector<8x896xf32>
    %146 = arith.mulf %136, %145 : vector<8x896xf32>
    %147 = arith.mulf %130, %144 : vector<8x896xf32>
    %148 = arith.addf %146, %147 : vector<8x896xf32>
    %149 = math.tanh %148 : vector<8x896xf32>
    %150 = arith.mulf %142, %149 : vector<8x896xf32>
    %151 = vector.broadcast %32 : vector<1x896xf32> to vector<8x896xf32>
    %152 = arith.mulf %150, %151 : vector<8x896xf32>
    %c0_96 = arith.constant 0 : index
    %c0_97 = arith.constant 0 : index
    %153 = vector.load %arg16[%c0_96, %c0_97] : memref<8x896xf32, #tpu.memory_space<vmem>>, vector<8x896xf32>
    tpu.vector_store %arg16[%c0_96, %c0_97], %148 {strides = array<i32>} : memref<8x896xf32, #tpu.memory_space<vmem>>, vector<8x896xf32>,
    %c0_98 = arith.constant 0 : index
    %c128_99 = arith.constant 128 : index
    %154 = vector.load %arg15[%c0_98, %c128_99] : memref<8x1152xf32, #tpu.memory_space<vmem>>, vector<8x896xf32>
    tpu.vector_store %arg15[%c0_98, %c128_99], %152 {strides = array<i32>} : memref<8x1152xf32, #tpu.memory_space<vmem>>, vector<8x896xf32>,
    %c0_100 = arith.constant 0 : index
    %c0_101 = arith.constant 0 : index
    %c0_102 = arith.constant 0 : index
    %155 = vector.load %arg9[%c0_100, %c0_101, %c0_102] : memref<9x32x8xf32, #tpu.memory_space<vmem>>, vector<1x32x8xf32>
    %156 = vector.shape_cast %155 : vector<1x32x8xf32> to vector<32x8xf32>
    %c0_103 = arith.constant 0 : index
    %c95_104 = arith.constant 95 : index
    %157 = vector.load %arg15[%c0_103, %c95_104] : memref<8x1152xf32, #tpu.memory_space<vmem>>, vector<8x896xf32>
    %cst_105 = arith.constant dense<0.000000e+00> : vector<32x896xf32>
    %158 = tpu.matmul %156, %157, %cst_105 {dimension_numbers = #tpu.dot_dimension_numbers<[1], [0], [0], [1], [0, 0, 1, 1], [], []>} : vector<32x8xf32>, vector<8x896xf32>, vector<32x896xf32> -> vector<32x896xf32>
    %c1_106 = arith.constant 1 : index
    %c0_107 = arith.constant 0 : index
    %c0_108 = arith.constant 0 : index
    %159 = vector.load %arg9[%c1_106, %c0_107, %c0_108] : memref<9x32x8xf32, #tpu.memory_space<vmem>>, vector<1x32x8xf32>
    %160 = vector.shape_cast %159 : vector<1x32x8xf32> to vector<32x8xf32>
    %c0_109 = arith.constant 0 : index
    %c96_110 = arith.constant 96 : index
    %161 = vector.load %arg15[%c0_109, %c96_110] : memref<8x1152xf32, #tpu.memory_space<vmem>>, vector<8x896xf32>
    %cst_111 = arith.constant dense<0.000000e+00> : vector<32x896xf32>
    %162 = tpu.matmul %160, %161, %cst_111 {dimension_numbers = #tpu.dot_dimension_numbers<[1], [0], [0], [1], [0, 0, 1, 1], [], []>} : vector<32x8xf32>, vector<8x896xf32>, vector<32x896xf32> -> vector<32x896xf32>
    %163 = arith.addf %158, %162 : vector<32x896xf32>
    %c2_112 = arith.constant 2 : index
    %c0_113 = arith.constant 0 : index
    %c0_114 = arith.constant 0 : index
    %164 = vector.load %arg9[%c2_112, %c0_113, %c0_114] : memref<9x32x8xf32, #tpu.memory_space<vmem>>, vector<1x32x8xf32>
    %165 = vector.shape_cast %164 : vector<1x32x8xf32> to vector<32x8xf32>
    %c0_115 = arith.constant 0 : index
    %c97_116 = arith.constant 97 : index
    %166 = vector.load %arg15[%c0_115, %c97_116] : memref<8x1152xf32, #tpu.memory_space<vmem>>, vector<8x896xf32>
    %cst_117 = arith.constant dense<0.000000e+00> : vector<32x896xf32>
    %167 = tpu.matmul %165, %166, %cst_117 {dimension_numbers = #tpu.dot_dimension_numbers<[1], [0], [0], [1], [0, 0, 1, 1], [], []>} : vector<32x8xf32>, vector<8x896xf32>, vector<32x896xf32> -> vector<32x896xf32>
    %168 = arith.addf %163, %167 : vector<32x896xf32>
    %c3_118 = arith.constant 3 : index
    %c0_119 = arith.constant 0 : index
    %c0_120 = arith.constant 0 : index
    %169 = vector.load %arg9[%c3_118, %c0_119, %c0_120] : memref<9x32x8xf32, #tpu.memory_space<vmem>>, vector<1x32x8xf32>
    %170 = vector.shape_cast %169 : vector<1x32x8xf32> to vector<32x8xf32>
    %c0_121 = arith.constant 0 : index
    %c127_122 = arith.constant 127 : index
    %171 = vector.load %arg15[%c0_121, %c127_122] : memref<8x1152xf32, #tpu.memory_space<vmem>>, vector<8x896xf32>
    %cst_123 = arith.constant dense<0.000000e+00> : vector<32x896xf32>
    %172 = tpu.matmul %170, %171, %cst_123 {dimension_numbers = #tpu.dot_dimension_numbers<[1], [0], [0], [1], [0, 0, 1, 1], [], []>} : vector<32x8xf32>, vector<8x896xf32>, vector<32x896xf32> -> vector<32x896xf32>
    %173 = arith.addf %168, %172 : vector<32x896xf32>
    %c4_124 = arith.constant 4 : index
    %c0_125 = arith.constant 0 : index
    %c0_126 = arith.constant 0 : index
    %174 = vector.load %arg9[%c4_124, %c0_125, %c0_126] : memref<9x32x8xf32, #tpu.memory_space<vmem>>, vector<1x32x8xf32>
    %175 = vector.shape_cast %174 : vector<1x32x8xf32> to vector<32x8xf32>
    %c0_127 = arith.constant 0 : index
    %c128_128 = arith.constant 128 : index
    %176 = vector.load %arg15[%c0_127, %c128_128] : memref<8x1152xf32, #tpu.memory_space<vmem>>, vector<8x896xf32>
    %cst_129 = arith.constant dense<0.000000e+00> : vector<32x896xf32>
    %177 = tpu.matmul %175, %176, %cst_129 {dimension_numbers = #tpu.dot_dimension_numbers<[1], [0], [0], [1], [0, 0, 1, 1], [], []>} : vector<32x8xf32>, vector<8x896xf32>, vector<32x896xf32> -> vector<32x896xf32>
    %178 = arith.addf %173, %177 : vector<32x896xf32>
    %c5_130 = arith.constant 5 : index
    %c0_131 = arith.constant 0 : index
    %c0_132 = arith.constant 0 : index
    %179 = vector.load %arg9[%c5_130, %c0_131, %c0_132] : memref<9x32x8xf32, #tpu.memory_space<vmem>>, vector<1x32x8xf32>
    %180 = vector.shape_cast %179 : vector<1x32x8xf32> to vector<32x8xf32>
    %c0_133 = arith.constant 0 : index
    %c129_134 = arith.constant 129 : index
    %181 = vector.load %arg15[%c0_133, %c129_134] : memref<8x1152xf32, #tpu.memory_space<vmem>>, vector<8x896xf32>
    %cst_135 = arith.constant dense<0.000000e+00> : vector<32x896xf32>
    %182 = tpu.matmul %180, %181, %cst_135 {dimension_numbers = #tpu.dot_dimension_numbers<[1], [0], [0], [1], [0, 0, 1, 1], [], []>} : vector<32x8xf32>, vector<8x896xf32>, vector<32x896xf32> -> vector<32x896xf32>
    %183 = arith.addf %178, %182 : vector<32x896xf32>
    %c6_136 = arith.constant 6 : index
    %c0_137 = arith.constant 0 : index
    %c0_138 = arith.constant 0 : index
    %184 = vector.load %arg9[%c6_136, %c0_137, %c0_138] : memref<9x32x8xf32, #tpu.memory_space<vmem>>, vector<1x32x8xf32>
    %185 = vector.shape_cast %184 : vector<1x32x8xf32> to vector<32x8xf32>
    %c0_139 = arith.constant 0 : index
    %c159_140 = arith.constant 159 : index
    %186 = vector.load %arg15[%c0_139, %c159_140] : memref<8x1152xf32, #tpu.memory_space<vmem>>, vector<8x896xf32>
    %cst_141 = arith.constant dense<0.000000e+00> : vector<32x896xf32>
    %187 = tpu.matmul %185, %186, %cst_141 {dimension_numbers = #tpu.dot_dimension_numbers<[1], [0], [0], [1], [0, 0, 1, 1], [], []>} : vector<32x8xf32>, vector<8x896xf32>, vector<32x896xf32> -> vector<32x896xf32>
    %188 = arith.addf %183, %187 : vector<32x896xf32>
    %c7_142 = arith.constant 7 : index
    %c0_143 = arith.constant 0 : index
    %c0_144 = arith.constant 0 : index
    %189 = vector.load %arg9[%c7_142, %c0_143, %c0_144] : memref<9x32x8xf32, #tpu.memory_space<vmem>>, vector<1x32x8xf32>
    %190 = vector.shape_cast %189 : vector<1x32x8xf32> to vector<32x8xf32>
    %c0_145 = arith.constant 0 : index
    %c160_146 = arith.constant 160 : index
    %191 = vector.load %arg15[%c0_145, %c160_146] : memref<8x1152xf32, #tpu.memory_space<vmem>>, vector<8x896xf32>
    %cst_147 = arith.constant dense<0.000000e+00> : vector<32x896xf32>
    %192 = tpu.matmul %190, %191, %cst_147 {dimension_numbers = #tpu.dot_dimension_numbers<[1], [0], [0], [1], [0, 0, 1, 1], [], []>} : vector<32x8xf32>, vector<8x896xf32>, vector<32x896xf32> -> vector<32x896xf32>
    %193 = arith.addf %188, %192 : vector<32x896xf32>
    %c8_148 = arith.constant 8 : index
    %c0_149 = arith.constant 0 : index
    %c0_150 = arith.constant 0 : index
    %194 = vector.load %arg9[%c8_148, %c0_149, %c0_150] : memref<9x32x8xf32, #tpu.memory_space<vmem>>, vector<1x32x8xf32>
    %195 = vector.shape_cast %194 : vector<1x32x8xf32> to vector<32x8xf32>
    %c0_151 = arith.constant 0 : index
    %c161_152 = arith.constant 161 : index
    %196 = vector.load %arg15[%c0_151, %c161_152] : memref<8x1152xf32, #tpu.memory_space<vmem>>, vector<8x896xf32>
    %cst_153 = arith.constant dense<0.000000e+00> : vector<32x896xf32>
    %197 = tpu.matmul %195, %196, %cst_153 {dimension_numbers = #tpu.dot_dimension_numbers<[1], [0], [0], [1], [0, 0, 1, 1], [], []>} : vector<32x8xf32>, vector<8x896xf32>, vector<32x896xf32> -> vector<32x896xf32>
    %198 = arith.addf %193, %197 : vector<32x896xf32>
    %c0_154 = arith.constant 0 : index
    %c0_155 = arith.constant 0 : index
    %c0_156 = arith.constant 0 : index
    %199 = vector.load %arg10[%c0_154, %c0_155, %c0_156] : memref<9x32x8xf32, #tpu.memory_space<vmem>>, vector<1x32x8xf32>
    %200 = vector.shape_cast %199 : vector<1x32x8xf32> to vector<32x8xf32>
    %c0_157 = arith.constant 0 : index
    %c95_158 = arith.constant 95 : index
    %201 = vector.load %arg17[%c0_157, %c95_158] : memref<8x1152xf32, #tpu.memory_space<vmem>>, vector<8x896xf32>
    %cst_159 = arith.constant dense<0.000000e+00> : vector<32x896xf32>
    %202 = tpu.matmul %200, %201, %cst_159 {dimension_numbers = #tpu.dot_dimension_numbers<[1], [0], [0], [1], [0, 0, 1, 1], [], []>} : vector<32x8xf32>, vector<8x896xf32>, vector<32x896xf32> -> vector<32x896xf32>
    %c1_160 = arith.constant 1 : index
    %c0_161 = arith.constant 0 : index
    %c0_162 = arith.constant 0 : index
    %203 = vector.load %arg10[%c1_160, %c0_161, %c0_162] : memref<9x32x8xf32, #tpu.memory_space<vmem>>, vector<1x32x8xf32>
    %204 = vector.shape_cast %203 : vector<1x32x8xf32> to vector<32x8xf32>
    %c0_163 = arith.constant 0 : index
    %c96_164 = arith.constant 96 : index
    %205 = vector.load %arg17[%c0_163, %c96_164] : memref<8x1152xf32, #tpu.memory_space<vmem>>, vector<8x896xf32>
    %cst_165 = arith.constant dense<0.000000e+00> : vector<32x896xf32>
    %206 = tpu.matmul %204, %205, %cst_165 {dimension_numbers = #tpu.dot_dimension_numbers<[1], [0], [0], [1], [0, 0, 1, 1], [], []>} : vector<32x8xf32>, vector<8x896xf32>, vector<32x896xf32> -> vector<32x896xf32>
    %207 = arith.addf %202, %206 : vector<32x896xf32>
    %c2_166 = arith.constant 2 : index
    %c0_167 = arith.constant 0 : index
    %c0_168 = arith.constant 0 : index
    %208 = vector.load %arg10[%c2_166, %c0_167, %c0_168] : memref<9x32x8xf32, #tpu.memory_space<vmem>>, vector<1x32x8xf32>
    %209 = vector.shape_cast %208 : vector<1x32x8xf32> to vector<32x8xf32>
    %c0_169 = arith.constant 0 : index
    %c97_170 = arith.constant 97 : index
    %210 = vector.load %arg17[%c0_169, %c97_170] : memref<8x1152xf32, #tpu.memory_space<vmem>>, vector<8x896xf32>
    %cst_171 = arith.constant dense<0.000000e+00> : vector<32x896xf32>
    %211 = tpu.matmul %209, %210, %cst_171 {dimension_numbers = #tpu.dot_dimension_numbers<[1], [0], [0], [1], [0, 0, 1, 1], [], []>} : vector<32x8xf32>, vector<8x896xf32>, vector<32x896xf32> -> vector<32x896xf32>
    %212 = arith.addf %207, %211 : vector<32x896xf32>
    %c3_172 = arith.constant 3 : index
    %c0_173 = arith.constant 0 : index
    %c0_174 = arith.constant 0 : index
    %213 = vector.load %arg10[%c3_172, %c0_173, %c0_174] : memref<9x32x8xf32, #tpu.memory_space<vmem>>, vector<1x32x8xf32>
    %214 = vector.shape_cast %213 : vector<1x32x8xf32> to vector<32x8xf32>
    %c0_175 = arith.constant 0 : index
    %c127_176 = arith.constant 127 : index
    %215 = vector.load %arg17[%c0_175, %c127_176] : memref<8x1152xf32, #tpu.memory_space<vmem>>, vector<8x896xf32>
    %cst_177 = arith.constant dense<0.000000e+00> : vector<32x896xf32>
    %216 = tpu.matmul %214, %215, %cst_177 {dimension_numbers = #tpu.dot_dimension_numbers<[1], [0], [0], [1], [0, 0, 1, 1], [], []>} : vector<32x8xf32>, vector<8x896xf32>, vector<32x896xf32> -> vector<32x896xf32>
    %217 = arith.addf %212, %216 : vector<32x896xf32>
    %c4_178 = arith.constant 4 : index
    %c0_179 = arith.constant 0 : index
    %c0_180 = arith.constant 0 : index
    %218 = vector.load %arg10[%c4_178, %c0_179, %c0_180] : memref<9x32x8xf32, #tpu.memory_space<vmem>>, vector<1x32x8xf32>
    %219 = vector.shape_cast %218 : vector<1x32x8xf32> to vector<32x8xf32>
    %c0_181 = arith.constant 0 : index
    %c128_182 = arith.constant 128 : index
    %220 = vector.load %arg17[%c0_181, %c128_182] : memref<8x1152xf32, #tpu.memory_space<vmem>>, vector<8x896xf32>
    %cst_183 = arith.constant dense<0.000000e+00> : vector<32x896xf32>
    %221 = tpu.matmul %219, %220, %cst_183 {dimension_numbers = #tpu.dot_dimension_numbers<[1], [0], [0], [1], [0, 0, 1, 1], [], []>} : vector<32x8xf32>, vector<8x896xf32>, vector<32x896xf32> -> vector<32x896xf32>
    %222 = arith.addf %217, %221 : vector<32x896xf32>
    %c5_184 = arith.constant 5 : index
    %c0_185 = arith.constant 0 : index
    %c0_186 = arith.constant 0 : index
    %223 = vector.load %arg10[%c5_184, %c0_185, %c0_186] : memref<9x32x8xf32, #tpu.memory_space<vmem>>, vector<1x32x8xf32>
    %224 = vector.shape_cast %223 : vector<1x32x8xf32> to vector<32x8xf32>
    %c0_187 = arith.constant 0 : index
    %c129_188 = arith.constant 129 : index
    %225 = vector.load %arg17[%c0_187, %c129_188] : memref<8x1152xf32, #tpu.memory_space<vmem>>, vector<8x896xf32>
    %cst_189 = arith.constant dense<0.000000e+00> : vector<32x896xf32>
    %226 = tpu.matmul %224, %225, %cst_189 {dimension_numbers = #tpu.dot_dimension_numbers<[1], [0], [0], [1], [0, 0, 1, 1], [], []>} : vector<32x8xf32>, vector<8x896xf32>, vector<32x896xf32> -> vector<32x896xf32>
    %227 = arith.addf %222, %226 : vector<32x896xf32>
    %c6_190 = arith.constant 6 : index
    %c0_191 = arith.constant 0 : index
    %c0_192 = arith.constant 0 : index
    %228 = vector.load %arg10[%c6_190, %c0_191, %c0_192] : memref<9x32x8xf32, #tpu.memory_space<vmem>>, vector<1x32x8xf32>
    %229 = vector.shape_cast %228 : vector<1x32x8xf32> to vector<32x8xf32>
    %c0_193 = arith.constant 0 : index
    %c159_194 = arith.constant 159 : index
    %230 = vector.load %arg17[%c0_193, %c159_194] : memref<8x1152xf32, #tpu.memory_space<vmem>>, vector<8x896xf32>
    %cst_195 = arith.constant dense<0.000000e+00> : vector<32x896xf32>
    %231 = tpu.matmul %229, %230, %cst_195 {dimension_numbers = #tpu.dot_dimension_numbers<[1], [0], [0], [1], [0, 0, 1, 1], [], []>} : vector<32x8xf32>, vector<8x896xf32>, vector<32x896xf32> -> vector<32x896xf32>
    %232 = arith.addf %227, %231 : vector<32x896xf32>
    %c7_196 = arith.constant 7 : index
    %c0_197 = arith.constant 0 : index
    %c0_198 = arith.constant 0 : index
    %233 = vector.load %arg10[%c7_196, %c0_197, %c0_198] : memref<9x32x8xf32, #tpu.memory_space<vmem>>, vector<1x32x8xf32>
    %234 = vector.shape_cast %233 : vector<1x32x8xf32> to vector<32x8xf32>
    %c0_199 = arith.constant 0 : index
    %c160_200 = arith.constant 160 : index
    %235 = vector.load %arg17[%c0_199, %c160_200] : memref<8x1152xf32, #tpu.memory_space<vmem>>, vector<8x896xf32>
    %cst_201 = arith.constant dense<0.000000e+00> : vector<32x896xf32>
    %236 = tpu.matmul %234, %235, %cst_201 {dimension_numbers = #tpu.dot_dimension_numbers<[1], [0], [0], [1], [0, 0, 1, 1], [], []>} : vector<32x8xf32>, vector<8x896xf32>, vector<32x896xf32> -> vector<32x896xf32>
    %237 = arith.addf %232, %236 : vector<32x896xf32>
    %c8_202 = arith.constant 8 : index
    %c0_203 = arith.constant 0 : index
    %c0_204 = arith.constant 0 : index
    %238 = vector.load %arg10[%c8_202, %c0_203, %c0_204] : memref<9x32x8xf32, #tpu.memory_space<vmem>>, vector<1x32x8xf32>
    %239 = vector.shape_cast %238 : vector<1x32x8xf32> to vector<32x8xf32>
    %c0_205 = arith.constant 0 : index
    %c161_206 = arith.constant 161 : index
    %240 = vector.load %arg17[%c0_205, %c161_206] : memref<8x1152xf32, #tpu.memory_space<vmem>>, vector<8x896xf32>
    %cst_207 = arith.constant dense<0.000000e+00> : vector<32x896xf32>
    %241 = tpu.matmul %239, %240, %cst_207 {dimension_numbers = #tpu.dot_dimension_numbers<[1], [0], [0], [1], [0, 0, 1, 1], [], []>} : vector<32x8xf32>, vector<8x896xf32>, vector<32x896xf32> -> vector<32x896xf32>
    %242 = arith.addf %237, %241 : vector<32x896xf32>
    %243 = arith.addf %198, %242 : vector<32x896xf32>
    %c0_208 = arith.constant 0 : index
    %c0_209 = arith.constant 0 : index
    %244 = vector.load %arg11[%c0_208, %c0_209] : memref<32x1xf32, #tpu.memory_space<vmem>>, vector<32x1xf32>
    %245 = vector.broadcast %244 : vector<32x1xf32> to vector<32x896xf32>
    %246 = arith.addf %243, %245 : vector<32x896xf32>
    %247 = vector.extract_strided_slice %246 {offsets = [0, 0], sizes = [8, 896], strides = [1, 1]} : vector<32x896xf32> to vector<8x896xf32>
    %248 = arith.negf %247 : vector<8x896xf32>
    %249 = math.exp %248 : vector<8x896xf32>
    %cst_210 = arith.constant 1.000000e+00 : f32
    %250 = vector.broadcast %cst_210 : f32 to vector<8x896xf32>
    %251 = arith.addf %250, %249 : vector<8x896xf32>
    %252 = arith.divf %250, %251 : vector<8x896xf32>
    %253 = vector.extract_strided_slice %246 {offsets = [8, 0], sizes = [8, 896], strides = [1, 1]} : vector<32x896xf32> to vector<8x896xf32>
    %254 = arith.negf %253 : vector<8x896xf32>
    %255 = math.exp %254 : vector<8x896xf32>
    %cst_211 = arith.constant 1.000000e+00 : f32
    %256 = vector.broadcast %cst_211 : f32 to vector<8x896xf32>
    %257 = arith.addf %256, %255 : vector<8x896xf32>
    %258 = arith.divf %256, %257 : vector<8x896xf32>
    %259 = vector.extract_strided_slice %246 {offsets = [16, 0], sizes = [8, 896], strides = [1, 1]} : vector<32x896xf32> to vector<8x896xf32>
    %260 = arith.negf %259 : vector<8x896xf32>
    %261 = math.exp %260 : vector<8x896xf32>
    %cst_212 = arith.constant 1.000000e+00 : f32
    %262 = vector.broadcast %cst_212 : f32 to vector<8x896xf32>
    %263 = arith.addf %262, %261 : vector<8x896xf32>
    %264 = arith.divf %262, %263 : vector<8x896xf32>
    %265 = vector.extract_strided_slice %246 {offsets = [24, 0], sizes = [8, 896], strides = [1, 1]} : vector<32x896xf32> to vector<8x896xf32>
    %266 = math.tanh %265 : vector<8x896xf32>
    %c0_213 = arith.constant 0 : index
    %c0_214 = arith.constant 0 : index
    %267 = vector.load %arg18[%c0_213, %c0_214] : memref<8x896xf32, #tpu.memory_space<vmem>>, vector<8x896xf32>
    %268 = arith.mulf %258, %267 : vector<8x896xf32>
    %269 = arith.mulf %252, %266 : vector<8x896xf32>
    %270 = arith.addf %268, %269 : vector<8x896xf32>
    %271 = math.tanh %270 : vector<8x896xf32>
    %272 = arith.mulf %264, %271 : vector<8x896xf32>
    %273 = vector.broadcast %32 : vector<1x896xf32> to vector<8x896xf32>
    %274 = arith.mulf %272, %273 : vector<8x896xf32>
    %c0_215 = arith.constant 0 : index
    %c0_216 = arith.constant 0 : index
    %275 = vector.load %arg18[%c0_215, %c0_216] : memref<8x896xf32, #tpu.memory_space<vmem>>, vector<8x896xf32>
    tpu.vector_store %arg18[%c0_215, %c0_216], %270 {strides = array<i32>} : memref<8x896xf32, #tpu.memory_space<vmem>>, vector<8x896xf32>,
    %c0_217 = arith.constant 0 : index
    %c128_218 = arith.constant 128 : index
    %276 = vector.load %arg17[%c0_217, %c128_218] : memref<8x1152xf32, #tpu.memory_space<vmem>>, vector<8x896xf32>
    tpu.vector_store %arg17[%c0_217, %c128_218], %274 {strides = array<i32>} : memref<8x1152xf32, #tpu.memory_space<vmem>>, vector<8x896xf32>,
    %c3_i32 = arith.constant 3 : i32
    %277 = arith.cmpi eq, %arg1, %c3_i32 : i32
    %278 = arith.extui %277 : i1 to i32
    %c0_i32_219 = arith.constant 0 : i32
    %279 = arith.cmpi ne, %278, %c0_i32_219 : i32
    scf.if %279 {
      %c0_220 = arith.constant 0 : index
      %c0_221 = arith.constant 0 : index
      %c0_222 = arith.constant 0 : index
      %280 = vector.load %arg12[%c0_220, %c0_221, %c0_222] : memref<9x8x8xf32, #tpu.memory_space<vmem>>, vector<1x8x8xf32>
      %281 = vector.shape_cast %280 : vector<1x8x8xf32> to vector<8x8xf32>
      %c0_223 = arith.constant 0 : index
      %c95_224 = arith.constant 95 : index
      %282 = vector.load %arg17[%c0_223, %c95_224] : memref<8x1152xf32, #tpu.memory_space<vmem>>, vector<8x896xf32>
      %cst_225 = arith.constant dense<0.000000e+00> : vector<8x896xf32>
      %283 = tpu.matmul %281, %282, %cst_225 {dimension_numbers = #tpu.dot_dimension_numbers<[1], [0], [0], [1], [0, 0, 1, 1], [], []>} : vector<8x8xf32>, vector<8x896xf32>, vector<8x896xf32> -> vector<8x896xf32>
      %c1_226 = arith.constant 1 : index
      %c0_227 = arith.constant 0 : index
      %c0_228 = arith.constant 0 : index
      %284 = vector.load %arg12[%c1_226, %c0_227, %c0_228] : memref<9x8x8xf32, #tpu.memory_space<vmem>>, vector<1x8x8xf32>
      %285 = vector.shape_cast %284 : vector<1x8x8xf32> to vector<8x8xf32>
      %c0_229 = arith.constant 0 : index
      %c96_230 = arith.constant 96 : index
      %286 = vector.load %arg17[%c0_229, %c96_230] : memref<8x1152xf32, #tpu.memory_space<vmem>>, vector<8x896xf32>
      %cst_231 = arith.constant dense<0.000000e+00> : vector<8x896xf32>
      %287 = tpu.matmul %285, %286, %cst_231 {dimension_numbers = #tpu.dot_dimension_numbers<[1], [0], [0], [1], [0, 0, 1, 1], [], []>} : vector<8x8xf32>, vector<8x896xf32>, vector<8x896xf32> -> vector<8x896xf32>
      %288 = arith.addf %283, %287 : vector<8x896xf32>
      %c2_232 = arith.constant 2 : index
      %c0_233 = arith.constant 0 : index
      %c0_234 = arith.constant 0 : index
      %289 = vector.load %arg12[%c2_232, %c0_233, %c0_234] : memref<9x8x8xf32, #tpu.memory_space<vmem>>, vector<1x8x8xf32>
      %290 = vector.shape_cast %289 : vector<1x8x8xf32> to vector<8x8xf32>
      %c0_235 = arith.constant 0 : index
      %c97_236 = arith.constant 97 : index
      %291 = vector.load %arg17[%c0_235, %c97_236] : memref<8x1152xf32, #tpu.memory_space<vmem>>, vector<8x896xf32>
      %cst_237 = arith.constant dense<0.000000e+00> : vector<8x896xf32>
      %292 = tpu.matmul %290, %291, %cst_237 {dimension_numbers = #tpu.dot_dimension_numbers<[1], [0], [0], [1], [0, 0, 1, 1], [], []>} : vector<8x8xf32>, vector<8x896xf32>, vector<8x896xf32> -> vector<8x896xf32>
      %293 = arith.addf %288, %292 : vector<8x896xf32>
      %c3_238 = arith.constant 3 : index
      %c0_239 = arith.constant 0 : index
      %c0_240 = arith.constant 0 : index
      %294 = vector.load %arg12[%c3_238, %c0_239, %c0_240] : memref<9x8x8xf32, #tpu.memory_space<vmem>>, vector<1x8x8xf32>
      %295 = vector.shape_cast %294 : vector<1x8x8xf32> to vector<8x8xf32>
      %c0_241 = arith.constant 0 : index
      %c127_242 = arith.constant 127 : index
      %296 = vector.load %arg17[%c0_241, %c127_242] : memref<8x1152xf32, #tpu.memory_space<vmem>>, vector<8x896xf32>
      %cst_243 = arith.constant dense<0.000000e+00> : vector<8x896xf32>
      %297 = tpu.matmul %295, %296, %cst_243 {dimension_numbers = #tpu.dot_dimension_numbers<[1], [0], [0], [1], [0, 0, 1, 1], [], []>} : vector<8x8xf32>, vector<8x896xf32>, vector<8x896xf32> -> vector<8x896xf32>
      %298 = arith.addf %293, %297 : vector<8x896xf32>
      %c4_244 = arith.constant 4 : index
      %c0_245 = arith.constant 0 : index
      %c0_246 = arith.constant 0 : index
      %299 = vector.load %arg12[%c4_244, %c0_245, %c0_246] : memref<9x8x8xf32, #tpu.memory_space<vmem>>, vector<1x8x8xf32>
      %300 = vector.shape_cast %299 : vector<1x8x8xf32> to vector<8x8xf32>
      %c0_247 = arith.constant 0 : index
      %c128_248 = arith.constant 128 : index
      %301 = vector.load %arg17[%c0_247, %c128_248] : memref<8x1152xf32, #tpu.memory_space<vmem>>, vector<8x896xf32>
      %cst_249 = arith.constant dense<0.000000e+00> : vector<8x896xf32>
      %302 = tpu.matmul %300, %301, %cst_249 {dimension_numbers = #tpu.dot_dimension_numbers<[1], [0], [0], [1], [0, 0, 1, 1], [], []>} : vector<8x8xf32>, vector<8x896xf32>, vector<8x896xf32> -> vector<8x896xf32>
      %303 = arith.addf %298, %302 : vector<8x896xf32>
      %c5_250 = arith.constant 5 : index
      %c0_251 = arith.constant 0 : index
      %c0_252 = arith.constant 0 : index
      %304 = vector.load %arg12[%c5_250, %c0_251, %c0_252] : memref<9x8x8xf32, #tpu.memory_space<vmem>>, vector<1x8x8xf32>
      %305 = vector.shape_cast %304 : vector<1x8x8xf32> to vector<8x8xf32>
      %c0_253 = arith.constant 0 : index
      %c129_254 = arith.constant 129 : index
      %306 = vector.load %arg17[%c0_253, %c129_254] : memref<8x1152xf32, #tpu.memory_space<vmem>>, vector<8x896xf32>
      %cst_255 = arith.constant dense<0.000000e+00> : vector<8x896xf32>
      %307 = tpu.matmul %305, %306, %cst_255 {dimension_numbers = #tpu.dot_dimension_numbers<[1], [0], [0], [1], [0, 0, 1, 1], [], []>} : vector<8x8xf32>, vector<8x896xf32>, vector<8x896xf32> -> vector<8x896xf32>
      %308 = arith.addf %303, %307 : vector<8x896xf32>
      %c6_256 = arith.constant 6 : index
      %c0_257 = arith.constant 0 : index
      %c0_258 = arith.constant 0 : index
      %309 = vector.load %arg12[%c6_256, %c0_257, %c0_258] : memref<9x8x8xf32, #tpu.memory_space<vmem>>, vector<1x8x8xf32>
      %310 = vector.shape_cast %309 : vector<1x8x8xf32> to vector<8x8xf32>
      %c0_259 = arith.constant 0 : index
      %c159_260 = arith.constant 159 : index
      %311 = vector.load %arg17[%c0_259, %c159_260] : memref<8x1152xf32, #tpu.memory_space<vmem>>, vector<8x896xf32>
      %cst_261 = arith.constant dense<0.000000e+00> : vector<8x896xf32>
      %312 = tpu.matmul %310, %311, %cst_261 {dimension_numbers = #tpu.dot_dimension_numbers<[1], [0], [0], [1], [0, 0, 1, 1], [], []>} : vector<8x8xf32>, vector<8x896xf32>, vector<8x896xf32> -> vector<8x896xf32>
      %313 = arith.addf %308, %312 : vector<8x896xf32>
      %c7_262 = arith.constant 7 : index
      %c0_263 = arith.constant 0 : index
      %c0_264 = arith.constant 0 : index
      %314 = vector.load %arg12[%c7_262, %c0_263, %c0_264] : memref<9x8x8xf32, #tpu.memory_space<vmem>>, vector<1x8x8xf32>
      %315 = vector.shape_cast %314 : vector<1x8x8xf32> to vector<8x8xf32>
      %c0_265 = arith.constant 0 : index
      %c160_266 = arith.constant 160 : index
      %316 = vector.load %arg17[%c0_265, %c160_266] : memref<8x1152xf32, #tpu.memory_space<vmem>>, vector<8x896xf32>
      %cst_267 = arith.constant dense<0.000000e+00> : vector<8x896xf32>
      %317 = tpu.matmul %315, %316, %cst_267 {dimension_numbers = #tpu.dot_dimension_numbers<[1], [0], [0], [1], [0, 0, 1, 1], [], []>} : vector<8x8xf32>, vector<8x896xf32>, vector<8x896xf32> -> vector<8x896xf32>
      %318 = arith.addf %313, %317 : vector<8x896xf32>
      %c8_268 = arith.constant 8 : index
      %c0_269 = arith.constant 0 : index
      %c0_270 = arith.constant 0 : index
      %319 = vector.load %arg12[%c8_268, %c0_269, %c0_270] : memref<9x8x8xf32, #tpu.memory_space<vmem>>, vector<1x8x8xf32>
      %320 = vector.shape_cast %319 : vector<1x8x8xf32> to vector<8x8xf32>
      %c0_271 = arith.constant 0 : index
      %c161_272 = arith.constant 161 : index
      %321 = vector.load %arg17[%c0_271, %c161_272] : memref<8x1152xf32, #tpu.memory_space<vmem>>, vector<8x896xf32>
      %cst_273 = arith.constant dense<0.000000e+00> : vector<8x896xf32>
      %322 = tpu.matmul %320, %321, %cst_273 {dimension_numbers = #tpu.dot_dimension_numbers<[1], [0], [0], [1], [0, 0, 1, 1], [], []>} : vector<8x8xf32>, vector<8x896xf32>, vector<8x896xf32> -> vector<8x896xf32>
      %323 = arith.addf %318, %322 : vector<8x896xf32>
      %c0_274 = arith.constant 0 : index
      %c0_275 = arith.constant 0 : index
      %324 = vector.load %arg13[%c0_274, %c0_275] : memref<8x1xf32, #tpu.memory_space<vmem>>, vector<8x1xf32>
      %325 = vector.broadcast %324 : vector<8x1xf32> to vector<8x896xf32>
      %326 = arith.addf %323, %325 : vector<8x896xf32>
      %cst_276 = arith.constant 0.000000e+00 : f32
      %327 = vector.broadcast %cst_276 : f32 to vector<8x896xf32>
      %328 = arith.maximumf %326, %327 : vector<8x896xf32>
      %c0_277 = arith.constant 0 : index
      %c0_278 = arith.constant 0 : index
      %c0_279 = arith.constant 0 : index
      %329 = vector.load %arg14[%c0_277, %c0_278, %c0_279] : memref<1x8x896xf32, #tpu.memory_space<vmem>>, vector<1x8x896xf32>
      %330 = vector.shape_cast %329 : vector<1x8x896xf32> to vector<8x896xf32>
      %331 = vector.shape_cast %328 : vector<8x896xf32> to vector<1x8x896xf32>
      tpu.vector_store %arg14[%c0_277, %c0_278, %c0_279], %331 {strides = array<i32>} : memref<1x8x896xf32, #tpu.memory_space<vmem>>, vector<1x8x896xf32>,
    } else {
    }
    return
  }
  func.func @transform_0(%arg0: i32, %arg1: i32) -> (i32, i32) {
    %c0_i32 = arith.constant 0 : i32
    %c0_i32_0 = arith.constant 0 : i32
    %c0_i32_1 = arith.constant 0 : i32
    return %c0_i32, %c0_i32_0 : i32, i32
  }
  func.func @transform_1(%arg0: i32, %arg1: i32) -> (i32, i32) {
    %c0_i32 = arith.constant 0 : i32
    %c0_i32_0 = arith.constant 0 : i32
    %c0_i32_1 = arith.constant 0 : i32
    return %c0_i32, %c0_i32_0 : i32, i32
  }
  func.func @transform_2(%arg0: i32, %arg1: i32) -> (i32, i32) {
    %c0_i32 = arith.constant 0 : i32
    %c0_i32_0 = arith.constant 0 : i32
    %c0_i32_1 = arith.constant 0 : i32
    return %c0_i32, %c0_i32_0 : i32, i32
  }
  func.func @transform_3(%arg0: i32, %arg1: i32) -> (i32, i32, i32, i32) {
    %c0_i32 = arith.constant 0 : i32
    %c0_i32_0 = arith.constant 0 : i32
    %c0_i32_1 = arith.constant 0 : i32
    return %arg0, %arg1, %c0_i32, %c0_i32_0 : i32, i32, i32, i32
  }
  func.func @transform_4(%arg0: i32, %arg1: i32) -> (i32, i32, i32) {
    %c0_i32 = arith.constant 0 : i32
    %c0_i32_0 = arith.constant 0 : i32
    %c0_i32_1 = arith.constant 0 : i32
    %c0_i32_2 = arith.constant 0 : i32
    return %c0_i32, %c0_i32_0, %c0_i32_1 : i32, i32, i32
  }
  func.func @transform_5(%arg0: i32, %arg1: i32) -> (i32, i32, i32) {
    %c0_i32 = arith.constant 0 : i32
    %c0_i32_0 = arith.constant 0 : i32
    %c0_i32_1 = arith.constant 0 : i32
    %c0_i32_2 = arith.constant 0 : i32
    return %c0_i32, %c0_i32_0, %c0_i32_1 : i32, i32, i32
  }
  func.func @transform_6(%arg0: i32, %arg1: i32) -> (i32, i32) {
    %c0_i32 = arith.constant 0 : i32
    %c0_i32_0 = arith.constant 0 : i32
    %c0_i32_1 = arith.constant 0 : i32
    return %c0_i32, %c0_i32_0 : i32, i32
  }
  func.func @transform_7(%arg0: i32, %arg1: i32) -> (i32, i32, i32) {
    %c0_i32 = arith.constant 0 : i32
    %c0_i32_0 = arith.constant 0 : i32
    %c0_i32_1 = arith.constant 0 : i32
    %c0_i32_2 = arith.constant 0 : i32
    return %c0_i32, %c0_i32_0, %c0_i32_1 : i32, i32, i32
  }
  func.func @transform_8(%arg0: i32, %arg1: i32) -> (i32, i32, i32) {
    %c0_i32 = arith.constant 0 : i32
    %c0_i32_0 = arith.constant 0 : i32
    %c0_i32_1 = arith.constant 0 : i32
    %c0_i32_2 = arith.constant 0 : i32
    return %c0_i32, %c0_i32_0, %c0_i32_1 : i32, i32, i32
  }
  func.func @transform_9(%arg0: i32, %arg1: i32) -> (i32, i32) {
    %c0_i32 = arith.constant 0 : i32
    %c0_i32_0 = arith.constant 0 : i32
    %c0_i32_1 = arith.constant 0 : i32
    return %c0_i32, %c0_i32_0 : i32, i32
  }
  func.func @transform_10(%arg0: i32, %arg1: i32) -> (i32, i32, i32) {
    %c0_i32 = arith.constant 0 : i32
    %c0_i32_0 = arith.constant 0 : i32
    %c0_i32_1 = arith.constant 0 : i32
    %c0_i32_2 = arith.constant 0 : i32
    return %c0_i32, %c0_i32_0, %c0_i32_1 : i32, i32, i32
  }
  func.func @transform_11(%arg0: i32, %arg1: i32) -> (i32, i32) {
    %c0_i32 = arith.constant 0 : i32
    %c0_i32_0 = arith.constant 0 : i32
    %c0_i32_1 = arith.constant 0 : i32
    return %c0_i32, %c0_i32_0 : i32, i32
  }
  func.func @transform_12(%arg0: i32, %arg1: i32) -> (i32, i32, i32) {
    %c0_i32 = arith.constant 0 : i32
    %c0_i32_0 = arith.constant 0 : i32
    %c0_i32_1 = arith.constant 0 : i32
    return %arg0, %c0_i32, %c0_i32_0 : i32, i32, i32
  }
}

module attributes {stable_mosaic.version = 11 : i64} {
  func.func @_head_kernel(%arg0: memref<2x1152xf32, #tpu.memory_space<vmem>>, %arg1: memref<2x1152xf32, #tpu.memory_space<vmem>>, %arg2: memref<2x1152xf32, #tpu.memory_space<vmem>>, %arg3: memref<2x1152xf32, #tpu.memory_space<vmem>>, %arg4: memref<1152x16xf32, #tpu.memory_space<vmem>>, %arg5: memref<1x16xf32, #tpu.memory_space<vmem>>, %arg6: memref<16x8xf32, #tpu.memory_space<vmem>>, %arg7: memref<1x8xf32, #tpu.memory_space<vmem>>, %arg8: memref<8x2xf32, #tpu.memory_space<vmem>>, %arg9: memref<1x2xf32, #tpu.memory_space<vmem>>, %arg10: memref<2x2xf32, #tpu.memory_space<vmem>>) attributes {dimension_semantics = [], scalar_prefetch = 0 : i64, scratch_operands = 0 : i64, tpu.core_type = #tpu.core_type<tc>} {
    %c0 = arith.constant 0 : index
    %c0_0 = arith.constant 0 : index
    %0 = vector.load %arg0[%c0, %c0_0] : memref<2x1152xf32, #tpu.memory_space<vmem>>, vector<2x1152xf32>
    %c0_1 = arith.constant 0 : index
    %c0_2 = arith.constant 0 : index
    %1 = vector.load %arg1[%c0_1, %c0_2] : memref<2x1152xf32, #tpu.memory_space<vmem>>, vector<2x1152xf32>
    %2 = arith.maximumf %0, %1 : vector<2x1152xf32>
    %c0_3 = arith.constant 0 : index
    %c0_4 = arith.constant 0 : index
    %3 = vector.load %arg2[%c0_3, %c0_4] : memref<2x1152xf32, #tpu.memory_space<vmem>>, vector<2x1152xf32>
    %c0_5 = arith.constant 0 : index
    %c0_6 = arith.constant 0 : index
    %4 = vector.load %arg3[%c0_5, %c0_6] : memref<2x1152xf32, #tpu.memory_space<vmem>>, vector<2x1152xf32>
    %5 = arith.maximumf %3, %4 : vector<2x1152xf32>
    %6 = arith.maximumf %2, %5 : vector<2x1152xf32>
    %c0_7 = arith.constant 0 : index
    %c0_8 = arith.constant 0 : index
    %7 = vector.load %arg4[%c0_7, %c0_8] : memref<1152x16xf32, #tpu.memory_space<vmem>>, vector<1152x16xf32>
    %cst = arith.constant dense<0.000000e+00> : vector<2x16xf32>
    %8 = tpu.matmul %6, %7, %cst {dimension_numbers = #tpu.dot_dimension_numbers<[1], [0], [0], [1], [0, 0, 1, 1], [], []>} : vector<2x1152xf32>, vector<1152x16xf32>, vector<2x16xf32> -> vector<2x16xf32>
    %c0_9 = arith.constant 0 : index
    %c0_10 = arith.constant 0 : index
    %9 = vector.load %arg5[%c0_9, %c0_10] : memref<1x16xf32, #tpu.memory_space<vmem>>, vector<1x16xf32>
    %10 = vector.broadcast %9 : vector<1x16xf32> to vector<2x16xf32>
    %11 = arith.addf %8, %10 : vector<2x16xf32>
    %cst_11 = arith.constant 0.000000e+00 : f32
    %12 = vector.broadcast %cst_11 : f32 to vector<2x16xf32>
    %13 = arith.maximumf %11, %12 : vector<2x16xf32>
    %c0_12 = arith.constant 0 : index
    %c0_13 = arith.constant 0 : index
    %14 = vector.load %arg6[%c0_12, %c0_13] : memref<16x8xf32, #tpu.memory_space<vmem>>, vector<16x8xf32>
    %cst_14 = arith.constant dense<0.000000e+00> : vector<2x8xf32>
    %15 = tpu.matmul %13, %14, %cst_14 {dimension_numbers = #tpu.dot_dimension_numbers<[1], [0], [0], [1], [0, 0, 1, 1], [], []>} : vector<2x16xf32>, vector<16x8xf32>, vector<2x8xf32> -> vector<2x8xf32>
    %c0_15 = arith.constant 0 : index
    %c0_16 = arith.constant 0 : index
    %16 = vector.load %arg7[%c0_15, %c0_16] : memref<1x8xf32, #tpu.memory_space<vmem>>, vector<1x8xf32>
    %17 = vector.broadcast %16 : vector<1x8xf32> to vector<2x8xf32>
    %18 = arith.addf %15, %17 : vector<2x8xf32>
    %cst_17 = arith.constant 0.000000e+00 : f32
    %19 = vector.broadcast %cst_17 : f32 to vector<2x8xf32>
    %20 = arith.maximumf %18, %19 : vector<2x8xf32>
    %c0_18 = arith.constant 0 : index
    %c0_19 = arith.constant 0 : index
    %21 = vector.load %arg8[%c0_18, %c0_19] : memref<8x2xf32, #tpu.memory_space<vmem>>, vector<8x2xf32>
    %cst_20 = arith.constant dense<0.000000e+00> : vector<2x2xf32>
    %22 = tpu.matmul %20, %21, %cst_20 {dimension_numbers = #tpu.dot_dimension_numbers<[1], [0], [0], [1], [0, 0, 1, 1], [], []>} : vector<2x8xf32>, vector<8x2xf32>, vector<2x2xf32> -> vector<2x2xf32>
    %c0_21 = arith.constant 0 : index
    %c0_22 = arith.constant 0 : index
    %23 = vector.load %arg9[%c0_21, %c0_22] : memref<1x2xf32, #tpu.memory_space<vmem>>, vector<1x2xf32>
    %24 = vector.broadcast %23 : vector<1x2xf32> to vector<2x2xf32>
    %25 = arith.addf %22, %24 : vector<2x2xf32>
    %cst_23 = arith.constant dense<0xFF800000> : vector<2xf32>
    %26 = vector.multi_reduction <maximumf>, %25, %cst_23 [1] : vector<2x2xf32> to vector<2xf32>
    %27 = vector.shape_cast %26 : vector<2xf32> to vector<2x1xf32>
    %28 = vector.broadcast %27 : vector<2x1xf32> to vector<2x2xf32>
    %29 = arith.subf %25, %28 : vector<2x2xf32>
    %30 = math.exp %29 : vector<2x2xf32>
    %cst_24 = arith.constant dense<0.000000e+00> : vector<2xf32>
    %31 = vector.multi_reduction <add>, %30, %cst_24 [1] : vector<2x2xf32> to vector<2xf32>
    %32 = vector.shape_cast %31 : vector<2xf32> to vector<2x1xf32>
    %33 = math.log %32 : vector<2x1xf32>
    %34 = arith.addf %27, %33 : vector<2x1xf32>
    %35 = vector.broadcast %34 : vector<2x1xf32> to vector<2x2xf32>
    %36 = arith.subf %25, %35 : vector<2x2xf32>
    %c0_25 = arith.constant 0 : index
    %c0_26 = arith.constant 0 : index
    %37 = vector.load %arg10[%c0_25, %c0_26] : memref<2x2xf32, #tpu.memory_space<vmem>>, vector<2x2xf32>
    tpu.vector_store %arg10[%c0_25, %c0_26], %36 {strides = array<i32>} : memref<2x2xf32, #tpu.memory_space<vmem>>, vector<2x2xf32>,
    return
  }
}

</mosaic_0001>

<bundles_post_ra>
// kernel: simple_convlstm_forward.3
= control target key start
LH: loop header
LB: loop body
LE: loop exit
PB: predicated region body
PF: predicated region fallthrough
CT: control target
= control target key end

     0   :  { %v1209_v60 = vmov 1983009808   ;;  %v215_v62 = vlaneseq  ;;  %s1784_s0 = inlined_call_operand.vmem [shape: f32[2,1152], index: 0, kind: input, shape index: {}]   ;;  %s1785_s1 = inlined_call_operand.vmem [shape: f32[2,1152], index: 1, kind: input, shape index: {}]   ;;  %s1786_s2 = inlined_call_operand.vmem [shape: f32[2,1152], index: 2, kind: input, shape index: {}]   ;;  %s1787_s3 = inlined_call_operand.vmem [shape: f32[2,1152], index: 3, kind: input, shape index: {}]   ;;  %s1788_s4 = inlined_call_operand.vmem [shape: f32[1152,16], index: 4, kind: input, shape index: {}]   ;;  %s1789_s5 = inlined_call_operand.vmem [shape: f32[1,16], index: 5, kind: input, shape index: {}]   ;;  %s1790_s6 = inlined_call_operand.vmem [shape: f32[16,8], index: 6, kind: input, shape index: {}]   ;;  %s1791_s7 = inlined_call_operand.vmem [shape: f32[1,8], index: 7, kind: input, shape index: {}]   ;;  %s1792_s8 = inlined_call_operand.vmem [shape: f32[8,2], index: 8, kind: input, shape index: {}]   ;;  %s1793_s9 = inlined_call_operand.vmem [shape: f32[1,2], index: 9, kind: input, shape index: {}]   ;;  %s1794_s10 = inlined_call_operand.hbm [shape: f32[2,2], index: 10, kind: output, shape index: {}]  }
   0x1   :  { %v73_v0 = vld [vmem:[%s1788_s4 + $0x80] sm:$0xff]  ;;  %v74_v1 = vld [vmem:[%s1788_s4 + $0x88] sm:$0xff]  ;;  %v75_v11 = vld [vmem:[%s1788_s4 + $0x90] sm:$0xff]  ;;  %v213_v61 = vunpack.c.l.s4 %v1209_v60 }
   0x2   :  { %v57_v2 = vld [vmem:[%s1788_s4] sm:$0xff]  ;;  %v1021_v3 = vpack.c.bf16 %v74_v1, %v73_v0  ;;  %v58_v4 = vld [vmem:[%s1788_s4 + $0x8] sm:$0xff]  ;;  %v76_v13 = vld [vmem:[%s1788_s4 + $0x98] sm:$0xff] }
   0x3   :  { %v105_v5 = vld [vmem:[%s1788_s4 + $0x180] sm:$0xff]  ;;  %v106_v6 = vld [vmem:[%s1788_s4 + $0x188] sm:$0xff]  ;;  %v1023_v7 = vpack.c.bf16 %v58_v4, %v57_v2  ;;  %v59_v14 = vld [vmem:[%s1788_s4 + $0x10] sm:$0xff]  ;;  %v1025_v16 = vpack.c.bf16 %v76_v13, %v75_v11  ;;  %v214_v11 = vunpack.c.0.s8 %v213_v61 }
   0x4   :  { %v1053_v8 = vpack.c.bf16 %v106_v6, %v105_v5  ;;  %v89_v9 = vld [vmem:[%s1788_s4 + $0x100] sm:$0xff]  ;;  %v90_v10 = vld [vmem:[%s1788_s4 + $0x108] sm:$0xff]  ;;  %1022 = vmatprep.subr.bf16.mxu0 %v1021_v3  ;;  %v60_v15 = vld [vmem:[%s1788_s4 + $0x18] sm:$0xff] }
   0x5   :  { %v1055_v12 = vpack.c.bf16 %v90_v10, %v89_v9  ;;  %1024 = vmatpush3.bf16.msra.mxu0 %v1023_v7  ;;  %v1027_v17 = vpack.c.bf16 %v60_v15, %v59_v14  ;;  %v107_v18 = vld [vmem:[%s1788_s4 + $0x190] sm:$0xff]  ;;  %v108_v19 = vld [vmem:[%s1788_s4 + $0x198] sm:$0xff]  ;;  %v77_v23 = vld [vmem:[%s1788_s4 + $0xa0] sm:$0xff] }
   0x6   :  { %1054 = vmatprep.subr.bf16.mxu1 %v1053_v8  ;;  %v91_v20 = vld [vmem:[%s1788_s4 + $0x110] sm:$0xff]  ;;  %v1057_v21 = vpack.c.bf16 %v108_v19, %v107_v18  ;;  %v92_v22 = vld [vmem:[%s1788_s4 + $0x118] sm:$0xff]  ;;  %v78_v24 = vld [vmem:[%s1788_s4 + $0xa8] sm:$0xff]  ;;  %1026 = vmatprep.subr.bf16.mxu0 %v1025_v16 }
   0x7   :  { %1056 = vmatpush3.bf16.msra.mxu1 %v1055_v12  ;;  %v1059_v25 = vpack.c.bf16 %v92_v22, %v91_v20  ;;  %v1029_v26 = vpack.c.bf16 %v78_v24, %v77_v23  ;;  %v61_v27 = vld [vmem:[%s1788_s4 + $0x20] sm:$0xff]  ;;  %v62_v28 = vld [vmem:[%s1788_s4 + $0x28] sm:$0xff]  ;;  %v79_v35 = vld [vmem:[%s1788_s4 + $0xb0] sm:$0xff]  ;;  %v216_v12 = vshrl.u32 %v215_v62, 7 }
   0x8   :  { %v109_v29 = vld [vmem:[%s1788_s4 + $0x1a0] sm:$0xff]  ;;  %1058 = vmatprep.subr.bf16.mxu1 %v1057_v21  ;;  %v110_v30 = vld [vmem:[%s1788_s4 + $0x1a8] sm:$0xff]  ;;  %v1031_v33 = vpack.c.bf16 %v62_v28, %v61_v27  ;;  %v80_v36 = vld [vmem:[%s1788_s4 + $0xb8] sm:$0xff] }
   0x9   :  { %v93_v31 = vld [vmem:[%s1788_s4 + $0x120] sm:$0xff]  ;;  %v94_v32 = vld [vmem:[%s1788_s4 + $0x128] sm:$0xff]  ;;  %1028 = vmatpush3.bf16.msra.mxu0 %v1027_v17  ;;  %v1061_v34 = vpack.c.bf16 %v110_v30, %v109_v29  ;;  %v63_v37 = vld [vmem:[%s1788_s4 + $0x30] sm:$0xff]  ;;  %v1033_v39 = vpack.c.bf16 %v80_v36, %v79_v35 }
   0xa   :  { %1030 = vmatprep.subr.bf16.mxu0 %v1029_v26  ;;  %v1063_v38 = vpack.c.bf16 %v94_v32, %v93_v31  ;;  %v64_v40 = vld [vmem:[%s1788_s4 + $0x38] sm:$0xff]  ;;  %v111_v41 = vld [vmem:[%s1788_s4 + $0x1b0] sm:$0xff]  ;;  %v81_v46 = vld [vmem:[%s1788_s4 + $0xc0] sm:$0xff]  ;;  %v1455_v31 = vsub.s32 %v214_v11, %v216_v12 }
   0xb   :  { %1060 = vmatpush3.bf16.msra.mxu1 %v1059_v25  ;;  %v112_v42 = vld [vmem:[%s1788_s4 + $0x1b8] sm:$0xff]  ;;  %v95_v44 = vld [vmem:[%s1788_s4 + $0x130] sm:$0xff]  ;;  %v82_v47 = vld [vmem:[%s1788_s4 + $0xc8] sm:$0xff]  ;;  %v1035_v48 = vpack.c.bf16 %v64_v40, %v63_v37 }
   0xc   :  { %1062 = vmatprep.subr.bf16.mxu1 %v1061_v34  ;;  %v1065_v43 = vpack.c.bf16 %v112_v42, %v111_v41  ;;  %v96_v45 = vld [vmem:[%s1788_s4 + $0x138] sm:$0xff]  ;;  %v113_v49 = vld [vmem:[%s1788_s4 + $0x1c0] sm:$0xff]  ;;  %v114_v50 = vld [vmem:[%s1788_s4 + $0x1c8] sm:$0xff]  ;;  %v1037_v52 = vpack.c.bf16 %v82_v47, %v81_v46 }
   0xd   :  { %1032 = vmatpush3.bf16.msra.mxu0 %v1031_v33  ;;  %v1067_v51 = vpack.c.bf16 %v96_v45, %v95_v44  ;;  %v65_v53 = vld [vmem:[%s1788_s4 + $0x40] sm:$0xff]  ;;  %v66_v54 = vld [vmem:[%s1788_s4 + $0x48] sm:$0xff]  ;;  %v1069_v56 = vpack.c.bf16 %v114_v50, %v113_v49  ;;  %v83_v58 = vld [vmem:[%s1788_s4 + $0xd0] sm:$0xff] }
   0xe   :  { %1034 = vmatprep.subr.bf16.mxu0 %v1033_v39  ;;  %v97_v55 = vld [vmem:[%s1788_s4 + $0x140] sm:$0xff]  ;;  %v98_v57 = vld [vmem:[%s1788_s4 + $0x148] sm:$0xff]  ;;  %v84_v59 = vld [vmem:[%s1788_s4 + $0xd8] sm:$0xff]  ;;  %v1039_v1 = vpack.c.bf16 %v66_v54, %v65_v53 }
   0xf   :  { %1064 = vmatpush3.bf16.msra.mxu1 %v1063_v38  ;;  %v115_v63 = vld [vmem:[%s1788_s4 + $0x1d0] sm:$0xff]  ;;  %v116_v0 = vld [vmem:[%s1788_s4 + $0x1d8] sm:$0xff]  ;;  %v1071_v2 = vpack.c.bf16 %v98_v57, %v97_v55  ;;  %v1041_v3 = vpack.c.bf16 %v84_v59, %v83_v58  ;;  %v85_v9 = vld [vmem:[%s1788_s4 + $0xe0] sm:$0xff] }
  0x10   :  { %1066 = vmatprep.subr.bf16.mxu1 %v1065_v43  ;;  %v67_v4 = vld [vmem:[%s1788_s4 + $0x50] sm:$0xff]  ;;  %v68_v5 = vld [vmem:[%s1788_s4 + $0x58] sm:$0xff]  ;;  %v1073_v7 = vpack.c.bf16 %v116_v0, %v115_v63  ;;  %v86_v10 = vld [vmem:[%s1788_s4 + $0xe8] sm:$0xff] }
  0x11   :  { %1036 = vmatpush3.bf16.msra.mxu0 %v1035_v48  ;;  %v99_v6 = vld [vmem:[%s1788_s4 + $0x150] sm:$0xff]  ;;  %v100_v8 = vld [vmem:[%s1788_s4 + $0x158] sm:$0xff]  ;;  %v69_v13 = vld [vmem:[%s1788_s4 + $0x60] sm:$0xff]  ;;  %v1043_v16 = vpack.c.bf16 %v68_v5, %v67_v4  ;;  %v1045_v21 = vpack.c.bf16 %v86_v10, %v85_v9 }
  0x12   :  { %1038 = vmatprep.subr.bf16.mxu0 %v1037_v52  ;;  %v117_v14 = vld [vmem:[%s1788_s4 + $0x1e0] sm:$0xff]  ;;  %v118_v15 = vld [vmem:[%s1788_s4 + $0x1e8] sm:$0xff]  ;;  %v1075_v20 = vpack.c.bf16 %v100_v8, %v99_v6  ;;  %v87_v27 = vld [vmem:[%s1788_s4 + $0xf0] sm:$0xff] }
  0x13   :  { %1068 = vmatpush3.bf16.msra.mxu1 %v1067_v51  ;;  %v70_v17 = vld [vmem:[%s1788_s4 + $0x68] sm:$0xff]  ;;  %v101_v18 = vld [vmem:[%s1788_s4 + $0x160] sm:$0xff]  ;;  %v1077_v25 = vpack.c.bf16 %v118_v15, %v117_v14  ;;  %v88_v28 = vld [vmem:[%s1788_s4 + $0xf8] sm:$0xff] }
  0x14   :  { %1070 = vmatprep.subr.bf16.mxu1 %v1069_v56  ;;  %v36_v19 = vld [vmem:[%s1784_s0] sm:$0xff]  ;;  %v102_v26 = vld [vmem:[%s1788_s4 + $0x168] sm:$0xff]  ;;  %v119_v32 = vld [vmem:[%s1788_s4 + $0x1f0] sm:$0xff]  ;;  %v1047_v34 = vpack.c.bf16 %v70_v17, %v69_v13  ;;  %v1049_v37 = vpack.c.bf16 %v88_v28, %v87_v27 }
  0x15   :  { %1040 = vmatpush3.bf16.msra.mxu0 %v1039_v1  ;;  %v39_v22 = vld [vmem:[%s1785_s1] sm:$0xff]  ;;  %v120_v33 = vld [vmem:[%s1788_s4 + $0x1f8] sm:$0xff]  ;;  %v1079_v36 = vpack.c.bf16 %v102_v26, %v101_v18  ;;  %v71_v38 = vld [vmem:[%s1788_s4 + $0x70] sm:$0xff] }
  0x16   :  { %1042 = vmatprep.subr.bf16.mxu0 %v1041_v3  ;;  %v45_v23 = vld [vmem:[%s1786_s2] sm:$0xff]  ;;  %v42_v29 = vmax.f32 %v36_v19, %v39_v22  ;;  %v72_v39 = vld [vmem:[%s1788_s4 + $0x78] sm:$0xff]  ;;  %v103_v40 = vld [vmem:[%s1788_s4 + $0x170] sm:$0xff]  ;;  %v1081_v41 = vpack.c.bf16 %v120_v33, %v119_v32 }
  0x17   :  { %1072 = vmatpush3.bf16.msra.mxu1 %v1071_v2  ;;  %v48_v24 = vld [vmem:[%s1787_s3] sm:$0xff]  ;;  %v104_v43 = vld [vmem:[%s1788_s4 + $0x178] sm:$0xff]  ;;  %v138_v45 = vld [vmem:[%s1788_s4 + $0x288] sm:$0xff]  ;;  %v1051_v49 = vpack.c.bf16 %v72_v39, %v71_v38 }
  0x18   :  { %1074 = vmatprep.subr.bf16.mxu1 %v1073_v7  ;;  %v51_v30 = vmax.f32 %v45_v23, %v48_v24  ;;  %v137_v44 = vld [vmem:[%s1788_s4 + $0x280] sm:$0xff]  ;;  %v170_v48 = vld [vmem:[%s1788_s4 + $0x388] sm:$0xff]  ;;  %v1083_v52 = vpack.c.bf16 %v104_v43, %v103_v40  ;;  %v139_v60 = vld [vmem:[%s1788_s4 + $0x290] sm:$0xff] }
  0x19   :  { %1044 = vmatpush3.bf16.msra.mxu0 %v1043_v16  ;;  %v169_v47 = vld [vmem:[%s1788_s4 + $0x380] sm:$0xff]  ;;  %v1085_v53 = vpack.c.bf16 %v138_v45, %v137_v44  ;;  %v122_v55 = vld [vmem:[%s1788_s4 + $0x208] sm:$0xff]  ;;  %v140_v61 = vld [vmem:[%s1788_s4 + $0x298] sm:$0xff] }
  0x1a   :  { %v54_v35 = vmax.f32 %v42_v29, %v51_v30  ;;  %1046 = vmatprep.subr.bf16.mxu0 %v1045_v21  ;;  %v121_v54 = vld [vmem:[%s1788_s4 + $0x200] sm:$0xff]  ;;  %v1117_v58 = vpack.c.bf16 %v170_v48, %v169_v47  ;;  %v154_v59 = vld [vmem:[%s1788_s4 + $0x308] sm:$0xff]  ;;  %v171_v62 = vld [vmem:[%s1788_s4 + $0x390] sm:$0xff]  ;;  %v1089_v2 = vpack.c.bf16 %v140_v61, %v139_v60 }
  0x1b   :  { %1076 = vmatpush3.bf16.msra.mxu1 %v1075_v20  ;;  %v153_v56 = vld [vmem:[%s1788_s4 + $0x300] sm:$0xff]  ;;  %v172_v63 = vld [vmem:[%s1788_s4 + $0x398] sm:$0xff]  ;;  %v1087_v0 = vpack.c.bf16 %v122_v55, %v121_v54  ;;  %v123_v3 = vld [vmem:[%s1788_s4 + $0x210] sm:$0xff] }
  0x1c   :  { %1078 = vmatprep.subr.bf16.mxu1 %v1077_v25  ;;  %v218_v42 = vrot.slane %v54_v35, %v1455_v31  ;;  %v211_v46 = vcombine.high %v54_v35, %v54_v35  ;;  %v1119_v1 = vpack.c.bf16 %v154_v59, %v153_v56  ;;  %v124_v4 = vld [vmem:[%s1788_s4 + $0x218] sm:$0xff]  ;;  %v155_v5 = vld [vmem:[%s1788_s4 + $0x310] sm:$0xff]  ;;  %v1121_v6 = vpack.c.bf16 %v172_v63, %v171_v62  ;;  %v141_v8 = vld [vmem:[%s1788_s4 + $0x2a0] sm:$0xff] }
  0x1d   :  { %1048 = vmatpush3.bf16.msra.mxu0 %v1047_v34  ;;  %v156_v7 = vld [vmem:[%s1788_s4 + $0x318] sm:$0xff]  ;;  %v142_v9 = vld [vmem:[%s1788_s4 + $0x2a8] sm:$0xff]  ;;  %v173_v10 = vld [vmem:[%s1788_s4 + $0x3a0] sm:$0xff]  ;;  %v1091_v12 = vpack.c.bf16 %v124_v4, %v123_v3 }
  0x1e   :  { %v226_v50 = vcombine.high %v218_v42, %v218_v42  ;;  %v225_v51 = vrot.slane %v211_v46, %v1455_v31  ;;  %1050 = vmatprep.subr.bf16.mxu0 %v1049_v37  ;;  %v174_v11 = vld [vmem:[%s1788_s4 + $0x3a8] sm:$0xff]  ;;  %v1123_v13 = vpack.c.bf16 %v156_v7, %v155_v5  ;;  %v1093_v14 = vpack.c.bf16 %v142_v9, %v141_v8  ;;  %v125_v15 = vld [vmem:[%s1788_s4 + $0x220] sm:$0xff]  ;;  %v143_v20 = vld [vmem:[%s1788_s4 + $0x2b0] sm:$0xff] }
  0x1f   :  { %1080 = vmatpush3.bf16.msra.mxu1 %v1079_v36  ;;  %v126_v16 = vld [vmem:[%s1788_s4 + $0x228] sm:$0xff]  ;;  %v157_v17 = vld [vmem:[%s1788_s4 + $0x320] sm:$0xff]  ;;  %v1125_v18 = vpack.c.bf16 %v174_v11, %v173_v10  ;;  %v144_v21 = vld [vmem:[%s1788_s4 + $0x2b8] sm:$0xff] }
  0x20   :  { %1082 = vmatprep.subr.bf16.mxu1 %v1081_v41  ;;  %325 = vmatprep.mubr.f32.mxu0 %v226_v50  ;;  %v227_v57 = vcombine.high %v225_v51, %v225_v51  ;;  %v158_v19 = vld [vmem:[%s1788_s4 + $0x328] sm:$0xff]  ;;  %v175_v22 = vld [vmem:[%s1788_s4 + $0x3b0] sm:$0xff]  ;;  %v176_v23 = vld [vmem:[%s1788_s4 + $0x3b8] sm:$0xff]  ;;  %v1095_v24 = vpack.c.bf16 %v126_v16, %v125_v15  ;;  %v1097_v27 = vpack.c.bf16 %v144_v21, %v143_v20 }
  0x21   :  { %1052 = vmatpush3.bf16.msra.mxu0 %v1051_v49  ;;  %v127_v25 = vld [vmem:[%s1788_s4 + $0x230] sm:$0xff]  ;;  %v1127_v26 = vpack.c.bf16 %v158_v19, %v157_v17  ;;  %v128_v28 = vld [vmem:[%s1788_s4 + $0x238] sm:$0xff]  ;;  %v1129_v32 = vpack.c.bf16 %v176_v23, %v175_v22  ;;  %v145_v33 = vld [vmem:[%s1788_s4 + $0x2c0] sm:$0xff] }
  0x22   :  { %395 = vmatprep.mubr.f32.mxu1 %v227_v57  ;;  %1086 = vmatprep.subr.bf16.mxu0 %v1085_v53  ;;  %v159_v29 = vld [vmem:[%s1788_s4 + $0x330] sm:$0xff]  ;;  %v160_v30 = vld [vmem:[%s1788_s4 + $0x338] sm:$0xff]  ;;  %v146_v34 = vld [vmem:[%s1788_s4 + $0x2c8] sm:$0xff]  ;;  %v1099_v39 = vpack.c.bf16 %v128_v28, %v127_v25 }
  0x23   :  { %1084 = vmatpush3.bf16.msra.mxu1 %v1083_v52  ;;  %v177_v35 = vld [vmem:[%s1788_s4 + $0x3c0] sm:$0xff]  ;;  %v178_v36 = vld [vmem:[%s1788_s4 + $0x3c8] sm:$0xff]  ;;  %v1131_v44 = vpack.c.bf16 %v160_v30, %v159_v29  ;;  %v1101_v45 = vpack.c.bf16 %v146_v34, %v145_v33  ;;  %v148_v52 = vld [vmem:[%s1788_s4 + $0x2d8] sm:$0xff] }
  0x24   :  { %1118 = vmatprep.subr.bf16.mxu1 %v1117_v58  ;;  %326 = vmatmul.mubr.f32.vlgmr.msra.gmra.mrb[0].mxu0 %v218_v42  ;;  %v37_v37 = vld [vmem:[%s1784_s0 + $0x8] sm:$0xff]  ;;  %v129_v40 = vld [vmem:[%s1788_s4 + $0x240] sm:$0xff]  ;;  %v1133_v50 = vpack.c.bf16 %v178_v36, %v177_v35  ;;  %v179_v53 = vld [vmem:[%s1788_s4 + $0x3d0] sm:$0xff] }
  0x25   :  { %1088 = vmatpush3.bf16.msra.mxu0 %v1087_v0  ;;  %v40_v38 = vld [vmem:[%s1785_s1 + $0x8] sm:$0xff]  ;;  %v161_v47 = vld [vmem:[%s1788_s4 + $0x340] sm:$0xff]  ;;  %v180_v54 = vld [vmem:[%s1788_s4 + $0x3d8] sm:$0xff] }
  0x26   :  { %396 = vmatmul.mubr.f32.vlgmr.msra.gmra.mrb[0].mxu1 %v225_v51  ;;  %1090 = vmatprep.subr.bf16.mxu0 %v1089_v2  ;;  %v43_v41 = vmax.f32 %v37_v37, %v40_v38  ;;  %v46_v42 = vld [vmem:[%s1786_s2 + $0x8] sm:$0xff]  ;;  %v147_v51 = vld [vmem:[%s1788_s4 + $0x2d0] sm:$0xff]  ;;  %v132_v60 = vld [vmem:[%s1788_s4 + $0x258] sm:$0xff]  ;;  %v1137_v0 = vpack.c.bf16 %v180_v54, %v179_v53 }
  0x27   :  { %1120 = vmatpush3.bf16.msra.mxu1 %v1119_v1  ;;  %v49_v43 = vld [vmem:[%s1787_s3 + $0x8] sm:$0xff]  ;;  %v1105_v58 = vpack.c.bf16 %v148_v52, %v147_v51  ;;  %v131_v59 = vld [vmem:[%s1788_s4 + $0x250] sm:$0xff]  ;;  %v164_v1 = vld [vmem:[%s1788_s4 + $0x358] sm:$0xff] }
  0x28   :  { %1122 = vmatprep.subr.bf16.mxu1 %v1121_v6  ;;  %v130_v46 = vld [vmem:[%s1788_s4 + $0x248] sm:$0xff]  ;;  %v52_v49 = vmax.f32 %v46_v42, %v49_v43  ;;  %v163_v61 = vld [vmem:[%s1788_s4 + $0x350] sm:$0xff]  ;;  %v149_v2 = vld [vmem:[%s1788_s4 + $0x2e0] sm:$0xff]  ;;  %v1107_v8 = vpack.c.bf16 %v132_v60, %v131_v59 }
  0x29   :  { %1092 = vmatpush3.bf16.msra.mxu0 %v1091_v12  ;;  %v162_v48 = vld [vmem:[%s1788_s4 + $0x348] sm:$0xff]  ;;  %v1103_v56 = vpack.c.bf16 %v130_v46, %v129_v40  ;;  %v181_v4 = vld [vmem:[%s1788_s4 + $0x3e0] sm:$0xff] }
  0x2a   :  { %1094 = vmatprep.subr.bf16.mxu0 %v1093_v14  ;;  %v55_v55 = vmax.f32 %v43_v41, %v52_v49  ;;  %v1135_v57 = vpack.c.bf16 %v162_v48, %v161_v47  ;;  %v150_v3 = vld [vmem:[%s1788_s4 + $0x2e8] sm:$0xff] }
  0x2b   :  { %1124 = vmatpush3.bf16.msra.mxu1 %v1123_v13  ;;  %v182_v5 = vld [vmem:[%s1788_s4 + $0x3e8] sm:$0xff] }
  0x2c   :  { %1126 = vmatprep.subr.bf16.mxu1 %v1125_v18  ;;  %v235_v62 = vrot.slane %v55_v55, %v1455_v31  ;;  %v228_v63 = vcombine.high %v55_v55, %v55_v55 }
  0x2d   :  { %1096 = vmatpush3.bf16.msra.mxu0 %v1095_v24 }
  0x2e   :  { %1098 = vmatprep.subr.bf16.mxu0 %v1097_v27  ;;  %v243_v6 = vcombine.high %v235_v62, %v235_v62  ;;  %v242_v7 = vrot.slane %v228_v63, %v1455_v31 }
  0x2f   :  { %1128 = vmatpush3.bf16.msra.mxu1 %v1127_v26 }
  0x30   :  { %1130 = vmatprep.subr.bf16.mxu1 %v1129_v32 }
  0x31   :  { %1100 = vmatpush3.bf16.msra.mxu0 %v1099_v39 }
  0x32   :  { %1102 = vmatprep.subr.bf16.mxu0 %v1101_v45 }
  0x33   :  { %1132 = vmatpush3.bf16.msra.mxu1 %v1131_v44 }
  0x34   :  { %1134 = vmatprep.subr.bf16.mxu1 %v1133_v50 }
  0x35   :  { %1104 = vmatpush3.bf16.msra.mxu0 %v1103_v56 }
  0x36   :  { %15 = vsyncpa [#allocation3], 0  ;;  %1106 = vmatprep.subr.bf16.mxu0 %v1105_v58  ;;  %v1139_v9 = vpack.c.bf16 %v164_v1, %v163_v61  ;;  %v1109_v10 = vpack.c.bf16 %v150_v3, %v149_v2  ;;  %v133_v11 = vld [vmem:[%s1788_s4 + $0x260] sm:$0xff]  ;;  %v134_v12 = vld [vmem:[%s1788_s4 + $0x268] sm:$0xff]  ;;  %v244_v14 = vcombine.high %v242_v7, %v242_v7  ;;  %v1141_v15 = vpack.c.bf16 %v182_v5, %v181_v4 }
  0x37   :  { %1136 = vmatpush3.bf16.msra.mxu1 %v1135_v57  ;;  %v165_v13 = vld [vmem:[%s1788_s4 + $0x360] sm:$0xff]  ;;  %v166_v16 = vld [vmem:[%s1788_s4 + $0x368] sm:$0xff]  ;;  %v151_v17 = vld [vmem:[%s1788_s4 + $0x2f0] sm:$0xff]  ;;  %465 = vmatprep.mubr.f32.mxu0 %v243_v6  ;;  %v1111_v21 = vpack.c.bf16 %v134_v12, %v133_v11  ;;  %v1210_v35 = vmov 0.0|0.0   ;;  %vm1211_vm0 = vmmov 0   ;;  %v1212_v41 = vmov 0.0  }
  0x38   :  { %1138 = vmatprep.subr.bf16.mxu1 %v1137_v0  ;;  %v152_v18 = vld [vmem:[%s1788_s4 + $0x2f8] sm:$0xff]  ;;  %v183_v19 = vld [vmem:[%s1788_s4 + $0x3f0] sm:$0xff]  ;;  %535 = vmatprep.mubr.f32.mxu1 %v244_v14  ;;  %v1143_v22 = vpack.c.bf16 %v166_v16, %v165_v13  ;;  %v185_v32 = vld [vmem:[%s1788_s4 + $0x400] sm:$0xff]  ;;  %vm621_vm1 = vcmask 130048   ;;  %vm704_vm2 = vcmask 64512   ;;  %vm778_vm3 = vcmask 9216  }
  0x39   :  { %v184_v20 = vld [vmem:[%s1788_s4 + $0x3f8] sm:$0xff]  ;;  %1108 = vmatpush3.bf16.msra.mxu0 %v1107_v8  ;;  %v1113_v23 = vpack.c.bf16 %v152_v18, %v151_v17  ;;  %v135_v24 = vld [vmem:[%s1788_s4 + $0x270] sm:$0xff]  ;;  %v186_v33 = vld [vmem:[%s1788_s4 + $0x408] sm:$0xff] }
  0x3a   :  { %1110 = vmatprep.subr.bf16.mxu0 %v1109_v10  ;;  %v136_v25 = vld [vmem:[%s1788_s4 + $0x278] sm:$0xff]  ;;  %v1145_v26 = vpack.c.bf16 %v184_v20, %v183_v19  ;;  %v167_v27 = vld [vmem:[%s1788_s4 + $0x370] sm:$0xff]  ;;  %v1150_v34 = vpack.c.bf16 %v186_v33, %v185_v32  ;;  %v189_v39 = vld [vmem:[%s1788_s4 + $0x420] sm:$0xff] }
  0x3b   :  { %1140 = vmatpush3.bf16.msra.mxu1 %v1139_v9  ;;  %v168_v28 = vld [vmem:[%s1788_s4 + $0x378] sm:$0xff]  ;;  %v1115_v29 = vpack.c.bf16 %v136_v25, %v135_v24  ;;  %v187_v36 = vld [vmem:[%s1788_s4 + $0x410] sm:$0xff]  ;;  %v190_v40 = vld [vmem:[%s1788_s4 + $0x428] sm:$0xff] }
  0x3c   :  { %1142 = vmatprep.subr.bf16.mxu1 %v1141_v15  ;;  %v1147_v30 = vpack.c.bf16 %v168_v28, %v167_v27  ;;  %v188_v37 = vld [vmem:[%s1788_s4 + $0x418] sm:$0xff]  ;;  %v1156_v42 = vpack.c.bf16 %v190_v40, %v189_v39  ;;  %v191_v43 = vld [vmem:[%s1788_s4 + $0x430] sm:$0xff]  ;;  %v193_v46 = vld [vmem:[%s1788_s4 + $0x440] sm:$0xff] }
  0x3d   :  { %1112 = vmatpush3.bf16.msra.mxu0 %v1111_v21  ;;  %v1153_v38 = vpack.c.bf16 %v188_v37, %v187_v36  ;;  %v192_v44 = vld [vmem:[%s1788_s4 + $0x438] sm:$0xff]  ;;  %v194_v47 = vld [vmem:[%s1788_s4 + $0x448] sm:$0xff]  ;;  %v195_v49 = vld [vmem:[%s1788_s4 + $0x450] sm:$0xff] }
  0x3e   :  { %1114 = vmatprep.subr.bf16.mxu0 %v1113_v23  ;;  %v1159_v45 = vpack.c.bf16 %v192_v44, %v191_v43  ;;  %v1162_v48 = vpack.c.bf16 %v194_v47, %v193_v46  ;;  %v196_v50 = vld [vmem:[%s1788_s4 + $0x458] sm:$0xff]  ;;  %v38_v51 = vld [vmem:[%s1784_s0 + $0x10] sm:$0x3]  ;;  %v197_v56 = vld [vmem:[%s1788_s4 + $0x460] sm:$0xff] }
  0x3f   :  { %1144 = vmatpush3.bf16.msra.mxu1 %v1143_v22  ;;  %v1165_v52 = vpack.c.bf16 %v196_v50, %v195_v49  ;;  %v41_v53 = vld [vmem:[%s1785_s1 + $0x10] sm:$0x3]  ;;  %v198_v57 = vld [vmem:[%s1788_s4 + $0x468] sm:$0xff]  ;;  %v612_v2 = vld [vmem:[%s1790_s6] sm:$0xff] }
  0x40   :  { %1146 = vmatprep.subr.bf16.mxu1 %v1145_v26  ;;  %v47_v54 = vld [vmem:[%s1786_s2 + $0x10] sm:$0x3]  ;;  %v44_v58 = vmax.f32 %v38_v51, %v41_v53  ;;  %v1168_v60 = vpack.c.bf16 %v198_v57, %v197_v56  ;;  %v613_v3 = vld [vmem:[%s1790_s6 + $0x8] sm:$0xff]  ;;  %v807_v6 = vld [vmem:[%s1789_s5] ss:$0 sm:$0xff] }
  0x41   :  { %1116 = vmatpush3.bf16.msra.mxu0 %v1115_v29  ;;  %v50_v55 = vld [vmem:[%s1787_s3 + $0x10] sm:$0x3]  ;;  %v1174_v4 = vpack.c.bf16 %v613_v3, %v612_v2  ;;  %v696_v25 = vld [vmem:[%s1792_s8] sm:$0xff] }
  0x42   :  { %1149 = vmatprep.subr.bf16.mxu0 %v1210_v35  ;;  %v53_v59 = vmax.f32 %v47_v54, %v50_v55  ;;  %v199_v61 = vld [vmem:[%s1788_s4 + $0x470] sm:$0xff]  ;;  %v808_v26 = vld [vmem:[%s1791_s7] ss:$0 sm:$0xff]  ;;  %s1213_s7 = smov [#allocation2]  }
  0x43   :  { %1148 = vmatpush3.bf16.msra.mxu1 %v1147_v30  ;;  %v810_v32 = vld [vmem:[%s1793_s9] ss:$0 sm:$0xff]  ;;  %s799_s8 = sshll.u32 %s1213_s7, 4  ;;  %s800_s8 = int_to_ptr.vmem [resolvable:$true] %s799_s8 }
  0x44   :  { %1173 = vmatprep.subr.bf16.mxu1 %v1210_v35  ;;  %466 = vmatmul.mubr.f32.vlgmr.msra.gmra.mrb[2].mxu0 %v235_v62  ;;  %v200_v62 = vld [vmem:[%s1788_s4 + $0x478] sm:$0xff]  ;;  %v56_v63 = vmax.f32 %v44_v58, %v53_v59  ;;  %s1185_s9 = scalar_lea.vmem %s800_s8, 32  ;;  %p1190_p1 = scmp.lt.s32.totalorder %s800_s8, %s800_s8 }
  0x45   :  { %1151 = vmatpush3.bf16.msra.mxu0 %v1150_v34  ;;  %1006 = vmatprep.mubr.msk.f32.mxu0 %vm1211_vm0, %v1212_v41  ;;  %v1171_v0 = vpack.c.bf16 %v200_v62, %v199_v61  ;;  %p1186_p0 = scmp.ne.s32.totalorder %s800_s8, %s1185_s9  ;;  %p1191_p2 = scmp.lt.s32.totalorder %s1185_s9, %s1185_s9 }
  0x46   :  { %536 = vmatmul.mubr.f32.vlgmr.msra.gmra.mrb[2].mxu1 %v242_v7  ;;  %1152 = vmatprep.subr.bf16.mxu0 %v1210_v35  ;;  %v251_v1 = vrot.slane %v56_v63, %v1455_v31 }
  0x47   :  { %1013 = vmatprep.mubr.msk.f32.mxu1 %vm1211_vm0, %v1212_v41  ;;  %1175 = vmatpush3.bf16.msra.mxu1 %v1174_v4  ;;  %p1192_p3 = por %p1191_p2, %p1190_p1 }
  0x48   :  { %1016 = vmatprep.subr.mxu1 %v1212_v41 }
  0x49   :  { %1154 = vmatpush3.bf16.msra.mxu0 %v1153_v38  ;;  %p1193_p4 = pnand %p1192_p3, %p1186_p0 }
  0x4a   :  { %1155 = vmatprep.subr.bf16.mxu0 %v1210_v35 }
  0x4d   :  { %1157 = vmatpush3.bf16.msra.mxu0 %v1156_v42 }
  0x4e   :  { %1158 = vmatprep.subr.bf16.mxu0 %v1210_v35 }
  0x51   :  { %1160 = vmatpush3.bf16.msra.mxu0 %v1159_v45 }
  0x52   :  { %1161 = vmatprep.subr.bf16.mxu0 %v1210_v35 }
  0x55   :  { %1163 = vmatpush3.bf16.msra.mxu0 %v1162_v48 }
  0x56   :  { %1164 = vmatprep.subr.bf16.mxu0 %v1210_v35 }
  0x59   :  { %1166 = vmatpush3.bf16.msra.mxu0 %v1165_v52 }
  0x5a   :  { %1167 = vmatprep.subr.bf16.mxu0 %v1210_v35 }
  0x5d   :  { %1169 = vmatpush3.bf16.msra.mxu0 %v1168_v60 }
  0x5e   :  { %1170 = vmatprep.subr.bf16.mxu0 %v1210_v35 }
  0x61   :  { %1172 = vmatpush3.bf16.msra.mxu0 %v1171_v0 }
  0x64   :  { %1007 = vmatmul.mubr.f32.vlgmr.msra.gmra.mrb[4].mxu0 %v251_v1 }
  0xf7   :  { %v844_v5 = vpop.f32.mrb[0].mxu0 }
  0xf8   :  { %v845_v31 = vpop.f32.mrb[1].mxu0 }
  0xf9   :  { %v879_v7 = vpop.f32.mrb[0].mxu1  ;;  %v846_v8 = vadd.f32 %v845_v31, %v844_v5 }
  0xfa   :  { %v880_v9 = vpop.f32.mrb[1].mxu1 }
  0xfb   :  { %v881_v10 = vadd.f32 %v880_v9, %v879_v7  ;;  %v328_v11 = vadd.f32 %v846_v8, %v807_v6 }
  0xfd   :  { %v398_v12 = vadd.f32 %v881_v10, %v328_v11 }
 0x117   :  { %v914_v13 = vpop.f32.mrb[2].mxu0 }
 0x118   :  { %v915_v14 = vpop.f32.mrb[3].mxu0 }
 0x119   :  { %v949_v15 = vpop.f32.mrb[2].mxu1  ;;  %v916_v16 = vadd.f32 %v915_v14, %v914_v13 }
 0x11a   :  { %v950_v17 = vpop.f32.mrb[3].mxu1 }
 0x11b   :  { %v951_v18 = vadd.f32 %v950_v17, %v949_v15  ;;  %v468_v19 = vadd.f32 %v916_v16, %v398_v12 }
 0x11d   :  { %v538_v20 = vadd.f32 %v951_v18, %v468_v19 }
 0x137   :  { %v607_v21 = vpop.f32.mrb[4].mxu0 }
 0x138   :  { %v608_v22 = vadd.f32 %v607_v21, %v538_v20  ;;  %v1008_v23 = vpop.f32.mrb[5].mxu0 }
 0x13a   :  { %v611_v24 = vmax.f32 %v608_v22, 0.0 }
 0x13c   :  { %1014 = vmatmul.mubr.msk.f32.vlgmr.msra.gmra.mrb[4].mxu1 %vm621_vm1, %v611_v24 }
 0x13d   :  { %1018 = vmatprep.mubr.msk.f32.mxu1 %vm1211_vm0, %v1212_v41  ;;  %1017 = vmatpush3.msra.mxu1 %v696_v25 }
 0x20f   :  { %v691_v27 = vpop.f32.mrb[4].mxu1 }
 0x210   :  { %v692_v28 = vadd.f32 %v808_v26, %v691_v27  ;;  %v1015_v29 = vpop.f32.mrb[5].mxu1 }
 0x212   :  { %v695_v30 = vmax.f32 %v692_v28, 0.0 }
 0x214   :  { %1019 = vmatmul.mubr.msk.f32.vlgmr.msra.gmra.mrb[6].mxu1 %vm704_vm2, %v695_v30 }
 0x2e7   :  { %v774_v33 = vpop.f32.mrb[6].mxu1 }
 0x2e8   :  { %v775_v34 = vadd.f32 %v810_v32, %v774_v33  ;;  %v1020_v35 = vpop.f32.mrb[7].mxu1 }
 0x2ea   :  { %v779_v36 = vsel %vm778_vm3, %v775_v34, -inf }
 0x2eb   :  { %780 = vmax.xlane.f32.xlu0 %v779_v36 }
 0x378   :  { %v781_v37 = vpop.xlane.xlu0 %780 }
 0x379   :  { %v782_v38 = vsub.f32 %v775_v34, %v781_v37 }
 0x37b   :  { %v783_v39 = vmul.f32 1.442695, %v782_v38 }
 0x37d   :  { %1181 = vpow2.f32 %v783_v39 }
 0x387   :  { %v1182_v40 = vpop.eup %1181 }
 0x388   :  { %v785_v41 = vsel %vm778_vm3, %v1182_v40, 0.0 }
 0x389   :  { %786 = vadd.xlane.f32.xlu0 %v785_v41 }
 0x416   :  { %v787_v42 = vpop.xlane.xlu0 %786 }
 0x417   :  { %1183 = vlog2.f32 %v787_v42 }
 0x421   :  { %v1184_v43 = vpop.eup %1183 }
 0x422   :  { %v789_v44 = vmul.f32 0.6931472, %v1184_v43 }
 0x424   :  { %v790_v45 = vadd.f32 %v789_v44, %v781_v37 }
 0x426   :  { %v791_v46 = vsub.f32 %v775_v34, %v790_v45 }
 0x428   :  { %792 = vst.msk [vmem:[#allocation2] sm:$0x3] %vm778_vm3, %v791_v46 }
 0x429   :  { %1196 = shalt.err (!%p1193_p4)
}
 0x42a   :  { %s1197_s12 = scalar_lea.hbm %s1794_s10, 32 }
 0x42b   :  { %p1198_p5 = scmp.ne.s32.totalorder %s1794_s10, %s1197_s12  ;;  %p1201_p6 = scmp.lt.u32.totalorder %s1197_s12, %s1794_s10 }
 0x42d   :  { %p1203_p7 = pnand %p1201_p6, %p1198_p5 }
 0x42f   :  { %1206 = shalt.err (!%p1203_p7)
}
 0x430   :  { %802 = dma.vmem_to_hbm [thread:$0]  %s800_s8, 32, %s1794_s10, [#allocation3]  }
 0x431   :  { %1207 = dma.done.wait [#allocation3], 32  }
 0x432   :  { %1208 = vsyncadd [#allocation3], 4294967264 }
 0x433   :  { %806 = vsyncpa [#allocation3], 1 }

// kernel: simple_convlstm_forward.2
= control target key start
LH: loop header
LB: loop body
LE: loop exit
PB: predicated region body
PF: predicated region fallthrough
CT: control target
= control target key end

     0   :  { %s22480_s21 = smov 0   ;;  %s22482_s22 = smov 0   ;;  %s26833_s0 = inlined_call_operand.vmem [shape: f32[4,1], index: 0, kind: input, shape index: {}]   ;;  %s26834_s1 = inlined_call_operand.vmem [shape: f32[4,1], index: 1, kind: input, shape index: {}]   ;;  %s26835_s2 = inlined_call_operand.vmem [shape: f32[1,1152], index: 2, kind: input, shape index: {}]   ;;  %s26836_s3 = inlined_call_operand.vmem [shape: f32[2,4,4,1152], index: 3, kind: input, shape index: {}]   ;;  %s26837_s4 = inlined_call_operand.vmem [shape: f32[9,32,4], index: 4, kind: input, shape index: {}]   ;;  %s26838_s5 = inlined_call_operand.vmem [shape: f32[9,32,8], index: 5, kind: input, shape index: {}]   ;;  %s26839_s6 = inlined_call_operand.vmem [shape: f32[32,1], index: 6, kind: input, shape index: {}]   ;;  %s26840_s7 = inlined_call_operand.vmem [shape: f32[9,32,8], index: 7, kind: input, shape index: {}]   ;;  %s26841_s8 = inlined_call_operand.vmem [shape: f32[9,32,8], index: 8, kind: input, shape index: {}]   ;;  %s26842_s9 = inlined_call_operand.vmem [shape: f32[32,1], index: 9, kind: input, shape index: {}]   ;;  %s26843_s10 = inlined_call_operand.vmem [shape: f32[9,8,8], index: 10, kind: input, shape index: {}]   ;;  %s26844_s11 = inlined_call_operand.vmem [shape: f32[8,1], index: 11, kind: input, shape index: {}]   ;;  %s26845_s12 = inlined_call_operand.vmem [shape: f32[2,8,896], index: 12, kind: output, shape index: {}]  }
   0x1   :  { %s22484_s23 = smov 0   ;;  %s22486_s24 = smov 0  }
   0x2   :  { %s22488_s25 = smov 0  }
   0x3 LB: > { %s31_s26 = sadd.s32 1, %s22382_s23  ;;  %s34_s27 = sadd.s32 1, %s22386_s24  ;;  %s22390_s25 = sphi %s22488_s25, %s22_s25   ;;  %s22386_s24 = sphi %s22486_s24, %s27159_s24   ;;  %s22382_s23 = sphi %s22484_s23, %s27158_s23   ;;  %s22378_s22 = sphi %s22482_s22, %s27157_s22   ;;  %s22374_s21 = sphi %s22480_s21, %s27156_s21  }
   0x4   : > { %p32_p0 = scmp.ge.s32.totalorder %s31_s26, 4  ;;  %p19626_p1 = scmp.ge.s32.totalorder %s22390_s25, 1 }
   0x5   : > { %p380_p2 = scmp.lt.s32.totalorder %s22390_s25, 9 }
   0x6   : > { %s27161_s26 = smov (%p32_p0, %s31_s26), 0  ;;  %s27163_s27 = smov (!%p32_p0, %s34_s27), %s22386_s24 }
   0x7   : > { %p381_p3 = pnand %p19626_p1, %p380_p2  ;;  %p36_p4 = scmp.ge.s32.totalorder %s27163_s27, 2 }
   0x9   : > { %s27165_s27 = smov (%p36_p4, %s27163_s27), 0  ;;  %384 = sbr.rel (%p381_p3) target bundleno = 3108 (0xc24), region = 68 }
   0xa   : > { %26945 = sst [smem:[#allocation6_spill]] %s27165_s27 }
  0x10   : > { %p426_p5 = scmp.lt.s32.totalorder %s22378_s22, 1  ;;  %p428_p6 = scmp.lt.s32.totalorder %s22374_s21, 3 }
  0x11   : > { %p19629_p7 = scmp.ne.s32.totalorder %s22374_s21, 0 }
  0x12   : > { %s27167_s22 = smov (!%p426_p5, %s22378_s22), 1  ;;  %v22392_v0 = vmov (!%p19629_p7), 0.0  }
  0x13   : > { %s429_s28 = scalar_select %p428_p6, %s22374_s21, 3 }
  0x14   : > { %s22019_s29 = smul.u32 36, %s27167_s22  ;;  %444 = vst [vmem:[#allocation2] sm:$0xff] (!%p19629_p7), %v22392_v0  ;;  %445 = vst [vmem:[#allocation2 + $0x8] sm:$0xff] (!%p19629_p7), %v22392_v0 }
  0x15   : > { %s22018_s30 = smul.u32 9, %s429_s28  ;;  %446 = vst [vmem:[#allocation2 + $0x10] sm:$0xff] (!%p19629_p7), %v22392_v0  ;;  %447 = vst [vmem:[#allocation2 + $0x18] sm:$0xff] (!%p19629_p7), %v22392_v0 }
  0x16   : > { %s22020_s13 = smul.u32 56, %s27167_s22  ;;  %448 = vst [vmem:[#allocation2 + $0x20] sm:$0xff] (!%p19629_p7), %v22392_v0  ;;  %449 = vst [vmem:[#allocation2 + $0x28] sm:$0xff] (!%p19629_p7), %v22392_v0 }
  0x17   : > { %s432_s14 = sadd.s32 %s22019_s29, %s22018_s30  ;;  %443 = sbr.rel (%p19629_p7) target bundleno = 36 (0x24), region = 72  ;;  %450 = vst [vmem:[#allocation2 + $0x30] sm:$0xff] (!%p19629_p7), %v22392_v0  ;;  %451 = vst [vmem:[#allocation2 + $0x38] sm:$0xff] (!%p19629_p7), %v22392_v0 }
  0x18   : > { %s19627_s15 = sshll.u32 %s432_s14, 2  ;;  %s22517_s18 = scalar_lea.vmem %s26845_s12, %s22020_s13  ;;  %452 = vst [vmem:[#allocation2 + $0x40] sm:$0xff] (!%p19629_p7), %v22392_v0  ;;  %453 = vst [vmem:[#allocation3] sm:$0xff] (!%p19629_p7), %v22392_v0 }
  0x19   : > { %s22522_s27 = scalar_lea.vmem %s26836_s3, %s19627_s15  ;;  %454 = vst [vmem:[#allocation3 + $0x8] sm:$0xff] (!%p19629_p7), %v22392_v0  ;;  %455 = vst [vmem:[#allocation3 + $0x10] sm:$0xff] (!%p19629_p7), %v22392_v0 }
  0x1a   : > { %456 = vst [vmem:[#allocation3 + $0x18] sm:$0xff] (!%p19629_p7), %v22392_v0  ;;  %457 = vst [vmem:[#allocation3 + $0x20] sm:$0xff] (!%p19629_p7), %v22392_v0 }
  0x1b   : > { %458 = vst [vmem:[#allocation3 + $0x28] sm:$0xff] (!%p19629_p7), %v22392_v0  ;;  %459 = vst [vmem:[#allocation3 + $0x30] sm:$0xff] (!%p19629_p7), %v22392_v0 }
  0x1c   : > { %460 = vst [vmem:[#allocation4] sm:$0xff] (!%p19629_p7), %v22392_v0  ;;  %461 = vst [vmem:[#allocation4 + $0x8] sm:$0xff] (!%p19629_p7), %v22392_v0 }
  0x1d   : > { %462 = vst [vmem:[#allocation4 + $0x10] sm:$0xff] (!%p19629_p7), %v22392_v0  ;;  %463 = vst [vmem:[#allocation4 + $0x18] sm:$0xff] (!%p19629_p7), %v22392_v0 }
  0x1e   : > { %464 = vst [vmem:[#allocation4 + $0x20] sm:$0xff] %v22392_v0  ;;  %465 = vst [vmem:[#allocation4 + $0x28] sm:$0xff] %v22392_v0 }
  0x1f   : > { %466 = vst [vmem:[#allocation4 + $0x30] sm:$0xff] %v22392_v0  ;;  %467 = vst [vmem:[#allocation4 + $0x38] sm:$0xff] %v22392_v0 }
  0x20   : > { %468 = vst [vmem:[#allocation4 + $0x40] sm:$0xff] %v22392_v0  ;;  %469 = vst [vmem:[#allocation5] sm:$0xff] %v22392_v0 }
  0x21   : > { %470 = vst [vmem:[#allocation5 + $0x8] sm:$0xff] %v22392_v0  ;;  %471 = vst [vmem:[#allocation5 + $0x10] sm:$0xff] %v22392_v0 }
  0x22   : > { %472 = vst [vmem:[#allocation5 + $0x18] sm:$0xff] %v22392_v0  ;;  %473 = vst [vmem:[#allocation5 + $0x20] sm:$0xff] %v22392_v0 }
  0x23   : > { %474 = vst [vmem:[#allocation5 + $0x28] sm:$0xff] %v22392_v0  ;;  %475 = vst [vmem:[#allocation5 + $0x30] sm:$0xff] %v22392_v0 }
  0x24 PF: > { %v716_v1 = vld [vmem:[%s26833_s0] sm:$0xf]  ;;  %v22393_v2 = vmov 0   ;;  %vm493_vm0 = vcmask 1043456   ;;  %v22535_v5 = vld [vmem:[%s22522_s27 + $0x10] sm:$0xff]  ;;  %v22540_v7 = vld [vmem:[%s22522_s27 + $0x8] sm:$0xff]  ;;  %v724_v21 = vlaneseq }
  0x25   : > { %22084 = vset.pattern.permute.xlu0 %v22393_v2  ;;  %22085 = vset.pattern.permute.xlu1 %v22393_v2  ;;  %v734_v3 = vld [vmem:[%s26834_s1] sm:$0xf]  ;;  %v487_v9 = vcombine.high %v22535_v5, %v22535_v5  ;;  %v22547_v10 = vld [vmem:[%s22522_s27 + $0x18] sm:$0xff]  ;;  %v486_v11 = vcombine.high %v22540_v7, %v22540_v7  ;;  %v508_v14 = vsel %vm493_vm0, %v22540_v7, 0.0  ;;  %v522_v17 = vsel %vm493_vm0, %v22535_v5, 0.0  ;;  %s22396_s19 = smov 32  }
  0x26   : > { %719 = vperm.xlu0 %22084, %v716_v1   ;;  %v22532_v4 = vld [vmem:[%s22522_s27] sm:$0xff]  ;;  %v488_v15 = vcombine.high %v22547_v10, %v22547_v10  ;;  %v509_v19 = vrot.slane %v508_v14, 4  ;;  %v536_v23 = vsel %vm493_vm0, %v22547_v10, 0.0  ;;  %v523_v24 = vrot.slane %v522_v17, 4  ;;  %s26915_s20 = smov 33   ;;  %s22398_s22 = smov 31  }
  0x27   : > { %v485_v6 = vcombine.high %v22532_v4, %v22532_v4  ;;  %v494_v8 = vsel %vm493_vm0, %v22532_v4, 0.0  ;;  %v529_v18 = vsel %vm493_vm0, %v487_v9, 0.0  ;;  %v515_v20 = vsel %vm493_vm0, %v486_v11, 0.0  ;;  %v806_v41 = vld [vmem:[%s26835_s2 + $0x1] sm:$0xff]  ;;  %s22399_s28 = smov 1   ;;  %s22400_s29 = smov 127  }
  0x28   : > { %v495_v13 = vrot.slane %v494_v8, 4  ;;  %v530_v25 = vrot.slane %v529_v18, 4  ;;  %v516_v27 = vrot.slane %v515_v20, 4  ;;  %v543_v28 = vsel %vm493_vm0, %v488_v15, 0.0  ;;  %v480_v54 = vld [vmem:[%s22522_s27 + $0x20] sm:$0xf] }
  0x29   : > { %v501_v12 = vsel %vm493_vm0, %v485_v6, 0.0  ;;  %v510_v29 = vadd.f32 %v509_v19, %v508_v14  ;;  %v537_v30 = vrot.slane %v536_v23, 4  ;;  %v22563_v31 = vshrl.u32 %v724_v21, 7  ;;  %s22401_s30 = smov 97   ;;  %s26893_s13 = smov 96  }
  0x2a   : > { %737 = vperm.xlu0 %22084, %v734_v3   ;;  %v502_v16 = vrot.slane %v501_v12, 4  ;;  %v496_v22 = vadd.f32 %v495_v13, %v494_v8  ;;  %v524_v33 = vadd.f32 %v523_v24, %v522_v17  ;;  %v531_v34 = vadd.f32 %v530_v25, %v529_v18  ;;  %s26891_s14 = smov 95   ;;  %p20440_p8 = scmp.ne.s32.totalorder %s22374_s21, 3 }
  0x2b   : > { %26946 = vst [vmem:[#allocation7_spill] sm:$0xff] %v22563_v31  ;;  %v544_v35 = vrot.slane %v543_v28, 4  ;;  %v517_v37 = vadd.f32 %v516_v27, %v515_v20  ;;  %v766_v38 = vsub.s32 2, %v22563_v31  ;;  %v511_v39 = vrot.slane %v510_v29, 2  ;;  %s22406_s21 = smov (!%p20440_p8), 33   ;;  %s22409_s27 = smov (!%p20440_p8), 127  }
  0x2c   : > { %v503_v26 = vadd.f32 %v502_v16, %v501_v12  ;;  %v497_v32 = vrot.slane %v496_v22, 2  ;;  %v538_v40 = vadd.f32 %v537_v30, %v536_v23  ;;  %v770_v43 = vsub.s32 3, %v22563_v31  ;;  %s22410_s15 = smov (!%p20440_p8), 97   ;;  %s22411_s16 = smov (!%p20440_p8), 96  }
  0x2d   : > { %v774_v44 = vsub.s32 4, %v22563_v31  ;;  %v22573_v45 = vrot.slane %v806_v41, %v766_v38  ;;  %v525_v46 = vrot.slane %v524_v33, 2  ;;  %v532_v47 = vrot.slane %v531_v34, 2 }
  0x2e   : > { %v504_v36 = vrot.slane %v503_v26, 2  ;;  %v498_v42 = vadd.f32 %v497_v32, %v496_v22  ;;  %v545_v48 = vadd.f32 %v544_v35, %v543_v28  ;;  %v778_v49 = vsub.s32 5, %v22563_v31 }
  0x2f   : > { %26947 = vst [vmem:[#allocation8_spill] sm:$0xff] %v22573_v45  ;;  %v518_v51 = vrot.slane %v517_v37, 2  ;;  %v22578_v52 = vrot.slane %v806_v41, %v770_v43  ;;  %v22582_v53 = vrot.slane %v806_v41, %v774_v44  ;;  %v512_v55 = vadd.f32 %v511_v39, %v510_v29 }
  0x30   : > { %v505_v50 = vadd.f32 %v504_v36, %v503_v26  ;;  %v22587_v56 = vrot.slane %v806_v41, %v778_v49  ;;  %v499_v57 = vrot.slane %v498_v42, 1  ;;  %v539_v58 = vrot.slane %v538_v40, 2 }
  0x31   : > { %26948 = vst [vmem:[#allocation9_spill] sm:$0xff] %v22578_v52  ;;  %26949 = vst [vmem:[#allocation10_spill] sm:$0xff] %v22582_v53  ;;  %v758_v59 = vsub.s32 0, %v22563_v31  ;;  %v762_v60 = vsub.s32 1, %v22563_v31  ;;  %v526_v61 = vadd.f32 %v525_v46, %v524_v33  ;;  %v533_v62 = vadd.f32 %v532_v47, %v531_v34 }
  0x32   : > { %26950 = vst [vmem:[#allocation11_spill] sm:$0xff] %v22587_v56  ;;  %v546_v63 = vrot.slane %v545_v48, 2  ;;  %v550_v0 = vsel %vm493_vm0, %v480_v54, 0.0  ;;  %v506_v1 = vrot.slane %v505_v50, 1  ;;  %v519_v2 = vadd.f32 %v518_v51, %v517_v37 }
  0x33   : > { %v22594_v3 = vrot.slane %v806_v41, %v758_v59  ;;  %v22598_v6 = vrot.slane %v806_v41, %v762_v60  ;;  %v551_v8 = vrot.slane %v550_v0, 4  ;;  %v540_v9 = vadd.f32 %v539_v58, %v538_v40 }
  0x34   : > { %v527_v11 = vrot.slane %v526_v61, 1  ;;  %v534_v12 = vrot.slane %v533_v62, 1  ;;  %v547_v13 = vadd.f32 %v546_v63, %v545_v48  ;;  %v500_v15 = vadd.f32 %v499_v57, %v498_v42 }
  0x35   : > { %26951 = vst [vmem:[#allocation12_spill] sm:$0xff] %v22594_v3  ;;  %26952 = vst [vmem:[#allocation13_spill] sm:$0xff] %v22598_v6  ;;  %v552_v14 = vadd.f32 %v551_v8, %v550_v0  ;;  %v507_v16 = vadd.f32 %v506_v1, %v505_v50  ;;  %v513_v17 = vrot.slane %v512_v55, 1  ;;  %v520_v18 = vrot.slane %v519_v2, 1  ;;  %v23163_v6 = vld [vmem:[%s26837_s4 + $0x40] sm:$0xff] }
  0x36   : > { %v528_v20 = vadd.f32 %v527_v11, %v526_v61  ;;  %v535_v21 = vadd.f32 %v534_v12, %v533_v62  ;;  %v541_v22 = vrot.slane %v540_v9, 1  ;;  %v548_v23 = vrot.slane %v547_v13, 1 }
  0x37   : > { %v553_v19 = vrot.slane %v552_v14, 2  ;;  %v514_v24 = vadd.f32 %v513_v17, %v512_v55  ;;  %v521_v25 = vadd.f32 %v520_v18, %v519_v2  ;;  %v558_v26 = vmul.f32 0.25, %v500_v15 }
  0x38   : > { %v559_v27 = vmul.f32 0.25, %v507_v16  ;;  %v542_v29 = vadd.f32 %v541_v22, %v540_v9  ;;  %v549_v30 = vadd.f32 %v548_v23, %v547_v13  ;;  %v562_v32 = vmul.f32 0.25, %v528_v20 }
  0x39   : > { %v554_v28 = vadd.f32 %v553_v19, %v552_v14  ;;  %v563_v33 = vmul.f32 0.25, %v535_v21  ;;  %v560_v34 = vmul.f32 0.25, %v514_v24  ;;  %v561_v35 = vmul.f32 0.25, %v521_v25 }
  0x3a   : > { %v575_v36 = vcombine.low %v558_v26, %v559_v27  ;;  %v564_v39 = vmul.f32 0.25, %v542_v29  ;;  %v565_v40 = vmul.f32 0.25, %v549_v30  ;;  %vm848_vm1 = vcmask 31744  }
  0x3b   : > { %v555_v37 = vrot.slane %v554_v28, 1  ;;  %v577_v41 = vcombine.low %v562_v32, %v563_v33  ;;  %v576_v42 = vcombine.low %v560_v34, %v561_v35  ;;  %vm840_vm2 = vcmask 261120  }
  0x3c   : > { %v22601_v46 = vsub.f32 %v22532_v4, %v575_v36  ;;  %v578_v48 = vcombine.low %v564_v39, %v565_v40  ;;  %vm1243_vm3 = vcmask 269312   ;;  %vm1650_vm4 = vcmask 252928  }
  0x3d   : > { %v556_v47 = vadd.f32 %v555_v37, %v554_v28  ;;  %v22604_v50 = vsub.f32 %v22535_v5, %v577_v41  ;;  %v22607_v51 = vsub.f32 %v22540_v7, %v576_v42  ;;  %vm2085_vm5 = vcmask 7168  }
  0x3e   : > { %v588_v55 = vmul.f32 %v22601_v46, %v22601_v46  ;;  %v22612_v58 = vsub.f32 %v22547_v10, %v578_v48  ;;  %vm2932_vm6 = vcmask 1039360   ;;  %vm3367_vm7 = vcmask 793600  }
  0x3f   : > { %v566_v57 = vmul.f32 0.25, %v556_v47  ;;  %v590_v61 = vmul.f32 %v22604_v50, %v22604_v50  ;;  %v589_v4 = vmul.f32 %v22607_v51, %v22607_v51  ;;  %vm3802_vm8 = vcmask 785408  }
  0x40   : > { %v597_v62 = vcombine.high %v588_v55, %v588_v55  ;;  %v591_v5 = vmul.f32 %v22612_v58, %v22612_v58  ;;  %v605_v0 = vsel %vm493_vm0, %v588_v55, 0.0  ;;  %vm4237_vm9 = vcmask 777216  }
  0x41   : > { %v22618_v63 = vsub.f32 %v480_v54, %v566_v57  ;;  %v599_v7 = vcombine.high %v590_v61, %v590_v61  ;;  %v598_v1 = vcombine.high %v589_v4, %v589_v4  ;;  %v619_v10 = vsel %vm493_vm0, %v589_v4, 0.0 }
  0x42   : > { %v612_v2 = vsel %vm493_vm0, %v597_v62, 0.0  ;;  %v606_v8 = vrot.slane %v605_v0, 4  ;;  %v633_v9 = vsel %vm493_vm0, %v590_v61, 0.0  ;;  %v600_v12 = vcombine.high %v591_v5, %v591_v5 }
  0x43   : > { %v592_v11 = vmul.f32 %v22618_v63, %v22618_v63  ;;  %v613_v54 = vrot.slane %v612_v2, 4  ;;  %v640_v13 = vsel %vm493_vm0, %v599_v7, 0.0  ;;  %v620_v14 = vrot.slane %v619_v10, 4 }
  0x44   : > { %v626_v15 = vsel %vm493_vm0, %v598_v1, 0.0  ;;  %v634_v16 = vrot.slane %v633_v9, 4  ;;  %v647_v17 = vsel %vm493_vm0, %v591_v5, 0.0  ;;  %v607_v18 = vadd.f32 %v606_v8, %v605_v0 }
  0x45   : > { %v641_v19 = vrot.slane %v640_v13, 4  ;;  %v661_v20 = vsel %vm493_vm0, %v592_v11, 0.0  ;;  %v614_v21 = vadd.f32 %v613_v54, %v612_v2  ;;  %v627_v22 = vrot.slane %v626_v15, 4 }
  0x46   : > { %v654_v23 = vsel %vm493_vm0, %v600_v12, 0.0  ;;  %v621_v24 = vadd.f32 %v620_v14, %v619_v10  ;;  %v648_v25 = vrot.slane %v647_v17, 4  ;;  %v635_v26 = vadd.f32 %v634_v16, %v633_v9 }
  0x47   : > { %v662_v27 = vrot.slane %v661_v20, 4  ;;  %v608_v28 = vrot.slane %v607_v18, 2  ;;  %v642_v29 = vadd.f32 %v641_v19, %v640_v13  ;;  %v655_v30 = vrot.slane %v654_v23, 4 }
  0x48   : > { %v615_v32 = vrot.slane %v614_v21, 2  ;;  %v628_v33 = vadd.f32 %v627_v22, %v626_v15  ;;  %v622_v34 = vrot.slane %v621_v24, 2  ;;  %v649_v35 = vadd.f32 %v648_v25, %v647_v17 }
  0x49   : > { %v636_v36 = vrot.slane %v635_v26, 2  ;;  %v663_v37 = vadd.f32 %v662_v27, %v661_v20  ;;  %v609_v39 = vadd.f32 %v608_v28, %v607_v18  ;;  %v643_v40 = vrot.slane %v642_v29, 2 }
  0x4a   : > { %v656_v41 = vadd.f32 %v655_v30, %v654_v23  ;;  %v616_v42 = vadd.f32 %v615_v32, %v614_v21  ;;  %v629_v47 = vrot.slane %v628_v33, 2  ;;  %v623_v48 = vadd.f32 %v622_v34, %v621_v24 }
  0x4b   : > { %v650_v55 = vrot.slane %v649_v35, 2  ;;  %v637_v57 = vadd.f32 %v636_v36, %v635_v26  ;;  %v664_v61 = vrot.slane %v663_v37, 2  ;;  %v610_v4 = vrot.slane %v609_v39, 1 }
  0x4c   : > { %v644_v62 = vadd.f32 %v643_v40, %v642_v29  ;;  %v657_v5 = vrot.slane %v656_v41, 2  ;;  %v617_v7 = vrot.slane %v616_v42, 1  ;;  %v630_v0 = vadd.f32 %v629_v47, %v628_v33 }
  0x4d   : > { %v624_v1 = vrot.slane %v623_v48, 1  ;;  %v651_v2 = vadd.f32 %v650_v55, %v649_v35  ;;  %v638_v10 = vrot.slane %v637_v57, 1  ;;  %v665_v8 = vadd.f32 %v664_v61, %v663_v37 }
  0x4e   : > { %v611_v9 = vadd.f32 %v610_v4, %v609_v39  ;;  %v645_v11 = vrot.slane %v644_v62, 1  ;;  %v658_v12 = vadd.f32 %v657_v5, %v656_v41  ;;  %v618_v54 = vadd.f32 %v617_v7, %v616_v42 }
  0x4f   : > { %v631_v13 = vrot.slane %v630_v0, 1  ;;  %v625_v14 = vadd.f32 %v624_v1, %v623_v48  ;;  %v652_v15 = vrot.slane %v651_v2, 1  ;;  %v639_v16 = vadd.f32 %v638_v10, %v637_v57  ;;  %v752_v10 = vld [vmem:[%s26835_s2] sm:$0xff] }
  0x50   : > { %v666_v17 = vrot.slane %v665_v8, 1  ;;  %v646_v18 = vadd.f32 %v645_v11, %v644_v62  ;;  %v659_v19 = vrot.slane %v658_v12, 1  ;;  %v668_v20 = vmul.f32 0.25, %v611_v9 }
  0x51   : > { %v632_v21 = vadd.f32 %v631_v13, %v630_v0  ;;  %v669_v22 = vmul.f32 0.25, %v618_v54  ;;  %v653_v23 = vadd.f32 %v652_v15, %v651_v2  ;;  %v670_v24 = vmul.f32 0.25, %v625_v14 }
  0x52   : > { %v672_v25 = vmul.f32 0.25, %v639_v16  ;;  %v667_v26 = vadd.f32 %v666_v17, %v665_v8  ;;  %v660_v27 = vadd.f32 %v659_v19, %v658_v12  ;;  %v673_v28 = vmul.f32 0.25, %v646_v18 }
  0x53   : > { %v677_v29 = vadd.f32 1e-05, %v668_v20  ;;  %v671_v30 = vmul.f32 0.25, %v632_v21  ;;  %v678_v32 = vadd.f32 1e-05, %v669_v22  ;;  %v674_v33 = vmul.f32 0.25, %v653_v23 }
  0x54   : > { %v679_v34 = vadd.f32 1e-05, %v670_v24  ;;  %v681_v35 = vadd.f32 1e-05, %v672_v25  ;;  %v676_v36 = vmul.f32 0.25, %v667_v26  ;;  %v675_v37 = vmul.f32 0.25, %v660_v27 }
  0x55   : > { %v682_v39 = vadd.f32 1e-05, %v673_v28  ;;  %22090 = vrsqrt.f32 %v677_v29  ;;  %v680_v40 = vadd.f32 1e-05, %v671_v30  ;;  %v683_v41 = vadd.f32 1e-05, %v674_v33 }
  0x56   : > { %22092 = vrsqrt.f32 %v678_v32  ;;  %v685_v42 = vadd.f32 1e-05, %v676_v36  ;;  %v684_v47 = vadd.f32 1e-05, %v675_v37  ;;  %v22394_v48 = vmov 839922192  }
  0x57   : > { %22094 = vrsqrt.f32 %v679_v34  ;;  %v722_v55 = vunpack.c.l.s4 %v22394_v48  ;;  %v759_v13 = vrot.slane %v752_v10, %v758_v59  ;;  %v763_v14 = vrot.slane %v752_v10, %v762_v60 }
  0x58   : > { %22096 = vrsqrt.f32 %v681_v35  ;;  %v26846_v21 = vsub.s32 6, %v22563_v31  ;;  %v775_v22 = vrot.slane %v752_v10, %v774_v44  ;;  %v779_v59 = vrot.slane %v752_v10, %v778_v49  ;;  %v22657_v44 = vld [vmem:[%s26837_s4 + $0x20] sm:$0xff] }
  0x59   : > { %22098 = vrsqrt.f32 %v682_v39  ;;  %v723_v4 = vunpack.c.0.s8 %v722_v55  ;;  %v786_v23 = vsub.s32 7, %v22563_v31  ;;  %v793_v24 = vcombine.low %v759_v13, %v763_v14  ;;  %20687 = vmatprep.mubr.msk.f32.mxu1 %vm848_vm1, %v22657_v44  ;;  %v22826_v13 = vld [vmem:[#allocation2 + $0x28] sm:$0xff] }
  0x5a   : > { %22100 = vrsqrt.f32 %v680_v40  ;;  %v795_v34 = vcombine.low %v775_v22, %v779_v59  ;;  %v22856_v22 = vld [vmem:[%s26837_s4 + $0x30] sm:$0xff]  ;;  %vm4706_vm10 = vcmask 64512   ;;  %vm22414_vm11 = vmmov (!%p20440_p8), 0  }
  0x5b   : > { %22102 = vrsqrt.f32 %v683_v41  ;;  %v726_v1 = vsub.s32 %v723_v4, %v22563_v31  ;;  %v787_v30 = vrot.slane %v752_v10, %v786_v23  ;;  %v22790_v4 = vld [vmem:[#allocation2 + $0x8] sm:$0xff] }
  0x5c   : > { %22104 = vrsqrt.f32 %v685_v42 }
  0x5d   : > { %22106 = vrsqrt.f32 %v684_v47 }
  0x5f   : > { %v22091_v57 = vpop.eup %22090 }
  0x60   : > { %v22093_v61 = vpop.eup %22092 }
  0x61   : > { %v22095_v62 = vpop.eup %22094  ;;  %v703_v2 = vcombine.low %v22091_v57, %v22093_v61 }
  0x62   : > { %v22097_v5 = vpop.eup %22096 }
  0x63   : > { %v22099_v7 = vpop.eup %22098  ;;  %v711_v16 = vmul.f32 %v703_v2, %v22601_v46  ;;  %v22810_v2 = vld [vmem:[#allocation2 + $0x30] sm:$0xff] }
  0x64   : > { %v22101_v0 = vpop.eup %22100  ;;  %v705_v11 = vcombine.low %v22097_v5, %v22099_v7  ;;  %v22802_v5 = vld [vmem:[#allocation2 + $0x20] sm:$0xff] }
  0x65   : > { %v22103_v8 = vpop.eup %22102  ;;  %v704_v15 = vcombine.low %v22095_v62, %v22101_v0  ;;  %v22796_v62 = vld [vmem:[#allocation2] sm:$0xff]  ;;  %v22806_v0 = vld [vmem:[#allocation2 + $0x10] sm:$0xff] }
  0x66   : > { %v22105_v9 = vpop.eup %22104  ;;  %v713_v20 = vmul.f32 %v705_v11, %v22604_v50  ;;  %v26854_v50 = vmov 0.0  }
  0x67   : > { %v22107_v12 = vpop.eup %22106  ;;  %v715_v18 = vmul.f32 %v22105_v9, %v22618_v63  ;;  %v712_v46 = vmul.f32 %v704_v15, %v22607_v51  ;;  %v767_v63 = vrot.slane %v752_v10, %v766_v38  ;;  %939 = vmatprep.mubr.f32.mxu0 %v26854_v50  ;;  %v771_v51 = vrot.slane %v752_v10, %v770_v43 }
  0x68   : > { %v706_v19 = vcombine.low %v22103_v8, %v22107_v12  ;;  %v783_v38 = vrot.slane %v752_v10, %v26846_v21  ;;  %v22814_v8 = vld [vmem:[#allocation2 + $0x18] sm:$0xff] }
  0x6a   : > { %v714_v27 = vmul.f32 %v706_v19, %v22612_v58  ;;  %v794_v58 = vcombine.low %v767_v63, %v771_v51  ;;  %v796_v40 = vcombine.low %v783_v38, %v787_v30 }
  0xa5   : > { %v720_v54 = vpop.permute.xlu0 %719 }
  0xa6   : > { %v727_v17 = vrot.slane %v720_v54, %v726_v1 }
  0xa8   : > { %v729_v25 = vmul.f32 %v727_v17, %v711_v16  ;;  %v733_v49 = vmul.f32 %v727_v17, %v715_v18  ;;  %v731_v28 = vmul.f32 %v727_v17, %v713_v20  ;;  %v730_v33 = vmul.f32 %v727_v17, %v712_v46 }
  0xa9   : > { %v738_v60 = vpop.permute.xlu0 %737  ;;  %v732_v37 = vmul.f32 %v727_v17, %v714_v27  ;;  %v22838_v17 = vld [vmem:[%s26837_s4 + $0x28] sm:$0xff] }
  0xaa   : > { %v745_v26 = vrot.slane %v738_v60, %v726_v1  ;;  %v22871_v60 = vld [vmem:[%s26837_s4 + $0x38] sm:$0xff] }
  0xac   : > { %v747_v29 = vadd.f32 %v745_v26, %v729_v25  ;;  %v22666_v32 = vadd.f32 %v745_v26, %v733_v49  ;;  %v749_v35 = vadd.f32 %v745_v26, %v731_v28  ;;  %v748_v39 = vadd.f32 %v745_v26, %v730_v33 }
  0xad   : > { %v750_v41 = vadd.f32 %v745_v26, %v732_v37 }
  0xae   : > { %v801_v36 = vmul.f32 %v793_v24, %v747_v29  ;;  %v22671_v42 = vmul.f32 %v795_v34, %v749_v35  ;;  %v22675_v47 = vmul.f32 %v794_v58, %v748_v39 }
  0xaf   : > { %v22679_v48 = vmul.f32 %v796_v40, %v750_v41 }
  0xb0   : > { %824 = vrot.lane.b32.xlu0 %v801_v36, %s22396_s19  ;;  %v22669_v43 = vcombine.high %v801_v36, %v801_v36  ;;  %v22687_v55 = vcombine.high %v22675_v47, %v22675_v47  ;;  %v22695_v57 = vcombine.high %v22671_v42, %v22671_v42 }
  0xb1   : > { %v22746_v61 = vcombine.high %v22679_v48, %v22679_v48 }
  0xb2   : > { %826 = vrot.lane.b32.xlu1 %v22669_v43, %s22396_s19 }
  0xb4   : > { %832 = vrot.lane.b32.xlu0 %v22671_v42, %s22396_s19 }
  0xb6   : > { %828 = vrot.lane.b32.xlu1 %v22675_v47, %s22396_s19 }
  0xb8   : > { %836 = vrot.lane.b32.xlu0 %v22679_v48, %s22396_s19 }
  0xba   : > { %830 = vrot.lane.b32.xlu1 %v22687_v55, %s22396_s19 }
  0xbc   : > { %1231 = vrot.lane.b32.xlu0 %v22675_v47, %s26915_s20 }
  0xbe   : > { %834 = vrot.lane.b32.xlu1 %v22695_v57, %s22396_s19 }
  0xc0   : > { %1233 = vrot.lane.b32.xlu0 %v22687_v55, %s26915_s20 }
  0xc2   : > { %1229 = vrot.lane.b32.xlu1 %v22669_v43, %s26915_s20 }
  0xc4   : > { %1237 = vrot.lane.b32.xlu0 %v22695_v57, %s26915_s20 }
  0xc6   : > { %1227 = vrot.lane.b32.xlu1 %v801_v36, %s26915_s20 }
  0xc8   : > { %1636 = vrot.lane.b32.xlu0 %v22669_v43, %s22398_s22 }
  0xca   : > { %1235 = vrot.lane.b32.xlu1 %v22671_v42, %s26915_s20 }
  0xcc   : > { %1634 = vrot.lane.b32.xlu0 %v801_v36, %s22398_s22 }
  0xce   : > { %1239 = vrot.lane.b32.xlu1 %v22679_v48, %s26915_s20 }
  0xd0   : > { %1642 = vrot.lane.b32.xlu0 %v22671_v42, %s22398_s22 }
  0xd2   : > { %1638 = vrot.lane.b32.xlu1 %v22675_v47, %s22398_s22 }
  0xd4   : > { %1646 = vrot.lane.b32.xlu0 %v22679_v48, %s22398_s22 }
  0xd6   : > { %1640 = vrot.lane.b32.xlu1 %v22687_v55, %s22398_s22 }
  0xd8   : > { %2073 = vrot.lane.b32.xlu0 %v22675_v47, %s22399_s28 }
  0xda   : > { %1644 = vrot.lane.b32.xlu1 %v22695_v57, %s22398_s22 }
  0xdc   : > { %2075 = vrot.lane.b32.xlu0 %v22687_v55, %s22399_s28 }
  0xde   : > { %2071 = vrot.lane.b32.xlu1 %v22669_v43, %s22399_s28 }
  0xe0   : > { %2079 = vrot.lane.b32.xlu0 %v22695_v57, %s22399_s28 }
  0xe2   : > { %2069 = vrot.lane.b32.xlu1 %v801_v36, %s22399_s28 }
  0xe4   : > { %2918 = vrot.lane.b32.xlu0 %v22675_v47, %s22400_s29 }
  0xe6   : > { %2077 = vrot.lane.b32.xlu1 %v22671_v42, %s22399_s28 }
  0xe8   : > { %2916 = vrot.lane.b32.xlu0 %v22669_v43, %s22400_s29 }
  0xea   : > { %2081 = vrot.lane.b32.xlu1 %v22679_v48, %s22399_s28 }
  0xec   : > { %2924 = vrot.lane.b32.xlu0 %v22695_v57, %s22400_s29 }
  0xee   : > { %2920 = vrot.lane.b32.xlu1 %v22687_v55, %s22400_s29 }
  0xf0   : > { %2928 = vrot.lane.b32.xlu0 %v22746_v61, %s22400_s29 }
  0xf2   : > { %2922 = vrot.lane.b32.xlu1 %v22671_v42, %s22400_s29 }
  0xf4   : > { %3355 = vrot.lane.b32.xlu0 %v22687_v55, %s22401_s30 }
  0xf6   : > { %2926 = vrot.lane.b32.xlu1 %v22679_v48, %s22400_s29 }
  0xf8   : > { %3357 = vrot.lane.b32.xlu0 %v22671_v42, %s22401_s30 }
  0xfa   : > { %3353 = vrot.lane.b32.xlu1 %v22675_v47, %s22401_s30 }
  0xfc   : > { %3361 = vrot.lane.b32.xlu0 %v22679_v48, %s22401_s30 }
  0xfe   : > { %3351 = vrot.lane.b32.xlu1 %v22669_v43, %s22401_s30 }
 0x100   : > { %3788 = vrot.lane.b32.xlu0 %v22675_v47, %s26893_s13 }
 0x102   : > { %3359 = vrot.lane.b32.xlu1 %v22695_v57, %s22401_s30 }
 0x104   : > { %3786 = vrot.lane.b32.xlu0 %v22669_v43, %s26893_s13 }
 0x106   : > { %3363 = vrot.lane.b32.xlu1 %v22746_v61, %s22401_s30 }
 0x108   : > { %3794 = vrot.lane.b32.xlu0 %v22695_v57, %s26893_s13 }
 0x10a   : > { %3790 = vrot.lane.b32.xlu1 %v22687_v55, %s26893_s13 }
 0x10c   : > { %3798 = vrot.lane.b32.xlu0 %v22746_v61, %s26893_s13 }
 0x10e   : > { %3792 = vrot.lane.b32.xlu1 %v22671_v42, %s26893_s13 }
 0x110   : > { %4225 = vrot.lane.b32.xlu0 %v22687_v55, %s26891_s14 }
 0x112   : > { %3796 = vrot.lane.b32.xlu1 %v22679_v48, %s26893_s13 }
 0x114   : > { %4227 = vrot.lane.b32.xlu0 %v22671_v42, %s26891_s14 }
 0x116   : > { %4223 = vrot.lane.b32.xlu1 %v22675_v47, %s26891_s14 }
 0x118   : > { %4231 = vrot.lane.b32.xlu0 %v22679_v48, %s26891_s14 }
 0x11a   : > { %4221 = vrot.lane.b32.xlu1 %v22669_v43, %s26891_s14 }
 0x11c   : > { %4678 = vrot.lane.b32.xlu0 %v22790_v4, %s22396_s19 }
 0x11e   : > { %4229 = vrot.lane.b32.xlu1 %v22695_v57, %s26891_s14 }
 0x120   : > { %4676 = vrot.lane.b32.xlu0 %v22796_v62, %s22396_s19 }
 0x122   : > { %v825_v7 = vpop.permute.xlu0 %824  ;;  %4233 = vrot.lane.b32.xlu1 %v22746_v61, %s26891_s14 }
 0x124   : > { %4684 = vrot.lane.b32.xlu0 %v22802_v5, %s22396_s19  ;;  %v827_v1 = vpop.permute.xlu1 %826 }
 0x125   : > { %v841_v54 = vsel %vm840_vm2, %v825_v7, %v827_v1 }
 0x126   : > { %v833_v10 = vpop.permute.xlu0 %832  ;;  %4680 = vrot.lane.b32.xlu1 %v22806_v0, %s22396_s19 }
 0x128   : > { %4688 = vrot.lane.b32.xlu0 %v22810_v2, %s22396_s19  ;;  %v829_v9 = vpop.permute.xlu1 %828 }
 0x129   : > { %v842_v11 = vsel %vm840_vm2, %v827_v1, %v829_v9 }
 0x12a   : > { %v22819_v12 = vpop.permute.xlu0 %836  ;;  %4682 = vrot.lane.b32.xlu1 %v22814_v8, %s22396_s19  ;;  %19635 = vmatprep.subr.msk.mxu0 %vm493_vm0, %v842_v11  ;;  %v23004_v11 = vld [vmem:[#allocation2 + $0x38] sm:$0xff] }
 0x12b   : > { %19636 = vmatpush1.msk.msra.mxu0 %vm493_vm0, %v841_v54  ;;  %v23009_v54 = vld [vmem:[%s26837_s4 + $0x8] sm:$0xff] }
 0x12c   : > { %5075 = vrot.lane.b32.xlu0 %v22806_v0, %s26915_s20  ;;  %19637 = vmatmul.mubr.msk.f32.vlgmr.msra.gmra.mrb[0].mxu0 %vm848_vm1, %v22657_v44  ;;  %v831_v14 = vpop.permute.xlu1 %830 }
 0x12d   : > { %v843_v15 = vsel %vm840_vm2, %v829_v9, %v831_v14  ;;  %v844_v16 = vsel %vm840_vm2, %v831_v14, %v833_v10  ;;  %945 = vmatprep.mubr.f32.mxu0 %v26854_v50 }
 0x12e   : > { %v22840_v18 = vpop.permute.xlu0 %1231  ;;  %4686 = vrot.lane.b32.xlu1 %v22826_v13, %s22396_s19  ;;  %19641 = vmatprep.subr.msk.mxu0 %vm493_vm0, %v844_v16  ;;  %v23026_v16 = vld [vmem:[%s26837_s4 + $0x10] sm:$0xff] }
 0x12f   : > { %19642 = vmatpush1.msk.msra.mxu0 %vm493_vm0, %v843_v15 }
 0x130   : > { %5077 = vrot.lane.b32.xlu0 %v22814_v8, %s26915_s20  ;;  %19638 = vmatmul.mubr.msk.f32.gmra.mrb[2].mxu0 %vm848_vm1, %v22838_v17  ;;  %v835_v19 = vpop.permute.xlu1 %834 }
 0x131   : > { %v846_v20 = vsel %vm840_vm2, %v835_v19, %v22819_v12  ;;  %951 = vmatprep.mubr.f32.mxu0 %v26854_v50  ;;  %v845_v26 = vsel %vm840_vm2, %v833_v10, %v835_v19 }
 0x132   : > { %v22858_v59 = vpop.permute.xlu0 %1233  ;;  %5073 = vrot.lane.b32.xlu1 %v22790_v4, %s26915_s20  ;;  %19647 = vmatprep.subr.msk.mxu0 %vm493_vm0, %v846_v20  ;;  %v23042_v20 = vld [vmem:[%s26837_s4 + $0x18] sm:$0xff] }
 0x133   : > { %v1246_v1 = vsel %vm1243_vm3, %v22840_v18, %v22858_v59 }
 0x134   : > { %5081 = vrot.lane.b32.xlu0 %v22826_v13, %s26915_s20  ;;  %19639 = vmatmul.mubr.msk.f32.gmra.mrb[4].mxu0 %vm848_vm1, %v22856_v22  ;;  %v1230_v23 = vpop.permute.xlu1 %1229 }
 0x135   : > { %957 = vmatprep.mubr.f32.mxu0 %v26854_v50  ;;  %v1245_v49 = vsel %vm1243_vm3, %v1230_v23, %v22840_v18 }
 0x136   : > { %v22873_v24 = vpop.permute.xlu0 %1237  ;;  %5071 = vrot.lane.b32.xlu1 %v22796_v62, %s26915_s20 }
 0x138   : > { %5472 = vrot.lane.b32.xlu0 %v22790_v4, %s22398_s22  ;;  %19640 = vmatmul.mubr.msk.f32.gmra.mrb[6].mxu0 %vm848_vm1, %v22871_v60  ;;  %v1228_v46 = vpop.permute.xlu1 %1227 }
 0x139   : > { %1028 = vmatprep.mubr.f32.mxu0 %v26854_v50  ;;  %v1244_v34 = vsel %vm1243_vm3, %v1228_v46, %v1230_v23 }
 0x13a   : > { %v22882_v25 = vpop.permute.xlu0 %1636  ;;  %5079 = vrot.lane.b32.xlu1 %v22802_v5, %s26915_s20 }
 0x13c   : > { %5470 = vrot.lane.b32.xlu0 %v22796_v62, %s22398_s22  ;;  %19643 = vmatmul.mubr.msk.f32.vlgmr.msra.gmra.mrb[8].mxu0 %vm848_vm1, %v22657_v44  ;;  %v22891_v63 = vpop.permute.xlu1 %1235 }
 0x13d   : > { %19648 = vmatpush1.msk.msra.mxu0 %vm493_vm0, %v845_v26  ;;  %1034 = vmatprep.mubr.f32.mxu0 %v26854_v50  ;;  %v1247_v36 = vsel %vm1243_vm3, %v22858_v59, %v22891_v63  ;;  %v1248_v26 = vsel %vm1243_vm3, %v22891_v63, %v22873_v24 }
 0x13e   : > { %19658 = vmatprep.subr.msk.mxu0 %vm493_vm0, %v1245_v49  ;;  %v22898_v27 = vpop.permute.xlu0 %1634  ;;  %5083 = vrot.lane.b32.xlu1 %v22810_v2, %s26915_s20 }
 0x13f   : > { %v1651_v53 = vsel %vm1650_vm4, %v22898_v27, %v22882_v25 }
 0x140   : > { %5478 = vrot.lane.b32.xlu0 %v22802_v5, %s22398_s22  ;;  %19644 = vmatmul.mubr.msk.f32.gmra.mrb[10].mxu0 %vm848_vm1, %v22838_v17  ;;  %v22906_v28 = vpop.permute.xlu1 %1239 }
 0x141   : > { %1040 = vmatprep.mubr.f32.mxu0 %v26854_v50  ;;  %v1249_v9 = vsel %vm1243_vm3, %v22873_v24, %v22906_v28 }
 0x142   : > { %v22909_v51 = vpop.permute.xlu0 %1642  ;;  %5474 = vrot.lane.b32.xlu1 %v22806_v0, %s22398_s22 }
 0x144   : > { %5482 = vrot.lane.b32.xlu0 %v22810_v2, %s22398_s22  ;;  %19645 = vmatmul.mubr.msk.f32.gmra.mrb[12].mxu0 %vm848_vm1, %v22856_v22  ;;  %v22917_v29 = vpop.permute.xlu1 %1638 }
 0x145   : > { %1046 = vmatprep.mubr.f32.mxu0 %v26854_v50 }
 0x146   : > { %v22920_v38 = vpop.permute.xlu0 %1646  ;;  %5476 = vrot.lane.b32.xlu1 %v22814_v8, %s22398_s22 }
 0x148   : > { %5901 = vrot.lane.b32.xlu0 %v22806_v0, %s22399_s28  ;;  %19646 = vmatmul.mubr.msk.f32.gmra.mrb[14].mxu0 %vm848_vm1, %v22871_v60  ;;  %v22928_v30 = vpop.permute.xlu1 %1640 }
 0x149   : > { %1117 = vmatprep.mubr.f32.mxu0 %v26854_v50  ;;  %v1653_v31 = vsel %vm1650_vm4, %v22917_v29, %v22928_v30 }
 0x14a   : > { %v22931_v33 = vpop.permute.xlu0 %2073  ;;  %5480 = vrot.lane.b32.xlu1 %v22826_v13, %s22398_s22 }
 0x14c   : > { %5903 = vrot.lane.b32.xlu0 %v22814_v8, %s22399_s28  ;;  %19649 = vmatmul.mubr.msk.f32.vlgmr.msra.gmra.mrb[16].mxu0 %vm848_vm1, %v22657_v44  ;;  %v22940_v35 = vpop.permute.xlu1 %1644 }
 0x14d   : > { %19659 = vmatpush1.msk.msra.mxu0 %vm493_vm0, %v1244_v34  ;;  %1123 = vmatprep.mubr.f32.mxu0 %v26854_v50  ;;  %v1652_v34 = vsel %vm1650_vm4, %v22882_v25, %v22917_v29  ;;  %v23185_v29 = vld [vmem:[%s26837_s4 + $0x48] sm:$0xff] }
 0x14e   : > { %19664 = vmatprep.subr.msk.mxu0 %vm493_vm0, %v1247_v36  ;;  %v22948_v37 = vpop.permute.xlu0 %2075  ;;  %5899 = vrot.lane.b32.xlu1 %v22790_v4, %s22399_s28 }
 0x150   : > { %5907 = vrot.lane.b32.xlu0 %v22826_v13, %s22399_s28  ;;  %19650 = vmatmul.mubr.msk.f32.gmra.mrb[18].mxu0 %vm848_vm1, %v22838_v17  ;;  %v22956_v44 = vpop.permute.xlu1 %2071 }
 0x151   : > { %1129 = vmatprep.mubr.f32.mxu0 %v26854_v50 }
 0x152   : > { %v22959_v58 = vpop.permute.xlu0 %2079  ;;  %5897 = vrot.lane.b32.xlu1 %v22796_v62, %s22399_s28  ;;  %v22984_v62 = vld [vmem:[%s26837_s4] sm:$0xff] }
 0x154   : > { %6739 = vrot.lane.b32.xlu0 %v22806_v0, %s22400_s29  ;;  %19651 = vmatmul.mubr.msk.f32.gmra.mrb[20].mxu0 %vm848_vm1, %v22856_v22  ;;  %v22967_v39 = vpop.permute.xlu1 %2069 }
 0x155   : > { %1135 = vmatprep.mubr.f32.mxu0 %v26854_v50 }
 0x156   : > { %v22970_v40 = vpop.permute.xlu0 %2918  ;;  %5905 = vrot.lane.b32.xlu1 %v22802_v5, %s22399_s28 }
 0x158   : > { %6737 = vrot.lane.b32.xlu0 %v22790_v4, %s22400_s29  ;;  %19652 = vmatmul.mubr.msk.f32.gmra.mrb[22].mxu0 %vm848_vm1, %v22871_v60  ;;  %v22978_v41 = vpop.permute.xlu1 %2077 }
 0x159   : > { %1341 = vmatprep.mubr.f32.mxu0 %v26854_v50 }
 0x15a   : > { %v22986_v7 = vpop.permute.xlu0 %2916  ;;  %5909 = vrot.lane.b32.xlu1 %v22810_v2, %s22399_s28 }
 0x15c   : > { %6745 = vrot.lane.b32.xlu0 %v22826_v13, %s22400_s29  ;;  %19660 = vmatmul.mubr.msk.f32.vlgmr.msra.gmra.mrb[0].mxu0 %vm848_vm1, %v22984_v62  ;;  %v22997_v10 = vpop.permute.xlu1 %2081 }
 0x15d   : > { %19665 = vmatpush1.msk.msra.mxu0 %vm493_vm0, %v1246_v1  ;;  %1347 = vmatprep.mubr.f32.mxu0 %v26854_v50  ;;  %v19630_v1 = vld [vmem:[%s26835_s2 + $0x8] ss:$0 sm:$0xff] }
 0x15e   : > { %19670 = vmatprep.subr.msk.mxu0 %vm493_vm0, %v1249_v9  ;;  %v23012_v14 = vpop.permute.xlu0 %2924  ;;  %6741 = vrot.lane.b32.xlu1 %v22814_v8, %s22400_s29 }
 0x160   : > { %6749 = vrot.lane.b32.xlu0 %v23004_v11, %s22400_s29  ;;  %19661 = vmatmul.mubr.msk.f32.gmra.mrb[2].mxu0 %vm848_vm1, %v23009_v54  ;;  %v23020_v15 = vpop.permute.xlu1 %2920 }
 0x161   : > { %1353 = vmatprep.mubr.f32.mxu0 %v26854_v50 }
 0x162   : > { %v23028_v18 = vpop.permute.xlu0 %2928  ;;  %6743 = vrot.lane.b32.xlu1 %v22802_v5, %s22400_s29 }
 0x164   : > { %7166 = vrot.lane.b32.xlu0 %v22806_v0, %s22401_s30  ;;  %19662 = vmatmul.mubr.msk.f32.gmra.mrb[4].mxu0 %vm848_vm1, %v23026_v16  ;;  %v23036_v19 = vpop.permute.xlu1 %2922 }
 0x165   : > { %1359 = vmatprep.mubr.f32.mxu0 %v26854_v50 }
 0x166   : > { %v23044_v59 = vpop.permute.xlu0 %3355  ;;  %6747 = vrot.lane.b32.xlu1 %v22810_v2, %s22400_s29 }
 0x168   : > { %7164 = vrot.lane.b32.xlu0 %v22790_v4, %s22401_s30  ;;  %19663 = vmatmul.mubr.msk.f32.gmra.mrb[6].mxu0 %vm848_vm1, %v23042_v20  ;;  %v23052_v23 = vpop.permute.xlu1 %2926 }
 0x169   : > { %1430 = vmatprep.mubr.f32.mxu0 %v26854_v50 }
 0x16a   : > { %v23055_v46 = vpop.permute.xlu0 %3357  ;;  %838 = vrot.lane.b32.xlu1 %v22746_v61, %s22396_s19 }
 0x16c   : > { %1648 = vrot.lane.b32.xlu0 %v22746_v61, %s22398_s22  ;;  %19666 = vmatmul.mubr.msk.f32.vlgmr.msra.gmra.mrb[8].mxu0 %vm848_vm1, %v22984_v62  ;;  %v23066_v49 = vpop.permute.xlu1 %3353 }
 0x16d   : > { %19671 = vmatpush1.msk.msra.mxu0 %vm493_vm0, %v1248_v26  ;;  %1436 = vmatprep.mubr.f32.mxu0 %v26854_v50 }
 0x16e   : > { %19685 = vmatprep.subr.msk.mxu0 %vm493_vm0, %v1652_v34  ;;  %v23074_v24 = vpop.permute.xlu0 %3361  ;;  %7168 = vrot.lane.b32.xlu1 %v22814_v8, %s22401_s30  ;;  %v805_v34 = vmul.f32 %v19630_v1, %v22666_v32  ;;  %v1654_v1 = vsel %vm1650_vm4, %v22928_v30, %v22909_v51 }
 0x170   : > { %7172 = vrot.lane.b32.xlu0 %v22826_v13, %s22401_s30  ;;  %19667 = vmatmul.mubr.msk.f32.gmra.mrb[10].mxu0 %vm848_vm1, %v23009_v54  ;;  %v23082_v63 = vpop.permute.xlu1 %3351 }
 0x171   : > { %1442 = vmatprep.mubr.f32.mxu0 %v26854_v50 }
 0x172   : > { %v23085_v36 = vpop.permute.xlu0 %3788  ;;  %1241 = vrot.lane.b32.xlu1 %v22746_v61, %s26915_s20 }
 0x174   : > { %7174 = vrot.lane.b32.xlu0 %v22810_v2, %s22401_s30  ;;  %19668 = vmatmul.mubr.msk.f32.gmra.mrb[12].mxu0 %vm848_vm1, %v23026_v16  ;;  %v23096_v9 = vpop.permute.xlu1 %3359 }
 0x175   : > { %1448 = vmatprep.mubr.f32.mxu0 %v26854_v50 }
 0x176   : > { %v23099_v26 = vpop.permute.xlu0 %3786  ;;  %7170 = vrot.lane.b32.xlu1 %v22802_v5, %s22401_s30 }
 0x178   : > { %2930 = vrot.lane.b32.xlu0 %v805_v34, %s22400_s29  ;;  %19669 = vmatmul.mubr.msk.f32.gmra.mrb[14].mxu0 %vm848_vm1, %v23042_v20  ;;  %v23107_v21 = vpop.permute.xlu1 %3363 }
 0x179   : > { %1519 = vmatprep.mubr.f32.mxu0 %v26854_v50 }
 0x17a   : > { %v23110_v56 = vpop.permute.xlu0 %3794  ;;  %2083 = vrot.lane.b32.xlu1 %v22746_v61, %s22399_s28 }
 0x17c   : > { %7593 = vrot.lane.b32.xlu0 %v22806_v0, %s26893_s13  ;;  %19672 = vmatmul.mubr.msk.f32.vlgmr.msra.gmra.mrb[16].mxu0 %vm848_vm1, %v22984_v62  ;;  %v23121_v32 = vpop.permute.xlu1 %3790 }
 0x17d   : > { %19686 = vmatpush1.msk.msra.mxu0 %vm493_vm0, %v1651_v53  ;;  %1525 = vmatprep.mubr.f32.mxu0 %v26854_v50 }
 0x17e   : > { %19691 = vmatprep.subr.msk.mxu0 %vm493_vm0, %v1654_v1  ;;  %v23129_v52 = vpop.permute.xlu0 %3798  ;;  %7176 = vrot.lane.b32.xlu1 %v23004_v11, %s22401_s30 }
 0x180   : > { %7591 = vrot.lane.b32.xlu0 %v22790_v4, %s26893_s13  ;;  %19673 = vmatmul.mubr.msk.f32.gmra.mrb[18].mxu0 %vm848_vm1, %v23009_v54  ;;  %v23137_v53 = vpop.permute.xlu1 %3792 }
 0x181   : > { %1531 = vmatprep.mubr.f32.mxu0 %v26854_v50 }
 0x182   : > { %v23140_v25 = vpop.permute.xlu0 %4225  ;;  %3365 = vrot.lane.b32.xlu1 %v805_v34, %s22401_s30 }
 0x183   : > { %26953 = vst [vmem:[#allocation14_spill] sm:$0xff] %v23140_v25 }
 0x184   : > { %4235 = vrot.lane.b32.xlu0 %v805_v34, %s26891_s14  ;;  %19674 = vmatmul.mubr.msk.f32.gmra.mrb[20].mxu0 %vm848_vm1, %v23026_v16  ;;  %v23146_v27 = vpop.permute.xlu1 %3796 }
 0x185   : > { %26954 = vst [vmem:[#allocation15_spill] sm:$0xff] %v23146_v27  ;;  %1537 = vmatprep.mubr.f32.mxu0 %v26854_v50 }
 0x186   : > { %v23149_v1 = vpop.permute.xlu0 %4227  ;;  %7595 = vrot.lane.b32.xlu1 %v22814_v8, %s26893_s13 }
 0x187   : > { %26955 = vst [vmem:[#allocation16_spill] sm:$0xff] %v23149_v1  ;;  %v26959_v1 = vmov 0.0  }
 0x188   : > { %7599 = vrot.lane.b32.xlu0 %v22826_v13, %s26893_s13  ;;  %19675 = vmatmul.mubr.msk.f32.gmra.mrb[22].mxu0 %vm848_vm1, %v23042_v20  ;;  %v23157_v45 = vpop.permute.xlu1 %4223 }
 0x189   : > { %26956 = vst [vmem:[#allocation17_spill] sm:$0xff] %v23157_v45  ;;  %1748 = vmatprep.mubr.f32.mxu0 %v26854_v50  ;;  %v6728_v45 = vld [vmem:[#allocation2 + $0x40] sm:$0xff] }
 0x18a   : > { %v23165_v3 = vpop.permute.xlu0 %4231  ;;  %3800 = vrot.lane.b32.xlu1 %v805_v34, %s26893_s13  ;;  %v23202_v34 = vld [vmem:[%s26837_s4 + $0x50] sm:$0xff] }
 0x18b   : > { %26957 = vst [vmem:[#allocation18_spill] sm:$0xff] %v23165_v3  ;;  %v1656_v3 = vsel %vm1650_vm4, %v22940_v35, %v22920_v38 }
 0x18c   : > { %5085 = vrot.lane.b32.xlu0 %v23004_v11, %s26915_s20  ;;  %19687 = vmatmul.mubr.msk.f32.vlgmr.msra.gmra.mrb[0].mxu0 %vm848_vm1, %v23163_v6  ;;  %v23175_v50 = vpop.permute.xlu1 %4221 }
 0x18d   : > { %26958 = vst [vmem:[#allocation19_spill] sm:$0xff] %v23175_v50  ;;  %19692 = vmatpush1.msk.msra.mxu0 %vm493_vm0, %v1653_v31  ;;  %1754 = vmatprep.mubr.f32.mxu0 %v26959_v1 }
 0x18e   : > { %19697 = vmatprep.subr.msk.mxu0 %vm493_vm0, %v1656_v3  ;;  %v23188_v30 = vpop.permute.xlu0 %4678  ;;  %7597 = vrot.lane.b32.xlu1 %v22802_v5, %s26893_s13 }
 0x18f   : > { %26960 = vst [vmem:[#allocation20_spill] sm:$0xff] %v23188_v30 }
 0x190   : > { %7603 = vrot.lane.b32.xlu0 %v23004_v11, %s26893_s13  ;;  %19688 = vmatmul.mubr.msk.f32.gmra.mrb[2].mxu0 %vm848_vm1, %v23185_v29  ;;  %v23196_v31 = vpop.permute.xlu1 %4229 }
 0x191   : > { %26961 = vst [vmem:[#allocation21_spill] sm:$0xff] %v23196_v31  ;;  %1760 = vmatprep.mubr.f32.mxu0 %v26959_v1  ;;  %v23218_v31 = vld [vmem:[%s26837_s4 + $0x58] sm:$0xff] }
 0x192   : > { %v23204_v3 = vpop.permute.xlu0 %4676  ;;  %4690 = vrot.lane.b32.xlu1 %v23004_v11, %s22396_s19 }
 0x193   : > { %26962 = vst [vmem:[#allocation22_spill] sm:$0xff] %v23204_v3 }
 0x194   : > { %5911 = vrot.lane.b32.xlu0 %v23004_v11, %s22399_s28  ;;  %19689 = vmatmul.mubr.msk.f32.gmra.mrb[4].mxu0 %vm848_vm1, %v23202_v34  ;;  %v23212_v30 = vpop.permute.xlu1 %4233 }
 0x195   : > { %1766 = vmatprep.mubr.f32.mxu0 %v26959_v1 }
 0x196   : > { %v23220_v50 = vpop.permute.xlu0 %4684  ;;  %7601 = vrot.lane.b32.xlu1 %v22810_v2, %s26893_s13 }
 0x197   : > { %26963 = vst [vmem:[#allocation23_spill] sm:$0xff] %v23220_v50  ;;  %v1655_v50 = vsel %vm1650_vm4, %v22909_v51, %v22940_v35  ;;  %v8468_v35 = vld [vmem:[%s26839_s6] sm:$0xff] }
 0x198   : > { %8022 = vrot.lane.b32.xlu0 %v22814_v8, %s26891_s14  ;;  %19690 = vmatmul.mubr.msk.f32.gmra.mrb[6].mxu0 %vm848_vm1, %v23218_v31  ;;  %v23228_v3 = vpop.permute.xlu1 %4680 }
 0x199   : > { %26964 = vst [vmem:[#allocation24_spill] sm:$0xff] %v23228_v3  ;;  %1837 = vmatprep.mubr.f32.mxu0 %v26959_v1  ;;  %v2087_v3 = vsel %vm2085_vm5, %v22956_v44, %v22931_v33 }
 0x19a   : > { %v23231_v25 = vpop.permute.xlu0 %4688  ;;  %5484 = vrot.lane.b32.xlu1 %v23004_v11, %s22398_s22 }
 0x19c   : > { %6751 = vrot.lane.b32.xlu0 %v6728_v45, %s22400_s29  ;;  %19693 = vmatmul.mubr.msk.f32.vlgmr.msra.gmra.mrb[8].mxu0 %vm848_vm1, %v23163_v6  ;;  %v23241_v8 = vpop.permute.xlu1 %4682 }
 0x19d   : > { %19698 = vmatpush1.msk.msra.mxu0 %vm493_vm0, %v1655_v50  ;;  %1843 = vmatprep.mubr.f32.mxu0 %v26959_v1 }
 0x19e   : > { %19712 = vmatprep.subr.msk.mxu0 %vm493_vm0, %v2087_v3  ;;  %v23249_v27 = vpop.permute.xlu0 %5075  ;;  %8020 = vrot.lane.b32.xlu1 %v22806_v0, %s26891_s14 }
 0x1a0   : > { %8026 = vrot.lane.b32.xlu0 %v22826_v13, %s26891_s14  ;;  %19694 = vmatmul.mubr.msk.f32.gmra.mrb[10].mxu0 %vm848_vm1, %v23185_v29  ;;  %v23257_v50 = vpop.permute.xlu1 %4686 }
 0x1a1   : > { %1849 = vmatprep.mubr.f32.mxu0 %v26959_v1 }
 0x1a2   : > { %v23260_v51 = vpop.permute.xlu0 %5077  ;;  %8018 = vrot.lane.b32.xlu1 %v22790_v4, %s26891_s14 }
 0x1a3   : > { %26965 = vst [vmem:[#allocation25_spill] sm:$0xff] %v23260_v51  ;;  %v2089_v51 = vsel %vm2085_vm5, %v22948_v37, %v22978_v41 }
 0x1a4   : > { %7605 = vrot.lane.b32.xlu0 %v6728_v45, %s26893_s13  ;;  %19695 = vmatmul.mubr.msk.f32.gmra.mrb[12].mxu0 %vm848_vm1, %v23202_v34  ;;  %v23267_v0 = vpop.permute.xlu1 %5073  ;;  %s27077_s13 = smov 96  }
 0x1a5   : > { %1855 = vmatprep.mubr.f32.mxu0 %v26959_v1 }
 0x1a6   : > { %v23270_v13 = vpop.permute.xlu0 %5081  ;;  %8024 = vrot.lane.b32.xlu1 %v22802_v5, %s26891_s14  ;;  %v2086_v5 = vsel %vm2085_vm5, %v22967_v39, %v22956_v44 }
 0x1a7   : > { %26966 = vst [vmem:[#allocation26_spill] sm:$0xff] %v23270_v13 }
 0x1a8   : > { %8030 = vrot.lane.b32.xlu0 %v23004_v11, %s26891_s14  ;;  %19696 = vmatmul.mubr.msk.f32.gmra.mrb[14].mxu0 %vm848_vm1, %v23218_v31  ;;  %v23278_v4 = vpop.permute.xlu1 %5071 }
 0x1a9   : > { %1926 = vmatprep.mubr.f32.mxu0 %v26959_v1 }
 0x1aa   : > { %v23284_v3 = vpop.permute.xlu0 %5472  ;;  %7178 = vrot.lane.b32.xlu1 %v6728_v45, %s22401_s30 }
 0x1ab   : > { %26967 = vst [vmem:[#allocation27_spill] sm:$0xff] %v23284_v3  ;;  %v8470_v3 = vld [vmem:[%s26839_s6 + $0x10] sm:$0xff] }
 0x1ac   : > { %8474 = vperm.xlu0 %22084, %v8468_v35   ;;  %19699 = vmatmul.mubr.msk.f32.vlgmr.msra.gmra.mrb[16].mxu0 %vm848_vm1, %v23163_v6  ;;  %v23292_v13 = vpop.permute.xlu1 %5079 }
 0x1ad   : > { %26968 = vst [vmem:[#allocation28_spill] sm:$0xff] %v23292_v13  ;;  %19713 = vmatpush1.msk.msra.mxu0 %vm493_vm0, %v2086_v5  ;;  %1932 = vmatprep.mubr.f32.mxu0 %v26959_v1 }
 0x1ae   : > { %19718 = vmatprep.subr.msk.mxu0 %vm493_vm0, %v2089_v51  ;;  %v23303_v44 = vpop.permute.xlu0 %5470  ;;  %8028 = vrot.lane.b32.xlu1 %v22810_v2, %s26891_s14 }
 0x1af   : > { %26969 = vst [vmem:[#allocation29_spill] sm:$0xff] %v23303_v44 }
 0x1b0   : > { %8484 = vperm.xlu0 %22084, %v8470_v3   ;;  %19700 = vmatmul.mubr.msk.f32.gmra.mrb[18].mxu0 %vm848_vm1, %v23185_v29  ;;  %v23309_v39 = vpop.permute.xlu1 %5083 }
 0x1b1   : > { %1938 = vmatprep.mubr.f32.mxu0 %v26959_v1 }
 0x1b2   : > { %v23312_v35 = vpop.permute.xlu0 %5478  ;;  %8032 = vrot.lane.b32.xlu1 %v6728_v45, %s26891_s14  ;;  %v23330_v45 = vld [vmem:[%s26837_s4 + $0x60] sm:$0xff]  ;;  %s27078_s14 = smov 95  }
 0x1b3   : > { %26970 = vst [vmem:[#allocation30_spill] sm:$0xff] %v23312_v35  ;;  %v2088_v35 = vsel %vm2085_vm5, %v22931_v33, %v22948_v37 }
 0x1b4   : > { %19701 = vmatmul.mubr.msk.f32.gmra.mrb[20].mxu0 %vm848_vm1, %v23202_v34  ;;  %v23317_v51 = vpop.permute.xlu1 %5474 }
 0x1b5   : > { %26971 = vst [vmem:[#allocation31_spill] sm:$0xff] %v23317_v51  ;;  %1944 = vmatprep.mubr.f32.mxu0 %v26959_v1 }
 0x1b6   : > { %v23320_v2 = vpop.permute.xlu0 %5482 }
 0x1b8   : > { %19702 = vmatmul.mubr.msk.f32.gmra.mrb[22].mxu0 %vm848_vm1, %v23218_v31  ;;  %v23324_v3 = vpop.permute.xlu1 %5476 }
 0x1b9   : > { %26972 = vst [vmem:[#allocation32_spill] sm:$0xff] %v23324_v3  ;;  %2183 = vmatprep.mubr.f32.mxu0 %v26959_v1  ;;  %v2091_v3 = vsel %vm2085_vm5, %v22959_v58, %v22997_v10 }
 0x1ba   : > { %v23332_v5 = vpop.permute.xlu0 %5901 }
 0x1bb   : > { %26973 = vst [vmem:[#allocation33_spill] sm:$0xff] %v23332_v5  ;;  %v23349_v5 = vld [vmem:[%s26837_s4 + $0x68] sm:$0xff] }
 0x1bc   : > { %19714 = vmatmul.mubr.msk.f32.vlgmr.msra.gmra.mrb[0].mxu0 %vm848_vm1, %v23330_v45  ;;  %v23339_v44 = vpop.permute.xlu1 %5480 }
 0x1bd   : > { %26974 = vst [vmem:[#allocation34_spill] sm:$0xff] %v23339_v44  ;;  %19719 = vmatpush1.msk.msra.mxu0 %vm493_vm0, %v2088_v35  ;;  %2189 = vmatprep.mubr.f32.mxu0 %v26959_v1  ;;  %v23362_v35 = vld [vmem:[%s26837_s4 + $0x70] sm:$0xff] }
 0x1be   : > { %19724 = vmatprep.subr.msk.mxu0 %vm493_vm0, %v2091_v3  ;;  %v23352_v33 = vpop.permute.xlu0 %5903 }
 0x1bf   : > { %26975 = vst [vmem:[#allocation35_spill] sm:$0xff] %v23352_v33  ;;  %v23374_v33 = vld [vmem:[%s26837_s4 + $0x78] sm:$0xff] }
 0x1c0   : > { %19715 = vmatmul.mubr.msk.f32.gmra.mrb[2].mxu0 %vm848_vm1, %v23349_v5  ;;  %v23356_v37 = vpop.permute.xlu1 %5899 }
 0x1c1   : > { %26976 = vst [vmem:[#allocation36_spill] sm:$0xff] %v23356_v37  ;;  %2195 = vmatprep.mubr.f32.mxu0 %v26959_v1 }
 0x1c2   : > { %v23364_v44 = vpop.permute.xlu0 %5907 }
 0x1c3   : > { %26977 = vst [vmem:[#allocation37_spill] sm:$0xff] %v23364_v44 }
 0x1c4   : > { %19716 = vmatmul.mubr.msk.f32.gmra.mrb[4].mxu0 %vm848_vm1, %v23362_v35  ;;  %v23368_v3 = vpop.permute.xlu1 %5897 }
 0x1c5   : > { %26978 = vst [vmem:[#allocation38_spill] sm:$0xff] %v23368_v3  ;;  %2201 = vmatprep.mubr.f32.mxu0 %v26959_v1  ;;  %v2090_v3 = vsel %vm2085_vm5, %v22978_v41, %v22959_v58 }
 0x1c6   : > { %v23376_v37 = vpop.permute.xlu0 %6739 }
 0x1c7   : > { %26979 = vst [vmem:[#allocation39_spill] sm:$0xff] %v23376_v37 }
 0x1c8   : > { %19717 = vmatmul.mubr.msk.f32.gmra.mrb[6].mxu0 %vm848_vm1, %v23374_v33  ;;  %v23380_v51 = vpop.permute.xlu1 %5905 }
 0x1c9   : > { %2272 = vmatprep.mubr.f32.mxu0 %v26959_v1 }
 0x1ca   : > { %v23383_v44 = vpop.permute.xlu0 %6737 }
 0x1cb   : > { %26980 = vst [vmem:[#allocation40_spill] sm:$0xff] %v23383_v44 }
 0x1cc   : > { %19720 = vmatmul.mubr.msk.f32.vlgmr.msra.gmra.mrb[8].mxu0 %vm848_vm1, %v23330_v45  ;;  %v23390_v13 = vpop.permute.xlu1 %5909 }
 0x1cd   : > { %19725 = vmatpush1.msk.msra.mxu0 %vm493_vm0, %v2090_v3  ;;  %2278 = vmatprep.mubr.f32.mxu0 %v26959_v1 }
 0x1ce   : > { %19739 = vmatprep.subr.msk.mxu0 %vm493_vm0, %v22675_v47  ;;  %v23396_v37 = vpop.permute.xlu0 %6745 }
 0x1cf   : > { %26981 = vst [vmem:[#allocation41_spill] sm:$0xff] %v23396_v37 }
 0x1d0   : > { %19721 = vmatmul.mubr.msk.f32.gmra.mrb[10].mxu0 %vm848_vm1, %v23349_v5  ;;  %v23400_v44 = vpop.permute.xlu1 %6741 }
 0x1d1   : > { %2284 = vmatprep.mubr.f32.mxu0 %v26959_v1 }
 0x1d2   : > { %v23403_v58 = vpop.permute.xlu0 %6749 }
 0x1d4   : > { %19722 = vmatmul.mubr.msk.f32.gmra.mrb[12].mxu0 %vm848_vm1, %v23362_v35  ;;  %v23407_v41 = vpop.permute.xlu1 %6743 }
 0x1d5   : > { %26982 = vst [vmem:[#allocation42_spill] sm:$0xff] %v23407_v41  ;;  %2290 = vmatprep.mubr.f32.mxu0 %v26959_v1 }
 0x1d6   : > { %v23410_v3 = vpop.permute.xlu0 %7166 }
 0x1d7   : > { %26983 = vst [vmem:[#allocation43_spill] sm:$0xff] %v23410_v3 }
 0x1d8   : > { %19723 = vmatmul.mubr.msk.f32.gmra.mrb[14].mxu0 %vm848_vm1, %v23374_v33  ;;  %v23414_v47 = vpop.permute.xlu1 %6747 }
 0x1d9   : > { %26984 = vst [vmem:[#allocation44_spill] sm:$0xff] %v23414_v47  ;;  %2361 = vmatprep.mubr.f32.mxu0 %v26959_v1  ;;  %v23902_v47 = vld [vmem:[%s26838_s5 + $0x78] sm:$0xff] }
 0x1da   : > { %v23424_v3 = vpop.permute.xlu0 %7164 }
 0x1db   : > { %26985 = vst [vmem:[#allocation45_spill] sm:$0xff] %v23424_v3  ;;  %v3368_v3 = vsel %vm3367_vm7, %v23082_v63, %v23066_v49  ;;  %v8469_v63 = vld [vmem:[%s26839_s6 + $0x8] sm:$0xff] }
 0x1dc   : > { %19726 = vmatmul.mubr.msk.f32.vlgmr.msra.gmra.mrb[16].mxu0 %vm848_vm1, %v23330_v45  ;;  %v839_v37 = vpop.permute.xlu1 %838  ;;  %8479 = vperm.xlu1 %22085, %v8469_v63   ;;  %v23926_v63 = vld [vmem:[%s26838_s5 + $0x90] sm:$0xff] }
 0x1dd   : > { %19740 = vmatpush1.msk.msra.mxu0 %vm493_vm0, %v22669_v43  ;;  %v847_v41 = vsel %vm840_vm2, %v22819_v12, %v839_v37  ;;  %2367 = vmatprep.mubr.f32.mxu0 %v26959_v1 }
 0x1de   : > { %19745 = vmatprep.subr.msk.mxu0 %vm493_vm0, %v22671_v42  ;;  %20685 = vmatprep.subr.msk.mxu1 %vm493_vm0, %v847_v41  ;;  %v1649_v12 = vpop.permute.xlu0 %1648 }
 0x1df   : > { %20686 = vmatpush3.msk.msra.mxu1 %vm493_vm0, %v847_v41  ;;  %v23584_v41 = vld [vmem:[%s26837_s4 + $0xb0] sm:$0xff] }
 0x1e0   : > { %20688 = vmatmul.mubr.msk.f32.vlgmr.msra.gmra.mrb[0].mxu1 %vm848_vm1, %v22838_v17  ;;  %19727 = vmatmul.mubr.msk.f32.gmra.mrb[18].mxu0 %vm848_vm1, %v23349_v5  ;;  %v23434_v43 = vpop.permute.xlu1 %7168 }
 0x1e1   : > { %26986 = vst [vmem:[#allocation46_spill] sm:$0xff] %v23434_v43  ;;  %20690 = vmatprep.mubr.msk.f32.mxu1 %vm848_vm1, %v22856_v22  ;;  %2373 = vmatprep.mubr.f32.mxu0 %v26959_v1  ;;  %v1657_v22 = vsel %vm1650_vm4, %v22920_v38, %v1649_v12  ;;  %v23468_v38 = vld [vmem:[%s26837_s4 + $0x80] sm:$0xff] }
 0x1e4   : > { %20691 = vmatmul.mubr.msk.f32.gmra.mrb[2].mxu1 %vm848_vm1, %v22871_v60  ;;  %19728 = vmatmul.mubr.msk.f32.gmra.mrb[20].mxu0 %vm848_vm1, %v23362_v35  ;;  %v1242_v42 = vpop.permute.xlu1 %1241 }
 0x1e5   : > { %v1250_v17 = vsel %vm1243_vm3, %v22906_v28, %v1242_v42  ;;  %20695 = vmatprep.mubr.msk.f32.mxu1 %vm848_vm1, %v22984_v62  ;;  %2379 = vmatprep.mubr.f32.mxu0 %v26959_v1  ;;  %v23460_v28 = vpop.permute.xlu0 %7172  ;;  %v23594_v42 = vld [vmem:[%s26837_s4 + $0xb8] sm:$0xff] }
 0x1e6   : > { %20693 = vmatprep.subr.msk.mxu1 %vm493_vm0, %v1250_v17  ;;  %26988 = vst [vmem:[#allocation48_spill] sm:$0xff] %v23460_v28 }
 0x1e7   : > { %20694 = vmatpush3.msk.msra.mxu1 %vm493_vm0, %v1250_v17  ;;  %v23601_v17 = vld [vmem:[%s26837_s4 + $0xc0] sm:$0xff] }
 0x1e8   : > { %20696 = vmatmul.mubr.msk.f32.vlgmr.msra.gmra.mrb[0].mxu1 %vm848_vm1, %v23009_v54  ;;  %20701 = vmatprep.subr.msk.mxu1 %vm493_vm0, %v1657_v22  ;;  %v23455_v60 = vpop.permute.xlu1 %7170 }
 0x1e9   : > { %26987 = vst [vmem:[#allocation47_spill] sm:$0xff] %v23455_v60  ;;  %19729 = vmatmul.mubr.msk.f32.gmra.mrb[22].mxu0 %vm848_vm1, %v23374_v33  ;;  %20702 = vmatpush3.msk.msra.mxu1 %vm493_vm0, %v1657_v22  ;;  %v2933_v22 = vsel %vm2932_vm6, %v22986_v7, %v22970_v40  ;;  %v23632_v7 = vld [vmem:[%s26837_s4 + $0xd0] sm:$0xff]  ;;  %v23850_v60 = vld [vmem:[%s26838_s5 + $0x58] sm:$0xff] }
 0x1ea   : > { %20698 = vmatprep.mubr.msk.f32.mxu1 %vm848_vm1, %v23026_v16  ;;  %2594 = vmatprep.mubr.f32.mxu0 %v26959_v1  ;;  %v23484_v16 = vld [vmem:[%s26837_s4 + $0x88] sm:$0xff] }
 0x1ec   : > { %20699 = vmatmul.mubr.msk.f32.gmra.mrb[2].mxu1 %vm848_vm1, %v23042_v20  ;;  %v2084_v62 = vpop.permute.xlu1 %2083  ;;  %v23489_v20 = vpop.permute.xlu0 %7174 }
 0x1ed   : > { %19741 = vmatmul.mubr.msk.f32.vlgmr.msra.gmra.mrb[0].mxu0 %vm848_vm1, %v23468_v38  ;;  %v2092_v54 = vsel %vm2085_vm5, %v22997_v10, %v2084_v62  ;;  %20703 = vmatprep.mubr.msk.f32.mxu1 %vm848_vm1, %v23163_v6  ;;  %26989 = vst [vmem:[#allocation49_spill] sm:$0xff] %v23489_v20  ;;  %v23503_v6 = vld [vmem:[%s26837_s4 + $0x90] sm:$0xff]  ;;  %v23518_v10 = vld [vmem:[%s26837_s4 + $0x98] sm:$0xff]  ;;  %v23617_v62 = vld [vmem:[%s26837_s4 + $0xc8] sm:$0xff] }
 0x1ee   : > { %19746 = vmatpush1.msk.msra.mxu0 %vm493_vm0, %v22687_v55  ;;  %20709 = vmatprep.subr.msk.mxu1 %vm493_vm0, %v2092_v54 }
 0x1ef   : > { %19751 = vmatprep.subr.msk.mxu0 %vm493_vm0, %v22679_v48  ;;  %2600 = vmatprep.mubr.f32.mxu0 %v26959_v1 }
 0x1f0   : > { %20704 = vmatmul.mubr.msk.f32.vlgmr.msra.gmra.mrb[0].mxu1 %vm848_vm1, %v23185_v29  ;;  %v23506_v48 = vpop.permute.xlu1 %7176  ;;  %v2931_v55 = vpop.permute.xlu0 %2930 }
 0x1f1   : > { %20710 = vmatpush3.msk.msra.mxu1 %vm493_vm0, %v2092_v54  ;;  %19742 = vmatmul.mubr.msk.f32.gmra.mrb[2].mxu0 %vm848_vm1, %v23484_v16  ;;  %26990 = vst [vmem:[#allocation50_spill] sm:$0xff] %v23506_v48  ;;  %v2939_v29 = vsel %vm2932_vm6, %v23028_v18, %v2931_v55  ;;  %v2936_v55 = vsel %vm2932_vm6, %v23036_v19, %v23012_v14 }
 0x1f2   : > { %20717 = vmatprep.subr.msk.mxu1 %vm493_vm0, %v22746_v61  ;;  %20706 = vmatprep.mubr.msk.f32.mxu1 %vm848_vm1, %v23202_v34 }
 0x1f3   : > { %2606 = vmatprep.mubr.f32.mxu0 %v26959_v1 }
 0x1f4   : > { %20707 = vmatmul.mubr.msk.f32.gmra.mrb[2].mxu1 %vm848_vm1, %v23218_v31  ;;  %v3366_v31 = vpop.permute.xlu1 %3365 }
 0x1f5   : > { %19743 = vmatmul.mubr.msk.f32.gmra.mrb[4].mxu0 %vm848_vm1, %v23503_v6  ;;  %20711 = vmatprep.mubr.msk.f32.mxu1 %vm848_vm1, %v23330_v45  ;;  %v3374_v45 = vsel %vm3367_vm7, %v23107_v21, %v3366_v31  ;;  %v23649_v31 = vld [vmem:[%s26837_s4 + $0xe0] sm:$0xff] }
 0x1f6   : > { %2612 = vmatprep.mubr.f32.mxu0 %v26959_v1 }
 0x1f8   : > { %20712 = vmatmul.mubr.msk.f32.vlgmr.msra.gmra.mrb[0].mxu1 %vm848_vm1, %v23349_v5  ;;  %v23545_v34 = vpop.permute.xlu1 %7595  ;;  %v23561_v5 = vld [vmem:[%s26837_s4 + $0xa0] sm:$0xff] }
 0x1f9   : > { %19744 = vmatmul.mubr.msk.f32.gmra.mrb[6].mxu0 %vm848_vm1, %v23518_v10  ;;  %20718 = vmatpush3.msk.msra.mxu1 %vm493_vm0, %v22746_v61  ;;  %v2934_v61 = vsel %vm2932_vm6, %v22970_v40, %v23020_v15  ;;  %26991 = vst [vmem:[#allocation51_spill] sm:$0xff] %v23545_v34  ;;  %v23812_v34 = vld [vmem:[%s26838_s5 + $0x18] sm:$0xff] }
 0x1fa   : > { %20725 = vmatprep.subr.msk.mxu1 %vm493_vm0, %v2939_v29  ;;  %20714 = vmatprep.mubr.msk.f32.mxu1 %vm848_vm1, %v23362_v35 }
 0x1fb   : > { %2683 = vmatprep.mubr.f32.mxu0 %v26959_v1 }
 0x1fc   : > { %20715 = vmatmul.mubr.msk.f32.gmra.mrb[2].mxu1 %vm848_vm1, %v23374_v33  ;;  %v23574_v33 = vld [vmem:[%s26837_s4 + $0xa8] sm:$0xff]  ;;  %v3801_v37 = vpop.permute.xlu1 %3800 }
 0x1fd   : > { %19747 = vmatmul.mubr.msk.f32.vlgmr.msra.gmra.mrb[8].mxu0 %vm848_vm1, %v23468_v38  ;;  %20719 = vmatprep.mubr.msk.f32.mxu1 %vm848_vm1, %v23468_v38  ;;  %v3809_v12 = vsel %vm3802_vm8, %v23129_v52, %v3801_v37 }
 0x1fe   : > { %19752 = vmatpush1.msk.msra.mxu0 %vm493_vm0, %v22695_v57  ;;  %2689 = vmatprep.mubr.f32.mxu0 %v26959_v1  ;;  %v23554_v57 = vpop.permute.xlu0 %7593 }
 0x1ff   : > { %19766 = vmatprep.subr.msk.mxu0 %vm493_vm0, %v2934_v61  ;;  %26992 = vst [vmem:[#allocation52_spill] sm:$0xff] %v23554_v57  ;;  %v3369_v57 = vsel %vm3367_vm7, %v23066_v49, %v23044_v59  ;;  %v23883_v49 = vld [vmem:[%s26838_s5 + $0x70] sm:$0xff] }
 0x200   : > { %20720 = vmatmul.mubr.msk.f32.vlgmr.msra.gmra.mrb[0].mxu1 %vm848_vm1, %v23484_v16  ;;  %v23625_v40 = vpop.permute.xlu1 %7597 }
 0x201   : > { %19748 = vmatmul.mubr.msk.f32.gmra.mrb[10].mxu0 %vm848_vm1, %v23484_v16  ;;  %20726 = vmatpush3.msk.msra.mxu1 %vm493_vm0, %v2939_v29  ;;  %26994 = vst [vmem:[#allocation54_spill] sm:$0xff] %v23625_v40  ;;  %v23642_v29 = vld [vmem:[%s26837_s4 + $0xd8] sm:$0xff] }
 0x202   : > { %20733 = vmatprep.subr.msk.mxu1 %vm493_vm0, %v3374_v45  ;;  %2695 = vmatprep.mubr.f32.mxu0 %v26959_v1  ;;  %v23577_v35 = vpop.permute.xlu0 %7591 }
 0x203   : > { %20722 = vmatprep.mubr.msk.f32.mxu1 %vm848_vm1, %v23503_v6  ;;  %26993 = vst [vmem:[#allocation53_spill] sm:$0xff] %v23577_v35  ;;  %v2937_v35 = vsel %vm2932_vm6, %v23012_v14, %v23052_v23  ;;  %v23798_v14 = vld [vmem:[%s26838_s5 + $0x10] sm:$0xff] }
 0x204   : > { %20723 = vmatmul.mubr.msk.f32.gmra.mrb[2].mxu1 %vm848_vm1, %v23518_v10  ;;  %v4691_v61 = vpop.permute.xlu1 %4690 }
 0x205   : > { %19749 = vmatmul.mubr.msk.f32.gmra.mrb[12].mxu0 %vm848_vm1, %v23503_v6  ;;  %20727 = vmatprep.mubr.msk.f32.mxu1 %vm848_vm1, %v23561_v5 }
 0x206   : > { %2701 = vmatprep.mubr.f32.mxu0 %v26959_v1  ;;  %v4236_v54 = vpop.permute.xlu0 %4235 }
 0x208   : > { %20728 = vmatmul.mubr.msk.f32.vlgmr.msra.gmra.mrb[0].mxu1 %vm848_vm1, %v23574_v33 }
 0x209   : > { %19750 = vmatmul.mubr.msk.f32.gmra.mrb[14].mxu0 %vm848_vm1, %v23518_v10  ;;  %20734 = vmatpush3.msk.msra.mxu1 %vm493_vm0, %v3374_v45  ;;  %v23668_v45 = vld [vmem:[%s26837_s4 + $0xf0] sm:$0xff] }
 0x20a   : > { %20741 = vmatprep.subr.msk.mxu1 %vm493_vm0, %v3809_v12  ;;  %2772 = vmatprep.mubr.f32.mxu0 %v26959_v1  ;;  %v23674_v37 = vpop.permute.xlu0 %7599 }
 0x20b   : > { %20730 = vmatprep.mubr.msk.f32.mxu1 %vm848_vm1, %v23584_v41  ;;  %26995 = vst [vmem:[#allocation55_spill] sm:$0xff] %v23674_v37  ;;  %v23768_v37 = vld [vmem:[%s26838_s5 + $0x38] sm:$0xff] }
 0x20c   : > { %20731 = vmatmul.mubr.msk.f32.gmra.mrb[2].mxu1 %vm848_vm1, %v23594_v42 }
 0x20d   : > { %19753 = vmatmul.mubr.msk.f32.vlgmr.msra.gmra.mrb[16].mxu0 %vm848_vm1, %v23468_v38  ;;  %20735 = vmatprep.mubr.msk.f32.mxu1 %vm848_vm1, %v23601_v17  ;;  %v4244_v38 = vsel %vm4237_vm9, %v23212_v30, %v4236_v54  ;;  %v23704_v54 = vld [vmem:[%s26837_s4 + $0x108] sm:$0xff] }
 0x20e   : > { %19767 = vmatpush1.msk.msra.mxu0 %vm493_vm0, %v2933_v22  ;;  %2778 = vmatprep.mubr.f32.mxu0 %v26959_v1  ;;  %v23690_v22 = vld [vmem:[%s26837_s4 + $0x100] sm:$0xff] }
 0x20f   : > { %19772 = vmatprep.subr.msk.mxu0 %vm493_vm0, %v2936_v55  ;;  %v2938_v55 = vsel %vm2932_vm6, %v23052_v23, %v23028_v18  ;;  %v23730_v18 = vld [vmem:[%s26837_s4 + $0x118] sm:$0xff] }
 0x210   : > { %20736 = vmatmul.mubr.msk.f32.vlgmr.msra.gmra.mrb[0].mxu1 %vm848_vm1, %v23617_v62 }
 0x211   : > { %19754 = vmatmul.mubr.msk.f32.gmra.mrb[18].mxu0 %vm848_vm1, %v23484_v16  ;;  %20742 = vmatpush3.msk.msra.mxu1 %vm493_vm0, %v3809_v12  ;;  %v23662_v16 = vld [vmem:[%s26837_s4 + $0xe8] sm:$0xff]  ;;  %v23682_v12 = vld [vmem:[%s26837_s4 + $0xf8] sm:$0xff] }
 0x212   : > { %20749 = vmatprep.subr.msk.mxu1 %vm493_vm0, %v4244_v38  ;;  %2784 = vmatprep.mubr.f32.mxu0 %v26959_v1 }
 0x213   : > { %20738 = vmatprep.mubr.msk.f32.mxu1 %vm848_vm1, %v23632_v7 }
 0x214   : > { %20739 = vmatmul.mubr.msk.f32.gmra.mrb[2].mxu1 %vm848_vm1, %v23642_v29 }
 0x215   : > { %19755 = vmatmul.mubr.msk.f32.gmra.mrb[20].mxu0 %vm848_vm1, %v23503_v6  ;;  %20743 = vmatprep.mubr.msk.f32.mxu1 %vm848_vm1, %v23649_v31  ;;  %v4698_v6 = vsel %vm840_vm2, %v23231_v25, %v4691_v61 }
 0x216   : > { %2790 = vmatprep.mubr.f32.mxu0 %v26959_v1 }
 0x218   : > { %20744 = vmatmul.mubr.msk.f32.vlgmr.msra.gmra.mrb[0].mxu1 %vm848_vm1, %v23662_v16 }
 0x219   : > { %19756 = vmatmul.mubr.msk.f32.gmra.mrb[22].mxu0 %vm848_vm1, %v23518_v10  ;;  %20750 = vmatpush3.msk.msra.mxu1 %vm493_vm0, %v4244_v38  ;;  %v2935_v10 = vsel %vm2932_vm6, %v23020_v15, %v23036_v19  ;;  %v23714_v15 = vld [vmem:[%s26837_s4 + $0x110] sm:$0xff]  ;;  %v5086_v19 = vpop.permute.xlu0 %5085  ;;  %v23717_v38 = vpop.permute.xlu1 %7601 }
 0x21a   : > { %3030 = vmatprep.mubr.f32.mxu0 %v26959_v1  ;;  %20746 = vmatprep.mubr.msk.f32.mxu1 %vm848_vm1, %v23668_v45  ;;  %26996 = vst [vmem:[#allocation56_spill] sm:$0xff] %v23717_v38  ;;  %v5093_v61 = vsel %vm1243_vm3, %v23309_v39, %v5086_v19  ;;  %v23753_v19 = vld [vmem:[%s26838_s5 + $0x30] sm:$0xff] }
 0x21b   : > { %20757 = vmatprep.subr.mxu1 %v4698_v6 }
 0x21c   : > { %20747 = vmatmul.mubr.msk.f32.gmra.mrb[2].mxu1 %vm848_vm1, %v23682_v12 }
 0x21d   : > { %19768 = vmatmul.mubr.msk.f32.vlgmr.msra.gmra.mrb[0].mxu0 %vm848_vm1, %v23561_v5  ;;  %20751 = vmatprep.mubr.msk.f32.mxu1 %vm848_vm1, %v23690_v22  ;;  %v23759_v40 = vpop.permute.xlu0 %7603 }
 0x21e   : > { %19773 = vmatpush1.msk.msra.mxu0 %vm493_vm0, %v2935_v10  ;;  %3036 = vmatprep.mubr.f32.mxu0 %v26959_v1  ;;  %v23736_v10 = vld [vmem:[%s26838_s5 + $0x20] sm:$0xff]  ;;  %26997 = vst [vmem:[#allocation57_spill] sm:$0xff] %v23759_v40 }
 0x21f   : > { %19778 = vmatprep.subr.msk.mxu0 %vm493_vm0, %v2938_v55  ;;  %v5485_v55 = vpop.permute.xlu1 %5484 }
 0x220   : > { %20752 = vmatmul.mubr.msk.f32.vlgmr.msra.gmra.mrb[0].mxu1 %vm848_vm1, %v23704_v54  ;;  %v5492_v38 = vsel %vm1650_vm4, %v23320_v2, %v5485_v55  ;;  %v23774_v55 = vld [vmem:[%s26838_s5] sm:$0xff] }
 0x221   : > { %19769 = vmatmul.mubr.msk.f32.gmra.mrb[2].mxu0 %vm848_vm1, %v23574_v33  ;;  %20754 = vmatprep.mubr.msk.f32.mxu1 %vm848_vm1, %v23714_v15  ;;  %v5912_v23 = vpop.permute.xlu0 %5911 }
 0x222   : > { %3042 = vmatprep.mubr.f32.mxu0 %v26959_v1  ;;  %20758 = vmatpush3.msra.mxu1 %v4698_v6  ;;  %v23747_v6 = vld [vmem:[%s26838_s5 + $0x28] sm:$0xff] }
 0x223   : > { %20765 = vmatprep.subr.mxu1 %v5093_v61 }
 0x224   : > { %20755 = vmatmul.mubr.msk.f32.gmra.mrb[2].mxu1 %vm848_vm1, %v23730_v18 }
 0x225   : > { %19770 = vmatmul.mubr.msk.f32.gmra.mrb[4].mxu0 %vm848_vm1, %v23584_v41  ;;  %20759 = vmatprep.mubr.msk.f32.mxu1 %vm4706_vm10, %v23736_v10  ;;  %v23841_v20 = vpop.permute.xlu0 %8022 }
 0x226   : > { %3048 = vmatprep.mubr.f32.mxu0 %v26959_v1  ;;  %26999 = vst [vmem:[#allocation59_spill] sm:$0xff] %v23841_v20  ;;  %v23858_v20 = vld [vmem:[%s26838_s5 + $0x60] sm:$0xff] }
 0x228   : > { %20760 = vmatmul.mubr.msk.f32.vlgmr.msra.gmra.mrb[0].mxu1 %vm4706_vm10, %v23747_v6 }
 0x229   : > { %19771 = vmatmul.mubr.msk.f32.gmra.mrb[6].mxu0 %vm848_vm1, %v23594_v42  ;;  %20762 = vmatprep.mubr.msk.f32.mxu1 %vm4706_vm10, %v23753_v19 }
 0x22a   : > { %3119 = vmatprep.mubr.f32.mxu0 %v26959_v1  ;;  %20766 = vmatpush3.msra.mxu1 %v5093_v61  ;;  %v23788_v61 = vld [vmem:[%s26838_s5 + $0x8] sm:$0xff] }
 0x22b   : > { %20773 = vmatprep.subr.mxu1 %v5492_v38 }
 0x22c   : > { %20763 = vmatmul.mubr.msk.f32.gmra.mrb[2].mxu1 %vm4706_vm10, %v23768_v37 }
 0x22d   : > { %19774 = vmatmul.mubr.msk.f32.vlgmr.msra.gmra.mrb[8].mxu0 %vm848_vm1, %v23561_v5  ;;  %20767 = vmatprep.mubr.msk.f32.mxu1 %vm4706_vm10, %v23774_v55 }
 0x22e   : > { %19779 = vmatpush1.msk.msra.mxu0 %vm493_vm0, %v2937_v35  ;;  %3125 = vmatprep.mubr.f32.mxu0 %v26959_v1  ;;  %v5919_v35 = vsel %vm2085_vm5, %v23390_v13, %v5912_v23  ;;  %v23820_v23 = vpop.permute.xlu1 %8020 }
 0x22f   : > { %19793 = vmatprep.subr.msk.mxu0 %vm493_vm0, %v3369_v57  ;;  %v23818_v57 = vld [vmem:[%s26838_s5 + $0x40] sm:$0xff]  ;;  %26998 = vst [vmem:[#allocation58_spill] sm:$0xff] %v23820_v23  ;;  %v23837_v23 = vld [vmem:[%s26838_s5 + $0x50] sm:$0xff] }
 0x230   : > { %20768 = vmatmul.mubr.msk.f32.vlgmr.msra.gmra.mrb[0].mxu1 %vm4706_vm10, %v23788_v61 }
 0x231   : > { %19775 = vmatmul.mubr.msk.f32.gmra.mrb[10].mxu0 %vm848_vm1, %v23574_v33  ;;  %20770 = vmatprep.mubr.msk.f32.mxu1 %vm4706_vm10, %v23798_v14 }
 0x232   : > { %3131 = vmatprep.mubr.f32.mxu0 %v26959_v1  ;;  %20774 = vmatpush3.msra.mxu1 %v5492_v38  ;;  %v23831_v38 = vld [vmem:[%s26838_s5 + $0x48] sm:$0xff]  ;;  %v23852_v28 = vpop.permute.xlu1 %8018 }
 0x233   : > { %20781 = vmatprep.subr.mxu1 %v5919_v35  ;;  %27000 = vst [vmem:[#allocation60_spill] sm:$0xff] %v23852_v28  ;;  %v3371_v28 = vsel %vm3367_vm7, %v23055_v46, %v23096_v9 }
 0x234   : > { %20771 = vmatmul.mubr.msk.f32.gmra.mrb[2].mxu1 %vm4706_vm10, %v23812_v34 }
 0x235   : > { %19776 = vmatmul.mubr.msk.f32.gmra.mrb[12].mxu0 %vm848_vm1, %v23584_v41  ;;  %20775 = vmatprep.mubr.msk.f32.mxu1 %vm4706_vm10, %v23818_v57 }
 0x236   : > { %3137 = vmatprep.mubr.f32.mxu0 %v26959_v1  ;;  %v23889_v43 = vpop.permute.xlu1 %8024 }
 0x237   : > { %27001 = vst [vmem:[#allocation61_spill] sm:$0xff] %v23889_v43  ;;  %v23941_v43 = vld [vmem:[%s26838_s5 + $0x98] sm:$0xff] }
 0x238   : > { %20776 = vmatmul.mubr.msk.f32.vlgmr.msra.gmra.mrb[0].mxu1 %vm4706_vm10, %v23831_v38 }
 0x239   : > { %19777 = vmatmul.mubr.msk.f32.gmra.mrb[14].mxu0 %vm848_vm1, %v23594_v42  ;;  %20778 = vmatprep.mubr.msk.f32.mxu1 %vm4706_vm10, %v23837_v23 }
 0x23a   : > { %3208 = vmatprep.mubr.f32.mxu0 %v26959_v1  ;;  %20782 = vmatpush3.msra.mxu1 %v5919_v35  ;;  %v23873_v35 = vld [vmem:[%s26838_s5 + $0x68] sm:$0xff] }
 0x23b   : > { %20789 = vmatprep.subr.mxu1 %v23004_v11 }
 0x23c   : > { %20779 = vmatmul.mubr.msk.f32.gmra.mrb[2].mxu1 %vm4706_vm10, %v23850_v60 }
 0x23d   : > { %19780 = vmatmul.mubr.msk.f32.vlgmr.msra.gmra.mrb[16].mxu0 %vm848_vm1, %v23561_v5  ;;  %20783 = vmatprep.mubr.msk.f32.mxu1 %vm4706_vm10, %v23858_v20  ;;  %v6752_v5 = vpop.permute.xlu0 %6751 }
 0x23e   : > { %19794 = vmatpush1.msk.msra.mxu0 %vm493_vm0, %v3368_v3  ;;  %3214 = vmatprep.mubr.f32.mxu0 %v26959_v1  ;;  %v6759_v3 = vsel %vm2932_vm6, %v23403_v58, %v6752_v5 }
 0x23f   : > { %19799 = vmatprep.subr.msk.mxu0 %vm493_vm0, %v3371_v28  ;;  %v23909_v28 = vld [vmem:[%s26838_s5 + $0x80] sm:$0xff] }
 0x240   : > { %20784 = vmatmul.mubr.msk.f32.vlgmr.msra.gmra.mrb[0].mxu1 %vm4706_vm10, %v23873_v35 }
 0x241   : > { %19781 = vmatmul.mubr.msk.f32.gmra.mrb[18].mxu0 %vm848_vm1, %v23574_v33  ;;  %20786 = vmatprep.mubr.msk.f32.mxu1 %vm4706_vm10, %v23883_v49  ;;  %v23920_v33 = vld [vmem:[%s26838_s5 + $0x88] sm:$0xff]  ;;  %v23932_v5 = vpop.permute.xlu0 %8026 }
 0x242   : > { %3220 = vmatprep.mubr.f32.mxu0 %v26959_v1  ;;  %20790 = vmatpush3.msra.mxu1 %v23004_v11  ;;  %v7179_v11 = vpop.permute.xlu1 %7178  ;;  %27002 = vst [vmem:[#allocation62_spill] sm:$0xff] %v23932_v5  ;;  %v3370_v5 = vsel %vm3367_vm7, %v23044_v59, %v23055_v46  ;;  %v23974_v59 = vld [vmem:[%s26838_s5 + $0xb0] sm:$0xff] }
 0x243   : > { %20797 = vmatprep.subr.mxu1 %v6759_v3 }
 0x244   : > { %20787 = vmatmul.mubr.msk.f32.gmra.mrb[2].mxu1 %vm4706_vm10, %v23902_v47 }
 0x245   : > { %19782 = vmatmul.mubr.msk.f32.gmra.mrb[20].mxu0 %vm848_vm1, %v23584_v41  ;;  %20791 = vmatprep.mubr.msk.f32.mxu1 %vm4706_vm10, %v23909_v28  ;;  %v7186_v41 = vsel %vm3367_vm7, %v23506_v48, %v7179_v11  ;;  %v23947_v11 = vld [vmem:[%s26838_s5 + $0xa0] sm:$0xff]  ;;  %v7606_v46 = vpop.permute.xlu0 %7605 }
 0x246   : > { %3226 = vmatprep.mubr.f32.mxu0 %v26959_v1  ;;  %v23977_v48 = vpop.permute.xlu1 %8028 }
 0x247   : > { %27003 = vst [vmem:[#allocation63_spill] sm:$0xff] %v23977_v48  ;;  %v24013_v48 = vld [vmem:[%s26838_s5 + $0xd0] sm:$0xff] }
 0x248   : > { %20792 = vmatmul.mubr.msk.f32.vlgmr.msra.gmra.mrb[0].mxu1 %vm4706_vm10, %v23920_v33 }
 0x249   : > { %19783 = vmatmul.mubr.msk.f32.gmra.mrb[22].mxu0 %vm848_vm1, %v23594_v42  ;;  %20794 = vmatprep.mubr.msk.f32.mxu1 %vm4706_vm10, %v23926_v63  ;;  %v8471_v42 = vld [vmem:[%s26839_s6 + $0x18] sm:$0xff] }
 0x24a   : > { %3465 = vmatprep.mubr.f32.mxu0 %v26959_v1  ;;  %20798 = vmatpush3.msra.mxu1 %v6759_v3  ;;  %v23964_v3 = vld [vmem:[%s26838_s5 + $0xa8] sm:$0xff] }
 0x24b   : > { %20805 = vmatprep.subr.mxu1 %v7186_v41  ;;  %8489 = vperm.xlu1 %22085, %v8471_v42   ;;  %v3373_v42 = vsel %vm3367_vm7, %v23074_v24, %v23107_v21  ;;  %v23990_v21 = vld [vmem:[%s26838_s5 + $0xb8] sm:$0xff] }
 0x24c   : > { %20795 = vmatmul.mubr.msk.f32.gmra.mrb[2].mxu1 %vm4706_vm10, %v23941_v43  ;;  %27004 = vst [vmem:[#allocation64_spill] sm:$0xff] %v23990_v21 }
 0x24d   : > { %19795 = vmatmul.mubr.msk.f32.vlgmr.msra.gmra.mrb[0].mxu0 %vm848_vm1, %v23601_v17  ;;  %20799 = vmatprep.mubr.msk.f32.mxu1 %vm4706_vm10, %v23947_v11 }
 0x24e   : > { %19800 = vmatpush1.msk.msra.mxu0 %vm493_vm0, %v3370_v5  ;;  %3471 = vmatprep.mubr.f32.mxu0 %v26959_v1  ;;  %v7613_v5 = vsel %vm3802_vm8, %v23759_v40, %v7606_v46  ;;  %v24007_v46 = vld [vmem:[%s26838_s5 + $0xc8] sm:$0xff]  ;;  %v24015_v40 = vpop.permute.xlu0 %8030 }
 0x24f   : > { %19805 = vmatprep.subr.msk.mxu0 %vm493_vm0, %v3373_v42  ;;  %v23996_v42 = vld [vmem:[%s26838_s5 + $0xc0] sm:$0xff]  ;;  %27006 = vst [vmem:[#allocation66_spill] sm:$0xff] %v24007_v46  ;;  %27007 = vst [vmem:[#allocation67_spill] sm:$0xff] %v24015_v40 }
 0x250   : > { %20800 = vmatmul.mubr.msk.f32.vlgmr.msra.gmra.mrb[0].mxu1 %vm4706_vm10, %v23964_v3  ;;  %27005 = vst [vmem:[#allocation65_spill] sm:$0xff] %v23996_v42 }
 0x251   : > { %19796 = vmatmul.mubr.msk.f32.gmra.mrb[2].mxu0 %vm848_vm1, %v23617_v62  ;;  %20802 = vmatprep.mubr.msk.f32.mxu1 %vm4706_vm10, %v23974_v59 }
 0x252   : > { %3477 = vmatprep.mubr.f32.mxu0 %v26959_v1  ;;  %20806 = vmatpush3.msra.mxu1 %v7186_v41  ;;  %v8033_v41 = vpop.permute.xlu1 %8032 }
 0x253   : > { %20813 = vmatprep.subr.mxu1 %v7613_v5 }
 0x254   : > { %20803 = vmatmul.mubr.msk.f32.gmra.mrb[2].mxu1 %vm4706_vm10, %v23990_v21  ;;  %v24028_v21 = vld [vmem:[%s26838_s5 + $0xd8] sm:$0xff] }
 0x255   : > { %19797 = vmatmul.mubr.msk.f32.gmra.mrb[4].mxu0 %vm848_vm1, %v23632_v7  ;;  %20807 = vmatprep.mubr.msk.f32.mxu1 %vm4706_vm10, %v23996_v42  ;;  %v8040_v42 = vsel %vm4237_vm9, %v24015_v40, %v8033_v41  ;;  %v3372_v41 = vsel %vm3367_vm7, %v23096_v9, %v23074_v24  ;;  %v3804_v40 = vsel %vm3802_vm8, %v23085_v36, %v23121_v32  ;;  %v24058_v24 = vld [vmem:[%s26838_s5 + $0xf0] sm:$0xff]  ;;  %v24070_v9 = vld [vmem:[%s26838_s5 + $0xf8] sm:$0xff] }
 0x256   : > { %3483 = vmatprep.mubr.f32.mxu0 %v26959_v1 }
 0x258   : > { %20808 = vmatmul.mubr.msk.f32.vlgmr.msra.gmra.mrb[0].mxu1 %vm4706_vm10, %v24007_v46  ;;  %v24034_v46 = vld [vmem:[%s26838_s5 + $0xe0] sm:$0xff] }
 0x259   : > { %19798 = vmatmul.mubr.msk.f32.gmra.mrb[6].mxu0 %vm848_vm1, %v23642_v29  ;;  %20810 = vmatprep.mubr.msk.f32.mxu1 %vm4706_vm10, %v24013_v48 }
 0x25a   : > { %3554 = vmatprep.mubr.f32.mxu0 %v26959_v1  ;;  %20814 = vmatpush3.msra.mxu1 %v7613_v5  ;;  %v24048_v5 = vld [vmem:[%s26838_s5 + $0xe8] sm:$0xff] }
 0x25b   : > { %20821 = vmatprep.subr.mxu1 %v8040_v42 }
 0x25c   : > { %20811 = vmatmul.mubr.msk.f32.gmra.mrb[2].mxu1 %vm4706_vm10, %v24028_v21 }
 0x25d   : > { %19801 = vmatmul.mubr.msk.f32.vlgmr.msra.gmra.mrb[8].mxu0 %vm848_vm1, %v23601_v17  ;;  %20815 = vmatprep.mubr.msk.f32.mxu1 %vm4706_vm10, %v24034_v46 }
 0x25e   : > { %19806 = vmatpush1.msk.msra.mxu0 %vm493_vm0, %v3372_v41  ;;  %3560 = vmatprep.mubr.f32.mxu0 %v26959_v1  ;;  %v24087_v41 = vld [vmem:[%s26838_s5 + $0x108] sm:$0xff] }
 0x25f   : > { %19820 = vmatprep.subr.msk.mxu0 %vm493_vm0, %v3804_v40  ;;  %v24076_v40 = vld [vmem:[%s26838_s5 + $0x100] sm:$0xff]  ;;  %27009 = vst [vmem:[#allocation69_spill] sm:$0xff] %v24087_v41 }
 0x260   : > { %20816 = vmatmul.mubr.msk.f32.vlgmr.msra.gmra.mrb[0].mxu1 %vm4706_vm10, %v24048_v5  ;;  %27008 = vst [vmem:[#allocation68_spill] sm:$0xff] %v24076_v40 }
 0x261   : > { %19802 = vmatmul.mubr.msk.f32.gmra.mrb[10].mxu0 %vm848_vm1, %v23617_v62  ;;  %20818 = vmatprep.mubr.msk.f32.mxu1 %vm4706_vm10, %v24058_v24 }
 0x262   : > { %3566 = vmatprep.mubr.f32.mxu0 %v26959_v1  ;;  %20822 = vmatpush3.msra.mxu1 %v8040_v42  ;;  %v24093_v42 = vld [vmem:[%s26838_s5 + $0x110] sm:$0xff] }
 0x263   : > { %27010 = vst [vmem:[#allocation70_spill] sm:$0xff] %v24093_v42 }
 0x264   : > { %20819 = vmatmul.mubr.msk.f32.gmra.mrb[2].mxu1 %vm4706_vm10, %v24070_v9 }
 0x265   : > { %19803 = vmatmul.mubr.msk.f32.gmra.mrb[12].mxu0 %vm848_vm1, %v23632_v7  ;;  %20823 = vmatprep.mubr.msk.f32.mxu1 %vm4706_vm10, %v24076_v40  ;;  %v24104_v40 = vld [vmem:[%s26838_s5 + $0x118] sm:$0xff] }
 0x266   : > { %3572 = vmatprep.mubr.f32.mxu0 %v26959_v1 }
 0x268   : > { %20824 = vmatmul.mubr.msk.f32.vlgmr.msra.gmra.mrb[0].mxu1 %vm4706_vm10, %v24087_v41  ;;  %v3803_v41 = vsel %vm3802_vm8, %v23099_v26, %v23085_v36  ;;  %v3805_v36 = vsel %vm3802_vm8, %v23121_v32, %v23137_v53  ;;  %v27011_v26 = vld [vmem:[#allocation15_spill] sm:$0xff]  ;;  %v27012_v32 = vld [vmem:[#allocation14_spill] sm:$0xff] }
 0x269   : > { %19804 = vmatmul.mubr.msk.f32.gmra.mrb[14].mxu0 %vm848_vm1, %v23642_v29  ;;  %20826 = vmatprep.mubr.msk.f32.mxu1 %vm4706_vm10, %v24093_v42  ;;  %v3806_v42 = vsel %vm3802_vm8, %v23137_v53, %v23110_v56  ;;  %v27013_v53 = vld [vmem:[#allocation17_spill] sm:$0xff] }
 0x26a   : > { %3643 = vmatprep.mubr.f32.mxu0 %v26959_v1 }
 0x26c   : > { %20827 = vmatmul.mubr.msk.f32.gmra.mrb[2].mxu1 %vm4706_vm10, %v24104_v40 }
 0x26d   : > { %19807 = vmatmul.mubr.msk.f32.vlgmr.msra.gmra.mrb[16].mxu0 %vm848_vm1, %v23601_v17  ;;  %v3808_v17 = vsel %vm3802_vm8, %v27011_v26, %v23129_v52  ;;  %v3807_v52 = vsel %vm3802_vm8, %v23110_v56, %v27011_v26  ;;  %v27014_v56 = vld [vmem:[#allocation19_spill] sm:$0xff] }
 0x26e   : > { %19821 = vmatpush1.msk.msra.mxu0 %vm493_vm0, %v3803_v41  ;;  %3649 = vmatprep.mubr.f32.mxu0 %v26959_v1  ;;  %v27016_v41 = vld [vmem:[#allocation16_spill] sm:$0xff] }
 0x26f   : > { %19826 = vmatprep.subr.msk.mxu0 %vm493_vm0, %v3806_v42 }
 0x271   : > { %19808 = vmatmul.mubr.msk.f32.gmra.mrb[18].mxu0 %vm848_vm1, %v23617_v62  ;;  %v4239_v62 = vsel %vm4237_vm9, %v27013_v53, %v27012_v32 }
 0x272   : > { %3655 = vmatprep.mubr.f32.mxu0 %v26959_v1 }
 0x275   : > { %19809 = vmatmul.mubr.msk.f32.gmra.mrb[20].mxu0 %vm848_vm1, %v23632_v7  ;;  %v4238_v7 = vsel %vm4237_vm9, %v27014_v56, %v27013_v53 }
 0x276   : > { %3661 = vmatprep.mubr.f32.mxu0 %v26959_v1 }
 0x279   : > { %19810 = vmatmul.mubr.msk.f32.gmra.mrb[22].mxu0 %vm848_vm1, %v23642_v29  ;;  %v27015_v29 = vld [vmem:[#allocation21_spill] sm:$0xff] }
 0x27a   : > { %3900 = vmatprep.mubr.f32.mxu0 %v26959_v1  ;;  %v4241_v42 = vsel %vm4237_vm9, %v27016_v41, %v27015_v29 }
 0x27d   : > { %19822 = vmatmul.mubr.msk.f32.vlgmr.msra.gmra.mrb[0].mxu0 %vm848_vm1, %v23649_v31 }
 0x27e   : > { %19827 = vmatpush1.msk.msra.mxu0 %vm493_vm0, %v3805_v36  ;;  %3906 = vmatprep.mubr.f32.mxu0 %v26959_v1 }
 0x27f   : > { %19832 = vmatprep.subr.msk.mxu0 %vm493_vm0, %v3808_v17  ;;  %v27020_v17 = vld [vmem:[#allocation22_spill] sm:$0xff] }
 0x281   : > { %19823 = vmatmul.mubr.msk.f32.gmra.mrb[2].mxu0 %vm848_vm1, %v23662_v16 }
 0x282   : > { %3912 = vmatprep.mubr.f32.mxu0 %v26959_v1 }
 0x285   : > { %19824 = vmatmul.mubr.msk.f32.gmra.mrb[4].mxu0 %vm848_vm1, %v23668_v45 }
 0x286   : > { %3918 = vmatprep.mubr.f32.mxu0 %v26959_v1 }
 0x289   : > { %19825 = vmatmul.mubr.msk.f32.gmra.mrb[6].mxu0 %vm848_vm1, %v23682_v12 }
 0x28a   : > { %3989 = vmatprep.mubr.f32.mxu0 %v26959_v1 }
 0x28d   : > { %19828 = vmatmul.mubr.msk.f32.vlgmr.msra.gmra.mrb[8].mxu0 %vm848_vm1, %v23649_v31 }
 0x28e   : > { %19833 = vmatpush1.msk.msra.mxu0 %vm493_vm0, %v3807_v52  ;;  %3995 = vmatprep.mubr.f32.mxu0 %v26959_v1 }
 0x28f   : > { %19847 = vmatprep.subr.msk.mxu0 %vm493_vm0, %v4239_v62 }
 0x291   : > { %19829 = vmatmul.mubr.msk.f32.gmra.mrb[10].mxu0 %vm848_vm1, %v23662_v16 }
 0x292   : > { %4001 = vmatprep.mubr.f32.mxu0 %v26959_v1 }
 0x295   : > { %19830 = vmatmul.mubr.msk.f32.gmra.mrb[12].mxu0 %vm848_vm1, %v23668_v45 }
 0x296   : > { %4007 = vmatprep.mubr.f32.mxu0 %v26959_v1 }
 0x299   : > { %19831 = vmatmul.mubr.msk.f32.gmra.mrb[14].mxu0 %vm848_vm1, %v23682_v12 }
 0x29a   : > { %4078 = vmatprep.mubr.f32.mxu0 %v26959_v1 }
 0x29d   : > { %19834 = vmatmul.mubr.msk.f32.vlgmr.msra.gmra.mrb[16].mxu0 %vm848_vm1, %v23649_v31  ;;  %v4240_v31 = vsel %vm4237_vm9, %v27012_v32, %v27016_v41  ;;  %v27021_v32 = vld [vmem:[#allocation23_spill] sm:$0xff] }
 0x29e   : > { %19848 = vmatpush1.msk.msra.mxu0 %vm493_vm0, %v4238_v7  ;;  %4084 = vmatprep.mubr.f32.mxu0 %v26959_v1  ;;  %v4695_v53 = vsel %vm840_vm2, %v23241_v8, %v27021_v32  ;;  %v27028_v7 = vld [vmem:[#allocation30_spill] sm:$0xff] }
 0x29f   : > { %19853 = vmatprep.subr.msk.mxu0 %vm493_vm0, %v4241_v42  ;;  %v24353_v42 = vpop.permute.xlu1 %8479 }
 0x2a1   : > { %19835 = vmatmul.mubr.msk.f32.gmra.mrb[18].mxu0 %vm848_vm1, %v23662_v16  ;;  %v27017_v16 = vld [vmem:[#allocation18_spill] sm:$0xff] }
 0x2a2   : > { %4090 = vmatprep.mubr.f32.mxu0 %v26959_v1  ;;  %v4242_v26 = vsel %vm4237_vm9, %v27015_v29, %v27017_v16  ;;  %v27029_v29 = vld [vmem:[#allocation32_spill] sm:$0xff] }
 0x2a3   : > { %v5489_v41 = vsel %vm1650_vm4, %v27029_v29, %v27028_v7 }
 0x2a5   : > { %19836 = vmatmul.mubr.msk.f32.gmra.mrb[20].mxu0 %vm848_vm1, %v23668_v45  ;;  %v4243_v45 = vsel %vm4237_vm9, %v27017_v16, %v23212_v30  ;;  %v27018_v30 = vld [vmem:[#allocation24_spill] sm:$0xff] }
 0x2a6   : > { %4096 = vmatprep.mubr.f32.mxu0 %v26959_v1 }
 0x2a9   : > { %19837 = vmatmul.mubr.msk.f32.gmra.mrb[22].mxu0 %vm848_vm1, %v23682_v12  ;;  %v27019_v12 = vld [vmem:[#allocation20_spill] sm:$0xff] }
 0x2aa   : > { %4335 = vmatprep.mubr.f32.mxu0 %v26959_v1  ;;  %v4693_v36 = vsel %vm840_vm2, %v27019_v12, %v27018_v30  ;;  %v4692_v52 = vsel %vm840_vm2, %v27020_v17, %v27019_v12 }
 0x2ad   : > { %19849 = vmatmul.mubr.msk.f32.vlgmr.msra.gmra.mrb[0].mxu0 %vm848_vm1, %v23690_v22 }
 0x2ae   : > { %19854 = vmatpush1.msk.msra.mxu0 %vm493_vm0, %v4240_v31  ;;  %4341 = vmatprep.mubr.f32.mxu0 %v26959_v1  ;;  %v24356_v31 = vpop.permute.xlu0 %8474 }
 0x2af   : > { %19859 = vmatprep.subr.msk.mxu0 %vm493_vm0, %v4243_v45  ;;  %v27030_v45 = vld [vmem:[#allocation34_spill] sm:$0xff] }
 0x2b1   : > { %19850 = vmatmul.mubr.msk.f32.gmra.mrb[2].mxu0 %vm848_vm1, %v23704_v54 }
 0x2b2   : > { %4347 = vmatprep.mubr.f32.mxu0 %v26959_v1 }
 0x2b5   : > { %19851 = vmatmul.mubr.msk.f32.gmra.mrb[4].mxu0 %vm848_vm1, %v23714_v15 }
 0x2b6   : > { %4353 = vmatprep.mubr.f32.mxu0 %v26959_v1 }
 0x2b9   : > { %19852 = vmatmul.mubr.msk.f32.gmra.mrb[6].mxu0 %vm848_vm1, %v23730_v18 }
 0x2ba   : > { %4424 = vmatprep.mubr.f32.mxu0 %v26959_v1 }
 0x2bd   : > { %19855 = vmatmul.mubr.msk.f32.vlgmr.msra.gmra.mrb[8].mxu0 %vm848_vm1, %v23690_v22 }
 0x2be   : > { %19860 = vmatpush1.msk.msra.mxu0 %vm493_vm0, %v4242_v26  ;;  %4430 = vmatprep.mubr.f32.mxu0 %v26959_v1 }
 0x2bf   : > { %4719 = vmatprep.subr.mxu0 %v4693_v36 }
 0x2c1   : > { %19856 = vmatmul.mubr.msk.f32.gmra.mrb[10].mxu0 %vm848_vm1, %v23704_v54 }
 0x2c2   : > { %4436 = vmatprep.mubr.f32.mxu0 %v26959_v1 }
 0x2c5   : > { %19857 = vmatmul.mubr.msk.f32.gmra.mrb[12].mxu0 %vm848_vm1, %v23714_v15 }
 0x2c6   : > { %4442 = vmatprep.mubr.f32.mxu0 %v26959_v1 }
 0x2c9   : > { %19858 = vmatmul.mubr.msk.f32.gmra.mrb[14].mxu0 %vm848_vm1, %v23730_v18 }
 0x2ca   : > { %4513 = vmatprep.mubr.f32.mxu0 %v26959_v1 }
 0x2cd   : > { %19861 = vmatmul.mubr.msk.f32.vlgmr.msra.gmra.mrb[16].mxu0 %vm848_vm1, %v23690_v22  ;;  %v4697_v22 = vsel %vm840_vm2, %v23257_v50, %v23231_v25  ;;  %v5088_v25 = vsel %vm1243_vm3, %v23267_v0, %v23249_v27 }
 0x2ce   : > { %4519 = vmatprep.mubr.f32.mxu0 %v26959_v1  ;;  %4720 = vmatpush1.msra.mxu0 %v4692_v52 }
 0x2cf   : > { %4808 = vmatprep.subr.mxu0 %v4695_v53 }
 0x2d1   : > { %19862 = vmatmul.mubr.msk.f32.gmra.mrb[18].mxu0 %vm848_vm1, %v23704_v54  ;;  %v4694_v54 = vsel %vm840_vm2, %v27018_v30, %v23241_v8  ;;  %v4696_v8 = vsel %vm840_vm2, %v27021_v32, %v23257_v50  ;;  %v5087_v50 = vsel %vm1243_vm3, %v23278_v4, %v23267_v0  ;;  %v27024_v0 = vld [vmem:[#allocation26_spill] sm:$0xff]  ;;  %v5491_v30 = vsel %vm1650_vm4, %v27030_v45, %v23320_v2  ;;  %v24371_v2 = vpop.permute.xlu0 %8484  ;;  %v24377_v32 = vpop.permute.xlu1 %8489 }
 0x2d2   : > { %4525 = vmatprep.mubr.f32.mxu0 %v26959_v1  ;;  %v5092_v4 = vsel %vm1243_vm3, %v27024_v0, %v23309_v39  ;;  %v27026_v39 = vld [vmem:[#allocation27_spill] sm:$0xff] }
 0x2d5   : > { %19863 = vmatmul.mubr.msk.f32.gmra.mrb[20].mxu0 %vm848_vm1, %v23714_v15  ;;  %v27022_v15 = vld [vmem:[#allocation28_spill] sm:$0xff] }
 0x2d6   : > { %4531 = vmatprep.mubr.f32.mxu0 %v26959_v1 }
 0x2d9   : > { %19864 = vmatmul.mubr.msk.f32.gmra.mrb[22].mxu0 %vm848_vm1, %v23730_v18  ;;  %v27023_v18 = vld [vmem:[#allocation25_spill] sm:$0xff] }
 0x2da   : > { %4783 = vmatprep.mubr.f32.mxu0 %v26959_v1  ;;  %v5090_v62 = vsel %vm1243_vm3, %v27023_v18, %v27022_v15 }
 0x2dd   : > { %19874 = vmatmul.mubr.msk.f32.vlgmr.msra.gmra.mrb[0].mxu0 %vm4706_vm10, %v23736_v10 }
 0x2de   : > { %4809 = vmatpush1.msra.mxu0 %v4694_v54  ;;  %4789 = vmatprep.mubr.f32.mxu0 %v26959_v1 }
 0x2df   : > { %4897 = vmatprep.subr.mxu0 %v4697_v22 }
 0x2e1   : > { %19875 = vmatmul.mubr.msk.f32.gmra.mrb[2].mxu0 %vm4706_vm10, %v23747_v6 }
 0x2e2   : > { %4795 = vmatprep.mubr.f32.mxu0 %v26959_v1 }
 0x2e5   : > { %19876 = vmatmul.mubr.msk.f32.gmra.mrb[4].mxu0 %vm4706_vm10, %v23753_v19 }
 0x2e6   : > { %4801 = vmatprep.mubr.f32.mxu0 %v26959_v1 }
 0x2e9   : > { %19877 = vmatmul.mubr.msk.f32.gmra.mrb[6].mxu0 %vm4706_vm10, %v23768_v37 }
 0x2ea   : > { %4872 = vmatprep.mubr.f32.mxu0 %v26959_v1 }
 0x2ed   : > { %19878 = vmatmul.mubr.msk.f32.vlgmr.msra.gmra.mrb[8].mxu0 %vm4706_vm10, %v23736_v10 }
 0x2ee   : > { %4898 = vmatpush1.msra.mxu0 %v4696_v8  ;;  %4878 = vmatprep.mubr.f32.mxu0 %v26959_v1 }
 0x2ef   : > { %5113 = vmatprep.subr.mxu0 %v5088_v25 }
 0x2f1   : > { %19879 = vmatmul.mubr.msk.f32.gmra.mrb[10].mxu0 %vm4706_vm10, %v23747_v6 }
 0x2f2   : > { %4884 = vmatprep.mubr.f32.mxu0 %v26959_v1 }
 0x2f5   : > { %19880 = vmatmul.mubr.msk.f32.gmra.mrb[12].mxu0 %vm4706_vm10, %v23753_v19 }
 0x2f6   : > { %4890 = vmatprep.mubr.f32.mxu0 %v26959_v1 }
 0x2f9   : > { %19881 = vmatmul.mubr.msk.f32.gmra.mrb[14].mxu0 %vm4706_vm10, %v23768_v37 }
 0x2fa   : > { %4961 = vmatprep.mubr.f32.mxu0 %v26959_v1 }
 0x2fd   : > { %19882 = vmatmul.mubr.msk.f32.vlgmr.msra.gmra.mrb[16].mxu0 %vm4706_vm10, %v23736_v10  ;;  %v5089_v10 = vsel %vm1243_vm3, %v23249_v27, %v27023_v18  ;;  %v27025_v27 = vld [vmem:[#allocation31_spill] sm:$0xff]  ;;  %v27032_v18 = vld [vmem:[#allocation36_spill] sm:$0xff] }
 0x2fe   : > { %4967 = vmatprep.mubr.f32.mxu0 %v26959_v1  ;;  %5114 = vmatpush1.msra.mxu0 %v5087_v50 }
 0x2ff   : > { %5202 = vmatprep.subr.mxu0 %v5090_v62 }
 0x301   : > { %19883 = vmatmul.mubr.msk.f32.gmra.mrb[18].mxu0 %vm4706_vm10, %v23747_v6  ;;  %v5091_v6 = vsel %vm1243_vm3, %v27022_v15, %v27024_v0  ;;  %v27031_v15 = vld [vmem:[#allocation33_spill] sm:$0xff]  ;;  %v5490_v0 = vsel %vm1650_vm4, %v27028_v7, %v27030_v45  ;;  %v27033_v7 = vld [vmem:[#allocation38_spill] sm:$0xff]  ;;  %v22332_v45 = vld [vmem:[%s26835_s2 + $0x1] sm:$0xff] }
 0x302   : > { %4973 = vmatprep.mubr.f32.mxu0 %v26959_v1  ;;  %v5914_v62 = vsel %vm2085_vm5, %v27032_v18, %v27031_v15 }
 0x305   : > { %19884 = vmatmul.mubr.msk.f32.gmra.mrb[20].mxu0 %vm4706_vm10, %v23753_v19  ;;  %v27027_v19 = vld [vmem:[#allocation29_spill] sm:$0xff] }
 0x306   : > { %4979 = vmatprep.mubr.f32.mxu0 %v26959_v1  ;;  %v5486_v56 = vsel %vm1650_vm4, %v27027_v19, %v27026_v39 }
 0x309   : > { %19885 = vmatmul.mubr.msk.f32.gmra.mrb[22].mxu0 %vm4706_vm10, %v23768_v37  ;;  %v5487_v37 = vsel %vm1650_vm4, %v27026_v39, %v27025_v27 }
 0x30a   : > { %5177 = vmatprep.mubr.f32.mxu0 %v26959_v1 }
 0x30d   : > { %19890 = vmatmul.mubr.msk.f32.vlgmr.msra.gmra.mrb[0].mxu0 %vm4706_vm10, %v23774_v55 }
 0x30e   : > { %5203 = vmatpush1.msra.mxu0 %v5089_v10  ;;  %5183 = vmatprep.mubr.f32.mxu0 %v26959_v1  ;;  %v8659_v10 = vld [vmem:[#allocation3 + $0x30] sm:$0xff] }
 0x30f   : > { %5291 = vmatprep.subr.mxu0 %v5092_v4 }
 0x311   : > { %19891 = vmatmul.mubr.msk.f32.gmra.mrb[2].mxu0 %vm4706_vm10, %v23788_v61 }
 0x312   : > { %5189 = vmatprep.mubr.f32.mxu0 %v26959_v1 }
 0x315   : > { %19892 = vmatmul.mubr.msk.f32.gmra.mrb[4].mxu0 %vm4706_vm10, %v23798_v14 }
 0x316   : > { %5195 = vmatprep.mubr.f32.mxu0 %v26959_v1 }
 0x319   : > { %19893 = vmatmul.mubr.msk.f32.gmra.mrb[6].mxu0 %vm4706_vm10, %v23812_v34 }
 0x31a   : > { %5266 = vmatprep.mubr.f32.mxu0 %v26959_v1 }
 0x31d   : > { %19894 = vmatmul.mubr.msk.f32.vlgmr.msra.gmra.mrb[8].mxu0 %vm4706_vm10, %v23774_v55 }
 0x31e   : > { %5292 = vmatpush1.msra.mxu0 %v5091_v6  ;;  %5272 = vmatprep.mubr.f32.mxu0 %v26959_v1 }
 0x31f   : > { %5512 = vmatprep.subr.mxu0 %v5487_v37 }
 0x321   : > { %19895 = vmatmul.mubr.msk.f32.gmra.mrb[10].mxu0 %vm4706_vm10, %v23788_v61 }
 0x322   : > { %5278 = vmatprep.mubr.f32.mxu0 %v26959_v1 }
 0x325   : > { %19896 = vmatmul.mubr.msk.f32.gmra.mrb[12].mxu0 %vm4706_vm10, %v23798_v14 }
 0x326   : > { %5284 = vmatprep.mubr.f32.mxu0 %v26959_v1 }
 0x329   : > { %19897 = vmatmul.mubr.msk.f32.gmra.mrb[14].mxu0 %vm4706_vm10, %v23812_v34 }
 0x32a   : > { %5355 = vmatprep.mubr.f32.mxu0 %v26959_v1 }
 0x32d   : > { %19898 = vmatmul.mubr.msk.f32.vlgmr.msra.gmra.mrb[16].mxu0 %vm4706_vm10, %v23774_v55 }
 0x32e   : > { %5361 = vmatprep.mubr.f32.mxu0 %v26959_v1  ;;  %5513 = vmatpush1.msra.mxu0 %v5486_v56 }
 0x32f   : > { %5601 = vmatprep.subr.mxu0 %v5489_v41 }
 0x331   : > { %19899 = vmatmul.mubr.msk.f32.gmra.mrb[18].mxu0 %vm4706_vm10, %v23788_v61 }
 0x332   : > { %5367 = vmatprep.mubr.f32.mxu0 %v26959_v1 }
 0x335   : > { %19900 = vmatmul.mubr.msk.f32.gmra.mrb[20].mxu0 %vm4706_vm10, %v23798_v14 }
 0x336   : > { %5373 = vmatprep.mubr.f32.mxu0 %v26959_v1 }
 0x339   : > { %19901 = vmatmul.mubr.msk.f32.gmra.mrb[22].mxu0 %vm4706_vm10, %v23812_v34  ;;  %v5488_v34 = vsel %vm1650_vm4, %v27025_v27, %v27029_v29  ;;  %v5913_v29 = vsel %vm2085_vm5, %v27033_v7, %v27032_v18  ;;  %v27047_v18 = vld [vmem:[#allocation45_spill] sm:$0xff] }
 0x33a   : > { %5576 = vmatprep.mubr.f32.mxu0 %v26959_v1 }
 0x33b   : > { %v20825_v55 = vpop.f32.mrb[0].mxu1 }
 0x33c   : > { %v8393_v16 = vpop.f32.mrb[1].mxu1  ;;  %v8505_v61 = vadd.f32 %v20825_v55, %v24353_v42  ;;  %v27034_v55 = vld [vmem:[#allocation35_spill] sm:$0xff] }
 0x33d   : > { %19910 = vmatmul.mubr.msk.f32.vlgmr.msra.gmra.mrb[0].mxu0 %vm4706_vm10, %v23818_v57  ;;  %v8498_v14 = vadd.f32 %v24356_v31, %v8393_v16  ;;  %v5916_v16 = vsel %vm2085_vm5, %v27034_v55, %v23380_v51 }
 0x33e   : > { %5602 = vmatpush1.msra.mxu0 %v5488_v34  ;;  %v20059_v12 = vmul.f32 -1.442695, %v8505_v61  ;;  %5582 = vmatprep.mubr.f32.mxu0 %v26959_v1 }
 0x33f   : > { %v20052_v36 = vmul.f32 -1.442695, %v8498_v14  ;;  %v20828_v26 = vpop.f32.mrb[2].mxu1  ;;  %5690 = vmatprep.subr.mxu0 %v5491_v30  ;;  %v27035_v30 = vld [vmem:[#allocation7_spill] sm:$0xff] }
 0x340   : > { %22108 = vpow2.f32 %v20059_v12  ;;  %v8403_v17 = vpop.f32.mrb[3].mxu1  ;;  %v8519_v22 = vadd.f32 %v20828_v26, %v24377_v32  ;;  %v27036_v34 = vsub.s32 6, %v27035_v30  ;;  %v22333_v26 = vld [vmem:[#allocation2 + $0x10] sm:$0xff]  ;;  %v27060_v30 = vld [vmem:[#allocation56_spill] sm:$0xff] }
 0x341   : > { %22110 = vpow2.f32 %v20052_v36  ;;  %19911 = vmatmul.mubr.msk.f32.gmra.mrb[2].mxu0 %vm4706_vm10, %v23831_v38  ;;  %v8512_v52 = vadd.f32 %v24371_v2, %v8403_v17  ;;  %v22335_v17 = vld [vmem:[#allocation2 + $0x20] sm:$0xff] }
 0x342   : > { %5588 = vmatprep.mubr.f32.mxu0 %v26959_v1 }
 0x343   : > { %v20066_v53 = vmul.f32 -1.442695, %v8512_v52  ;;  %v22338_v52 = vld [vmem:[#allocation2 + $0x28] sm:$0xff] }
 0x345   : > { %19912 = vmatmul.mubr.msk.f32.gmra.mrb[4].mxu0 %vm4706_vm10, %v23837_v23  ;;  %22112 = vpow2.f32 %v20066_v53  ;;  %v27040_v53 = vld [vmem:[#allocation40_spill] sm:$0xff] }
 0x346   : > { %5594 = vmatprep.mubr.f32.mxu0 %v26959_v1  ;;  %22114 = vtanh.f32 %v8519_v22 }
 0x349   : > { %19913 = vmatmul.mubr.msk.f32.gmra.mrb[6].mxu0 %vm4706_vm10, %v23850_v60 }
 0x34a   : > { %v22109_v54 = vpop.eup %22108  ;;  %5665 = vmatprep.mubr.f32.mxu0 %v26959_v1 }
 0x34b   : > { %v22111_v25 = vpop.eup %22110  ;;  %v8589_v8 = vadd.f32 1.0, %v22109_v54  ;;  %v27041_v54 = vld [vmem:[#allocation41_spill] sm:$0xff] }
 0x34c   : > { %v8547_v50 = vadd.f32 1.0, %v22111_v25  ;;  %v27042_v25 = vld [vmem:[#allocation42_spill] sm:$0xff] }
 0x34d   : > { %22116 = vrcp.f32 %v8589_v8  ;;  %19914 = vmatmul.mubr.msk.f32.vlgmr.msra.gmra.mrb[8].mxu0 %vm4706_vm10, %v23818_v57  ;;  %v6756_v8 = vsel %vm2932_vm6, %v27042_v25, %v27041_v54 }
 0x34e   : > { %22118 = vrcp.f32 %v8547_v50  ;;  %5691 = vmatpush1.msra.mxu0 %v5490_v0  ;;  %5671 = vmatprep.mubr.f32.mxu0 %v26959_v1  ;;  %v27048_v0 = vld [vmem:[#allocation48_spill] sm:$0xff] }
 0x34f   : > { %5939 = vmatprep.subr.mxu0 %v5914_v62  ;;  %v22113_v4 = vpop.eup %22112 }
 0x350   : > { %v22115_v27 = vpop.eup %22114  ;;  %v8631_v19 = vadd.f32 1.0, %v22113_v4  ;;  %v27049_v4 = vld [vmem:[#allocation47_spill] sm:$0xff] }
 0x351   : > { %19915 = vmatmul.mubr.msk.f32.gmra.mrb[10].mxu0 %vm4706_vm10, %v23831_v38 }
 0x352   : > { %5677 = vmatprep.mubr.f32.mxu0 %v26959_v1  ;;  %22120 = vrcp.f32 %v8631_v19  ;;  %v27055_v19 = vld [vmem:[#allocation52_spill] sm:$0xff] }
 0x355   : > { %19916 = vmatmul.mubr.msk.f32.gmra.mrb[12].mxu0 %vm4706_vm10, %v23837_v23 }
 0x356   : > { %5683 = vmatprep.mubr.f32.mxu0 %v26959_v1 }
 0x357   : > { %v22117_v39 = vpop.eup %22116 }
 0x358   : > { %v22119_v37 = vpop.eup %22118  ;;  %v8666_v6 = vmul.f32 %v22117_v39, %v8659_v10  ;;  %v7183_v10 = vsel %vm3367_vm7, %v27049_v4, %v27048_v0 }
 0x359   : > { %v8673_v56 = vmul.f32 %v22119_v37, %v22115_v27  ;;  %19917 = vmatmul.mubr.msk.f32.gmra.mrb[14].mxu0 %vm4706_vm10, %v23850_v60  ;;  %v27051_v27 = vld [vmem:[#allocation49_spill] sm:$0xff] }
 0x35a   : > { %5754 = vmatprep.mubr.f32.mxu0 %v26959_v1  ;;  %v27052_v37 = vld [vmem:[#allocation65_spill] sm:$0xff]  ;;  %v7184_v7 = vsel %vm3367_vm7, %v27048_v0, %v27051_v27 }
 0x35b   : > { %v8680_v41 = vadd.f32 %v8673_v56, %v8666_v6  ;;  %v27054_v6 = vld [vmem:[#allocation51_spill] sm:$0xff] }
 0x35c   : > { %v22121_v61 = vpop.eup %22120  ;;  %v7608_v56 = vsel %vm3802_vm8, %v27055_v19, %v27054_v6 }
 0x35d   : > { %22122 = vtanh.f32 %v8680_v41  ;;  %8744 = vst [vmem:[#allocation3 + $0x30] sm:$0xff] %v8680_v41  ;;  %19918 = vmatmul.mubr.msk.f32.vlgmr.msra.gmra.mrb[16].mxu0 %vm4706_vm10, %v23818_v57  ;;  %v24421_v57 = vrot.slane %v22332_v45, %v27036_v34  ;;  %v27059_v45 = vld [vmem:[#allocation57_spill] sm:$0xff] }
 0x35e   : > { %5760 = vmatprep.mubr.f32.mxu0 %v26959_v1  ;;  %5940 = vmatpush1.msra.mxu0 %v5913_v29  ;;  %v27056_v29 = vld [vmem:[#allocation53_spill] sm:$0xff]  ;;  %v7612_v34 = vsel %vm3802_vm8, %v27060_v30, %v27059_v45 }
 0x35f   : > { %6028 = vmatprep.subr.mxu0 %v5916_v16  ;;  %27037 = vst [vmem:[#allocation15_spill] sm:$0xff] %v24421_v57  ;;  %v7607_v41 = vsel %vm3802_vm8, %v27056_v29, %v27055_v19  ;;  %v27058_v16 = vld [vmem:[#allocation54_spill] sm:$0xff] }
 0x361   : > { %19919 = vmatmul.mubr.msk.f32.gmra.mrb[18].mxu0 %vm4706_vm10, %v23831_v38  ;;  %v27038_v38 = vld [vmem:[#allocation37_spill] sm:$0xff] }
 0x362   : > { %5766 = vmatprep.mubr.f32.mxu0 %v26959_v1  ;;  %v5918_v36 = vsel %vm2085_vm5, %v27038_v38, %v23390_v13  ;;  %v5917_v13 = vsel %vm2085_vm5, %v23380_v51, %v27038_v38  ;;  %v22334_v51 = vld [vmem:[#allocation2 + $0x8] sm:$0xff] }
 0x365   : > { %19920 = vmatmul.mubr.msk.f32.gmra.mrb[20].mxu0 %vm4706_vm10, %v23837_v23 }
 0x366   : > { %5772 = vmatprep.mubr.f32.mxu0 %v26959_v1 }
 0x367   : > { %v22123_v14 = vpop.eup %22122 }
 0x368   : > { %v8694_v12 = vmul.f32 %v22123_v14, %v22121_v61  ;;  %v7609_v14 = vsel %vm3802_vm8, %v27054_v6, %v27058_v16 }
 0x369   : > { %19921 = vmatmul.mubr.msk.f32.gmra.mrb[22].mxu0 %vm4706_vm10, %v23850_v60  ;;  %v5915_v60 = vsel %vm2085_vm5, %v27031_v15, %v27034_v55  ;;  %v27057_v55 = vld [vmem:[#allocation55_spill] sm:$0xff] }
 0x36a   : > { %6003 = vmatprep.mubr.f32.mxu0 %v26959_v1  ;;  %v24428_v23 = vmul.f32 %v24421_v57, %v8694_v12  ;;  %v7610_v61 = vsel %vm3802_vm8, %v27058_v16, %v27057_v55  ;;  %v7611_v38 = vsel %vm3802_vm8, %v27057_v55, %v27060_v30 }
 0x36c   : > { %8751 = vst [vmem:[#allocation2 + $0x38] sm:$0xff] %v24428_v23  ;;  %8791 = vrot.lane.b32.xlu1 %v24428_v23, %s22396_s19 }
 0x36d   : > { %19930 = vmatmul.mubr.msk.f32.vlgmr.msra.gmra.mrb[0].mxu0 %vm4706_vm10, %v23858_v20 }
 0x36e   : > { %6029 = vmatpush1.msra.mxu0 %v5915_v60  ;;  %6009 = vmatprep.mubr.f32.mxu0 %v26959_v1 }
 0x36f   : > { %6117 = vmatprep.subr.mxu0 %v5918_v36  ;;  %v27063_v36 = vld [vmem:[#allocation60_spill] sm:$0xff] }
 0x370   : > { %9185 = vrot.lane.b32.xlu1 %v24428_v23, %s26915_s20 }
 0x371   : > { %19931 = vmatmul.mubr.msk.f32.gmra.mrb[2].mxu0 %vm4706_vm10, %v23873_v35 }
 0x372   : > { %6015 = vmatprep.mubr.f32.mxu0 %v26959_v1 }
 0x374   : > { %9584 = vrot.lane.b32.xlu1 %v24428_v23, %s22398_s22 }
 0x375   : > { %19932 = vmatmul.mubr.msk.f32.gmra.mrb[4].mxu0 %vm4706_vm10, %v23883_v49 }
 0x376   : > { %6021 = vmatprep.mubr.f32.mxu0 %v26959_v1 }
 0x379   : > { %19933 = vmatmul.mubr.msk.f32.gmra.mrb[6].mxu0 %vm4706_vm10, %v23902_v47 }
 0x37a   : > { %6092 = vmatprep.mubr.f32.mxu0 %v26959_v1 }
 0x37d   : > { %19934 = vmatmul.mubr.msk.f32.vlgmr.msra.gmra.mrb[8].mxu0 %vm4706_vm10, %v23858_v20 }
 0x37e   : > { %6118 = vmatpush1.msra.mxu0 %v5917_v13  ;;  %6098 = vmatprep.mubr.f32.mxu0 %v26959_v1  ;;  %v27064_v13 = vld [vmem:[#allocation62_spill] sm:$0xff] }
 0x37f   : > { %6336 = vmatprep.subr.mxu0 %v22333_v26  ;;  %v27065_v26 = vld [vmem:[#allocation61_spill] sm:$0xff] }
 0x381   : > { %19935 = vmatmul.mubr.msk.f32.gmra.mrb[10].mxu0 %vm4706_vm10, %v23873_v35 }
 0x382   : > { %6104 = vmatprep.mubr.f32.mxu0 %v26959_v1 }
 0x385   : > { %19936 = vmatmul.mubr.msk.f32.gmra.mrb[12].mxu0 %vm4706_vm10, %v23883_v49 }
 0x386   : > { %6110 = vmatprep.mubr.f32.mxu0 %v26959_v1 }
 0x389   : > { %19937 = vmatmul.mubr.msk.f32.gmra.mrb[14].mxu0 %vm4706_vm10, %v23902_v47 }
 0x38a   : > { %6181 = vmatprep.mubr.f32.mxu0 %v26959_v1 }
 0x38d   : > { %19938 = vmatmul.mubr.msk.f32.vlgmr.msra.gmra.mrb[16].mxu0 %vm4706_vm10, %v23858_v20  ;;  %v22336_v20 = vld [vmem:[#allocation2 + $0x18] sm:$0xff] }
 0x38e   : > { %6187 = vmatprep.mubr.f32.mxu0 %v26959_v1  ;;  %6337 = vmatpush1.msra.mxu0 %v22334_v51  ;;  %v8037_v51 = vsel %vm4237_vm9, %v27065_v26, %v27064_v13 }
 0x38f   : > { %6425 = vmatprep.subr.mxu0 %v22335_v17  ;;  %v27067_v17 = vld [vmem:[#allocation63_spill] sm:$0xff] }
 0x391   : > { %19939 = vmatmul.mubr.msk.f32.gmra.mrb[18].mxu0 %vm4706_vm10, %v23873_v35  ;;  %v22337_v35 = vld [vmem:[#allocation2 + $0x30] sm:$0xff] }
 0x392   : > { %6193 = vmatprep.mubr.f32.mxu0 %v26959_v1 }
 0x395   : > { %19940 = vmatmul.mubr.msk.f32.gmra.mrb[20].mxu0 %vm4706_vm10, %v23883_v49 }
 0x396   : > { %6199 = vmatprep.mubr.f32.mxu0 %v26959_v1 }
 0x399   : > { %19941 = vmatmul.mubr.msk.f32.gmra.mrb[22].mxu0 %vm4706_vm10, %v23902_v47  ;;  %v27039_v47 = vld [vmem:[#allocation39_spill] sm:$0xff] }
 0x39a   : > { %6400 = vmatprep.mubr.f32.mxu0 %v26959_v1  ;;  %v6754_v49 = vsel %vm2932_vm6, %v27039_v47, %v23400_v44  ;;  %v6753_v22 = vsel %vm2932_vm6, %v27040_v53, %v27039_v47  ;;  %v8038_v47 = vsel %vm4237_vm9, %v27064_v13, %v27067_v17 }
 0x39d   : > { %19950 = vmatmul.mubr.msk.f32.vlgmr.msra.gmra.mrb[0].mxu0 %vm4706_vm10, %v23909_v28 }
 0x39e   : > { %6406 = vmatprep.mubr.f32.mxu0 %v26959_v1  ;;  %6426 = vmatpush1.msra.mxu0 %v22336_v20 }
 0x39f   : > { %6514 = vmatprep.subr.mxu0 %v22337_v35  ;;  %v27068_v35 = vld [vmem:[#allocation68_spill] sm:$0xff] }
 0x3a1   : > { %19951 = vmatmul.mubr.msk.f32.gmra.mrb[2].mxu0 %vm4706_vm10, %v23920_v33 }
 0x3a2   : > { %6412 = vmatprep.mubr.f32.mxu0 %v26959_v1 }
 0x3a5   : > { %19952 = vmatmul.mubr.msk.f32.gmra.mrb[4].mxu0 %vm4706_vm10, %v23926_v63 }
 0x3a6   : > { %6418 = vmatprep.mubr.f32.mxu0 %v26959_v1 }
 0x3a9   : > { %19953 = vmatmul.mubr.msk.f32.gmra.mrb[6].mxu0 %vm4706_vm10, %v23941_v43 }
 0x3aa   : > { %6489 = vmatprep.mubr.f32.mxu0 %v26959_v1 }
 0x3ad   : > { %19954 = vmatmul.mubr.msk.f32.vlgmr.msra.gmra.mrb[8].mxu0 %vm4706_vm10, %v23909_v28 }
 0x3ae   : > { %6495 = vmatprep.mubr.f32.mxu0 %v26959_v1  ;;  %6515 = vmatpush1.msra.mxu0 %v22338_v52 }
 0x3af   : > { %6779 = vmatprep.subr.mxu0 %v6754_v49 }
 0x3b1   : > { %19955 = vmatmul.mubr.msk.f32.gmra.mrb[10].mxu0 %vm4706_vm10, %v23920_v33 }
 0x3b2   : > { %6501 = vmatprep.mubr.f32.mxu0 %v26959_v1 }
 0x3b5   : > { %19956 = vmatmul.mubr.msk.f32.gmra.mrb[12].mxu0 %vm4706_vm10, %v23926_v63 }
 0x3b6   : > { %6507 = vmatprep.mubr.f32.mxu0 %v26959_v1 }
 0x3b9   : > { %19957 = vmatmul.mubr.msk.f32.gmra.mrb[14].mxu0 %vm4706_vm10, %v23941_v43 }
 0x3ba   : > { %6578 = vmatprep.mubr.f32.mxu0 %v26959_v1 }
 0x3bd   : > { %19958 = vmatmul.mubr.msk.f32.vlgmr.msra.gmra.mrb[16].mxu0 %vm4706_vm10, %v23909_v28  ;;  %v27043_v28 = vld [vmem:[#allocation44_spill] sm:$0xff] }
 0x3be   : > { %6584 = vmatprep.mubr.f32.mxu0 %v26959_v1  ;;  %6780 = vmatpush1.msra.mxu0 %v6753_v22  ;;  %v6758_v50 = vsel %vm2932_vm6, %v27043_v28, %v23403_v58  ;;  %v27044_v58 = vld [vmem:[#allocation64_spill] sm:$0xff]  ;;  %v6757_v15 = vsel %vm2932_vm6, %v27041_v54, %v27043_v28 }
 0x3bf   : > { %6868 = vmatprep.subr.mxu0 %v6756_v8 }
 0x3c1   : > { %19959 = vmatmul.mubr.msk.f32.gmra.mrb[18].mxu0 %vm4706_vm10, %v23920_v33  ;;  %v6755_v33 = vsel %vm2932_vm6, %v23400_v44, %v27042_v25  ;;  %v27045_v44 = vld [vmem:[#allocation46_spill] sm:$0xff] }
 0x3c2   : > { %6590 = vmatprep.mubr.f32.mxu0 %v26959_v1 }
 0x3c5   : > { %19960 = vmatmul.mubr.msk.f32.gmra.mrb[20].mxu0 %vm4706_vm10, %v23926_v63 }
 0x3c6   : > { %6596 = vmatprep.mubr.f32.mxu0 %v26959_v1 }
 0x3c9   : > { %19961 = vmatmul.mubr.msk.f32.gmra.mrb[22].mxu0 %vm4706_vm10, %v23941_v43  ;;  %v27046_v43 = vld [vmem:[#allocation43_spill] sm:$0xff] }
 0x3ca   : > { %6843 = vmatprep.mubr.f32.mxu0 %v26959_v1  ;;  %v7181_v63 = vsel %vm3367_vm7, %v27046_v43, %v27045_v44  ;;  %v7180_v62 = vsel %vm3367_vm7, %v27047_v18, %v27046_v43 }
 0x3cd   : > { %19970 = vmatmul.mubr.msk.f32.vlgmr.msra.gmra.mrb[0].mxu0 %vm4706_vm10, %v23947_v11 }
 0x3ce   : > { %6869 = vmatpush1.msra.mxu0 %v6755_v33  ;;  %6849 = vmatprep.mubr.f32.mxu0 %v26959_v1 }
 0x3cf   : > { %6957 = vmatprep.subr.mxu0 %v6758_v50 }
 0x3d1   : > { %19971 = vmatmul.mubr.msk.f32.gmra.mrb[2].mxu0 %vm4706_vm10, %v23964_v3 }
 0x3d2   : > { %6855 = vmatprep.mubr.f32.mxu0 %v26959_v1 }
 0x3d5   : > { %19972 = vmatmul.mubr.msk.f32.gmra.mrb[4].mxu0 %vm4706_vm10, %v23974_v59 }
 0x3d6   : > { %6861 = vmatprep.mubr.f32.mxu0 %v26959_v1 }
 0x3d9   : > { %19973 = vmatmul.mubr.msk.f32.gmra.mrb[6].mxu0 %vm4706_vm10, %v27044_v58 }
 0x3da   : > { %6932 = vmatprep.mubr.f32.mxu0 %v26959_v1 }
 0x3dd   : > { %19974 = vmatmul.mubr.msk.f32.vlgmr.msra.gmra.mrb[8].mxu0 %vm4706_vm10, %v23947_v11 }
 0x3de   : > { %6958 = vmatpush1.msra.mxu0 %v6757_v15  ;;  %6938 = vmatprep.mubr.f32.mxu0 %v26959_v1 }
 0x3df   : > { %7206 = vmatprep.subr.mxu0 %v7181_v63 }
 0x3e1   : > { %19975 = vmatmul.mubr.msk.f32.gmra.mrb[10].mxu0 %vm4706_vm10, %v23964_v3 }
 0x3e2   : > { %6944 = vmatprep.mubr.f32.mxu0 %v26959_v1 }
 0x3e5   : > { %19976 = vmatmul.mubr.msk.f32.gmra.mrb[12].mxu0 %vm4706_vm10, %v23974_v59 }
 0x3e6   : > { %6950 = vmatprep.mubr.f32.mxu0 %v26959_v1 }
 0x3e9   : > { %19977 = vmatmul.mubr.msk.f32.gmra.mrb[14].mxu0 %vm4706_vm10, %v27044_v58 }
 0x3ea   : > { %7021 = vmatprep.mubr.f32.mxu0 %v26959_v1 }
 0x3ed   : > { %19978 = vmatmul.mubr.msk.f32.vlgmr.msra.gmra.mrb[16].mxu0 %vm4706_vm10, %v23947_v11  ;;  %v27050_v11 = vld [vmem:[#allocation50_spill] sm:$0xff] }
 0x3ee   : > { %7027 = vmatprep.mubr.f32.mxu0 %v26959_v1  ;;  %7207 = vmatpush1.msra.mxu0 %v7180_v62  ;;  %v7185_v39 = vsel %vm3367_vm7, %v27051_v27, %v27050_v11 }
 0x3ef   : > { %7295 = vmatprep.subr.mxu0 %v7183_v10 }
 0x3f1   : > { %19979 = vmatmul.mubr.msk.f32.gmra.mrb[18].mxu0 %vm4706_vm10, %v23964_v3  ;;  %v7182_v3 = vsel %vm3367_vm7, %v27045_v44, %v27049_v4 }
 0x3f2   : > { %7033 = vmatprep.mubr.f32.mxu0 %v26959_v1 }
 0x3f5   : > { %19980 = vmatmul.mubr.msk.f32.gmra.mrb[20].mxu0 %vm4706_vm10, %v23974_v59  ;;  %v27053_v59 = vld [vmem:[#allocation66_spill] sm:$0xff] }
 0x3f6   : > { %7039 = vmatprep.mubr.f32.mxu0 %v26959_v1 }
 0x3f9   : > { %19981 = vmatmul.mubr.msk.f32.gmra.mrb[22].mxu0 %vm4706_vm10, %v27044_v58 }
 0x3fa   : > { %7270 = vmatprep.mubr.f32.mxu0 %v26959_v1 }
 0x3fd   : > { %19990 = vmatmul.mubr.msk.f32.vlgmr.msra.gmra.mrb[0].mxu0 %vm4706_vm10, %v27052_v37 }
 0x3fe   : > { %7296 = vmatpush1.msra.mxu0 %v7182_v3  ;;  %7276 = vmatprep.mubr.f32.mxu0 %v26959_v1 }
 0x3ff   : > { %7384 = vmatprep.subr.mxu0 %v7185_v39 }
 0x401   : > { %19991 = vmatmul.mubr.msk.f32.gmra.mrb[2].mxu0 %vm4706_vm10, %v27053_v59 }
 0x402   : > { %7282 = vmatprep.mubr.f32.mxu0 %v26959_v1 }
 0x405   : > { %19992 = vmatmul.mubr.msk.f32.gmra.mrb[4].mxu0 %vm4706_vm10, %v24013_v48 }
 0x406   : > { %7288 = vmatprep.mubr.f32.mxu0 %v26959_v1 }
 0x409   : > { %19993 = vmatmul.mubr.msk.f32.gmra.mrb[6].mxu0 %vm4706_vm10, %v24028_v21 }
 0x40a   : > { %7359 = vmatprep.mubr.f32.mxu0 %v26959_v1 }
 0x40d   : > { %19994 = vmatmul.mubr.msk.f32.vlgmr.msra.gmra.mrb[8].mxu0 %vm4706_vm10, %v27052_v37 }
 0x40e   : > { %7385 = vmatpush1.msra.mxu0 %v7184_v7  ;;  %7365 = vmatprep.mubr.f32.mxu0 %v26959_v1 }
 0x40f   : > { %7633 = vmatprep.subr.mxu0 %v7608_v56 }
 0x411   : > { %19995 = vmatmul.mubr.msk.f32.gmra.mrb[10].mxu0 %vm4706_vm10, %v27053_v59 }
 0x412   : > { %7371 = vmatprep.mubr.f32.mxu0 %v26959_v1 }
 0x415   : > { %19996 = vmatmul.mubr.msk.f32.gmra.mrb[12].mxu0 %vm4706_vm10, %v24013_v48 }
 0x416   : > { %7377 = vmatprep.mubr.f32.mxu0 %v26959_v1 }
 0x419   : > { %19997 = vmatmul.mubr.msk.f32.gmra.mrb[14].mxu0 %vm4706_vm10, %v24028_v21 }
 0x41a   : > { %7448 = vmatprep.mubr.f32.mxu0 %v26959_v1 }
 0x41d   : > { %19998 = vmatmul.mubr.msk.f32.vlgmr.msra.gmra.mrb[16].mxu0 %vm4706_vm10, %v27052_v37 }
 0x41e   : > { %7454 = vmatprep.mubr.f32.mxu0 %v26959_v1  ;;  %7634 = vmatpush1.msra.mxu0 %v7607_v41 }
 0x41f   : > { %7722 = vmatprep.subr.mxu0 %v7610_v61 }
 0x421   : > { %19999 = vmatmul.mubr.msk.f32.gmra.mrb[18].mxu0 %vm4706_vm10, %v27053_v59 }
 0x422   : > { %7460 = vmatprep.mubr.f32.mxu0 %v26959_v1 }
 0x425   : > { %20000 = vmatmul.mubr.msk.f32.gmra.mrb[20].mxu0 %vm4706_vm10, %v24013_v48  ;;  %v27061_v48 = vld [vmem:[#allocation59_spill] sm:$0xff] }
 0x426   : > { %7466 = vmatprep.mubr.f32.mxu0 %v26959_v1 }
 0x429   : > { %20001 = vmatmul.mubr.msk.f32.gmra.mrb[22].mxu0 %vm4706_vm10, %v24028_v21  ;;  %v27062_v21 = vld [vmem:[#allocation58_spill] sm:$0xff] }
 0x42a   : > { %7697 = vmatprep.mubr.f32.mxu0 %v26959_v1  ;;  %v8035_v12 = vsel %vm4237_vm9, %v27062_v21, %v27061_v48  ;;  %v8034_v60 = vsel %vm4237_vm9, %v27063_v36, %v27062_v21 }
 0x42d   : > { %20010 = vmatmul.mubr.msk.f32.vlgmr.msra.gmra.mrb[0].mxu0 %vm4706_vm10, %v24034_v46 }
 0x42e   : > { %7723 = vmatpush1.msra.mxu0 %v7609_v14  ;;  %7703 = vmatprep.mubr.f32.mxu0 %v26959_v1 }
 0x42f   : > { %7811 = vmatprep.subr.mxu0 %v7612_v34 }
 0x431   : > { %20011 = vmatmul.mubr.msk.f32.gmra.mrb[2].mxu0 %vm4706_vm10, %v24048_v5 }
 0x432   : > { %7709 = vmatprep.mubr.f32.mxu0 %v26959_v1 }
 0x435   : > { %20012 = vmatmul.mubr.msk.f32.gmra.mrb[4].mxu0 %vm4706_vm10, %v24058_v24 }
 0x436   : > { %7715 = vmatprep.mubr.f32.mxu0 %v26959_v1 }
 0x439   : > { %20013 = vmatmul.mubr.msk.f32.gmra.mrb[6].mxu0 %vm4706_vm10, %v24070_v9 }
 0x43a   : > { %7786 = vmatprep.mubr.f32.mxu0 %v26959_v1 }
 0x43d   : > { %20014 = vmatmul.mubr.msk.f32.vlgmr.msra.gmra.mrb[8].mxu0 %vm4706_vm10, %v24034_v46 }
 0x43e   : > { %7812 = vmatpush1.msra.mxu0 %v7611_v38  ;;  %7792 = vmatprep.mubr.f32.mxu0 %v26959_v1 }
 0x43f   : > { %8060 = vmatprep.subr.mxu0 %v8035_v12 }
 0x441   : > { %20015 = vmatmul.mubr.msk.f32.gmra.mrb[10].mxu0 %vm4706_vm10, %v24048_v5 }
 0x442   : > { %7798 = vmatprep.mubr.f32.mxu0 %v26959_v1 }
 0x445   : > { %20016 = vmatmul.mubr.msk.f32.gmra.mrb[12].mxu0 %vm4706_vm10, %v24058_v24 }
 0x446   : > { %7804 = vmatprep.mubr.f32.mxu0 %v26959_v1 }
 0x449   : > { %20017 = vmatmul.mubr.msk.f32.gmra.mrb[14].mxu0 %vm4706_vm10, %v24070_v9 }
 0x44a   : > { %7875 = vmatprep.mubr.f32.mxu0 %v26959_v1 }
 0x44d   : > { %20018 = vmatmul.mubr.msk.f32.vlgmr.msra.gmra.mrb[16].mxu0 %vm4706_vm10, %v24034_v46  ;;  %v27066_v46 = vld [vmem:[#allocation67_spill] sm:$0xff] }
 0x44e   : > { %7881 = vmatprep.mubr.f32.mxu0 %v26959_v1  ;;  %8061 = vmatpush1.msra.mxu0 %v8034_v60  ;;  %v8039_v20 = vsel %vm4237_vm9, %v27067_v17, %v27066_v46 }
 0x44f   : > { %8149 = vmatprep.subr.mxu0 %v8037_v51 }
 0x451   : > { %20019 = vmatmul.mubr.msk.f32.gmra.mrb[18].mxu0 %vm4706_vm10, %v24048_v5  ;;  %v8036_v5 = vsel %vm4237_vm9, %v27061_v48, %v27065_v26 }
 0x452   : > { %7887 = vmatprep.mubr.f32.mxu0 %v26959_v1 }
 0x455   : > { %20020 = vmatmul.mubr.msk.f32.gmra.mrb[20].mxu0 %vm4706_vm10, %v24058_v24  ;;  %v27069_v24 = vld [vmem:[#allocation69_spill] sm:$0xff] }
 0x456   : > { %7893 = vmatprep.mubr.f32.mxu0 %v26959_v1 }
 0x459   : > { %20021 = vmatmul.mubr.msk.f32.gmra.mrb[22].mxu0 %vm4706_vm10, %v24070_v9  ;;  %v27070_v9 = vld [vmem:[#allocation70_spill] sm:$0xff] }
 0x45a   : > { %8124 = vmatprep.mubr.f32.mxu0 %v26959_v1 }
 0x45d   : > { %20030 = vmatmul.mubr.msk.f32.vlgmr.msra.gmra.mrb[0].mxu0 %vm4706_vm10, %v27068_v35 }
 0x45e   : > { %8150 = vmatpush1.msra.mxu0 %v8036_v5  ;;  %8130 = vmatprep.mubr.f32.mxu0 %v26959_v1 }
 0x45f   : > { %8238 = vmatprep.subr.mxu0 %v8039_v20 }
 0x461   : > { %20031 = vmatmul.mubr.msk.f32.gmra.mrb[2].mxu0 %vm4706_vm10, %v27069_v24 }
 0x462   : > { %8136 = vmatprep.mubr.f32.mxu0 %v26959_v1 }
 0x465   : > { %20032 = vmatmul.mubr.msk.f32.gmra.mrb[4].mxu0 %vm4706_vm10, %v27070_v9 }
 0x466   : > { %8142 = vmatprep.mubr.f32.mxu0 %v26959_v1 }
 0x469   : > { %20033 = vmatmul.mubr.msk.f32.gmra.mrb[6].mxu0 %vm4706_vm10, %v24104_v40 }
 0x46a   : > { %8213 = vmatprep.mubr.f32.mxu0 %v26959_v1 }
 0x46d   : > { %20034 = vmatmul.mubr.msk.f32.vlgmr.msra.gmra.mrb[8].mxu0 %vm4706_vm10, %v27068_v35 }
 0x46e   : > { %8239 = vmatpush1.msra.mxu0 %v8038_v47  ;;  %8219 = vmatprep.mubr.f32.mxu0 %v26959_v1 }
 0x471   : > { %20035 = vmatmul.mubr.msk.f32.gmra.mrb[10].mxu0 %vm4706_vm10, %v27069_v24 }
 0x472   : > { %8225 = vmatprep.mubr.f32.mxu0 %v26959_v1 }
 0x475   : > { %20036 = vmatmul.mubr.msk.f32.gmra.mrb[12].mxu0 %vm4706_vm10, %v27070_v9 }
 0x476   : > { %8231 = vmatprep.mubr.f32.mxu0 %v26959_v1 }
 0x479   : > { %20037 = vmatmul.mubr.msk.f32.gmra.mrb[14].mxu0 %vm4706_vm10, %v24104_v40 }
 0x47a   : > { %8302 = vmatprep.mubr.f32.mxu0 %v26959_v1 }
 0x47d   : > { %20038 = vmatmul.mubr.msk.f32.vlgmr.msra.gmra.mrb[16].mxu0 %vm4706_vm10, %v27068_v35 }
 0x47e   : > { %8308 = vmatprep.mubr.f32.mxu0 %v26959_v1 }
 0x481   : > { %20039 = vmatmul.mubr.msk.f32.gmra.mrb[18].mxu0 %vm4706_vm10, %v27069_v24 }
 0x482   : > { %8314 = vmatprep.mubr.f32.mxu0 %v26959_v1 }
 0x485   : > { %20040 = vmatmul.mubr.msk.f32.gmra.mrb[20].mxu0 %vm4706_vm10, %v27070_v9 }
 0x486   : > { %8320 = vmatprep.mubr.f32.mxu0 %v26959_v1 }
 0x489   : > { %20041 = vmatmul.mubr.msk.f32.gmra.mrb[22].mxu0 %vm4706_vm10, %v24104_v40 }
 0x48a   : > { %8883 = vmatprep.mubr.f32.mxu0 %v26959_v1 }
 0x530   : > { %v8126_v49 = vpop.f32.mrb[0].mxu0 }
 0x531   : > { %v8492_v52 = vadd.f32 %v24356_v31, %v8126_v49  ;;  %v8128_v53 = vpop.f32.mrb[1].mxu0 }
 0x532   : > { %v8493_v22 = vadd.f32 %v24356_v31, %v8128_v53  ;;  %v8653_v53 = vld [vmem:[#allocation3] sm:$0xff] }
 0x533   : > { %v20046_v54 = vmul.f32 -1.442695, %v8492_v52 }
 0x534   : > { %v20047_v25 = vmul.f32 -1.442695, %v8493_v22  ;;  %v8132_v8 = vpop.f32.mrb[2].mxu0 }
 0x535   : > { %22124 = vpow2.f32 %v20046_v54  ;;  %v8499_v28 = vadd.f32 %v24353_v42, %v8132_v8  ;;  %v8134_v50 = vpop.f32.mrb[3].mxu0 }
 0x536   : > { %22126 = vpow2.f32 %v20047_v25  ;;  %v8500_v33 = vadd.f32 %v24353_v42, %v8134_v50  ;;  %v8654_v25 = vld [vmem:[#allocation3 + $0x8] sm:$0xff] }
 0x537   : > { %v20053_v58 = vmul.f32 -1.442695, %v8499_v28 }
 0x538   : > { %v20054_v40 = vmul.f32 -1.442695, %v8500_v33  ;;  %v8138_v44 = vpop.f32.mrb[4].mxu0 }
 0x539   : > { %22128 = vpow2.f32 %v20053_v58  ;;  %v8506_v43 = vadd.f32 %v24371_v2, %v8138_v44  ;;  %v8140_v63 = vpop.f32.mrb[5].mxu0 }
 0x53a   : > { %22130 = vpow2.f32 %v20054_v40  ;;  %v8507_v15 = vadd.f32 %v24371_v2, %v8140_v63 }
 0x53b   : > { %v20060_v18 = vmul.f32 -1.442695, %v8506_v43 }
 0x53c   : > { %v20061_v62 = vmul.f32 -1.442695, %v8507_v15  ;;  %v8144_v0 = vpop.f32.mrb[6].mxu0 }
 0x53d   : > { %22132 = vpow2.f32 %v20060_v18  ;;  %v8513_v4 = vadd.f32 %v24377_v32, %v8144_v0  ;;  %v8146_v10 = vpop.f32.mrb[7].mxu0 }
 0x53e   : > { %v8514_v11 = vadd.f32 %v24377_v32, %v8146_v10  ;;  %22134 = vpow2.f32 %v20061_v62 }
 0x53f   : > { %v22125_v27 = vpop.eup %22124  ;;  %22136 = vtanh.f32 %v8513_v4 }
 0x540   : > { %v22127_v39 = vpop.eup %22126  ;;  %v8541_v37 = vadd.f32 1.0, %v22125_v27  ;;  %v8215_v3 = vpop.f32.mrb[8].mxu0  ;;  %22138 = vtanh.f32 %v8514_v11 }
 0x541   : > { %v8542_v59 = vadd.f32 1.0, %v22127_v39  ;;  %v8494_v6 = vadd.f32 %v24356_v31, %v8215_v3  ;;  %v8217_v19 = vpop.f32.mrb[9].mxu0 }
 0x542   : > { %22140 = vrcp.f32 %v8541_v37  ;;  %v8495_v56 = vadd.f32 %v24356_v31, %v8217_v19 }
 0x543   : > { %v22129_v7 = vpop.eup %22128  ;;  %22142 = vrcp.f32 %v8542_v59  ;;  %v20048_v29 = vmul.f32 -1.442695, %v8494_v6 }
 0x544   : > { %v22131_v41 = vpop.eup %22130  ;;  %v8583_v55 = vadd.f32 1.0, %v22129_v7  ;;  %v20049_v16 = vmul.f32 -1.442695, %v8495_v56  ;;  %v8221_v61 = vpop.f32.mrb[10].mxu0 }
 0x545   : > { %v8584_v45 = vadd.f32 1.0, %v22131_v41  ;;  %22144 = vpow2.f32 %v20048_v29  ;;  %v8501_v30 = vadd.f32 %v24353_v42, %v8221_v61  ;;  %v8223_v34 = vpop.f32.mrb[11].mxu0 }
 0x546   : > { %22146 = vrcp.f32 %v8583_v55  ;;  %v8502_v14 = vadd.f32 %v24353_v42, %v8223_v34 }
 0x547   : > { %v22133_v48 = vpop.eup %22132  ;;  %22148 = vrcp.f32 %v8584_v45  ;;  %v20055_v21 = vmul.f32 -1.442695, %v8501_v30 }
 0x548   : > { %22150 = vpow2.f32 %v20049_v16  ;;  %v20056_v12 = vmul.f32 -1.442695, %v8502_v14  ;;  %v8227_v38 = vpop.f32.mrb[12].mxu0  ;;  %v22135_v36 = vpop.eup %22134  ;;  %v8625_v51 = vadd.f32 1.0, %v22133_v48 }
 0x549   : > { %22152 = vpow2.f32 %v20055_v21  ;;  %v8508_v60 = vadd.f32 %v24371_v2, %v8227_v38  ;;  %v8229_v13 = vpop.f32.mrb[13].mxu0  ;;  %v22137_v26 = vpop.eup %22136  ;;  %v8626_v8 = vadd.f32 1.0, %v22135_v36 }
 0x54a   : > { %v8509_v46 = vadd.f32 %v24371_v2, %v8229_v13  ;;  %v22139_v17 = vpop.eup %22138  ;;  %22154 = vpow2.f32 %v20056_v12 }
 0x54b   : > { %v20062_v20 = vmul.f32 -1.442695, %v8508_v60  ;;  %22156 = vrcp.f32 %v8625_v51 }
 0x54c   : > { %v22141_v35 = vpop.eup %22140  ;;  %v20063_v5 = vmul.f32 -1.442695, %v8509_v46  ;;  %v8233_v24 = vpop.f32.mrb[14].mxu0 }
 0x54d   : > { %v22143_v9 = vpop.eup %22142  ;;  %v8667_v47 = vmul.f32 %v22141_v35, %v22137_v26  ;;  %v8515_v49 = vadd.f32 %v24377_v32, %v8233_v24  ;;  %v8235_v52 = vpop.f32.mrb[15].mxu0  ;;  %22158 = vpow2.f32 %v20062_v20  ;;  %v8655_v20 = vld [vmem:[#allocation3 + $0x10] sm:$0xff] }
 0x54e   : > { %v8668_v22 = vmul.f32 %v22143_v9, %v22139_v17  ;;  %22160 = vpow2.f32 %v20063_v5  ;;  %v8516_v33 = vadd.f32 %v24377_v32, %v8235_v52  ;;  %v8656_v9 = vld [vmem:[#allocation3 + $0x18] sm:$0xff] }
 0x54f   : > { %v22145_v54 = vpop.eup %22144  ;;  %22162 = vtanh.f32 %v8515_v49  ;;  %v27071_v49 = vld [vmem:[#allocation12_spill] sm:$0xff] }
 0x550   : > { %v22147_v28 = vpop.eup %22146  ;;  %v8543_v50 = vadd.f32 1.0, %v22145_v54  ;;  %v8304_v58 = vpop.f32.mrb[16].mxu0 }
 0x551   : > { %v22149_v40 = vpop.eup %22148  ;;  %v8660_v44 = vmul.f32 %v22147_v28, %v8653_v53  ;;  %v8306_v43 = vpop.f32.mrb[17].mxu0  ;;  %v8496_v11 = vadd.f32 %v24356_v31, %v8304_v58 }
 0x552   : > { %v22151_v63 = vpop.eup %22150  ;;  %v8661_v15 = vmul.f32 %v22149_v40, %v8654_v25  ;;  %22164 = vrcp.f32 %v8543_v50  ;;  %v8497_v39 = vadd.f32 %v24356_v31, %v8306_v43  ;;  %v27072_v25 = vld [vmem:[#allocation13_spill] sm:$0xff] }
 0x553   : > { %v22153_v18 = vpop.eup %22152  ;;  %22166 = vrcp.f32 %v8626_v8  ;;  %v8674_v62 = vadd.f32 %v8667_v47, %v8660_v44  ;;  %v8544_v0 = vadd.f32 1.0, %v22151_v63  ;;  %v20050_v7 = vmul.f32 -1.442695, %v8496_v11 }
 0x554   : > { %v8675_v4 = vadd.f32 %v8668_v22, %v8661_v15  ;;  %v8585_v10 = vadd.f32 1.0, %v22153_v18  ;;  %22168 = vtanh.f32 %v8516_v33  ;;  %v8310_v27 = vpop.f32.mrb[18].mxu0  ;;  %v22155_v3 = vpop.eup %22154  ;;  %v20051_v55 = vmul.f32 -1.442695, %v8497_v39 }
 0x555   : > { %22170 = vtanh.f32 %v8674_v62  ;;  %8738 = vst [vmem:[#allocation3] sm:$0xff] %v8674_v62  ;;  %v8312_v37 = vpop.f32.mrb[19].mxu0  ;;  %v8503_v59 = vadd.f32 %v24353_v42, %v8310_v27  ;;  %v8586_v6 = vadd.f32 1.0, %v22155_v3  ;;  %v22157_v56 = vpop.eup %22156 }
 0x556   : > { %22172 = vtanh.f32 %v8675_v4  ;;  %8739 = vst [vmem:[#allocation3 + $0x8] sm:$0xff] %v8675_v4  ;;  %v8504_v19 = vadd.f32 %v24353_v42, %v8312_v37 }
 0x557   : > { %22174 = vrcp.f32 %v8544_v0  ;;  %v22159_v41 = vpop.eup %22158  ;;  %v20057_v31 = vmul.f32 -1.442695, %v8503_v59 }
 0x558   : > { %22176 = vrcp.f32 %v8585_v10  ;;  %v8316_v29 = vpop.f32.mrb[20].mxu0  ;;  %v22161_v61 = vpop.eup %22160  ;;  %v20058_v30 = vmul.f32 -1.442695, %v8504_v19  ;;  %v8627_v12 = vadd.f32 1.0, %v22159_v41 }
 0x559   : > { %22178 = vrcp.f32 %v8586_v6  ;;  %v8318_v16 = vpop.f32.mrb[21].mxu0  ;;  %v22163_v45 = vpop.eup %22162  ;;  %v8510_v34 = vadd.f32 %v24371_v2, %v8316_v29  ;;  %v8628_v13 = vadd.f32 1.0, %v22161_v61  ;;  %v27073_v29 = vld [vmem:[#allocation8_spill] sm:$0xff] }
 0x55a   : > { %22180 = vpow2.f32 %v20050_v7  ;;  %v8511_v48 = vadd.f32 %v24371_v2, %v8318_v16 }
 0x55b   : > { %22182 = vpow2.f32 %v20051_v55  ;;  %v20064_v51 = vmul.f32 -1.442695, %v8510_v34  ;;  %v8658_v55 = vld [vmem:[#allocation3 + $0x28] sm:$0xff] }
 0x55c   : > { %v22165_v14 = vpop.eup %22164  ;;  %v8322_v21 = vpop.f32.mrb[22].mxu0  ;;  %22184 = vpow2.f32 %v20057_v31  ;;  %v20065_v35 = vmul.f32 -1.442695, %v8511_v48 }
 0x55d   : > { %v22167_v42 = vpop.eup %22166  ;;  %v8669_v38 = vmul.f32 %v22165_v14, %v22163_v45  ;;  %v8324_v36 = vpop.f32.mrb[23].mxu0  ;;  %22186 = vpow2.f32 %v20058_v30  ;;  %v8517_v2 = vadd.f32 %v24377_v32, %v8322_v21  ;;  %v27074_v45 = vld [vmem:[#allocation9_spill] sm:$0xff] }
 0x55e   : > { %v22169_v60 = vpop.eup %22168  ;;  %22188 = vrcp.f32 %v8627_v12  ;;  %v8518_v22 = vadd.f32 %v24377_v32, %v8324_v36  ;;  %v24781_v36 = vld [vmem:[%s26840_s7 + $0x20] sm:$0xff] }
 0x55f   : > { %v22171_v26 = vpop.eup %22170  ;;  %22190 = vrcp.f32 %v8628_v13  ;;  %20831 = vmatprep.mubr.msk.f32.mxu1 %vm4706_vm10, %v24781_v36 }
 0x560   : > { %v22173_v46 = vpop.eup %22172  ;;  %v8688_v17 = vmul.f32 %v22171_v26, %v22157_v56  ;;  %22192 = vpow2.f32 %v20064_v51  ;;  %v8657_v56 = vld [vmem:[#allocation3 + $0x20] sm:$0xff] }
 0x561   : > { %v22175_v5 = vpop.eup %22174  ;;  %v8689_v24 = vmul.f32 %v22173_v46, %v22167_v42  ;;  %22194 = vpow2.f32 %v20065_v35 }
 0x562   : > { %v22177_v47 = vpop.eup %22176  ;;  %v24758_v52 = vmul.f32 %v27071_v49, %v8688_v17  ;;  %v8670_v53 = vmul.f32 %v22175_v5, %v22169_v60  ;;  %22196 = vtanh.f32 %v8517_v2  ;;  %v27076_v5 = vld [vmem:[#allocation11_spill] sm:$0xff] }
 0x563   : > { %v22179_v54 = vpop.eup %22178  ;;  %v24762_v8 = vmul.f32 %v27072_v25, %v8689_v24  ;;  %v8662_v28 = vmul.f32 %v22177_v47, %v8655_v20  ;;  %22198 = vtanh.f32 %v8518_v22  ;;  %v27075_v20 = vld [vmem:[#allocation10_spill] sm:$0xff]  ;;  %v10828_v2 = vld [vmem:[#allocation2 + $0x40] sm:$0xff]  ;;  %v24863_v47 = vld [vmem:[#allocation4 + $0x10] sm:$0xff] }
 0x564   : > { %8745 = vst [vmem:[#allocation2 + $0x8] sm:$0xff] %v24758_v52  ;;  %v8663_v50 = vmul.f32 %v22179_v54, %v8656_v9  ;;  %v22181_v58 = vpop.eup %22180  ;;  %v24809_v9 = vld [vmem:[#allocation2] sm:$0xff]  ;;  %v24875_v22 = vld [vmem:[#allocation4 + $0x28] sm:$0xff]  ;;  %v24881_v54 = vld [vmem:[#allocation4 + $0x38] sm:$0xff] }
 0x565   : > { %8746 = vst [vmem:[#allocation2 + $0x10] sm:$0xff] %v24762_v8  ;;  %v8676_v33 = vadd.f32 %v8669_v38, %v8662_v28  ;;  %10001 = vrot.lane.b32.xlu1 %v24762_v8, %s22399_s28  ;;  %v22183_v32 = vpop.eup %22182  ;;  %v8545_v44 = vadd.f32 1.0, %v22181_v58  ;;  %v8792_v28 = vpop.permute.xlu1 %8791 }
 0x566   : > { %v8677_v40 = vadd.f32 %v8670_v53, %v8663_v50  ;;  %v22185_v43 = vpop.eup %22184  ;;  %v8546_v63 = vadd.f32 1.0, %v22183_v32  ;;  %v24869_v53 = vld [vmem:[#allocation4 + $0x18] sm:$0xff]  ;;  %v24891_v50 = vld [vmem:[#allocation4 + $0x8] sm:$0xff]  ;;  %v24909_v32 = vld [vmem:[#allocation4 + $0x30] sm:$0xff] }
 0x567   : > { %22200 = vtanh.f32 %v8676_v33  ;;  %8740 = vst [vmem:[#allocation3 + $0x10] sm:$0xff] %v8676_v33  ;;  %v22187_v15 = vpop.eup %22186  ;;  %v8587_v18 = vadd.f32 1.0, %v22185_v43  ;;  %v24897_v33 = vld [vmem:[#allocation4] sm:$0xff] }
 0x568   : > { %22202 = vtanh.f32 %v8677_v40  ;;  %8741 = vst [vmem:[#allocation3 + $0x18] sm:$0xff] %v8677_v40  ;;  %v8588_v62 = vadd.f32 1.0, %v22187_v15  ;;  %v22189_v0 = vpop.eup %22188  ;;  %v24903_v40 = vld [vmem:[#allocation4 + $0x20] sm:$0xff] }
 0x569   : > { %22204 = vrcp.f32 %v8545_v44  ;;  %v22191_v4 = vpop.eup %22190  ;;  %v9186_v58 = vpop.permute.xlu1 %9185 }
 0x56a   : > { %22206 = vrcp.f32 %v8546_v63  ;;  %v22193_v10 = vpop.eup %22192 }
 0x56b   : > { %22208 = vrcp.f32 %v8587_v18  ;;  %v22195_v11 = vpop.eup %22194  ;;  %v8629_v16 = vadd.f32 1.0, %v22193_v10 }
 0x56c   : > { %22210 = vrcp.f32 %v8588_v62  ;;  %v22197_v27 = vpop.eup %22196  ;;  %v8630_v34 = vadd.f32 1.0, %v22195_v11  ;;  %v24938_v62 = vld [vmem:[%s26840_s7 + $0x28] sm:$0xff] }
 0x56d   : > { %v22199_v39 = vpop.eup %22198  ;;  %22212 = vrcp.f32 %v8629_v16  ;;  %v25006_v16 = vld [vmem:[%s26840_s7 + $0x18] sm:$0xff] }
 0x56e   : > { %22214 = vrcp.f32 %v8630_v34 }
 0x571   : > { %v22201_v37 = vpop.eup %22200 }
 0x572   : > { %v22203_v3 = vpop.eup %22202  ;;  %v8690_v59 = vmul.f32 %v22201_v37, %v22189_v0  ;;  %v24945_v0 = vld [vmem:[%s26840_s7 + $0x30] sm:$0xff] }
 0x573   : > { %v22205_v6 = vpop.eup %22204  ;;  %v8691_v19 = vmul.f32 %v22203_v3, %v22191_v4 }
 0x574   : > { %v22207_v7 = vpop.eup %22206  ;;  %v24769_v41 = vmul.f32 %v27073_v29, %v8690_v59  ;;  %v8671_v61 = vmul.f32 %v22205_v6, %v22197_v27  ;;  %v24962_v27 = vld [vmem:[%s26840_s7 + $0x38] sm:$0xff]  ;;  %v24986_v6 = vld [vmem:[%s26840_s7 + $0x8] sm:$0xff] }
 0x575   : > { %v22209_v31 = vpop.eup %22208  ;;  %v24772_v30 = vmul.f32 %v27074_v45, %v8691_v19  ;;  %v8672_v14 = vmul.f32 %v22207_v7, %v22199_v39  ;;  %v24969_v39 = vld [vmem:[%s26840_s7] sm:$0xff]  ;;  %v24997_v7 = vld [vmem:[%s26840_s7 + $0x10] sm:$0xff] }
 0x576   : > { %v22211_v48 = vpop.eup %22210  ;;  %8747 = vst [vmem:[#allocation2 + $0x18] sm:$0xff] %v24769_v41  ;;  %v8664_v21 = vmul.f32 %v22209_v31, %v8657_v56  ;;  %10003 = vrot.lane.b32.xlu1 %v24769_v41, %s22399_s28 }
 0x577   : > { %8748 = vst [vmem:[#allocation2 + $0x20] sm:$0xff] %v24772_v30  ;;  %v8665_v42 = vmul.f32 %v22211_v48, %v8658_v55  ;;  %v22213_v60 = vpop.eup %22212 }
 0x578   : > { %v8678_v12 = vadd.f32 %v8671_v61, %v8664_v21  ;;  %v22215_v13 = vpop.eup %22214  ;;  %v25013_v61 = vld [vmem:[%s26840_s7 + $0x40] sm:$0xff] }
 0x579   : > { %v8679_v38 = vadd.f32 %v8672_v14, %v8665_v42  ;;  %v25028_v14 = vld [vmem:[%s26840_s7 + $0x48] sm:$0xff] }
 0x57a   : > { %22216 = vtanh.f32 %v8678_v12  ;;  %8742 = vst [vmem:[#allocation3 + $0x20] sm:$0xff] %v8678_v12  ;;  %27080 = vst [vmem:[#allocation17_spill] sm:$0xff] %v25028_v14  ;;  %v25040_v12 = vld [vmem:[%s26840_s7 + $0x50] sm:$0xff] }
 0x57b   : > { %22218 = vtanh.f32 %v8679_v38  ;;  %8743 = vst [vmem:[#allocation3 + $0x28] sm:$0xff] %v8679_v38  ;;  %27081 = vst [vmem:[#allocation19_spill] sm:$0xff] %v25040_v12 }
 0x584   : > { %v22217_v26 = vpop.eup %22216 }
 0x585   : > { %v22219_v51 = vpop.eup %22218  ;;  %v8692_v46 = vmul.f32 %v22217_v26, %v22213_v60  ;;  %v25049_v60 = vld [vmem:[%s26840_s7 + $0x58] sm:$0xff] }
 0x586   : > { %v8693_v17 = vmul.f32 %v22219_v51, %v22215_v13  ;;  %27082 = vst [vmem:[#allocation21_spill] sm:$0xff] %v25049_v60  ;;  %v25065_v51 = vld [vmem:[%s26840_s7 + $0x60] sm:$0xff] }
 0x587   : > { %v24786_v35 = vmul.f32 %v27075_v20, %v8692_v46 }
 0x588   : > { %v24789_v24 = vmul.f32 %v27076_v5, %v8693_v17 }
 0x589   : > { %8749 = vst [vmem:[#allocation2 + $0x28] sm:$0xff] %v24786_v35  ;;  %10007 = vrot.lane.b32.xlu1 %v24786_v35, %s22399_s28 }
 0x58a   : > { %8750 = vst [vmem:[#allocation2 + $0x30] sm:$0xff] %v24789_v24  ;;  %8789 = vrot.lane.b32.xlu0 %v24789_v24, %s22396_s19 }
 0x58d   : > { %10011 = vrot.lane.b32.xlu1 %v24428_v23, %s22399_s28 }
 0x58e   : > { %9183 = vrot.lane.b32.xlu0 %v24789_v24, %s26915_s20 }
 0x591   : > { %10841 = vrot.lane.b32.xlu1 %v24769_v41, %s22400_s29 }
 0x592   : > { %9582 = vrot.lane.b32.xlu0 %v24789_v24, %s22398_s22 }
 0x595   : > { %10843 = vrot.lane.b32.xlu1 %v24772_v30, %s22400_s29 }
 0x596   : > { %9999 = vrot.lane.b32.xlu0 %v24758_v52, %s22399_s28 }
 0x599   : > { %10847 = vrot.lane.b32.xlu1 %v24789_v24, %s22400_s29 }
 0x59a   : > { %9997 = vrot.lane.b32.xlu0 %v24809_v9, %s22399_s28 }
 0x59d   : > { %10851 = vrot.lane.b32.xlu1 %v10828_v2, %s22400_s29 }
 0x59e   : > { %10005 = vrot.lane.b32.xlu0 %v24772_v30, %s22399_s28 }
 0x5a1   : > { %11268 = vrot.lane.b32.xlu1 %v24769_v41, %s22401_s30 }
 0x5a2   : > { %10009 = vrot.lane.b32.xlu0 %v24789_v24, %s22399_s28 }
 0x5a5   : > { %11270 = vrot.lane.b32.xlu1 %v24772_v30, %s22401_s30 }
 0x5a6   : > { %10839 = vrot.lane.b32.xlu0 %v24762_v8, %s22400_s29 }
 0x5a9   : > { %11274 = vrot.lane.b32.xlu1 %v24789_v24, %s22401_s30 }
 0x5aa   : > { %10837 = vrot.lane.b32.xlu0 %v24758_v52, %s22400_s29 }
 0x5ad   : > { %11278 = vrot.lane.b32.xlu1 %v10828_v2, %s22401_s30 }
 0x5ae   : > { %10845 = vrot.lane.b32.xlu0 %v24786_v35, %s22400_s29 }
 0x5b1   : > { %11695 = vrot.lane.b32.xlu1 %v24769_v41, %s27077_s13 }
 0x5b2   : > { %10849 = vrot.lane.b32.xlu0 %v24428_v23, %s22400_s29 }
 0x5b5   : > { %11697 = vrot.lane.b32.xlu1 %v24772_v30, %s27077_s13 }
 0x5b6   : > { %11266 = vrot.lane.b32.xlu0 %v24762_v8, %s22401_s30 }
 0x5b9   : > { %11701 = vrot.lane.b32.xlu1 %v24789_v24, %s27077_s13 }
 0x5ba   : > { %11264 = vrot.lane.b32.xlu0 %v24758_v52, %s22401_s30 }
 0x5bd   : > { %11705 = vrot.lane.b32.xlu1 %v10828_v2, %s27077_s13 }
 0x5be   : > { %11272 = vrot.lane.b32.xlu0 %v24786_v35, %s22401_s30 }
 0x5c1   : > { %12122 = vrot.lane.b32.xlu1 %v24769_v41, %s27078_s14 }
 0x5c2   : > { %11276 = vrot.lane.b32.xlu0 %v24428_v23, %s22401_s30 }
 0x5c5   : > { %12124 = vrot.lane.b32.xlu1 %v24772_v30, %s27078_s14 }
 0x5c6   : > { %11693 = vrot.lane.b32.xlu0 %v24762_v8, %s27077_s13 }
 0x5c9   : > { %12128 = vrot.lane.b32.xlu1 %v24789_v24, %s27078_s14 }
 0x5ca   : > { %11691 = vrot.lane.b32.xlu0 %v24758_v52, %s27077_s13 }
 0x5cd   : > { %12132 = vrot.lane.b32.xlu1 %v10828_v2, %s27078_s14 }
 0x5ce   : > { %11699 = vrot.lane.b32.xlu0 %v24786_v35, %s27077_s13 }
 0x5d1   : > { %12569 = vrot.lane.b32.xlu1 %v24863_v47, %s22396_s19 }
 0x5d2   : > { %11703 = vrot.lane.b32.xlu0 %v24428_v23, %s27077_s13 }
 0x5d5   : > { %12571 = vrot.lane.b32.xlu1 %v24869_v53, %s22396_s19 }
 0x5d6   : > { %12120 = vrot.lane.b32.xlu0 %v24762_v8, %s27078_s14 }
 0x5d9   : > { %12575 = vrot.lane.b32.xlu1 %v24875_v22, %s22396_s19 }
 0x5da   : > { %12118 = vrot.lane.b32.xlu0 %v24758_v52, %s27078_s14 }
 0x5dd   : > { %12579 = vrot.lane.b32.xlu1 %v24881_v54, %s22396_s19 }
 0x5de   : > { %12126 = vrot.lane.b32.xlu0 %v24786_v35, %s27078_s14 }
 0x5e1   : > { %12963 = vrot.lane.b32.xlu1 %v24863_v47, %s26915_s20 }
 0x5e2   : > { %12130 = vrot.lane.b32.xlu0 %v24428_v23, %s27078_s14  ;;  %v9585_v23 = vpop.permute.xlu1 %9584 }
 0x5e5   : > { %12965 = vrot.lane.b32.xlu1 %v24869_v53, %s26915_s20 }
 0x5e6   : > { %12567 = vrot.lane.b32.xlu0 %v24891_v50, %s22396_s19  ;;  %v24915_v44 = vpop.permute.xlu1 %10001 }
 0x5e9   : > { %12969 = vrot.lane.b32.xlu1 %v24875_v22, %s26915_s20 }
 0x5ea   : > { %12565 = vrot.lane.b32.xlu0 %v24897_v33, %s22396_s19  ;;  %v24921_v43 = vpop.permute.xlu1 %10003 }
 0x5eb   : > { %v10015_v17 = vsel %vm2085_vm5, %v24915_v44, %v24921_v43 }
 0x5ed   : > { %12973 = vrot.lane.b32.xlu1 %v24881_v54, %s26915_s20 }
 0x5ee   : > { %12573 = vrot.lane.b32.xlu0 %v24903_v40, %s22396_s19 }
 0x5f1   : > { %13362 = vrot.lane.b32.xlu1 %v24863_v47, %s22398_s22 }
 0x5f2   : > { %12577 = vrot.lane.b32.xlu0 %v24909_v32, %s22396_s19 }
 0x5f5   : > { %13364 = vrot.lane.b32.xlu1 %v24869_v53, %s22398_s22 }
 0x5f6   : > { %12961 = vrot.lane.b32.xlu0 %v24891_v50, %s26915_s20 }
 0x5f9   : > { %13368 = vrot.lane.b32.xlu1 %v24875_v22, %s22398_s22 }
 0x5fa   : > { %12959 = vrot.lane.b32.xlu0 %v24897_v33, %s26915_s20 }
 0x5fb   : > { %v24927_v63 = vpop.permute.xlu1 %10007 }
 0x5fc   : > { %v24929_v15 = vpop.permute.xlu0 %8789 }
 0x5fd   : > { %13372 = vrot.lane.b32.xlu1 %v24881_v54, %s22398_s22  ;;  %v8799_v18 = vsel %vm840_vm2, %v24929_v15, %v8792_v28 }
 0x5fe   : > { %20829 = vmatprep.subr.mxu1 %v8799_v18  ;;  %12967 = vrot.lane.b32.xlu0 %v24903_v40, %s26915_s20 }
 0x5ff   : > { %20830 = vmatpush3.msra.mxu1 %v8799_v18  ;;  %v24947_v4 = vpop.permute.xlu1 %10011 }
 0x600   : > { %20832 = vmatmul.mubr.msk.f32.vlgmr.msra.gmra.mrb[4].mxu1 %vm4706_vm10, %v24938_v62  ;;  %v24951_v10 = vpop.permute.xlu0 %9183 }
 0x601   : > { %13789 = vrot.lane.b32.xlu1 %v24863_v47, %s22399_s28  ;;  %v9193_v11 = vsel %vm1243_vm3, %v24951_v10, %v9186_v58  ;;  %20834 = vmatprep.mubr.msk.f32.mxu1 %vm4706_vm10, %v24945_v0  ;;  %v25085_v58 = vld [vmem:[%s26840_s7 + $0x68] sm:$0xff] }
 0x602   : > { %20837 = vmatprep.subr.mxu1 %v9193_v11  ;;  %12971 = vrot.lane.b32.xlu0 %v24909_v32, %s26915_s20 }
 0x603   : > { %20838 = vmatpush3.msra.mxu1 %v9193_v11  ;;  %v24971_v37 = vpop.permute.xlu1 %10841 }
 0x604   : > { %20835 = vmatmul.mubr.msk.f32.gmra.mrb[6].mxu1 %vm4706_vm10, %v24962_v27  ;;  %v24975_v3 = vpop.permute.xlu0 %9582 }
 0x605   : > { %27079 = vst [vmem:[#allocation14_spill] sm:$0xff] %v24975_v3  ;;  %13791 = vrot.lane.b32.xlu1 %v24869_v53, %s22399_s28  ;;  %v9592_v59 = vsel %vm1650_vm4, %v24975_v3, %v9585_v23  ;;  %20839 = vmatprep.mubr.msk.f32.mxu1 %vm4706_vm10, %v24969_v39  ;;  %v25089_v23 = vld [vmem:[#allocation4 + $0x40] sm:$0xff] }
 0x606   : > { %20845 = vmatprep.subr.mxu1 %v9592_v59  ;;  %13360 = vrot.lane.b32.xlu0 %v24891_v50, %s22398_s22 }
 0x607   : > { %v24990_v19 = vpop.permute.xlu1 %10843 }
 0x608   : > { %20840 = vmatmul.mubr.msk.f32.vlgmr.msra.gmra.mrb[4].mxu1 %vm4706_vm10, %v24986_v6  ;;  %v10000_v56 = vpop.permute.xlu0 %9999 }
 0x609   : > { %20846 = vmatpush3.msra.mxu1 %v9592_v59  ;;  %13795 = vrot.lane.b32.xlu1 %v24875_v22, %s22399_s28  ;;  %v10014_v55 = vsel %vm2085_vm5, %v10000_v56, %v24915_v44  ;;  %v25120_v59 = vld [vmem:[%s26840_s7 + $0x78] sm:$0xff] }
 0x60a   : > { %13358 = vrot.lane.b32.xlu0 %v24897_v33, %s22398_s22  ;;  %10039 = vmatprep.subr.mxu1 %v10014_v55 }
 0x60b   : > { %20842 = vmatprep.mubr.msk.f32.mxu1 %vm4706_vm10, %v24997_v7  ;;  %v25017_v31 = vpop.permute.xlu1 %10847 }
 0x60c   : > { %20843 = vmatmul.mubr.msk.f32.gmra.mrb[6].mxu1 %vm4706_vm10, %v25006_v16  ;;  %v9998_v34 = vpop.permute.xlu0 %9997 }
 0x60d   : > { %13799 = vrot.lane.b32.xlu1 %v24881_v54, %s22399_s28  ;;  %20847 = vmatprep.mubr.msk.f32.mxu1 %vm4706_vm10, %v25013_v61  ;;  %v10013_v21 = vsel %vm2085_vm5, %v9998_v34, %v10000_v56 }
 0x60e   : > { %13366 = vrot.lane.b32.xlu0 %v24903_v40, %s22398_s22 }
 0x60f   : > { %v25032_v48 = vpop.permute.xlu1 %10851 }
 0x610   : > { %20848 = vmatmul.mubr.msk.f32.vlgmr.msra.gmra.mrb[4].mxu1 %vm4706_vm10, %v25028_v14  ;;  %v10006_v42 = vpop.permute.xlu0 %10005 }
 0x611   : > { %10040 = vmatpush1.msra.mxu1 %v10013_v21  ;;  %14629 = vrot.lane.b32.xlu1 %v24869_v53, %s22400_s29  ;;  %v10016_v38 = vsel %vm2085_vm5, %v24921_v43, %v10006_v42  ;;  %v10017_v21 = vsel %vm2085_vm5, %v10006_v42, %v24927_v63 }
 0x612   : > { %13370 = vrot.lane.b32.xlu0 %v24909_v32, %s22398_s22  ;;  %10128 = vmatprep.subr.mxu1 %v10016_v38 }
 0x613   : > { %20850 = vmatprep.mubr.msk.f32.mxu1 %vm4706_vm10, %v25040_v12  ;;  %v25055_v13 = vpop.permute.xlu1 %11268 }
 0x614   : > { %20851 = vmatmul.mubr.msk.f32.gmra.mrb[6].mxu1 %vm4706_vm10, %v25049_v60  ;;  %v10010_v26 = vpop.permute.xlu0 %10009 }
 0x615   : > { %14631 = vrot.lane.b32.xlu1 %v24903_v40, %s22400_s29  ;;  %10103 = vmatprep.mubr.f32.mxu1 %v26959_v1  ;;  %v10018_v28 = vsel %vm2085_vm5, %v24927_v63, %v10010_v26 }
 0x616   : > { %13787 = vrot.lane.b32.xlu0 %v24891_v50, %s22399_s28 }
 0x617   : > { %v25069_v46 = vpop.permute.xlu1 %11270 }
 0x618   : > { %20127 = vmatmul.mubr.msk.f32.vlgmr.msra.gmra.mrb[8].mxu1 %vm4706_vm10, %v25065_v51  ;;  %v25076_v2 = vpop.permute.xlu0 %10839 }
 0x619   : > { %10129 = vmatpush1.msra.mxu1 %v10015_v17  ;;  %14635 = vrot.lane.b32.xlu1 %v24909_v32, %s22400_s29  ;;  %v10019_v17 = vsel %vm2085_vm5, %v10010_v26, %v24947_v4 }
 0x61a   : > { %10217 = vmatprep.subr.mxu1 %v10018_v28  ;;  %13785 = vrot.lane.b32.xlu0 %v24897_v33, %s22399_s28  ;;  %v25104_v33 = vld [vmem:[%s26840_s7 + $0x70] sm:$0xff] }
 0x61b   : > { %v25091_v44 = vpop.permute.xlu1 %11274  ;;  %10109 = vmatprep.mubr.f32.mxu1 %v26959_v1 }
 0x61c   : > { %20128 = vmatmul.mubr.msk.f32.gmra.mrb[10].mxu1 %vm4706_vm10, %v25085_v58  ;;  %v25096_v43 = vpop.permute.xlu0 %10837 }
 0x61d   : > { %14639 = vrot.lane.b32.xlu1 %v25089_v23, %s22400_s29  ;;  %10115 = vmatprep.mubr.f32.mxu1 %v26959_v1 }
 0x61e   : > { %13793 = vrot.lane.b32.xlu0 %v24903_v40, %s22399_s28 }
 0x61f   : > { %v25108_v18 = vpop.permute.xlu1 %11278 }
 0x620   : > { %20129 = vmatmul.mubr.msk.f32.gmra.mrb[12].mxu1 %vm4706_vm10, %v25104_v33  ;;  %v25112_v11 = vpop.permute.xlu0 %10845 }
 0x621   : > { %15056 = vrot.lane.b32.xlu1 %v24869_v53, %s22401_s30  ;;  %10121 = vmatprep.mubr.f32.mxu1 %v26959_v1 }
 0x622   : > { %13797 = vrot.lane.b32.xlu0 %v24909_v32, %s22399_s28  ;;  %s27085_s28 = smov 33  }
 0x623   : > { %v25124_v56 = vpop.permute.xlu1 %11695 }
 0x624   : > { %20130 = vmatmul.mubr.msk.f32.gmra.mrb[14].mxu1 %vm4706_vm10, %v25120_v59  ;;  %v25128_v55 = vpop.permute.xlu0 %10849 }
 0x625   : > { %15058 = vrot.lane.b32.xlu1 %v24903_v40, %s22401_s30  ;;  %10192 = vmatprep.mubr.f32.mxu1 %v26959_v1 }
 0x626   : > { %14627 = vrot.lane.b32.xlu0 %v24863_v47, %s22400_s29 }
 0x627   : > { %v25135_v34 = vpop.permute.xlu1 %11697 }
 0x628   : > { %20131 = vmatmul.mubr.msk.f32.vlgmr.msra.gmra.mrb[16].mxu1 %vm4706_vm10, %v25065_v51  ;;  %v25141_v38 = vpop.permute.xlu0 %11266 }
 0x629   : > { %10218 = vmatpush1.msra.mxu1 %v10017_v21  ;;  %8779 = vrot.lane.b32.xlu1 %v24758_v52, %s22396_s19 }
 0x62a   : > { %20853 = vmatprep.subr.mxu1 %v10019_v17  ;;  %14625 = vrot.lane.b32.xlu0 %v24891_v50, %s22400_s29 }
 0x62b   : > { %v11702_v28 = vpop.permute.xlu1 %11701  ;;  %10198 = vmatprep.mubr.f32.mxu1 %v26959_v1 }
 0x62c   : > { %20132 = vmatmul.mubr.msk.f32.gmra.mrb[18].mxu1 %vm4706_vm10, %v25085_v58  ;;  %v25152_v63 = vpop.permute.xlu0 %11264 }
 0x62d   : > { %8777 = vrot.lane.b32.xlu1 %v24809_v9, %s22396_s19  ;;  %10204 = vmatprep.mubr.f32.mxu1 %v26959_v1 }
 0x62e   : > { %14633 = vrot.lane.b32.xlu0 %v24875_v22, %s22400_s29 }
 0x62f   : > { %v11706_v4 = vpop.permute.xlu1 %11705 }
 0x630   : > { %20133 = vmatmul.mubr.msk.f32.gmra.mrb[20].mxu1 %vm4706_vm10, %v25104_v33  ;;  %v25161_v42 = vpop.permute.xlu0 %11272 }
 0x631   : > { %15064 = vrot.lane.b32.xlu1 %v24881_v54, %s22401_s30  ;;  %10210 = vmatprep.mubr.f32.mxu1 %v26959_v1 }
 0x632   : > { %14637 = vrot.lane.b32.xlu0 %v24881_v54, %s22400_s29 }
 0x633   : > { %v12123_v26 = vpop.permute.xlu1 %12122 }
 0x634   : > { %20134 = vmatmul.mubr.msk.f32.gmra.mrb[22].mxu1 %vm4706_vm10, %v25120_v59  ;;  %v25170_v21 = vpop.permute.xlu0 %11276 }
 0x635   : > { %8785 = vrot.lane.b32.xlu1 %v24772_v30, %s22396_s19  ;;  %10281 = vmatprep.mubr.f32.mxu1 %v26959_v1 }
 0x636   : > { %15054 = vrot.lane.b32.xlu0 %v24863_v47, %s22401_s30 }
 0x637   : > { %v12125_v57 = vpop.permute.xlu1 %12124 }
 0x638   : > { %v25178_v5 = vsel %vm4237_vm9, %v12123_v26, %v12125_v57  ;;  %20135 = vmatmul.mubr.msk.f32.vlgmr.msra.gmra.mrb[24].mxu1 %vm4706_vm10, %v25065_v51  ;;  %v25182_v20 = vpop.permute.xlu0 %11693 }
 0x639   : > { %27083 = vst [vmem:[#allocation16_spill] sm:$0xff] %v25178_v5  ;;  %20854 = vmatpush3.msra.mxu1 %v10019_v17  ;;  %15481 = vrot.lane.b32.xlu1 %v24863_v47, %s27077_s13 }
 0x63a   : > { %10436 = vmatprep.subr.mxu1 %v24762_v8  ;;  %15052 = vrot.lane.b32.xlu0 %v24891_v50, %s22401_s30 }
 0x63b   : > { %v12129_v45 = vpop.permute.xlu1 %12128  ;;  %10287 = vmatprep.mubr.f32.mxu1 %v26959_v1 }
 0x63c   : > { %20136 = vmatmul.mubr.msk.f32.gmra.mrb[26].mxu1 %vm4706_vm10, %v25085_v58  ;;  %v25192_v29 = vpop.permute.xlu0 %11691 }
 0x63d   : > { %15479 = vrot.lane.b32.xlu1 %v24891_v50, %s27077_s13  ;;  %10293 = vmatprep.mubr.f32.mxu1 %v26959_v1 }
 0x63e   : > { %15060 = vrot.lane.b32.xlu0 %v24875_v22, %s22401_s30 }
 0x63f   : > { %v12133_v17 = vpop.permute.xlu1 %12132 }
 0x640   : > { %20137 = vmatmul.mubr.msk.f32.gmra.mrb[28].mxu1 %vm4706_vm10, %v25104_v33  ;;  %v25201_v25 = vpop.permute.xlu0 %11699 }
 0x641   : > { %v25205_v49 = vsel %vm3802_vm8, %v25201_v25, %v11702_v28  ;;  %15485 = vrot.lane.b32.xlu1 %v24903_v40, %s27077_s13  ;;  %10299 = vmatprep.mubr.f32.mxu1 %v26959_v1 }
 0x642   : > { %8781 = vrot.lane.b32.xlu0 %v24762_v8, %s22396_s19 }
 0x643   : > { %v25212_v5 = vpop.permute.xlu1 %12569 }
 0x644   : > { %27084 = vst [vmem:[#allocation18_spill] sm:$0xff] %v25212_v5  ;;  %20138 = vmatmul.mubr.msk.f32.gmra.mrb[30].mxu1 %vm4706_vm10, %v25120_v59  ;;  %v11704_v60 = vpop.permute.xlu0 %11703 }
 0x645   : > { %9173 = vrot.lane.b32.xlu1 %v24758_v52, %s27085_s28  ;;  %20855 = vmatprep.mubr.msk.f32.mxu1 %vm4706_vm10, %v25065_v51  ;;  %v25221_v12 = vsel %vm3802_vm8, %v11702_v28, %v11704_v60  ;;  %v25224_v14 = vsel %vm3802_vm8, %v11704_v60, %v11706_v4  ;;  %v25256_v4 = vld [vmem:[%s26840_s7 + $0x80] sm:$0xff] }
 0x646   : > { %15062 = vrot.lane.b32.xlu0 %v24909_v32, %s22401_s30 }
 0x647   : > { %v25228_v5 = vpop.permute.xlu1 %12571 }
 0x648   : > { %27086 = vst [vmem:[#allocation24_spill] sm:$0xff] %v25228_v5  ;;  %20856 = vmatmul.mubr.msk.f32.vlgmr.msra.gmra.mrb[4].mxu1 %vm4706_vm10, %v25085_v58  ;;  %v12121_v3 = vpop.permute.xlu0 %12120 }
 0x649   : > { %10437 = vmatpush1.msra.mxu1 %v24758_v52  ;;  %9171 = vrot.lane.b32.xlu1 %v24809_v9, %s27085_s28  ;;  %v25236_v51 = vsel %vm4237_vm9, %v12121_v3, %v12123_v26  ;;  %v25273_v26 = vld [vmem:[%s26840_s7 + $0x88] sm:$0xff] }
 0x64a   : > { %10525 = vmatprep.subr.mxu1 %v24772_v30  ;;  %8783 = vrot.lane.b32.xlu0 %v24769_v41, %s22396_s19 }
 0x64b   : > { %v25241_v60 = vpop.permute.xlu1 %12575  ;;  %20858 = vmatprep.mubr.msk.f32.mxu1 %vm4706_vm10, %v25104_v33 }
 0x64c   : > { %27087 = vst [vmem:[#allocation20_spill] sm:$0xff] %v25241_v60  ;;  %20859 = vmatmul.mubr.msk.f32.gmra.mrb[6].mxu1 %vm4706_vm10, %v25120_v59  ;;  %v12119_v58 = vpop.permute.xlu0 %12118 }
 0x64d   : > { %v25248_v28 = vsel %vm4237_vm9, %v12119_v58, %v12121_v3  ;;  %15491 = vrot.lane.b32.xlu1 %v24881_v54, %s27077_s13  ;;  %10500 = vmatprep.mubr.f32.mxu1 %v26959_v1 }
 0x64e   : > { %15066 = vrot.lane.b32.xlu0 %v25089_v23, %s22401_s30 }
 0x64f   : > { %v25260_v33 = vpop.permute.xlu1 %12579 }
 0x650   : > { %27088 = vst [vmem:[#allocation22_spill] sm:$0xff] %v25260_v33  ;;  %20147 = vmatmul.mubr.msk.f32.vlgmr.msra.gmra.mrb[8].mxu1 %vm4706_vm10, %v25256_v4  ;;  %v12127_v3 = vpop.permute.xlu0 %12126 }
 0x651   : > { %10526 = vmatpush1.msra.mxu1 %v24769_v41  ;;  %v25266_v59 = vsel %vm4237_vm9, %v12127_v3, %v12129_v45  ;;  %9179 = vrot.lane.b32.xlu1 %v24772_v30, %s27085_s28  ;;  %v25276_v58 = vsel %vm4237_vm9, %v12125_v57, %v12127_v3  ;;  %v25292_v57 = vld [vmem:[%s26840_s7 + $0x90] sm:$0xff] }
 0x652   : > { %10614 = vmatprep.subr.mxu1 %v24789_v24  ;;  %15483 = vrot.lane.b32.xlu0 %v24869_v53, %s27077_s13 }
 0x653   : > { %v25281_v33 = vpop.permute.xlu1 %12963  ;;  %10506 = vmatprep.mubr.f32.mxu1 %v26959_v1 }
 0x654   : > { %27089 = vst [vmem:[#allocation23_spill] sm:$0xff] %v25281_v33  ;;  %20148 = vmatmul.mubr.msk.f32.gmra.mrb[10].mxu1 %vm4706_vm10, %v25273_v26  ;;  %v12131_v60 = vpop.permute.xlu0 %12130 }
 0x655   : > { %9181 = vrot.lane.b32.xlu1 %v24786_v35, %s27085_s28  ;;  %10512 = vmatprep.mubr.f32.mxu1 %v26959_v1  ;;  %v25295_v24 = vsel %vm4237_vm9, %v12129_v45, %v12131_v60  ;;  %v25298_v3 = vsel %vm4237_vm9, %v12131_v60, %v12133_v17  ;;  %v25314_v45 = vld [vmem:[%s26840_s7 + $0x98] sm:$0xff] }
 0x656   : > { %8787 = vrot.lane.b32.xlu0 %v24786_v35, %s22396_s19  ;;  %s22404_s19 = smov (!%p20440_p8), 32  }
 0x657   : > { %v25302_v33 = vpop.permute.xlu1 %12965 }
 0x658   : > { %27090 = vst [vmem:[#allocation28_spill] sm:$0xff] %v25302_v33  ;;  %20149 = vmatmul.mubr.msk.f32.gmra.mrb[12].mxu1 %vm4706_vm10, %v25292_v57  ;;  %v25306_v5 = vpop.permute.xlu0 %12567 }
 0x659   : > { %15910 = vrot.lane.b32.xlu1 %v24869_v53, %s27078_s14  ;;  %10518 = vmatprep.mubr.f32.mxu1 %v26959_v1 }
 0x65a   : > { %15487 = vrot.lane.b32.xlu0 %v24875_v22, %s27077_s13 }
 0x65b   : > { %v25318_v17 = vpop.permute.xlu1 %12969 }
 0x65c   : > { %27091 = vst [vmem:[#allocation25_spill] sm:$0xff] %v25318_v17  ;;  %20150 = vmatmul.mubr.msk.f32.gmra.mrb[14].mxu1 %vm4706_vm10, %v25314_v45  ;;  %v25322_v60 = vpop.permute.xlu0 %12565  ;;  %v22339_v17 = vld [vmem:[#allocation2 + $0x38] sm:$0xff] }
 0x65d   : > { %9572 = vrot.lane.b32.xlu1 %v24758_v52, %s22398_s22  ;;  %10589 = vmatprep.mubr.f32.mxu1 %v26959_v1 }
 0x65e   : > { %9175 = vrot.lane.b32.xlu0 %v24762_v8, %s27085_s28 }
 0x65f   : > { %v25329_v53 = vpop.permute.xlu1 %12973 }
 0x660   : > { %27092 = vst [vmem:[#allocation26_spill] sm:$0xff] %v25329_v53  ;;  %20151 = vmatmul.mubr.msk.f32.vlgmr.msra.gmra.mrb[16].mxu1 %vm4706_vm10, %v25256_v4  ;;  %v25333_v33 = vpop.permute.xlu0 %12573 }
 0x661   : > { %10615 = vmatpush1.msra.mxu1 %v24786_v35  ;;  %9570 = vrot.lane.b32.xlu1 %v24809_v9, %s22398_s22 }
 0x662   : > { %20861 = vmatprep.subr.mxu1 %v22339_v17  ;;  %15489 = vrot.lane.b32.xlu0 %v24909_v32, %s27077_s13 }
 0x663   : > { %v25340_v52 = vpop.permute.xlu1 %13362  ;;  %10595 = vmatprep.mubr.f32.mxu1 %v26959_v1 }
 0x664   : > { %27093 = vst [vmem:[#allocation31_spill] sm:$0xff] %v25340_v52  ;;  %20152 = vmatmul.mubr.msk.f32.gmra.mrb[18].mxu1 %vm4706_vm10, %v25273_v26  ;;  %v25345_v53 = vpop.permute.xlu0 %12577 }
 0x665   : > { %27094 = vst [vmem:[#allocation27_spill] sm:$0xff] %v25345_v53  ;;  %15914 = vrot.lane.b32.xlu1 %v24875_v22, %s27078_s14  ;;  %10601 = vmatprep.mubr.f32.mxu1 %v26959_v1 }
 0x666   : > { %9177 = vrot.lane.b32.xlu0 %v24769_v41, %s27085_s28  ;;  %s22408_s28 = smov (!%p20440_p8), 1  }
 0x667   : > { %v25352_v9 = vpop.permute.xlu1 %13364 }
 0x668   : > { %27095 = vst [vmem:[#allocation29_spill] sm:$0xff] %v25352_v9  ;;  %20153 = vmatmul.mubr.msk.f32.gmra.mrb[20].mxu1 %vm4706_vm10, %v25292_v57  ;;  %v25356_v52 = vpop.permute.xlu0 %12961 }
 0x669   : > { %9578 = vrot.lane.b32.xlu1 %v24772_v30, %s22398_s22  ;;  %10607 = vmatprep.mubr.f32.mxu1 %v26959_v1 }
 0x66a   : > { %15493 = vrot.lane.b32.xlu0 %v25089_v23, %s27077_s13  ;;  %s22407_s13 = smov (!%p20440_p8), 31  }
 0x66b   : > { %v25363_v22 = vpop.permute.xlu1 %13368 }
 0x66c   : > { %20154 = vmatmul.mubr.msk.f32.gmra.mrb[22].mxu1 %vm4706_vm10, %v25314_v45  ;;  %v25367_v53 = vpop.permute.xlu0 %12959 }
 0x66d   : > { %15918 = vrot.lane.b32.xlu1 %v24881_v54, %s27078_s14  ;;  %10678 = vmatprep.mubr.f32.mxu1 %v26959_v1  ;;  %v10854_v54 = vsel %vm2932_vm6, %v25076_v2, %v24971_v37 }
 0x66e   : > { %15908 = vrot.lane.b32.xlu0 %v24863_v47, %s27078_s14  ;;  %v16357_v47 = vld [vmem:[%s26842_s9 + $0x8] sm:$0xff] }
 0x66f   : > { %v25374_v30 = vpop.permute.xlu1 %13372 }
 0x670   : > { %27096 = vst [vmem:[#allocation30_spill] sm:$0xff] %v25374_v30  ;;  %20155 = vmatmul.mubr.msk.f32.vlgmr.msra.gmra.mrb[24].mxu1 %vm4706_vm10, %v25256_v4  ;;  %v25378_v9 = vpop.permute.xlu0 %12967 }
 0x671   : > { %20862 = vmatpush3.msra.mxu1 %v22339_v17  ;;  %15920 = vrot.lane.b32.xlu1 %v25089_v23, %s27078_s14 }
 0x672   : > { %10879 = vmatprep.subr.mxu1 %v10854_v54  ;;  %15906 = vrot.lane.b32.xlu0 %v24891_v50, %s27078_s14  ;;  %v16359_v50 = vld [vmem:[%s26842_s9 + $0x18] sm:$0xff] }
 0x673   : > { %v25390_v30 = vpop.permute.xlu1 %13789  ;;  %10684 = vmatprep.mubr.f32.mxu1 %v26959_v1 }
 0x674   : > { %20156 = vmatmul.mubr.msk.f32.gmra.mrb[26].mxu1 %vm4706_vm10, %v25273_v26  ;;  %v25395_v23 = vpop.permute.xlu0 %12971 }
 0x675   : > { %16367 = vperm.xlu1 %22085, %v16357_v47   ;;  %10690 = vmatprep.mubr.f32.mxu1 %v26959_v1 }
 0x676   : > { %9574 = vrot.lane.b32.xlu0 %v24762_v8, %s22398_s22 }
 0x677   : > { %v25403_v17 = vpop.permute.xlu1 %13791 }
 0x678   : > { %27097 = vst [vmem:[#allocation32_spill] sm:$0xff] %v25403_v17  ;;  %20157 = vmatmul.mubr.msk.f32.gmra.mrb[28].mxu1 %vm4706_vm10, %v25292_v57  ;;  %v25407_v54 = vpop.permute.xlu0 %13360 }
 0x679   : > { %16377 = vperm.xlu1 %22085, %v16359_v50   ;;  %10696 = vmatprep.mubr.f32.mxu1 %v26959_v1  ;;  %v10853_v50 = vsel %vm2932_vm6, %v25096_v43, %v25076_v2  ;;  %v25448_v43 = vld [vmem:[%s26840_s7 + $0xa0] sm:$0xff] }
 0x67a   : > { %15912 = vrot.lane.b32.xlu0 %v24903_v40, %s27078_s14 }
 0x67b   : > { %v25412_v47 = vpop.permute.xlu1 %13795 }
 0x67c   : > { %27098 = vst [vmem:[#allocation34_spill] sm:$0xff] %v25412_v47  ;;  %20158 = vmatmul.mubr.msk.f32.gmra.mrb[30].mxu1 %vm4706_vm10, %v25314_v45  ;;  %v25416_v8 = vpop.permute.xlu0 %13358  ;;  %v10856_v47 = vsel %vm2932_vm6, %v24990_v19, %v25112_v11 }
 0x67d   : > { %20863 = vmatprep.mubr.msk.f32.mxu1 %vm4706_vm10, %v25256_v4 }
 0x67e   : > { %9576 = vrot.lane.b32.xlu0 %v24769_v41, %s22398_s22 }
 0x67f   : > { %v25422_v17 = vpop.permute.xlu1 %13799 }
 0x680   : > { %27099 = vst [vmem:[#allocation33_spill] sm:$0xff] %v25422_v17  ;;  %20864 = vmatmul.mubr.msk.f32.vlgmr.msra.gmra.mrb[4].mxu1 %vm4706_vm10, %v25273_v26  ;;  %v25429_v40 = vpop.permute.xlu0 %13366  ;;  %v10855_v26 = vsel %vm2932_vm6, %v24971_v37, %v24990_v19  ;;  %v16358_v37 = vld [vmem:[%s26842_s9 + $0x10] sm:$0xff] }
 0x681   : > { %10880 = vmatpush1.msra.mxu1 %v10853_v50  ;;  %20866 = vmatprep.mubr.msk.f32.mxu1 %vm4706_vm10, %v25292_v57  ;;  %v20165_v50 = vld [vmem:[%s26840_s7 + $0xb0] sm:$0xff] }
 0x682   : > { %10968 = vmatprep.subr.mxu1 %v10856_v47  ;;  %15916 = vrot.lane.b32.xlu0 %v24909_v32, %s27078_s14  ;;  %v16356_v32 = vld [vmem:[%s26842_s9] sm:$0xff]  ;;  %s22412_s14 = smov (!%p20440_p8), 95  }
 0x683   : > { %v25438_v41 = vpop.permute.xlu1 %14629 }
 0x684   : > { %27100 = vst [vmem:[#allocation36_spill] sm:$0xff] %v25438_v41  ;;  %20867 = vmatmul.mubr.msk.f32.gmra.mrb[6].mxu1 %vm4706_vm10, %v25314_v45  ;;  %v25442_v2 = vpop.permute.xlu0 %13370  ;;  %v20164_v45 = vld [vmem:[%s26840_s7 + $0xa8] sm:$0xff] }
 0x685   : > { %10943 = vmatprep.mubr.f32.mxu1 %v26959_v1 }
 0x686   : > { %9580 = vrot.lane.b32.xlu0 %v24786_v35, %s22398_s22  ;;  %v10858_v35 = vsel %vm2932_vm6, %v25017_v31, %v25128_v55 }
 0x687   : > { %v25452_v4 = vpop.permute.xlu1 %14631 }
 0x688   : > { %27101 = vst [vmem:[#allocation38_spill] sm:$0xff] %v25452_v4  ;;  %20167 = vmatmul.mubr.msk.f32.vlgmr.msra.gmra.mrb[8].mxu1 %vm4706_vm10, %v25448_v43  ;;  %v25462_v57 = vpop.permute.xlu0 %13787 }
 0x689   : > { %10969 = vmatpush1.msra.mxu1 %v10855_v26  ;;  %10949 = vmatprep.mubr.f32.mxu1 %v26959_v1 }
 0x68a   : > { %11057 = vmatprep.subr.mxu1 %v10858_v35  ;;  %16362 = vperm.xlu0 %22084, %v16356_v32   ;;  %v20166_v35 = vld [vmem:[%s26840_s7 + $0xb8] sm:$0xff] }
 0x68b   : > { %v25471_v47 = vpop.permute.xlu1 %14635 }
 0x68c   : > { %27102 = vst [vmem:[#allocation35_spill] sm:$0xff] %v25471_v47  ;;  %20168 = vmatmul.mubr.msk.f32.gmra.mrb[10].mxu1 %vm4706_vm10, %v20164_v45  ;;  %v25477_v19 = vpop.permute.xlu0 %13785 }
 0x68d   : > { %10955 = vmatprep.mubr.f32.mxu1 %v26959_v1 }
 0x68e   : > { %16372 = vperm.xlu0 %22084, %v16358_v37  }
 0x68f   : > { %v25483_v26 = vpop.permute.xlu1 %14639 }
 0x690   : > { %27103 = vst [vmem:[#allocation7_spill] sm:$0xff] %v25483_v26  ;;  %20169 = vmatmul.mubr.msk.f32.gmra.mrb[12].mxu1 %vm4706_vm10, %v20165_v50  ;;  %v25486_v32 = vpop.permute.xlu0 %13793  ;;  %v10857_v26 = vsel %vm2932_vm6, %v25112_v11, %v25017_v31 }
 0x691   : > { %10961 = vmatprep.mubr.f32.mxu1 %v26959_v1 }
 0x693   : > { %v25492_v47 = vpop.permute.xlu1 %15056 }
 0x694   : > { %27104 = vst [vmem:[#allocation37_spill] sm:$0xff] %v25492_v47  ;;  %20170 = vmatmul.mubr.msk.f32.gmra.mrb[14].mxu1 %vm4706_vm10, %v20166_v35  ;;  %v25495_v4 = vpop.permute.xlu0 %13797  ;;  %v10859_v47 = vsel %vm2932_vm6, %v25128_v55, %v25032_v48 }
 0x695   : > { %11032 = vmatprep.mubr.f32.mxu1 %v26959_v1 }
 0x697   : > { %v25498_v37 = vpop.permute.xlu1 %15058 }
 0x698   : > { %27105 = vst [vmem:[#allocation39_spill] sm:$0xff] %v25498_v37  ;;  %20171 = vmatmul.mubr.msk.f32.vlgmr.msra.gmra.mrb[16].mxu1 %vm4706_vm10, %v25448_v43  ;;  %v25505_v41 = vpop.permute.xlu0 %14627 }
 0x699   : > { %11058 = vmatpush1.msra.mxu1 %v10857_v26  ;;  %11038 = vmatprep.mubr.f32.mxu1 %v26959_v1 }
 0x69a   : > { %20869 = vmatprep.subr.mxu1 %v10859_v47 }
 0x69b   : > { %v8780_v17 = vpop.permute.xlu1 %8779 }
 0x69c   : > { %20172 = vmatmul.mubr.msk.f32.gmra.mrb[18].mxu1 %vm4706_vm10, %v20164_v45  ;;  %v25512_v37 = vpop.permute.xlu0 %14625 }
 0x69d   : > { %27106 = vst [vmem:[#allocation40_spill] sm:$0xff] %v25512_v37  ;;  %11044 = vmatprep.mubr.f32.mxu1 %v26959_v1 }
 0x69f   : > { %v8778_v11 = vpop.permute.xlu1 %8777 }
 0x6a0   : > { %20173 = vmatmul.mubr.msk.f32.gmra.mrb[20].mxu1 %vm4706_vm10, %v20165_v50  ;;  %v25516_v31 = vpop.permute.xlu0 %14633 }
 0x6a1   : > { %27107 = vst [vmem:[#allocation41_spill] sm:$0xff] %v25516_v31  ;;  %11050 = vmatprep.mubr.f32.mxu1 %v26959_v1  ;;  %v11281_v31 = vsel %vm3367_vm7, %v25141_v38, %v25055_v13 }
 0x6a3   : > { %v25523_v55 = vpop.permute.xlu1 %15064 }
 0x6a4   : > { %20174 = vmatmul.mubr.msk.f32.gmra.mrb[22].mxu1 %vm4706_vm10, %v20166_v35  ;;  %v25520_v48 = vpop.permute.xlu0 %14637  ;;  %27109 = vst [vmem:[#allocation44_spill] sm:$0xff] %v25523_v55 }
 0x6a5   : > { %27108 = vst [vmem:[#allocation42_spill] sm:$0xff] %v25520_v48  ;;  %11121 = vmatprep.mubr.f32.mxu1 %v26959_v1 }
 0x6a7   : > { %v8786_v55 = vpop.permute.xlu1 %8785 }
 0x6a8   : > { %20175 = vmatmul.mubr.msk.f32.vlgmr.msra.gmra.mrb[24].mxu1 %vm4706_vm10, %v25448_v43  ;;  %v25527_v26 = vpop.permute.xlu0 %15054 }
 0x6a9   : > { %27110 = vst [vmem:[#allocation64_spill] sm:$0xff] %v25527_v26  ;;  %20870 = vmatpush3.msra.mxu1 %v10859_v47  ;;  %11127 = vmatprep.mubr.f32.mxu1 %v26959_v1 }
 0x6aa   : > { %11306 = vmatprep.subr.mxu1 %v11281_v31 }
 0x6ab   : > { %v25541_v47 = vpop.permute.xlu1 %15481 }
 0x6ac   : > { %20176 = vmatmul.mubr.msk.f32.gmra.mrb[26].mxu1 %vm4706_vm10, %v20164_v45  ;;  %v25534_v48 = vpop.permute.xlu0 %15052  ;;  %27113 = vst [vmem:[#allocation45_spill] sm:$0xff] %v25541_v47 }
 0x6ad   : > { %27111 = vst [vmem:[#allocation46_spill] sm:$0xff] %v25534_v48  ;;  %11133 = vmatprep.mubr.f32.mxu1 %v26959_v1  ;;  %v8793_v48 = vsel %vm840_vm2, %v8778_v11, %v8780_v17 }
 0x6b0   : > { %20177 = vmatmul.mubr.msk.f32.gmra.mrb[28].mxu1 %vm4706_vm10, %v20165_v50  ;;  %v25538_v37 = vpop.permute.xlu0 %15060 }
 0x6b1   : > { %27112 = vst [vmem:[#allocation43_spill] sm:$0xff] %v25538_v37  ;;  %11139 = vmatprep.mubr.f32.mxu1 %v26959_v1  ;;  %v11280_v37 = vsel %vm3367_vm7, %v25152_v63, %v25141_v38 }
 0x6b4   : > { %20178 = vmatmul.mubr.msk.f32.gmra.mrb[30].mxu1 %vm4706_vm10, %v20166_v35  ;;  %v8782_v26 = vpop.permute.xlu0 %8781 }
 0x6b5   : > { %v8794_v31 = vsel %vm840_vm2, %v8780_v17, %v8782_v26  ;;  %20871 = vmatprep.mubr.msk.f32.mxu1 %vm4706_vm10, %v25448_v43  ;;  %v11283_v43 = vsel %vm3367_vm7, %v25069_v46, %v25161_v42  ;;  %v25560_v17 = vpop.permute.xlu1 %15479 }
 0x6b6   : > { %8819 = vmatprep.subr.mxu0 %v8794_v31 }
 0x6b7   : > { %8820 = vmatpush1.msra.mxu0 %v8793_v48  ;;  %v11285_v48 = vsel %vm3367_vm7, %v25091_v44, %v25170_v21 }
 0x6b8   : > { %20071 = vmatmul.mubr.msk.f32.vlgmr.msra.gmra.mrb[24].mxu0 %vm4706_vm10, %v24781_v36  ;;  %20872 = vmatmul.mubr.msk.f32.vlgmr.msra.gmra.mrb[4].mxu1 %vm4706_vm10, %v20164_v45  ;;  %v25554_v47 = vpop.permute.xlu0 %15062 }
 0x6b9   : > { %11307 = vmatpush1.msra.mxu1 %v11280_v37  ;;  %8889 = vmatprep.mubr.f32.mxu0 %v26959_v1  ;;  %v25573_v37 = vld [vmem:[%s26840_s7 + $0xc0] sm:$0xff] }
 0x6ba   : > { %11395 = vmatprep.subr.mxu1 %v11283_v43  ;;  %20874 = vmatprep.mubr.msk.f32.mxu1 %vm4706_vm10, %v20165_v50  ;;  %v25575_v50 = vpop.permute.xlu1 %15485 }
 0x6bc   : > { %20072 = vmatmul.mubr.msk.f32.gmra.mrb[26].mxu0 %vm4706_vm10, %v24938_v62  ;;  %20875 = vmatmul.mubr.msk.f32.gmra.mrb[6].mxu1 %vm4706_vm10, %v20166_v35  ;;  %v8784_v38 = vpop.permute.xlu0 %8783  ;;  %v11282_v35 = vsel %vm3367_vm7, %v25055_v13, %v25069_v46  ;;  %v25607_v46 = vld [vmem:[%s26840_s7 + $0xd0] sm:$0xff] }
 0x6bd   : > { %v8795_v63 = vsel %vm840_vm2, %v8782_v26, %v8784_v38  ;;  %v8796_v45 = vsel %vm840_vm2, %v8784_v38, %v8786_v55  ;;  %8895 = vmatprep.mubr.f32.mxu0 %v26959_v1  ;;  %11370 = vmatprep.mubr.f32.mxu1 %v26959_v1  ;;  %v25593_v26 = vld [vmem:[%s26840_s7 + $0xc8] sm:$0xff] }
 0x6be   : > { %8908 = vmatprep.subr.mxu0 %v8796_v45  ;;  %v9174_v31 = vpop.permute.xlu1 %9173  ;;  %v25621_v45 = vld [vmem:[%s26840_s7 + $0xd8] sm:$0xff] }
 0x6bf   : > { %8909 = vmatpush1.msra.mxu0 %v8795_v63 }
 0x6c0   : > { %20073 = vmatmul.mubr.msk.f32.gmra.mrb[28].mxu0 %vm4706_vm10, %v24945_v0  ;;  %20187 = vmatmul.mubr.msk.f32.vlgmr.msra.gmra.mrb[8].mxu1 %vm4706_vm10, %v25573_v37  ;;  %v25584_v11 = vpop.permute.xlu0 %15066 }
 0x6c1   : > { %11396 = vmatpush1.msra.mxu1 %v11282_v35  ;;  %8901 = vmatprep.mubr.f32.mxu0 %v26959_v1 }
 0x6c2   : > { %11484 = vmatprep.subr.mxu1 %v11285_v48  ;;  %11376 = vmatprep.mubr.f32.mxu1 %v26959_v1  ;;  %v9172_v35 = vpop.permute.xlu1 %9171 }
 0x6c4   : > { %20074 = vmatmul.mubr.msk.f32.gmra.mrb[30].mxu0 %vm4706_vm10, %v24962_v27  ;;  %20188 = vmatmul.mubr.msk.f32.gmra.mrb[10].mxu1 %vm4706_vm10, %v25593_v26  ;;  %v25600_v13 = vpop.permute.xlu0 %15483 }
 0x6c5   : > { %8972 = vmatprep.mubr.f32.mxu0 %v26959_v1  ;;  %11382 = vmatprep.mubr.f32.mxu1 %v26959_v1 }
 0x6c8   : > { %20075 = vmatmul.mubr.msk.f32.vlgmr.msra.gmra.mrb[32].mxu0 %vm4706_vm10, %v24781_v36  ;;  %20189 = vmatmul.mubr.msk.f32.gmra.mrb[12].mxu1 %vm4706_vm10, %v25607_v46  ;;  %v8788_v43 = vpop.permute.xlu0 %8787 }
 0x6c9   : > { %v8797_v38 = vsel %vm840_vm2, %v8786_v55, %v8788_v43  ;;  %v8798_v63 = vsel %vm840_vm2, %v8788_v43, %v24929_v15  ;;  %8978 = vmatprep.mubr.f32.mxu0 %v26959_v1  ;;  %11388 = vmatprep.mubr.f32.mxu1 %v26959_v1  ;;  %v11284_v15 = vsel %vm3367_vm7, %v25161_v42, %v25091_v44 }
 0x6ca   : > { %8997 = vmatprep.subr.mxu0 %v8798_v63  ;;  %v11286_v43 = vsel %vm3367_vm7, %v25170_v21, %v25108_v18  ;;  %v25643_v63 = vpop.permute.xlu1 %15491  ;;  %v9187_v18 = vsel %vm1243_vm3, %v9172_v35, %v9174_v31 }
 0x6cb   : > { %8998 = vmatpush1.msra.mxu0 %v8797_v38 }
 0x6cc   : > { %20076 = vmatmul.mubr.msk.f32.gmra.mrb[34].mxu0 %vm4706_vm10, %v24938_v62  ;;  %20190 = vmatmul.mubr.msk.f32.gmra.mrb[14].mxu1 %vm4706_vm10, %v25621_v45  ;;  %v25627_v55 = vpop.permute.xlu0 %15487 }
 0x6cd   : > { %8984 = vmatprep.mubr.f32.mxu0 %v26959_v1  ;;  %11459 = vmatprep.mubr.f32.mxu1 %v26959_v1 }
 0x6ce   : > { %v9180_v42 = vpop.permute.xlu1 %9179 }
 0x6d0   : > { %20077 = vmatmul.mubr.msk.f32.gmra.mrb[36].mxu0 %vm4706_vm10, %v24945_v0  ;;  %20191 = vmatmul.mubr.msk.f32.vlgmr.msra.gmra.mrb[16].mxu1 %vm4706_vm10, %v25573_v37  ;;  %v9176_v48 = vpop.permute.xlu0 %9175 }
 0x6d1   : > { %11485 = vmatpush1.msra.mxu1 %v11284_v15  ;;  %v9188_v38 = vsel %vm1243_vm3, %v9174_v31, %v9176_v48  ;;  %8990 = vmatprep.mubr.f32.mxu0 %v26959_v1 }
 0x6d2   : > { %20877 = vmatprep.subr.mxu1 %v11286_v43  ;;  %9213 = vmatprep.subr.mxu0 %v9188_v38  ;;  %v11710_v38 = vsel %vm3802_vm8, %v25135_v34, %v25201_v25  ;;  %v25729_v25 = vld [vmem:[%s26840_s7 + $0xe0] sm:$0xff] }
 0x6d3   : > { %11465 = vmatprep.mubr.f32.mxu1 %v26959_v1 }
 0x6d4   : > { %20078 = vmatmul.mubr.msk.f32.gmra.mrb[38].mxu0 %vm4706_vm10, %v24962_v27  ;;  %20192 = vmatmul.mubr.msk.f32.gmra.mrb[18].mxu1 %vm4706_vm10, %v25593_v26  ;;  %v25650_v44 = vpop.permute.xlu0 %15489 }
 0x6d5   : > { %9061 = vmatprep.mubr.f32.mxu0 %v26959_v1  ;;  %11471 = vmatprep.mubr.f32.mxu1 %v26959_v1 }
 0x6d8   : > { %20079 = vmatmul.mubr.msk.f32.vlgmr.msra.gmra.mrb[40].mxu0 %vm4706_vm10, %v24781_v36  ;;  %20193 = vmatmul.mubr.msk.f32.gmra.mrb[20].mxu1 %vm4706_vm10, %v25607_v46  ;;  %v9178_v21 = vpop.permute.xlu0 %9177  ;;  %v11708_v36 = vsel %vm3802_vm8, %v25182_v20, %v25124_v56 }
 0x6d9   : > { %9214 = vmatpush1.msra.mxu0 %v9187_v18  ;;  %v9190_v15 = vsel %vm1243_vm3, %v9178_v21, %v9180_v42  ;;  %9067 = vmatprep.mubr.f32.mxu0 %v26959_v1  ;;  %v9189_v31 = vsel %vm1243_vm3, %v9176_v48, %v9178_v21 }
 0x6da   : > { %9302 = vmatprep.subr.mxu0 %v9190_v15  ;;  %11477 = vmatprep.mubr.f32.mxu1 %v26959_v1 }
 0x6dc   : > { %20080 = vmatmul.mubr.msk.f32.gmra.mrb[42].mxu0 %vm4706_vm10, %v24938_v62  ;;  %20194 = vmatmul.mubr.msk.f32.gmra.mrb[22].mxu1 %vm4706_vm10, %v25621_v45  ;;  %v25677_v62 = vpop.permute.xlu0 %15493 }
 0x6dd   : > { %9073 = vmatprep.mubr.f32.mxu0 %v26959_v1  ;;  %11548 = vmatprep.mubr.f32.mxu1 %v26959_v1 }
 0x6e0   : > { %20081 = vmatmul.mubr.msk.f32.gmra.mrb[44].mxu0 %vm4706_vm10, %v24945_v0  ;;  %20195 = vmatmul.mubr.msk.f32.vlgmr.msra.gmra.mrb[24].mxu1 %vm4706_vm10, %v25573_v37  ;;  %v9182_v0 = vpop.permute.xlu1 %9181  ;;  %v25693_v35 = vpop.permute.xlu0 %15908 }
 0x6e1   : > { %20878 = vmatpush3.msra.mxu1 %v11286_v43  ;;  %9079 = vmatprep.mubr.f32.mxu0 %v26959_v1 }
 0x6e2   : > { %11733 = vmatprep.subr.mxu1 %v11708_v36  ;;  %11554 = vmatprep.mubr.f32.mxu1 %v26959_v1 }
 0x6e4   : > { %20082 = vmatmul.mubr.msk.f32.gmra.mrb[46].mxu0 %vm4706_vm10, %v24962_v27  ;;  %20196 = vmatmul.mubr.msk.f32.gmra.mrb[26].mxu1 %vm4706_vm10, %v25593_v26  ;;  %v9192_v27 = vsel %vm1243_vm3, %v9182_v0, %v24951_v10  ;;  %v11707_v10 = vsel %vm3802_vm8, %v25192_v29, %v25182_v20  ;;  %v25706_v48 = vpop.permute.xlu1 %15910  ;;  %v25708_v43 = vpop.permute.xlu0 %15906 }
 0x6e5   : > { %9277 = vmatprep.mubr.f32.mxu0 %v26959_v1  ;;  %11560 = vmatprep.mubr.f32.mxu1 %v26959_v1 }
 0x6e8   : > { %20087 = vmatmul.mubr.msk.f32.vlgmr.msra.gmra.mrb[24].mxu0 %vm4706_vm10, %v24969_v39  ;;  %20197 = vmatmul.mubr.msk.f32.gmra.mrb[28].mxu1 %vm4706_vm10, %v25607_v46  ;;  %v9573_v29 = vpop.permute.xlu1 %9572  ;;  %v9575_v20 = vpop.permute.xlu0 %9574 }
 0x6e9   : > { %9303 = vmatpush1.msra.mxu0 %v9189_v31  ;;  %9283 = vmatprep.mubr.f32.mxu0 %v26959_v1  ;;  %v27115_v31 = vld [vmem:[#allocation17_spill] sm:$0xff] }
 0x6ea   : > { %9391 = vmatprep.subr.mxu0 %v9192_v27  ;;  %11566 = vmatprep.mubr.f32.mxu1 %v26959_v1 }
 0x6ec   : > { %20088 = vmatmul.mubr.msk.f32.gmra.mrb[26].mxu0 %vm4706_vm10, %v24986_v6  ;;  %20198 = vmatmul.mubr.msk.f32.gmra.mrb[30].mxu1 %vm4706_vm10, %v25621_v45  ;;  %v9571_v18 = vpop.permute.xlu1 %9570 }
 0x6ed   : > { %9289 = vmatprep.mubr.f32.mxu0 %v26959_v1  ;;  %20879 = vmatprep.mubr.msk.f32.mxu1 %vm4706_vm10, %v25573_v37  ;;  %v9191_v37 = vsel %vm1243_vm3, %v9180_v42, %v9182_v0  ;;  %v9586_v15 = vsel %vm1650_vm4, %v9571_v18, %v9573_v29  ;;  %v27121_v18 = vld [vmem:[#allocation27_spill] sm:$0xff] }
 0x6f0   : > { %20089 = vmatmul.mubr.msk.f32.gmra.mrb[28].mxu0 %vm4706_vm10, %v24997_v7  ;;  %20880 = vmatmul.mubr.msk.f32.vlgmr.msra.gmra.mrb[4].mxu1 %vm4706_vm10, %v25593_v26  ;;  %v11709_v26 = vsel %vm3802_vm8, %v25124_v56, %v25135_v34  ;;  %v25757_v56 = vld [vmem:[%s26840_s7 + $0xf0] sm:$0xff]  ;;  %v20206_v34 = vld [vmem:[%s26840_s7 + $0xf8] sm:$0xff]  ;;  %v25770_v42 = vpop.permute.xlu1 %15914 }
 0x6f1   : > { %11734 = vmatpush1.msra.mxu1 %v11707_v10  ;;  %9295 = vmatprep.mubr.f32.mxu0 %v26959_v1  ;;  %v22340_v10 = vld [vmem:[%s26840_s7 + $0x48] sm:$0xff] }
 0x6f2   : > { %11822 = vmatprep.subr.mxu1 %v11710_v38  ;;  %20882 = vmatprep.mubr.msk.f32.mxu1 %vm4706_vm10, %v25607_v46  ;;  %v9587_v46 = vsel %vm1650_vm4, %v9573_v29, %v9575_v20  ;;  %v22341_v38 = vld [vmem:[%s26840_s7 + $0x58] sm:$0xff] }
 0x6f3   : > { %v20226_v29 = vld [vmem:[%s26840_s7 + $0x118] sm:$0xff] }
 0x6f4   : > { %20090 = vmatmul.mubr.msk.f32.gmra.mrb[30].mxu0 %vm4706_vm10, %v25006_v16  ;;  %20883 = vmatmul.mubr.msk.f32.gmra.mrb[6].mxu1 %vm4706_vm10, %v25621_v45  ;;  %v25743_v45 = vld [vmem:[%s26840_s7 + $0xe8] sm:$0xff]  ;;  %v9579_v36 = vpop.permute.xlu1 %9578 }
 0x6f5   : > { %9366 = vmatprep.mubr.f32.mxu0 %v26959_v1  ;;  %11797 = vmatprep.mubr.f32.mxu1 %v26959_v1 }
 0x6f8   : > { %20091 = vmatmul.mubr.msk.f32.vlgmr.msra.gmra.mrb[32].mxu0 %vm4706_vm10, %v24969_v39  ;;  %20207 = vmatmul.mubr.msk.f32.vlgmr.msra.gmra.mrb[8].mxu1 %vm4706_vm10, %v25729_v25 }
 0x6f9   : > { %9392 = vmatpush1.msra.mxu0 %v9191_v37  ;;  %11823 = vmatpush1.msra.mxu1 %v11709_v26  ;;  %v12581_v26 = vsel %vm840_vm2, %v25322_v60, %v25306_v5 }
 0x6fa   : > { %9612 = vmatprep.subr.mxu0 %v9587_v46  ;;  %11911 = vmatprep.subr.mxu1 %v25221_v12  ;;  %v25759_v12 = vpop.permute.xlu0 %15912 }
 0x6fb   : > { %9372 = vmatprep.mubr.f32.mxu0 %v26959_v1  ;;  %11803 = vmatprep.mubr.f32.mxu1 %v26959_v1 }
 0x6fc   : > { %20092 = vmatmul.mubr.msk.f32.gmra.mrb[34].mxu0 %vm4706_vm10, %v24986_v6  ;;  %20208 = vmatmul.mubr.msk.f32.gmra.mrb[10].mxu1 %vm4706_vm10, %v25743_v45 }
 0x6fd   : > { %9378 = vmatprep.mubr.f32.mxu0 %v26959_v1  ;;  %11809 = vmatprep.mubr.f32.mxu1 %v26959_v1 }
 0x6fe   : > { %v9577_v21 = vpop.permute.xlu0 %9576 }
 0x6ff   : > { %v9589_v0 = vsel %vm1650_vm4, %v9577_v21, %v9579_v36 }
 0x700   : > { %20093 = vmatmul.mubr.msk.f32.gmra.mrb[36].mxu0 %vm4706_vm10, %v24997_v7  ;;  %20209 = vmatmul.mubr.msk.f32.gmra.mrb[12].mxu1 %vm4706_vm10, %v25757_v56 }
 0x701   : > { %9384 = vmatprep.mubr.f32.mxu0 %v26959_v1  ;;  %11815 = vmatprep.mubr.f32.mxu1 %v26959_v1 }
 0x704   : > { %20094 = vmatmul.mubr.msk.f32.gmra.mrb[38].mxu0 %vm4706_vm10, %v25006_v16  ;;  %20210 = vmatmul.mubr.msk.f32.gmra.mrb[14].mxu1 %vm4706_vm10, %v20206_v34 }
 0x705   : > { %9455 = vmatprep.mubr.f32.mxu0 %v26959_v1  ;;  %11886 = vmatprep.mubr.f32.mxu1 %v26959_v1 }
 0x708   : > { %20095 = vmatmul.mubr.msk.f32.vlgmr.msra.gmra.mrb[40].mxu0 %vm4706_vm10, %v24969_v39  ;;  %20211 = vmatmul.mubr.msk.f32.vlgmr.msra.gmra.mrb[16].mxu1 %vm4706_vm10, %v25729_v25 }
 0x709   : > { %9613 = vmatpush1.msra.mxu0 %v9586_v15  ;;  %11912 = vmatpush1.msra.mxu1 %v25205_v49  ;;  %v25793_v49 = vpop.permute.xlu0 %15916  ;;  %v20246_v15 = vld [vmem:[%s26841_s8 + $0x38] sm:$0xff] }
 0x70a   : > { %9701 = vmatprep.subr.mxu0 %v9589_v0  ;;  %20885 = vmatprep.subr.mxu1 %v25224_v14 }
 0x70b   : > { %9461 = vmatprep.mubr.f32.mxu0 %v26959_v1  ;;  %11892 = vmatprep.mubr.f32.mxu1 %v26959_v1 }
 0x70c   : > { %20096 = vmatmul.mubr.msk.f32.gmra.mrb[42].mxu0 %vm4706_vm10, %v24986_v6  ;;  %20212 = vmatmul.mubr.msk.f32.gmra.mrb[18].mxu1 %vm4706_vm10, %v25743_v45  ;;  %v9588_v6 = vsel %vm1650_vm4, %v9575_v20, %v9577_v21  ;;  %v22343_v20 = vld [vmem:[%s26840_s7 + $0x50] sm:$0xff] }
 0x70d   : > { %9467 = vmatprep.mubr.f32.mxu0 %v26959_v1  ;;  %11898 = vmatprep.mubr.f32.mxu1 %v26959_v1  ;;  %v9581_v39 = vpop.permute.xlu0 %9580  ;;  %v20245_v21 = vld [vmem:[%s26841_s8 + $0x30] sm:$0xff] }
 0x70e   : > { %v9590_v27 = vsel %vm1650_vm4, %v9579_v36, %v9581_v39  ;;  %v27123_v36 = vld [vmem:[#allocation22_spill] sm:$0xff] }
 0x70f   : > { %v12587_v0 = vsel %vm840_vm2, %v27121_v18, %v27123_v36 }
 0x710   : > { %20097 = vmatmul.mubr.msk.f32.gmra.mrb[44].mxu0 %vm4706_vm10, %v24997_v7  ;;  %20213 = vmatmul.mubr.msk.f32.gmra.mrb[20].mxu1 %vm4706_vm10, %v25757_v56  ;;  %v27114_v7 = vld [vmem:[#allocation14_spill] sm:$0xff] }
 0x711   : > { %9473 = vmatprep.mubr.f32.mxu0 %v26959_v1  ;;  %11904 = vmatprep.mubr.f32.mxu1 %v26959_v1 }
 0x714   : > { %20098 = vmatmul.mubr.msk.f32.gmra.mrb[46].mxu0 %vm4706_vm10, %v25006_v16  ;;  %20214 = vmatmul.mubr.msk.f32.gmra.mrb[22].mxu1 %vm4706_vm10, %v20206_v34  ;;  %v9591_v16 = vsel %vm1650_vm4, %v9581_v39, %v27114_v7  ;;  %v12975_v7 = vsel %vm1243_vm3, %v25367_v53, %v25356_v52  ;;  %v27126_v53 = vld [vmem:[#allocation25_spill] sm:$0xff] }
 0x715   : > { %9676 = vmatprep.mubr.f32.mxu0 %v26959_v1  ;;  %11975 = vmatprep.mubr.f32.mxu1 %v26959_v1 }
 0x718   : > { %20107 = vmatmul.mubr.msk.f32.vlgmr.msra.gmra.mrb[24].mxu0 %vm4706_vm10, %v25013_v61  ;;  %20215 = vmatmul.mubr.msk.f32.vlgmr.msra.gmra.mrb[24].mxu1 %vm4706_vm10, %v25729_v25 }
 0x719   : > { %9702 = vmatpush1.msra.mxu0 %v9588_v6  ;;  %20886 = vmatpush3.msra.mxu1 %v25224_v14  ;;  %v27116_v14 = vld [vmem:[#allocation19_spill] sm:$0xff] }
 0x71a   : > { %9790 = vmatprep.subr.mxu0 %v9591_v16  ;;  %12160 = vmatprep.subr.mxu1 %v25236_v51  ;;  %v27117_v51 = vld [vmem:[#allocation21_spill] sm:$0xff]  ;;  %v27124_v6 = vld [vmem:[#allocation23_spill] sm:$0xff]  ;;  %v27125_v16 = vld [vmem:[#allocation28_spill] sm:$0xff] }
 0x71b   : > { %9682 = vmatprep.mubr.f32.mxu0 %v26959_v1  ;;  %11981 = vmatprep.mubr.f32.mxu1 %v26959_v1 }
 0x71c   : > { %20108 = vmatmul.mubr.msk.f32.gmra.mrb[26].mxu0 %vm4706_vm10, %v27115_v31  ;;  %20216 = vmatmul.mubr.msk.f32.gmra.mrb[26].mxu1 %vm4706_vm10, %v25743_v45  ;;  %v12978_v31 = vsel %vm1243_vm3, %v27125_v16, %v25378_v9 }
 0x71d   : > { %9688 = vmatprep.mubr.f32.mxu0 %v26959_v1  ;;  %11987 = vmatprep.mubr.f32.mxu1 %v26959_v1 }
 0x720   : > { %20109 = vmatmul.mubr.msk.f32.gmra.mrb[28].mxu0 %vm4706_vm10, %v27116_v14  ;;  %20217 = vmatmul.mubr.msk.f32.gmra.mrb[28].mxu1 %vm4706_vm10, %v25757_v56 }
 0x721   : > { %9694 = vmatprep.mubr.f32.mxu0 %v26959_v1  ;;  %11993 = vmatprep.mubr.f32.mxu1 %v26959_v1 }
 0x724   : > { %20110 = vmatmul.mubr.msk.f32.gmra.mrb[30].mxu0 %vm4706_vm10, %v27117_v51  ;;  %20218 = vmatmul.mubr.msk.f32.gmra.mrb[30].mxu1 %vm4706_vm10, %v20206_v34  ;;  %v12977_v51 = vsel %vm1243_vm3, %v27124_v6, %v27125_v16  ;;  %v20321_v16 = vld [vmem:[%s26841_s8 + $0x90] sm:$0xff] }
 0x725   : > { %9765 = vmatprep.mubr.f32.mxu0 %v26959_v1  ;;  %20887 = vmatprep.mubr.msk.f32.mxu1 %vm4706_vm10, %v25729_v25  ;;  %v20225_v25 = vld [vmem:[%s26840_s7 + $0x110] sm:$0xff] }
 0x728   : > { %20111 = vmatmul.mubr.msk.f32.vlgmr.msra.gmra.mrb[32].mxu0 %vm4706_vm10, %v25013_v61  ;;  %20888 = vmatmul.mubr.msk.f32.vlgmr.msra.gmra.mrb[4].mxu1 %vm4706_vm10, %v25743_v45  ;;  %v20223_v61 = vld [vmem:[%s26840_s7 + $0x100] sm:$0xff] }
 0x729   : > { %9791 = vmatpush1.msra.mxu0 %v9590_v27  ;;  %12161 = vmatpush1.msra.mxu1 %v25248_v28  ;;  %v27118_v28 = vld [vmem:[#allocation16_spill] sm:$0xff]  ;;  %v20243_v45 = vld [vmem:[%s26841_s8 + $0x20] sm:$0xff] }
 0x72a   : > { %12249 = vmatprep.subr.mxu1 %v25276_v58  ;;  %20890 = vmatprep.mubr.msk.f32.mxu1 %vm4706_vm10, %v25757_v56  ;;  %v20224_v58 = vld [vmem:[%s26840_s7 + $0x108] sm:$0xff] }
 0x72b   : > { %9771 = vmatprep.mubr.f32.mxu0 %v26959_v1  ;;  %v12541_v27 = vld [vmem:[%s26841_s8 + $0x8] sm:$0xff] }
 0x72c   : > { %20891 = vmatmul.mubr.msk.f32.gmra.mrb[6].mxu1 %vm4706_vm10, %v20206_v34  ;;  %20112 = vmatmul.mubr.msk.f32.gmra.mrb[34].mxu0 %vm4706_vm10, %v22340_v10  ;;  %v20244_v34 = vld [vmem:[%s26841_s8 + $0x28] sm:$0xff] }
 0x72d   : > { %12224 = vmatprep.mubr.f32.mxu1 %v26959_v1  ;;  %9777 = vmatprep.mubr.f32.mxu0 %v26959_v1 }
 0x730   : > { %20227 = vmatmul.mubr.msk.f32.vlgmr.msra.gmra.mrb[8].mxu1 %vm4706_vm10, %v20223_v61  ;;  %20113 = vmatmul.mubr.msk.f32.gmra.mrb[36].mxu0 %vm4706_vm10, %v27116_v14  ;;  %v12540_v14 = vld [vmem:[%s26841_s8] sm:$0xff] }
 0x731   : > { %12250 = vmatpush1.msra.mxu1 %v27118_v28  ;;  %12230 = vmatprep.mubr.f32.mxu1 %v26959_v1  ;;  %v27127_v28 = vld [vmem:[#allocation26_spill] sm:$0xff] }
 0x732   : > { %12338 = vmatprep.subr.mxu1 %v25295_v24  ;;  %9783 = vmatprep.mubr.f32.mxu0 %v26959_v1  ;;  %v22342_v24 = vld [vmem:[%s26840_s7 + $0x40] sm:$0xff] }
 0x734   : > { %20228 = vmatmul.mubr.msk.f32.gmra.mrb[10].mxu1 %vm4706_vm10, %v20224_v58  ;;  %20114 = vmatmul.mubr.msk.f32.gmra.mrb[38].mxu0 %vm4706_vm10, %v22341_v38 }
 0x735   : > { %12236 = vmatprep.mubr.f32.mxu1 %v26959_v1  ;;  %9854 = vmatprep.mubr.f32.mxu0 %v26959_v1 }
 0x738   : > { %20229 = vmatmul.mubr.msk.f32.gmra.mrb[12].mxu1 %vm4706_vm10, %v20225_v25  ;;  %20115 = vmatmul.mubr.msk.f32.vlgmr.msra.gmra.mrb[40].mxu0 %vm4706_vm10, %v22342_v24  ;;  %v27129_v24 = vld [vmem:[#allocation29_spill] sm:$0xff] }
 0x739   : > { %12242 = vmatprep.mubr.f32.mxu1 %v26959_v1  ;;  %9860 = vmatprep.mubr.f32.mxu0 %v26959_v1 }
 0x73c   : > { %20230 = vmatmul.mubr.msk.f32.gmra.mrb[14].mxu1 %vm4706_vm10, %v20226_v29  ;;  %20116 = vmatmul.mubr.msk.f32.gmra.mrb[42].mxu0 %vm4706_vm10, %v22340_v10  ;;  %v12542_v10 = vld [vmem:[%s26841_s8 + $0x10] sm:$0xff] }
 0x73d   : > { %12313 = vmatprep.mubr.f32.mxu1 %v26959_v1  ;;  %9866 = vmatprep.mubr.f32.mxu0 %v26959_v1 }
 0x740   : > { %20231 = vmatmul.mubr.msk.f32.vlgmr.msra.gmra.mrb[16].mxu1 %vm4706_vm10, %v20223_v61  ;;  %20117 = vmatmul.mubr.msk.f32.gmra.mrb[44].mxu0 %vm4706_vm10, %v22343_v20  ;;  %v20279_v20 = vld [vmem:[%s26841_s8 + $0x40] sm:$0xff] }
 0x741   : > { %12339 = vmatpush1.msra.mxu1 %v25266_v59  ;;  %12319 = vmatprep.mubr.f32.mxu1 %v26959_v1  ;;  %v27119_v59 = vld [vmem:[#allocation18_spill] sm:$0xff] }
 0x742   : > { %20893 = vmatprep.subr.mxu1 %v25298_v3  ;;  %9872 = vmatprep.mubr.f32.mxu0 %v26959_v1  ;;  %v12582_v37 = vsel %vm840_vm2, %v25306_v5, %v27119_v59  ;;  %v27122_v5 = vld [vmem:[#allocation20_spill] sm:$0xff] }
 0x743   : > { %v12586_v60 = vsel %vm840_vm2, %v27122_v5, %v27121_v18  ;;  %v12585_v39 = vsel %vm840_vm2, %v25333_v33, %v27122_v5  ;;  %v20299_v5 = vld [vmem:[%s26841_s8 + $0x60] sm:$0xff] }
 0x744   : > { %20232 = vmatmul.mubr.msk.f32.gmra.mrb[18].mxu1 %vm4706_vm10, %v20224_v58  ;;  %20118 = vmatmul.mubr.msk.f32.gmra.mrb[46].mxu0 %vm4706_vm10, %v22341_v38  ;;  %v12979_v38 = vsel %vm1243_vm3, %v25378_v9, %v27126_v53 }
 0x745   : > { %12325 = vmatprep.mubr.f32.mxu1 %v26959_v1 }
 0x748   : > { %20233 = vmatmul.mubr.msk.f32.gmra.mrb[20].mxu1 %vm4706_vm10, %v20225_v25 }
 0x749   : > { %12331 = vmatprep.mubr.f32.mxu1 %v26959_v1 }
 0x74c   : > { %20234 = vmatmul.mubr.msk.f32.gmra.mrb[22].mxu1 %vm4706_vm10, %v20226_v29 }
 0x74d   : > { %12402 = vmatprep.mubr.f32.mxu1 %v26959_v1 }
 0x750   : > { %20235 = vmatmul.mubr.msk.f32.vlgmr.msra.gmra.mrb[24].mxu1 %vm4706_vm10, %v20223_v61 }
 0x751   : > { %20894 = vmatpush3.msra.mxu1 %v25298_v3  ;;  %12408 = vmatprep.mubr.f32.mxu1 %v26959_v1  ;;  %v27120_v3 = vld [vmem:[#allocation24_spill] sm:$0xff] }
 0x752   : > { %12607 = vmatprep.subr.mxu1 %v12582_v37  ;;  %v12584_v46 = vsel %vm840_vm2, %v27120_v3, %v25333_v33  ;;  %v12583_v56 = vsel %vm840_vm2, %v27119_v59, %v27120_v3  ;;  %v12976_v33 = vsel %vm1243_vm3, %v25356_v52, %v27124_v6  ;;  %v12980_v52 = vsel %vm1243_vm3, %v27126_v53, %v25395_v23  ;;  %v20280_v59 = vld [vmem:[%s26841_s8 + $0x48] sm:$0xff]  ;;  %v20281_v37 = vld [vmem:[%s26841_s8 + $0x50] sm:$0xff]  ;;  %v27130_v3 = vld [vmem:[#allocation30_spill] sm:$0xff] }
 0x753   : > { %v20320_v6 = vld [vmem:[%s26841_s8 + $0x88] sm:$0xff]  ;;  %v22350_v53 = vld [vmem:[#allocation4 + $0x38] sm:$0xff] }
 0x754   : > { %20236 = vmatmul.mubr.msk.f32.gmra.mrb[26].mxu1 %vm4706_vm10, %v20224_v58 }
 0x755   : > { %12414 = vmatprep.mubr.f32.mxu1 %v26959_v1 }
 0x758   : > { %20237 = vmatmul.mubr.msk.f32.gmra.mrb[28].mxu1 %vm4706_vm10, %v20225_v25 }
 0x759   : > { %12420 = vmatprep.mubr.f32.mxu1 %v26959_v1 }
 0x75c   : > { %20238 = vmatmul.mubr.msk.f32.gmra.mrb[30].mxu1 %vm4706_vm10, %v20226_v29 }
 0x75d   : > { %20895 = vmatprep.mubr.msk.f32.mxu1 %vm4706_vm10, %v20223_v61  ;;  %v12543_v61 = vld [vmem:[%s26841_s8 + $0x18] sm:$0xff] }
 0x760   : > { %20896 = vmatmul.mubr.msk.f32.vlgmr.msra.gmra.mrb[4].mxu1 %vm4706_vm10, %v20224_v58  ;;  %v12981_v58 = vsel %vm1243_vm3, %v25395_v23, %v27127_v28  ;;  %v27128_v23 = vld [vmem:[#allocation31_spill] sm:$0xff]  ;;  %v27137_v28 = vld [vmem:[#allocation38_spill] sm:$0xff] }
 0x761   : > { %20898 = vmatprep.mubr.msk.f32.mxu1 %vm4706_vm10, %v20225_v25  ;;  %12608 = vmatpush1.msra.mxu1 %v12581_v26  ;;  %v13375_v9 = vsel %vm1650_vm4, %v25407_v54, %v27128_v23  ;;  %v13374_v25 = vsel %vm1650_vm4, %v25416_v8, %v25407_v54  ;;  %v13379_v54 = vsel %vm1650_vm4, %v25363_v22, %v25442_v2  ;;  %v20282_v26 = vld [vmem:[%s26841_s8 + $0x58] sm:$0xff] }
 0x762   : > { %12696 = vmatprep.subr.mxu1 %v12584_v46  ;;  %v13376_v8 = vsel %vm1650_vm4, %v27128_v23, %v27129_v24  ;;  %v13380_v46 = vsel %vm1650_vm4, %v25442_v2, %v27130_v3  ;;  %v27131_v2 = vld [vmem:[#allocation32_spill] sm:$0xff]  ;;  %v27138_v23 = vld [vmem:[#allocation42_spill] sm:$0xff] }
 0x763   : > { %v13804_v18 = vsel %vm2085_vm5, %v27131_v2, %v25486_v32 }
 0x764   : > { %20899 = vmatmul.mubr.msk.f32.gmra.mrb[6].mxu1 %vm4706_vm10, %v20226_v29  ;;  %v13377_v29 = vsel %vm1650_vm4, %v27129_v24, %v25429_v40  ;;  %v20340_v24 = vld [vmem:[%s26841_s8 + $0xa8] sm:$0xff] }
 0x765   : > { %12671 = vmatprep.mubr.f32.mxu1 %v26959_v1 }
 0x768   : > { %20247 = vmatmul.mubr.msk.f32.vlgmr.msra.gmra.mrb[8].mxu1 %vm4706_vm10, %v20243_v45 }
 0x769   : > { %12697 = vmatpush1.msra.mxu1 %v12583_v56  ;;  %12677 = vmatprep.mubr.f32.mxu1 %v26959_v1  ;;  %v20300_v56 = vld [vmem:[%s26841_s8 + $0x68] sm:$0xff] }
 0x76a   : > { %12785 = vmatprep.subr.mxu1 %v12586_v60  ;;  %v13803_v60 = vsel %vm2085_vm5, %v25390_v30, %v27131_v2 }
 0x76c   : > { %20248 = vmatmul.mubr.msk.f32.gmra.mrb[10].mxu1 %vm4706_vm10, %v20244_v34 }
 0x76d   : > { %12683 = vmatprep.mubr.f32.mxu1 %v26959_v1 }
 0x770   : > { %20249 = vmatmul.mubr.msk.f32.gmra.mrb[12].mxu1 %vm4706_vm10, %v20245_v21 }
 0x771   : > { %12689 = vmatprep.mubr.f32.mxu1 %v26959_v1 }
 0x774   : > { %20250 = vmatmul.mubr.msk.f32.gmra.mrb[14].mxu1 %vm4706_vm10, %v20246_v15 }
 0x775   : > { %12760 = vmatprep.mubr.f32.mxu1 %v26959_v1 }
 0x778   : > { %20251 = vmatmul.mubr.msk.f32.vlgmr.msra.gmra.mrb[16].mxu1 %vm4706_vm10, %v20243_v45 }
 0x779   : > { %12786 = vmatpush1.msra.mxu1 %v12585_v39  ;;  %12766 = vmatprep.mubr.f32.mxu1 %v26959_v1  ;;  %v20319_v39 = vld [vmem:[%s26841_s8 + $0x80] sm:$0xff] }
 0x77a   : > { %20901 = vmatprep.subr.mxu1 %v12587_v0 }
 0x77c   : > { %20252 = vmatmul.mubr.msk.f32.gmra.mrb[18].mxu1 %vm4706_vm10, %v20244_v34 }
 0x77d   : > { %12772 = vmatprep.mubr.f32.mxu1 %v26959_v1 }
 0x780   : > { %20253 = vmatmul.mubr.msk.f32.gmra.mrb[20].mxu1 %vm4706_vm10, %v20245_v21 }
 0x781   : > { %12778 = vmatprep.mubr.f32.mxu1 %v26959_v1 }
 0x784   : > { %20254 = vmatmul.mubr.msk.f32.gmra.mrb[22].mxu1 %vm4706_vm10, %v20246_v15 }
 0x785   : > { %12849 = vmatprep.mubr.f32.mxu1 %v26959_v1 }
 0x788   : > { %20255 = vmatmul.mubr.msk.f32.vlgmr.msra.gmra.mrb[24].mxu1 %vm4706_vm10, %v20243_v45 }
 0x789   : > { %20902 = vmatpush3.msra.mxu1 %v12587_v0  ;;  %12855 = vmatprep.mubr.f32.mxu1 %v26959_v1  ;;  %v22346_v0 = vld [vmem:[#allocation4 + $0x20] sm:$0xff] }
 0x78a   : > { %13001 = vmatprep.subr.mxu1 %v12976_v33  ;;  %v22347_v33 = vld [vmem:[#allocation4 + $0x18] sm:$0xff] }
 0x78c   : > { %20256 = vmatmul.mubr.msk.f32.gmra.mrb[26].mxu1 %vm4706_vm10, %v20244_v34 }
 0x78d   : > { %12861 = vmatprep.mubr.f32.mxu1 %v26959_v1 }
 0x790   : > { %20257 = vmatmul.mubr.msk.f32.gmra.mrb[28].mxu1 %vm4706_vm10, %v20245_v21 }
 0x791   : > { %12867 = vmatprep.mubr.f32.mxu1 %v26959_v1 }
 0x794   : > { %20258 = vmatmul.mubr.msk.f32.gmra.mrb[30].mxu1 %vm4706_vm10, %v20246_v15 }
 0x795   : > { %20903 = vmatprep.mubr.msk.f32.mxu1 %vm4706_vm10, %v20243_v45  ;;  %v13378_v45 = vsel %vm1650_vm4, %v25429_v40, %v25363_v22  ;;  %v13802_v22 = vsel %vm2085_vm5, %v25462_v57, %v25390_v30  ;;  %v13801_v40 = vsel %vm2085_vm5, %v25477_v19, %v25462_v57  ;;  %v27132_v57 = vld [vmem:[#allocation34_spill] sm:$0xff] }
 0x796   : > { %v13806_v19 = vsel %vm2085_vm5, %v27132_v57, %v25495_v4  ;;  %v20302_v30 = vld [vmem:[%s26841_s8 + $0x78] sm:$0xff]  ;;  %v13805_v36 = vsel %vm2085_vm5, %v25486_v32, %v27132_v57  ;;  %v22345_v32 = vld [vmem:[#allocation4 + $0x8] sm:$0xff] }
 0x798   : > { %20904 = vmatmul.mubr.msk.f32.vlgmr.msra.gmra.mrb[4].mxu1 %vm4706_vm10, %v20244_v34  ;;  %v20301_v34 = vld [vmem:[%s26841_s8 + $0x70] sm:$0xff] }
 0x799   : > { %20906 = vmatprep.mubr.msk.f32.mxu1 %vm4706_vm10, %v20245_v21  ;;  %13002 = vmatpush1.msra.mxu1 %v12975_v7  ;;  %v27133_v21 = vld [vmem:[#allocation33_spill] sm:$0xff] }
 0x79a   : > { %13090 = vmatprep.subr.mxu1 %v12978_v31  ;;  %v22348_v7 = vld [vmem:[#allocation4 + $0x30] sm:$0xff]  ;;  %v20322_v31 = vld [vmem:[%s26841_s8 + $0x98] sm:$0xff] }
 0x79c   : > { %20907 = vmatmul.mubr.msk.f32.gmra.mrb[6].mxu1 %vm4706_vm10, %v20246_v15  ;;  %v13807_v15 = vsel %vm2085_vm5, %v25495_v4, %v27133_v21  ;;  %v22344_v4 = vld [vmem:[#allocation4 + $0x10] sm:$0xff] }
 0x79d   : > { %13065 = vmatprep.mubr.f32.mxu1 %v26959_v1 }
 0x7a0   : > { %20263 = vmatmul.mubr.msk.f32.vlgmr.msra.gmra.mrb[8].mxu1 %vm4706_vm10, %v12540_v14 }
 0x7a1   : > { %13091 = vmatpush1.msra.mxu1 %v12977_v51  ;;  %13071 = vmatprep.mubr.f32.mxu1 %v26959_v1 }
 0x7a2   : > { %13179 = vmatprep.subr.mxu1 %v12980_v52  ;;  %v27134_v52 = vld [vmem:[#allocation36_spill] sm:$0xff] }
 0x7a3   : > { %v14642_v51 = vsel %vm2932_vm6, %v25505_v41, %v27134_v52 }
 0x7a4   : > { %20264 = vmatmul.mubr.msk.f32.gmra.mrb[10].mxu1 %vm4706_vm10, %v12541_v27 }
 0x7a5   : > { %13077 = vmatprep.mubr.f32.mxu1 %v26959_v1 }
 0x7a8   : > { %20265 = vmatmul.mubr.msk.f32.gmra.mrb[12].mxu1 %vm4706_vm10, %v12542_v10 }
 0x7a9   : > { %13083 = vmatprep.mubr.f32.mxu1 %v26959_v1 }
 0x7ac   : > { %20266 = vmatmul.mubr.msk.f32.gmra.mrb[14].mxu1 %vm4706_vm10, %v12543_v61 }
 0x7ad   : > { %13154 = vmatprep.mubr.f32.mxu1 %v26959_v1 }
 0x7b0   : > { %20267 = vmatmul.mubr.msk.f32.vlgmr.msra.gmra.mrb[16].mxu1 %vm4706_vm10, %v12540_v14 }
 0x7b1   : > { %13180 = vmatpush1.msra.mxu1 %v12979_v38  ;;  %13160 = vmatprep.mubr.f32.mxu1 %v26959_v1  ;;  %v20339_v38 = vld [vmem:[%s26841_s8 + $0xa0] sm:$0xff] }
 0x7b2   : > { %20909 = vmatprep.subr.mxu1 %v12981_v58 }
 0x7b4   : > { %20268 = vmatmul.mubr.msk.f32.gmra.mrb[18].mxu1 %vm4706_vm10, %v12541_v27 }
 0x7b5   : > { %13166 = vmatprep.mubr.f32.mxu1 %v26959_v1 }
 0x7b8   : > { %20269 = vmatmul.mubr.msk.f32.gmra.mrb[20].mxu1 %vm4706_vm10, %v12542_v10 }
 0x7b9   : > { %13172 = vmatprep.mubr.f32.mxu1 %v26959_v1 }
 0x7bc   : > { %20270 = vmatmul.mubr.msk.f32.gmra.mrb[22].mxu1 %vm4706_vm10, %v12543_v61 }
 0x7bd   : > { %13243 = vmatprep.mubr.f32.mxu1 %v26959_v1 }
 0x7c0   : > { %20271 = vmatmul.mubr.msk.f32.vlgmr.msra.gmra.mrb[24].mxu1 %vm4706_vm10, %v12540_v14 }
 0x7c1   : > { %20910 = vmatpush3.msra.mxu1 %v12981_v58  ;;  %13249 = vmatprep.mubr.f32.mxu1 %v26959_v1 }
 0x7c2   : > { %13400 = vmatprep.subr.mxu1 %v13375_v9 }
 0x7c4   : > { %20272 = vmatmul.mubr.msk.f32.gmra.mrb[26].mxu1 %vm4706_vm10, %v12541_v27 }
 0x7c5   : > { %13255 = vmatprep.mubr.f32.mxu1 %v26959_v1 }
 0x7c8   : > { %20273 = vmatmul.mubr.msk.f32.gmra.mrb[28].mxu1 %vm4706_vm10, %v12542_v10 }
 0x7c9   : > { %13261 = vmatprep.mubr.f32.mxu1 %v26959_v1 }
 0x7cc   : > { %20274 = vmatmul.mubr.msk.f32.gmra.mrb[30].mxu1 %vm4706_vm10, %v12543_v61 }
 0x7cd   : > { %20911 = vmatprep.mubr.msk.f32.mxu1 %vm4706_vm10, %v12540_v14  ;;  %v22349_v14 = vld [vmem:[#allocation4 + $0x28] sm:$0xff] }
 0x7d0   : > { %20912 = vmatmul.mubr.msk.f32.vlgmr.msra.gmra.mrb[4].mxu1 %vm4706_vm10, %v12541_v27  ;;  %v27135_v27 = vld [vmem:[#allocation40_spill] sm:$0xff] }
 0x7d1   : > { %20914 = vmatprep.mubr.msk.f32.mxu1 %vm4706_vm10, %v12542_v10  ;;  %13401 = vmatpush1.msra.mxu1 %v13374_v25  ;;  %v14641_v10 = vsel %vm2932_vm6, %v27135_v27, %v25505_v41  ;;  %v27139_v41 = vld [vmem:[#allocation35_spill] sm:$0xff]  ;;  %v14643_v25 = vsel %vm2932_vm6, %v27134_v52, %v27137_v28 }
 0x7d2   : > { %13489 = vmatprep.subr.mxu1 %v13377_v29  ;;  %v14646_v9 = vsel %vm2932_vm6, %v27139_v41, %v27138_v23  ;;  %v20341_v29 = vld [vmem:[%s26841_s8 + $0xb0] sm:$0xff] }
 0x7d4   : > { %20915 = vmatmul.mubr.msk.f32.gmra.mrb[6].mxu1 %vm4706_vm10, %v12543_v61  ;;  %v27136_v61 = vld [vmem:[#allocation41_spill] sm:$0xff] }
 0x7d5   : > { %13464 = vmatprep.mubr.f32.mxu1 %v26959_v1  ;;  %v14644_v58 = vsel %vm2932_vm6, %v27137_v28, %v27136_v61  ;;  %v20379_v28 = vld [vmem:[%s26841_s8 + $0xe0] sm:$0xff] }
 0x7d8   : > { %20283 = vmatmul.mubr.msk.f32.vlgmr.msra.gmra.mrb[8].mxu1 %vm4706_vm10, %v20279_v20 }
 0x7d9   : > { %13490 = vmatpush1.msra.mxu1 %v13376_v8  ;;  %13470 = vmatprep.mubr.f32.mxu1 %v26959_v1 }
 0x7da   : > { %13578 = vmatprep.subr.mxu1 %v13379_v54  ;;  %v27140_v54 = vld [vmem:[#allocation7_spill] sm:$0xff] }
 0x7db   : > { %v14647_v8 = vsel %vm2932_vm6, %v27138_v23, %v27140_v54  ;;  %v15500_v23 = vsel %vm3802_vm8, %v25650_v44, %v25643_v63 }
 0x7dc   : > { %20284 = vmatmul.mubr.msk.f32.gmra.mrb[10].mxu1 %vm4706_vm10, %v20280_v59 }
 0x7dd   : > { %13476 = vmatprep.mubr.f32.mxu1 %v26959_v1 }
 0x7e0   : > { %20285 = vmatmul.mubr.msk.f32.gmra.mrb[12].mxu1 %vm4706_vm10, %v20281_v37 }
 0x7e1   : > { %13482 = vmatprep.mubr.f32.mxu1 %v26959_v1 }
 0x7e4   : > { %20286 = vmatmul.mubr.msk.f32.gmra.mrb[14].mxu1 %vm4706_vm10, %v20282_v26 }
 0x7e5   : > { %13553 = vmatprep.mubr.f32.mxu1 %v26959_v1 }
 0x7e8   : > { %20287 = vmatmul.mubr.msk.f32.vlgmr.msra.gmra.mrb[16].mxu1 %vm4706_vm10, %v20279_v20 }
 0x7e9   : > { %13579 = vmatpush1.msra.mxu1 %v13378_v45  ;;  %13559 = vmatprep.mubr.f32.mxu1 %v26959_v1 }
 0x7ea   : > { %20917 = vmatprep.subr.mxu1 %v13380_v46 }
 0x7ec   : > { %20288 = vmatmul.mubr.msk.f32.gmra.mrb[18].mxu1 %vm4706_vm10, %v20280_v59 }
 0x7ed   : > { %13565 = vmatprep.mubr.f32.mxu1 %v26959_v1 }
 0x7f0   : > { %20289 = vmatmul.mubr.msk.f32.gmra.mrb[20].mxu1 %vm4706_vm10, %v20281_v37 }
 0x7f1   : > { %13571 = vmatprep.mubr.f32.mxu1 %v26959_v1 }
 0x7f4   : > { %20290 = vmatmul.mubr.msk.f32.gmra.mrb[22].mxu1 %vm4706_vm10, %v20282_v26 }
 0x7f5   : > { %13642 = vmatprep.mubr.f32.mxu1 %v26959_v1 }
 0x7f8   : > { %20291 = vmatmul.mubr.msk.f32.vlgmr.msra.gmra.mrb[24].mxu1 %vm4706_vm10, %v20279_v20 }
 0x7f9   : > { %20918 = vmatpush3.msra.mxu1 %v13380_v46  ;;  %13648 = vmatprep.mubr.f32.mxu1 %v26959_v1  ;;  %v27143_v46 = vld [vmem:[#allocation46_spill] sm:$0xff] }
 0x7fa   : > { %13827 = vmatprep.subr.mxu1 %v13802_v22  ;;  %v27144_v22 = vld [vmem:[#allocation43_spill] sm:$0xff] }
 0x7fb   : > { %v15072_v21 = vsel %vm3367_vm7, %v27144_v22, %v25554_v47 }
 0x7fc   : > { %20292 = vmatmul.mubr.msk.f32.gmra.mrb[26].mxu1 %vm4706_vm10, %v20280_v59 }
 0x7fd   : > { %13654 = vmatprep.mubr.f32.mxu1 %v26959_v1 }
 0x800   : > { %20293 = vmatmul.mubr.msk.f32.gmra.mrb[28].mxu1 %vm4706_vm10, %v20281_v37 }
 0x801   : > { %13660 = vmatprep.mubr.f32.mxu1 %v26959_v1 }
 0x804   : > { %20294 = vmatmul.mubr.msk.f32.gmra.mrb[30].mxu1 %vm4706_vm10, %v20282_v26 }
 0x805   : > { %20919 = vmatprep.mubr.msk.f32.mxu1 %vm4706_vm10, %v20279_v20  ;;  %v20342_v20 = vld [vmem:[%s26841_s8 + $0xb8] sm:$0xff] }
 0x808   : > { %20920 = vmatmul.mubr.msk.f32.vlgmr.msra.gmra.mrb[4].mxu1 %vm4706_vm10, %v20280_v59  ;;  %v14645_v59 = vsel %vm2932_vm6, %v27136_v61, %v27139_v41 }
 0x809   : > { %20922 = vmatprep.mubr.msk.f32.mxu1 %vm4706_vm10, %v20281_v37  ;;  %13828 = vmatpush1.msra.mxu1 %v13801_v40  ;;  %v27141_v37 = vld [vmem:[#allocation37_spill] sm:$0xff]  ;;  %v27145_v40 = vld [vmem:[#allocation39_spill] sm:$0xff] }
 0x80a   : > { %13916 = vmatprep.subr.mxu1 %v13804_v18  ;;  %v15071_v2 = vsel %vm3367_vm7, %v27145_v40, %v27144_v22  ;;  %v20359_v18 = vld [vmem:[%s26841_s8 + $0xc0] sm:$0xff] }
 0x80c   : > { %20923 = vmatmul.mubr.msk.f32.gmra.mrb[6].mxu1 %vm4706_vm10, %v20282_v26  ;;  %v27142_v26 = vld [vmem:[#allocation64_spill] sm:$0xff] }
 0x80d   : > { %13891 = vmatprep.mubr.f32.mxu1 %v26959_v1  ;;  %v15069_v3 = vsel %vm3367_vm7, %v27142_v26, %v27141_v37  ;;  %v15068_v45 = vsel %vm3367_vm7, %v27143_v46, %v27142_v26  ;;  %v20400_v26 = vld [vmem:[%s26841_s8 + $0x108] sm:$0xff] }
 0x810   : > { %20303 = vmatmul.mubr.msk.f32.vlgmr.msra.gmra.mrb[8].mxu1 %vm4706_vm10, %v20299_v5 }
 0x811   : > { %13917 = vmatpush1.msra.mxu1 %v13803_v60  ;;  %13897 = vmatprep.mubr.f32.mxu1 %v26959_v1  ;;  %v20360_v60 = vld [vmem:[%s26841_s8 + $0xc8] sm:$0xff] }
 0x812   : > { %14005 = vmatprep.subr.mxu1 %v13806_v19  ;;  %v15070_v19 = vsel %vm3367_vm7, %v27141_v37, %v27145_v40  ;;  %v15919_v37 = vpop.permute.xlu1 %15918  ;;  %v26491_v40 = vpop.permute.xlu0 %16362 }
 0x814   : > { %20304 = vmatmul.mubr.msk.f32.gmra.mrb[10].mxu1 %vm4706_vm10, %v20300_v56 }
 0x815   : > { %13903 = vmatprep.mubr.f32.mxu1 %v26959_v1 }
 0x818   : > { %20305 = vmatmul.mubr.msk.f32.gmra.mrb[12].mxu1 %vm4706_vm10, %v20301_v34 }
 0x819   : > { %13909 = vmatprep.mubr.f32.mxu1 %v26959_v1 }
 0x81c   : > { %20306 = vmatmul.mubr.msk.f32.gmra.mrb[14].mxu1 %vm4706_vm10, %v20302_v30 }
 0x81d   : > { %13980 = vmatprep.mubr.f32.mxu1 %v26959_v1 }
 0x820   : > { %20307 = vmatmul.mubr.msk.f32.vlgmr.msra.gmra.mrb[16].mxu1 %vm4706_vm10, %v20299_v5 }
 0x821   : > { %14006 = vmatpush1.msra.mxu1 %v13805_v36  ;;  %13986 = vmatprep.mubr.f32.mxu1 %v26959_v1 }
 0x822   : > { %20925 = vmatprep.subr.mxu1 %v13807_v15 }
 0x824   : > { %20308 = vmatmul.mubr.msk.f32.gmra.mrb[18].mxu1 %vm4706_vm10, %v20300_v56 }
 0x825   : > { %13992 = vmatprep.mubr.f32.mxu1 %v26959_v1 }
 0x828   : > { %20309 = vmatmul.mubr.msk.f32.gmra.mrb[20].mxu1 %vm4706_vm10, %v20301_v34 }
 0x829   : > { %13998 = vmatprep.mubr.f32.mxu1 %v26959_v1 }
 0x82c   : > { %20310 = vmatmul.mubr.msk.f32.gmra.mrb[22].mxu1 %vm4706_vm10, %v20302_v30 }
 0x82d   : > { %14069 = vmatprep.mubr.f32.mxu1 %v26959_v1 }
 0x830   : > { %20311 = vmatmul.mubr.msk.f32.vlgmr.msra.gmra.mrb[24].mxu1 %vm4706_vm10, %v20299_v5 }
 0x831   : > { %20926 = vmatpush3.msra.mxu1 %v13807_v15  ;;  %14075 = vmatprep.mubr.f32.mxu1 %v26959_v1  ;;  %v26318_v15 = vpop.f32.mrb[24].mxu0 }
 0x832   : > { %14224 = vmatprep.subr.mxu1 %v22344_v4  ;;  %v26321_v36 = vpop.f32.mrb[25].mxu0 }
 0x833   : > { %v26323_v4 = vpop.f32.mrb[26].mxu0 }
 0x834   : > { %20312 = vmatmul.mubr.msk.f32.gmra.mrb[26].mxu1 %vm4706_vm10, %v20300_v56 }
 0x835   : > { %14081 = vmatprep.mubr.f32.mxu1 %v26959_v1 }
 0x838   : > { %20313 = vmatmul.mubr.msk.f32.gmra.mrb[28].mxu1 %vm4706_vm10, %v20301_v34 }
 0x839   : > { %14087 = vmatprep.mubr.f32.mxu1 %v26959_v1 }
 0x83c   : > { %20314 = vmatmul.mubr.msk.f32.gmra.mrb[30].mxu1 %vm4706_vm10, %v20302_v30 }
 0x83d   : > { %20927 = vmatprep.mubr.msk.f32.mxu1 %vm4706_vm10, %v20299_v5  ;;  %v27146_v5 = vld [vmem:[#allocation44_spill] sm:$0xff] }
 0x83e   : > { %v15073_v57 = vsel %vm3367_vm7, %v25554_v47, %v27146_v5  ;;  %v27147_v47 = vld [vmem:[#allocation45_spill] sm:$0xff] }
 0x840   : > { %20928 = vmatmul.mubr.msk.f32.vlgmr.msra.gmra.mrb[4].mxu1 %vm4706_vm10, %v20300_v56  ;;  %v20361_v56 = vld [vmem:[%s26841_s8 + $0xd0] sm:$0xff] }
 0x841   : > { %20930 = vmatprep.mubr.msk.f32.mxu1 %vm4706_vm10, %v20301_v34  ;;  %14225 = vmatpush1.msra.mxu1 %v22345_v32  ;;  %v20362_v34 = vld [vmem:[%s26841_s8 + $0xd8] sm:$0xff]  ;;  %v26325_v32 = vpop.f32.mrb[27].mxu0 }
 0x842   : > { %14313 = vmatprep.subr.mxu1 %v22346_v0  ;;  %v26328_v0 = vpop.f32.mrb[28].mxu0 }
 0x844   : > { %20931 = vmatmul.mubr.msk.f32.gmra.mrb[6].mxu1 %vm4706_vm10, %v20302_v30  ;;  %v15074_v30 = vsel %vm3367_vm7, %v27146_v5, %v25584_v11  ;;  %v15496_v11 = vsel %vm3802_vm8, %v27147_v47, %v25600_v13 }
 0x845   : > { %14288 = vmatprep.mubr.f32.mxu1 %v26959_v1 }
 0x848   : > { %20323 = vmatmul.mubr.msk.f32.vlgmr.msra.gmra.mrb[8].mxu1 %vm4706_vm10, %v20319_v39 }
 0x849   : > { %14294 = vmatprep.mubr.f32.mxu1 %v26959_v1  ;;  %14314 = vmatpush1.msra.mxu1 %v22347_v33 }
 0x84a   : > { %14402 = vmatprep.subr.mxu1 %v22348_v7 }
 0x84c   : > { %20324 = vmatmul.mubr.msk.f32.gmra.mrb[10].mxu1 %vm4706_vm10, %v20320_v6 }
 0x84d   : > { %14300 = vmatprep.mubr.f32.mxu1 %v26959_v1 }
 0x850   : > { %20325 = vmatmul.mubr.msk.f32.gmra.mrb[12].mxu1 %vm4706_vm10, %v20321_v16 }
 0x851   : > { %14306 = vmatprep.mubr.f32.mxu1 %v26959_v1 }
 0x854   : > { %20326 = vmatmul.mubr.msk.f32.gmra.mrb[14].mxu1 %vm4706_vm10, %v20322_v31 }
 0x855   : > { %14377 = vmatprep.mubr.f32.mxu1 %v26959_v1 }
 0x858   : > { %20327 = vmatmul.mubr.msk.f32.vlgmr.msra.gmra.mrb[16].mxu1 %vm4706_vm10, %v20319_v39 }
 0x859   : > { %14383 = vmatprep.mubr.f32.mxu1 %v26959_v1  ;;  %14403 = vmatpush1.msra.mxu1 %v22349_v14 }
 0x85a   : > { %20933 = vmatprep.subr.mxu1 %v22350_v53 }
 0x85c   : > { %20328 = vmatmul.mubr.msk.f32.gmra.mrb[18].mxu1 %vm4706_vm10, %v20320_v6 }
 0x85d   : > { %14389 = vmatprep.mubr.f32.mxu1 %v26959_v1 }
 0x860   : > { %20329 = vmatmul.mubr.msk.f32.gmra.mrb[20].mxu1 %vm4706_vm10, %v20321_v16 }
 0x861   : > { %14395 = vmatprep.mubr.f32.mxu1 %v26959_v1 }
 0x864   : > { %20330 = vmatmul.mubr.msk.f32.gmra.mrb[22].mxu1 %vm4706_vm10, %v20322_v31 }
 0x865   : > { %14466 = vmatprep.mubr.f32.mxu1 %v26959_v1 }
 0x868   : > { %20331 = vmatmul.mubr.msk.f32.vlgmr.msra.gmra.mrb[24].mxu1 %vm4706_vm10, %v20319_v39 }
 0x869   : > { %14472 = vmatprep.mubr.f32.mxu1 %v26959_v1  ;;  %20934 = vmatpush3.msra.mxu1 %v22350_v53  ;;  %v15498_v53 = vsel %vm3802_vm8, %v25575_v50, %v25627_v55 }
 0x86a   : > { %14667 = vmatprep.subr.mxu1 %v14642_v51 }
 0x86c   : > { %20332 = vmatmul.mubr.msk.f32.gmra.mrb[26].mxu1 %vm4706_vm10, %v20320_v6 }
 0x86d   : > { %14478 = vmatprep.mubr.f32.mxu1 %v26959_v1 }
 0x870   : > { %20333 = vmatmul.mubr.msk.f32.gmra.mrb[28].mxu1 %vm4706_vm10, %v20321_v16 }
 0x871   : > { %14484 = vmatprep.mubr.f32.mxu1 %v26959_v1 }
 0x874   : > { %20334 = vmatmul.mubr.msk.f32.gmra.mrb[30].mxu1 %vm4706_vm10, %v20322_v31 }
 0x875   : > { %20935 = vmatprep.mubr.msk.f32.mxu1 %vm4706_vm10, %v20319_v39  ;;  %v26331_v39 = vpop.f32.mrb[29].mxu0 }
 0x878   : > { %20936 = vmatmul.mubr.msk.f32.vlgmr.msra.gmra.mrb[4].mxu1 %vm4706_vm10, %v20320_v6  ;;  %v26333_v6 = vpop.f32.mrb[30].mxu0 }
 0x879   : > { %20938 = vmatprep.mubr.msk.f32.mxu1 %vm4706_vm10, %v20321_v16  ;;  %14668 = vmatpush1.msra.mxu1 %v14641_v10  ;;  %v26335_v33 = vpop.f32.mrb[31].mxu0 }
 0x87a   : > { %14756 = vmatprep.subr.mxu1 %v14644_v58  ;;  %v26338_v7 = vpop.f32.mrb[32].mxu0 }
 0x87b   : > { %v26341_v16 = vpop.f32.mrb[33].mxu0 }
 0x87c   : > { %20939 = vmatmul.mubr.msk.f32.gmra.mrb[6].mxu1 %vm4706_vm10, %v20322_v31  ;;  %v15495_v31 = vsel %vm3802_vm8, %v25560_v17, %v27147_v47  ;;  %v26346_v14 = vpop.f32.mrb[34].mxu0 }
 0x87d   : > { %14731 = vmatprep.mubr.f32.mxu1 %v26959_v1  ;;  %v26351_v52 = vpop.f32.mrb[35].mxu0 }
 0x87e   : > { %v26354_v51 = vpop.f32.mrb[36].mxu0 }
 0x87f   : > { %v26357_v27 = vpop.f32.mrb[37].mxu0 }
 0x880   : > { %20343 = vmatmul.mubr.msk.f32.vlgmr.msra.gmra.mrb[8].mxu1 %vm4706_vm10, %v20339_v38  ;;  %v26359_v10 = vpop.f32.mrb[38].mxu0 }
 0x881   : > { %14757 = vmatpush1.msra.mxu1 %v14643_v25  ;;  %14737 = vmatprep.mubr.f32.mxu1 %v26959_v1  ;;  %v26361_v17 = vpop.f32.mrb[39].mxu0 }
 0x882   : > { %14845 = vmatprep.subr.mxu1 %v14646_v9  ;;  %v26364_v61 = vpop.f32.mrb[40].mxu0  ;;  %v15497_v9 = vsel %vm3802_vm8, %v25600_v13, %v25575_v50  ;;  %v20381_v50 = vld [vmem:[%s26841_s8 + $0xf0] sm:$0xff]  ;;  %v20382_v13 = vld [vmem:[%s26841_s8 + $0xf8] sm:$0xff] }
 0x883   : > { %v26370_v58 = vpop.f32.mrb[41].mxu0 }
 0x884   : > { %20344 = vmatmul.mubr.msk.f32.gmra.mrb[10].mxu1 %vm4706_vm10, %v20340_v24 }
 0x885   : > { %14743 = vmatprep.mubr.f32.mxu1 %v26959_v1 }
 0x888   : > { %20345 = vmatmul.mubr.msk.f32.gmra.mrb[12].mxu1 %vm4706_vm10, %v20341_v29 }
 0x889   : > { %14749 = vmatprep.mubr.f32.mxu1 %v26959_v1 }
 0x88c   : > { %20346 = vmatmul.mubr.msk.f32.gmra.mrb[14].mxu1 %vm4706_vm10, %v20342_v20 }
 0x88d   : > { %14820 = vmatprep.mubr.f32.mxu1 %v26959_v1 }
 0x890   : > { %20347 = vmatmul.mubr.msk.f32.vlgmr.msra.gmra.mrb[16].mxu1 %vm4706_vm10, %v20339_v38 }
 0x891   : > { %14846 = vmatpush1.msra.mxu1 %v14645_v59  ;;  %14826 = vmatprep.mubr.f32.mxu1 %v26959_v1  ;;  %v15499_v59 = vsel %vm3802_vm8, %v25627_v55, %v25650_v44  ;;  %v15923_v55 = vsel %vm4237_vm9, %v25693_v35, %v25706_v48  ;;  %v15925_v44 = vsel %vm4237_vm9, %v25759_v12, %v25770_v42 }
 0x892   : > { %20941 = vmatprep.subr.mxu1 %v14647_v8 }
 0x894   : > { %20348 = vmatmul.mubr.msk.f32.gmra.mrb[18].mxu1 %vm4706_vm10, %v20340_v24 }
 0x895   : > { %14832 = vmatprep.mubr.f32.mxu1 %v26959_v1 }
 0x898   : > { %20349 = vmatmul.mubr.msk.f32.gmra.mrb[20].mxu1 %vm4706_vm10, %v20341_v29 }
 0x899   : > { %14838 = vmatprep.mubr.f32.mxu1 %v26959_v1 }
 0x89c   : > { %20350 = vmatmul.mubr.msk.f32.gmra.mrb[22].mxu1 %vm4706_vm10, %v20342_v20 }
 0x89d   : > { %14909 = vmatprep.mubr.f32.mxu1 %v26959_v1 }
 0x8a0   : > { %20351 = vmatmul.mubr.msk.f32.vlgmr.msra.gmra.mrb[24].mxu1 %vm4706_vm10, %v20339_v38 }
 0x8a1   : > { %20942 = vmatpush3.msra.mxu1 %v14647_v8  ;;  %14915 = vmatprep.mubr.f32.mxu1 %v26959_v1  ;;  %v15501_v8 = vsel %vm3802_vm8, %v25643_v63, %v25677_v62  ;;  %v15922_v63 = vsel %vm4237_vm9, %v25708_v43, %v25693_v35  ;;  %v20399_v62 = vld [vmem:[%s26841_s8 + $0x100] sm:$0xff]  ;;  %v15927_v35 = vsel %vm4237_vm9, %v25793_v49, %v15919_v37 }
 0x8a2   : > { %15094 = vmatprep.subr.mxu1 %v15069_v3  ;;  %v15924_v43 = vsel %vm4237_vm9, %v25706_v48, %v25759_v12  ;;  %v20401_v3 = vld [vmem:[%s26841_s8 + $0x110] sm:$0xff]  ;;  %v20402_v48 = vld [vmem:[%s26841_s8 + $0x118] sm:$0xff]  ;;  %v15921_v12 = vpop.permute.xlu1 %15920 }
 0x8a3   : > { %v15928_v46 = vsel %vm4237_vm9, %v15919_v37, %v15921_v12 }
 0x8a4   : > { %20352 = vmatmul.mubr.msk.f32.gmra.mrb[26].mxu1 %vm4706_vm10, %v20340_v24 }
 0x8a5   : > { %14921 = vmatprep.mubr.f32.mxu1 %v26959_v1 }
 0x8a8   : > { %20353 = vmatmul.mubr.msk.f32.gmra.mrb[28].mxu1 %vm4706_vm10, %v20341_v29 }
 0x8a9   : > { %14927 = vmatprep.mubr.f32.mxu1 %v26959_v1 }
 0x8ac   : > { %20354 = vmatmul.mubr.msk.f32.gmra.mrb[30].mxu1 %vm4706_vm10, %v20342_v20 }
 0x8ad   : > { %20943 = vmatprep.mubr.msk.f32.mxu1 %vm4706_vm10, %v20339_v38  ;;  %v26372_v38 = vpop.f32.mrb[42].mxu0 }
 0x8ae   : > { %v26377_v41 = vpop.f32.mrb[43].mxu0 }
 0x8af   : > { %v26383_v25 = vpop.f32.mrb[44].mxu0 }
 0x8b0   : > { %20944 = vmatmul.mubr.msk.f32.vlgmr.msra.gmra.mrb[4].mxu1 %vm4706_vm10, %v20340_v24  ;;  %v20380_v24 = vld [vmem:[%s26841_s8 + $0xe8] sm:$0xff] }
 0x8b1   : > { %20946 = vmatprep.mubr.msk.f32.mxu1 %vm4706_vm10, %v20341_v29  ;;  %15095 = vmatpush1.msra.mxu1 %v15068_v45  ;;  %v26389_v29 = vpop.f32.mrb[45].mxu0  ;;  %v15926_v45 = vsel %vm4237_vm9, %v25770_v42, %v25793_v49 }
 0x8b2   : > { %15183 = vmatprep.subr.mxu1 %v15071_v2 }
 0x8b4   : > { %20947 = vmatmul.mubr.msk.f32.gmra.mrb[6].mxu1 %vm4706_vm10, %v20342_v20  ;;  %v26391_v20 = vpop.f32.mrb[46].mxu0 }
 0x8b5   : > { %15158 = vmatprep.mubr.f32.mxu1 %v26959_v1  ;;  %v26393_v54 = vpop.f32.mrb[47].mxu0 }
 0x8b8   : > { %20363 = vmatmul.mubr.msk.f32.vlgmr.msra.gmra.mrb[8].mxu1 %vm4706_vm10, %v20359_v18 }
 0x8b9   : > { %15184 = vmatpush1.msra.mxu1 %v15070_v19  ;;  %15164 = vmatprep.mubr.f32.mxu1 %v26959_v1 }
 0x8ba   : > { %15272 = vmatprep.subr.mxu1 %v15073_v57 }
 0x8bc   : > { %20364 = vmatmul.mubr.msk.f32.gmra.mrb[10].mxu1 %vm4706_vm10, %v20360_v60 }
 0x8bd   : > { %15170 = vmatprep.mubr.f32.mxu1 %v26959_v1 }
 0x8c0   : > { %20365 = vmatmul.mubr.msk.f32.gmra.mrb[12].mxu1 %vm4706_vm10, %v20361_v56 }
 0x8c1   : > { %15176 = vmatprep.mubr.f32.mxu1 %v26959_v1 }
 0x8c4   : > { %20366 = vmatmul.mubr.msk.f32.gmra.mrb[14].mxu1 %vm4706_vm10, %v20362_v34 }
 0x8c5   : > { %15247 = vmatprep.mubr.f32.mxu1 %v26959_v1 }
 0x8c8   : > { %20367 = vmatmul.mubr.msk.f32.vlgmr.msra.gmra.mrb[16].mxu1 %vm4706_vm10, %v20359_v18 }
 0x8c9   : > { %15273 = vmatpush1.msra.mxu1 %v15072_v21  ;;  %15253 = vmatprep.mubr.f32.mxu1 %v26959_v1 }
 0x8ca   : > { %20949 = vmatprep.subr.mxu1 %v15074_v30 }
 0x8cc   : > { %20368 = vmatmul.mubr.msk.f32.gmra.mrb[18].mxu1 %vm4706_vm10, %v20360_v60 }
 0x8cd   : > { %15259 = vmatprep.mubr.f32.mxu1 %v26959_v1 }
 0x8d0   : > { %20369 = vmatmul.mubr.msk.f32.gmra.mrb[20].mxu1 %vm4706_vm10, %v20361_v56 }
 0x8d1   : > { %15265 = vmatprep.mubr.f32.mxu1 %v26959_v1 }
 0x8d4   : > { %20370 = vmatmul.mubr.msk.f32.gmra.mrb[22].mxu1 %vm4706_vm10, %v20362_v34 }
 0x8d5   : > { %15336 = vmatprep.mubr.f32.mxu1 %v26959_v1 }
 0x8d8   : > { %20371 = vmatmul.mubr.msk.f32.vlgmr.msra.gmra.mrb[24].mxu1 %vm4706_vm10, %v20359_v18 }
 0x8d9   : > { %20950 = vmatpush3.msra.mxu1 %v15074_v30  ;;  %15342 = vmatprep.mubr.f32.mxu1 %v26959_v1 }
 0x8da   : > { %15521 = vmatprep.subr.mxu1 %v15496_v11 }
 0x8dc   : > { %20372 = vmatmul.mubr.msk.f32.gmra.mrb[26].mxu1 %vm4706_vm10, %v20360_v60 }
 0x8dd   : > { %15348 = vmatprep.mubr.f32.mxu1 %v26959_v1 }
 0x8e0   : > { %20373 = vmatmul.mubr.msk.f32.gmra.mrb[28].mxu1 %vm4706_vm10, %v20361_v56 }
 0x8e1   : > { %15354 = vmatprep.mubr.f32.mxu1 %v26959_v1 }
 0x8e4   : > { %20374 = vmatmul.mubr.msk.f32.gmra.mrb[30].mxu1 %vm4706_vm10, %v20362_v34 }
 0x8e5   : > { %20951 = vmatprep.mubr.msk.f32.mxu1 %vm4706_vm10, %v20359_v18 }
 0x8e8   : > { %20952 = vmatmul.mubr.msk.f32.vlgmr.msra.gmra.mrb[4].mxu1 %vm4706_vm10, %v20360_v60 }
 0x8e9   : > { %15522 = vmatpush1.msra.mxu1 %v15495_v31  ;;  %20954 = vmatprep.mubr.msk.f32.mxu1 %vm4706_vm10, %v20361_v56  ;;  %v26497_v56 = vpop.permute.xlu1 %16367 }
 0x8ea   : > { %15610 = vmatprep.subr.mxu1 %v15498_v53  ;;  %v26503_v53 = vpop.permute.xlu0 %16372 }
 0x8ec   : > { %20955 = vmatmul.mubr.msk.f32.gmra.mrb[6].mxu1 %vm4706_vm10, %v20362_v34 }
 0x8ed   : > { %15585 = vmatprep.mubr.f32.mxu1 %v26959_v1 }
 0x8f0   : > { %20383 = vmatmul.mubr.msk.f32.vlgmr.msra.gmra.mrb[8].mxu1 %vm4706_vm10, %v20379_v28 }
 0x8f1   : > { %15611 = vmatpush1.msra.mxu1 %v15497_v9  ;;  %15591 = vmatprep.mubr.f32.mxu1 %v26959_v1 }
 0x8f2   : > { %15699 = vmatprep.subr.mxu1 %v15500_v23 }
 0x8f4   : > { %20384 = vmatmul.mubr.msk.f32.gmra.mrb[10].mxu1 %vm4706_vm10, %v20380_v24 }
 0x8f5   : > { %15597 = vmatprep.mubr.f32.mxu1 %v26959_v1 }
 0x8f8   : > { %20385 = vmatmul.mubr.msk.f32.gmra.mrb[12].mxu1 %vm4706_vm10, %v20381_v50 }
 0x8f9   : > { %15603 = vmatprep.mubr.f32.mxu1 %v26959_v1 }
 0x8fc   : > { %20386 = vmatmul.mubr.msk.f32.gmra.mrb[14].mxu1 %vm4706_vm10, %v20382_v13 }
 0x8fd   : > { %15674 = vmatprep.mubr.f32.mxu1 %v26959_v1 }
 0x900   : > { %20387 = vmatmul.mubr.msk.f32.vlgmr.msra.gmra.mrb[16].mxu1 %vm4706_vm10, %v20379_v28 }
 0x901   : > { %15700 = vmatpush1.msra.mxu1 %v15499_v59  ;;  %15680 = vmatprep.mubr.f32.mxu1 %v26959_v1 }
 0x902   : > { %20957 = vmatprep.subr.mxu1 %v15501_v8 }
 0x904   : > { %20388 = vmatmul.mubr.msk.f32.gmra.mrb[18].mxu1 %vm4706_vm10, %v20380_v24 }
 0x905   : > { %15686 = vmatprep.mubr.f32.mxu1 %v26959_v1 }
 0x908   : > { %20389 = vmatmul.mubr.msk.f32.gmra.mrb[20].mxu1 %vm4706_vm10, %v20381_v50 }
 0x909   : > { %15692 = vmatprep.mubr.f32.mxu1 %v26959_v1 }
 0x90c   : > { %20390 = vmatmul.mubr.msk.f32.gmra.mrb[22].mxu1 %vm4706_vm10, %v20382_v13 }
 0x90d   : > { %15763 = vmatprep.mubr.f32.mxu1 %v26959_v1 }
 0x910   : > { %20391 = vmatmul.mubr.msk.f32.vlgmr.msra.gmra.mrb[24].mxu1 %vm4706_vm10, %v20379_v28 }
 0x911   : > { %20958 = vmatpush3.msra.mxu1 %v15501_v8  ;;  %15769 = vmatprep.mubr.f32.mxu1 %v26959_v1  ;;  %v26509_v8 = vpop.permute.xlu1 %16377 }
 0x912   : > { %15948 = vmatprep.subr.mxu1 %v15923_v55 }
 0x914   : > { %20392 = vmatmul.mubr.msk.f32.gmra.mrb[26].mxu1 %vm4706_vm10, %v20380_v24 }
 0x915   : > { %15775 = vmatprep.mubr.f32.mxu1 %v26959_v1 }
 0x918   : > { %20393 = vmatmul.mubr.msk.f32.gmra.mrb[28].mxu1 %vm4706_vm10, %v20381_v50 }
 0x919   : > { %15781 = vmatprep.mubr.f32.mxu1 %v26959_v1 }
 0x91c   : > { %20394 = vmatmul.mubr.msk.f32.gmra.mrb[30].mxu1 %vm4706_vm10, %v20382_v13 }
 0x91d   : > { %20959 = vmatprep.mubr.msk.f32.mxu1 %vm4706_vm10, %v20379_v28 }
 0x920   : > { %20960 = vmatmul.mubr.msk.f32.vlgmr.msra.gmra.mrb[4].mxu1 %vm4706_vm10, %v20380_v24 }
 0x921   : > { %15949 = vmatpush1.msra.mxu1 %v15922_v63  ;;  %20962 = vmatprep.mubr.msk.f32.mxu1 %vm4706_vm10, %v20381_v50 }
 0x922   : > { %16037 = vmatprep.subr.mxu1 %v15925_v44 }
 0x924   : > { %20963 = vmatmul.mubr.msk.f32.gmra.mrb[6].mxu1 %vm4706_vm10, %v20382_v13 }
 0x925   : > { %16012 = vmatprep.mubr.f32.mxu1 %v26959_v1 }
 0x928   : > { %20403 = vmatmul.mubr.msk.f32.vlgmr.msra.gmra.mrb[8].mxu1 %vm4706_vm10, %v20399_v62 }
 0x929   : > { %16038 = vmatpush1.msra.mxu1 %v15924_v43  ;;  %16018 = vmatprep.mubr.f32.mxu1 %v26959_v1 }
 0x92a   : > { %16126 = vmatprep.subr.mxu1 %v15927_v35 }
 0x92c   : > { %20404 = vmatmul.mubr.msk.f32.gmra.mrb[10].mxu1 %vm4706_vm10, %v20400_v26 }
 0x92d   : > { %16024 = vmatprep.mubr.f32.mxu1 %v26959_v1 }
 0x930   : > { %20405 = vmatmul.mubr.msk.f32.gmra.mrb[12].mxu1 %vm4706_vm10, %v20401_v3 }
 0x931   : > { %16030 = vmatprep.mubr.f32.mxu1 %v26959_v1 }
 0x934   : > { %20406 = vmatmul.mubr.msk.f32.gmra.mrb[14].mxu1 %vm4706_vm10, %v20402_v48 }
 0x935   : > { %16101 = vmatprep.mubr.f32.mxu1 %v26959_v1 }
 0x938   : > { %20407 = vmatmul.mubr.msk.f32.vlgmr.msra.gmra.mrb[16].mxu1 %vm4706_vm10, %v20399_v62 }
 0x939   : > { %16127 = vmatpush1.msra.mxu1 %v15926_v45  ;;  %16107 = vmatprep.mubr.f32.mxu1 %v26959_v1 }
 0x93a   : > { %20965 = vmatprep.subr.mxu1 %v15928_v46 }
 0x93c   : > { %20408 = vmatmul.mubr.msk.f32.gmra.mrb[18].mxu1 %vm4706_vm10, %v20400_v26 }
 0x93d   : > { %16113 = vmatprep.mubr.f32.mxu1 %v26959_v1 }
 0x940   : > { %20409 = vmatmul.mubr.msk.f32.gmra.mrb[20].mxu1 %vm4706_vm10, %v20401_v3 }
 0x941   : > { %16119 = vmatprep.mubr.f32.mxu1 %v26959_v1 }
 0x944   : > { %20410 = vmatmul.mubr.msk.f32.gmra.mrb[22].mxu1 %vm4706_vm10, %v20402_v48 }
 0x945   : > { %16190 = vmatprep.mubr.f32.mxu1 %v26959_v1 }
 0x948   : > { %20411 = vmatmul.mubr.msk.f32.vlgmr.msra.gmra.mrb[24].mxu1 %vm4706_vm10, %v20399_v62 }
 0x949   : > { %20966 = vmatpush3.msra.mxu1 %v15928_v46  ;;  %16196 = vmatprep.mubr.f32.mxu1 %v26959_v1 }
 0x94c   : > { %20412 = vmatmul.mubr.msk.f32.gmra.mrb[26].mxu1 %vm4706_vm10, %v20400_v26 }
 0x94d   : > { %16202 = vmatprep.mubr.f32.mxu1 %v26959_v1 }
 0x950   : > { %20413 = vmatmul.mubr.msk.f32.gmra.mrb[28].mxu1 %vm4706_vm10, %v20401_v3 }
 0x951   : > { %16208 = vmatprep.mubr.f32.mxu1 %v26959_v1 }
 0x954   : > { %20414 = vmatmul.mubr.msk.f32.gmra.mrb[30].mxu1 %vm4706_vm10, %v20402_v48 }
 0x955   : > { %20967 = vmatprep.mubr.msk.f32.mxu1 %vm4706_vm10, %v20399_v62 }
 0x958   : > { %20968 = vmatmul.mubr.msk.f32.vlgmr.msra.gmra.mrb[4].mxu1 %vm4706_vm10, %v20400_v26 }
 0x959   : > { %20970 = vmatprep.mubr.msk.f32.mxu1 %vm4706_vm10, %v20401_v3 }
 0x95c   : > { %20971 = vmatmul.mubr.msk.f32.gmra.mrb[6].mxu1 %vm4706_vm10, %v20402_v48 }
 0x9fb   : > { %v16014_v42 = vpop.f32.mrb[8].mxu1 }
 0x9fc   : > { %v21018_v49 = vadd.f32 %v16014_v42, %v26318_v15  ;;  %v16016_v22 = vpop.f32.mrb[9].mxu1 }
 0x9fd   : > { %v21019_v2 = vadd.f32 %v16016_v22, %v26321_v36 }
 0x9fe   : > { %v16380_v1 = vadd.f32 %v21018_v49, %v26491_v40 }
 0x9ff   : > { %v16381_v18 = vadd.f32 %v21019_v2, %v26491_v40  ;;  %v16020_v5 = vpop.f32.mrb[10].mxu1 }
 0xa00   : > { %v20419_v57 = vmul.f32 -1.442695, %v16380_v1  ;;  %v21020_v19 = vadd.f32 %v16020_v5, %v26323_v4  ;;  %v16022_v60 = vpop.f32.mrb[11].mxu1 }
 0xa01   : > { %v20420_v34 = vmul.f32 -1.442695, %v16381_v18  ;;  %v21021_v30 = vadd.f32 %v16022_v60, %v26325_v32 }
 0xa02   : > { %22220 = vpow2.f32 %v20419_v57  ;;  %v16387_v21 = vadd.f32 %v21020_v19, %v26497_v56 }
 0xa03   : > { %22222 = vpow2.f32 %v20420_v34  ;;  %v16388_v47 = vadd.f32 %v21021_v30, %v26497_v56  ;;  %v16026_v11 = vpop.f32.mrb[12].mxu1 }
 0xa04   : > { %v20426_v15 = vmul.f32 -1.442695, %v16387_v21  ;;  %v21022_v36 = vadd.f32 %v16026_v11, %v26328_v0  ;;  %v16028_v31 = vpop.f32.mrb[13].mxu1 }
 0xa05   : > { %v20427_v4 = vmul.f32 -1.442695, %v16388_v47  ;;  %v21023_v28 = vadd.f32 %v16028_v31, %v26331_v39 }
 0xa06   : > { %22224 = vpow2.f32 %v20426_v15  ;;  %v16394_v23 = vadd.f32 %v21022_v36, %v26503_v53 }
 0xa07   : > { %22226 = vpow2.f32 %v20427_v4  ;;  %v16395_v32 = vadd.f32 %v21023_v28, %v26503_v53  ;;  %v16032_v9 = vpop.f32.mrb[14].mxu1 }
 0xa08   : > { %v20433_v24 = vmul.f32 -1.442695, %v16394_v23  ;;  %v21024_v50 = vadd.f32 %v16032_v9, %v26333_v6  ;;  %v16034_v13 = vpop.f32.mrb[15].mxu1 }
 0xa09   : > { %v20434_v0 = vmul.f32 -1.442695, %v16395_v32  ;;  %v21025_v59 = vadd.f32 %v16034_v13, %v26335_v33 }
 0xa0a   : > { %22228 = vpow2.f32 %v20433_v24  ;;  %v16401_v55 = vadd.f32 %v21024_v50, %v26509_v8 }
 0xa0b   : > { %v16402_v39 = vadd.f32 %v21025_v59, %v26509_v8  ;;  %v16103_v63 = vpop.f32.mrb[16].mxu1  ;;  %22230 = vpow2.f32 %v20434_v0  ;;  %v16541_v0 = vld [vmem:[#allocation5] sm:$0xff] }
 0xa0c   : > { %v22221_v44 = vpop.eup %22220  ;;  %v21026_v62 = vadd.f32 %v16103_v63, %v26338_v7  ;;  %v16105_v37 = vpop.f32.mrb[17].mxu1  ;;  %22232 = vtanh.f32 %v16401_v55  ;;  %v16542_v63 = vld [vmem:[#allocation5 + $0x8] sm:$0xff] }
 0xa0d   : > { %v22223_v35 = vpop.eup %22222  ;;  %v16429_v43 = vadd.f32 1.0, %v22221_v44  ;;  %v21027_v6 = vadd.f32 %v16105_v37, %v26341_v16  ;;  %22234 = vtanh.f32 %v16402_v39 }
 0xa0e   : > { %v16430_v26 = vadd.f32 1.0, %v22223_v35  ;;  %v16382_v33 = vadd.f32 %v21026_v62, %v26491_v40 }
 0xa0f   : > { %22236 = vrcp.f32 %v16429_v43  ;;  %v16383_v3 = vadd.f32 %v21027_v6, %v26491_v40  ;;  %v16109_v48 = vpop.f32.mrb[18].mxu1 }
 0xa10   : > { %v22225_v12 = vpop.eup %22224  ;;  %22238 = vrcp.f32 %v16430_v26  ;;  %v20421_v46 = vmul.f32 -1.442695, %v16382_v33  ;;  %v21028_v45 = vadd.f32 %v16109_v48, %v26346_v14  ;;  %v16111_v7 = vpop.f32.mrb[19].mxu1 }
 0xa11   : > { %v22227_v42 = vpop.eup %22226  ;;  %v16471_v49 = vadd.f32 1.0, %v22225_v12  ;;  %v20422_v22 = vmul.f32 -1.442695, %v16383_v3  ;;  %v21029_v2 = vadd.f32 %v16111_v7, %v26351_v52 }
 0xa12   : > { %v16472_v16 = vadd.f32 1.0, %v22227_v42  ;;  %22240 = vpow2.f32 %v20421_v46  ;;  %v16389_v1 = vadd.f32 %v21028_v45, %v26497_v56 }
 0xa13   : > { %22242 = vrcp.f32 %v16471_v49  ;;  %v16390_v18 = vadd.f32 %v21029_v2, %v26497_v56  ;;  %v16115_v5 = vpop.f32.mrb[20].mxu1 }
 0xa14   : > { %v22229_v57 = vpop.eup %22228  ;;  %22244 = vrcp.f32 %v16472_v16  ;;  %v20428_v19 = vmul.f32 -1.442695, %v16389_v1  ;;  %v21030_v60 = vadd.f32 %v16115_v5, %v26354_v51  ;;  %v16117_v14 = vpop.f32.mrb[21].mxu1 }
 0xa15   : > { %22246 = vpow2.f32 %v20422_v22  ;;  %v20429_v34 = vmul.f32 -1.442695, %v16390_v18  ;;  %v21031_v30 = vadd.f32 %v16117_v14, %v26357_v27  ;;  %v22231_v21 = vpop.eup %22230  ;;  %v16513_v11 = vadd.f32 1.0, %v22229_v57 }
 0xa16   : > { %22248 = vpow2.f32 %v20428_v19  ;;  %v16396_v52 = vadd.f32 %v21030_v60, %v26503_v53  ;;  %v22233_v47 = vpop.eup %22232  ;;  %v16514_v32 = vadd.f32 1.0, %v22231_v21 }
 0xa17   : > { %v16397_v15 = vadd.f32 %v21031_v30, %v26503_v53  ;;  %v16121_v36 = vpop.f32.mrb[22].mxu1  ;;  %v22235_v31 = vpop.eup %22234  ;;  %22250 = vpow2.f32 %v20429_v34 }
 0xa18   : > { %v20435_v4 = vmul.f32 -1.442695, %v16396_v52  ;;  %v21032_v28 = vadd.f32 %v16121_v36, %v26359_v10  ;;  %v16123_v23 = vpop.f32.mrb[23].mxu1 }
 0xa19   : > { %v22237_v51 = vpop.eup %22236  ;;  %v20436_v9 = vmul.f32 -1.442695, %v16397_v15  ;;  %v21033_v27 = vadd.f32 %v16123_v23, %v26361_v17 }
 0xa1a   : > { %v22239_v24 = vpop.eup %22238  ;;  %v16555_v50 = vmul.f32 %v22237_v51, %v22233_v47  ;;  %22252 = vpow2.f32 %v20435_v4  ;;  %v16403_v13 = vadd.f32 %v21032_v28, %v26509_v8 }
 0xa1b   : > { %22254 = vrcp.f32 %v16513_v11  ;;  %v16556_v59 = vmul.f32 %v22239_v24, %v22235_v31  ;;  %v16192_v55 = vpop.f32.mrb[24].mxu1  ;;  %v16404_v10 = vadd.f32 %v21033_v27, %v26509_v8 }
 0xa1c   : > { %v22241_v39 = vpop.eup %22240  ;;  %22256 = vpow2.f32 %v20436_v9  ;;  %v21034_v44 = vadd.f32 %v16192_v55, %v26364_v61  ;;  %v16194_v62 = vpop.f32.mrb[25].mxu1 }
 0xa1d   : > { %v22243_v37 = vpop.eup %22242  ;;  %22258 = vrcp.f32 %v16514_v32  ;;  %v16431_v17 = vadd.f32 1.0, %v22241_v39  ;;  %v21035_v35 = vadd.f32 %v16194_v62, %v26370_v58  ;;  %v16544_v62 = vld [vmem:[#allocation5 + $0x18] sm:$0xff] }
 0xa1e   : > { %v22245_v43 = vpop.eup %22244  ;;  %v16548_v6 = vmul.f32 %v22243_v37, %v16541_v0  ;;  %22260 = vtanh.f32 %v16403_v13  ;;  %v16384_v49 = vadd.f32 %v21034_v44, %v26491_v40 }
 0xa1f   : > { %v22247_v26 = vpop.eup %22246  ;;  %v16549_v33 = vmul.f32 %v22245_v43, %v16542_v63  ;;  %22262 = vrcp.f32 %v16431_v17  ;;  %v16198_v3 = vpop.f32.mrb[26].mxu1  ;;  %v16385_v22 = vadd.f32 %v21035_v35, %v26491_v40  ;;  %v16543_v63 = vld [vmem:[#allocation5 + $0x10] sm:$0xff]  ;;  %v27148_v43 = vld [vmem:[#allocation12_spill] sm:$0xff] }
 0xa20   : > { %v22249_v48 = vpop.eup %22248  ;;  %v16562_v12 = vadd.f32 %v16555_v50, %v16548_v6  ;;  %v16432_v46 = vadd.f32 1.0, %v22247_v26  ;;  %22264 = vtanh.f32 %v16404_v10  ;;  %v21036_v45 = vadd.f32 %v16198_v3, %v26372_v38  ;;  %v16200_v61 = vpop.f32.mrb[27].mxu1 }
 0xa21   : > { %v16563_v7 = vadd.f32 %v16556_v59, %v16549_v33  ;;  %v16473_v42 = vadd.f32 1.0, %v22249_v48  ;;  %v21037_v58 = vadd.f32 %v16200_v61, %v26377_v41  ;;  %v22251_v2 = vpop.eup %22250  ;;  %v20423_v14 = vmul.f32 -1.442695, %v16384_v49  ;;  %v27149_v48 = vld [vmem:[#allocation13_spill] sm:$0xff] }
 0xa22   : > { %22266 = vtanh.f32 %v16562_v12  ;;  %16590 = vst [vmem:[#allocation5] sm:$0xff] %v16562_v12  ;;  %v16391_v16 = vadd.f32 %v21036_v45, %v26497_v56  ;;  %v16474_v38 = vadd.f32 1.0, %v22251_v2  ;;  %v20424_v21 = vmul.f32 -1.442695, %v16385_v22 }
 0xa23   : > { %22268 = vtanh.f32 %v16563_v7  ;;  %16591 = vst [vmem:[#allocation5 + $0x8] sm:$0xff] %v16563_v7  ;;  %v16204_v1 = vpop.f32.mrb[28].mxu1  ;;  %v16392_v5 = vadd.f32 %v21037_v58, %v26497_v56 }
 0xa24   : > { %v22253_v18 = vpop.eup %22252  ;;  %22270 = vrcp.f32 %v16432_v46  ;;  %v21038_v57 = vadd.f32 %v16204_v1, %v26383_v25  ;;  %v16206_v19 = vpop.f32.mrb[29].mxu1  ;;  %v20430_v11 = vmul.f32 -1.442695, %v16391_v16 }
 0xa25   : > { %v22255_v60 = vpop.eup %22254  ;;  %22272 = vrcp.f32 %v16473_v42  ;;  %v16515_v41 = vadd.f32 1.0, %v22253_v18  ;;  %v21039_v34 = vadd.f32 %v16206_v19, %v26389_v29  ;;  %v20431_v25 = vmul.f32 -1.442695, %v16392_v5 }
 0xa26   : > { %v22257_v30 = vpop.eup %22256  ;;  %22274 = vrcp.f32 %v16474_v38  ;;  %v16398_v52 = vadd.f32 %v21038_v57, %v26503_v53 }
 0xa27   : > { %v22259_v47 = vpop.eup %22258  ;;  %v16399_v15 = vadd.f32 %v21039_v34, %v26503_v53  ;;  %v16210_v36 = vpop.f32.mrb[30].mxu1  ;;  %22276 = vrcp.f32 %v16515_v41  ;;  %v16516_v51 = vadd.f32 1.0, %v22257_v30 }
 0xa28   : > { %v22261_v31 = vpop.eup %22260  ;;  %v21040_v4 = vadd.f32 %v16210_v36, %v26391_v20  ;;  %v16212_v28 = vpop.f32.mrb[31].mxu1  ;;  %22278 = vpow2.f32 %v20423_v14  ;;  %v20437_v27 = vmul.f32 -1.442695, %v16398_v52 }
 0xa29   : > { %v22263_v23 = vpop.eup %22262  ;;  %v21041_v29 = vadd.f32 %v16212_v28, %v26393_v54  ;;  %22280 = vpow2.f32 %v20424_v21  ;;  %v20438_v24 = vmul.f32 -1.442695, %v16399_v15 }
 0xa2a   : > { %v22265_v32 = vpop.eup %22264  ;;  %v16557_v9 = vmul.f32 %v22263_v23, %v22261_v31  ;;  %22282 = vpow2.f32 %v20430_v11  ;;  %v16405_v0 = vadd.f32 %v21040_v4, %v26509_v8  ;;  %v16545_v4 = vld [vmem:[#allocation5 + $0x20] sm:$0xff] }
 0xa2b   : > { %v20969_v50 = vpop.f32.mrb[4].mxu1  ;;  %22284 = vpow2.f32 %v20431_v25  ;;  %v16406_v37 = vadd.f32 %v21041_v29, %v26509_v8  ;;  %v27150_v23 = vld [vmem:[#allocation8_spill] sm:$0xff] }
 0xa2c   : > { %v22267_v13 = vpop.eup %22266  ;;  %v16393_v59 = vadd.f32 %v20969_v50, %v26497_v56  ;;  %v16281_v20 = vpop.f32.mrb[5].mxu1  ;;  %22286 = vrcp.f32 %v16516_v51 }
 0xa2d   : > { %v22269_v55 = vpop.eup %22268  ;;  %v16576_v39 = vmul.f32 %v22267_v13, %v22255_v60  ;;  %v16386_v54 = vadd.f32 %v26491_v40, %v16281_v20  ;;  %22288 = vpow2.f32 %v20437_v27  ;;  %v27151_v27 = vld [vmem:[#allocation9_spill] sm:$0xff] }
 0xa2e   : > { %v22271_v10 = vpop.eup %22270  ;;  %v16577_v44 = vmul.f32 %v22269_v55, %v22259_v47  ;;  %v20432_v17 = vmul.f32 -1.442695, %v16393_v59  ;;  %22290 = vpow2.f32 %v20438_v24 }
 0xa2f   : > { %v22273_v35 = vpop.eup %22272  ;;  %v16583_v6 = vmul.f32 %v16576_v39, %v27148_v43  ;;  %v16558_v26 = vmul.f32 %v22271_v10, %v22265_v32  ;;  %v20425_v56 = vmul.f32 -1.442695, %v16386_v54  ;;  %v20972_v33 = vpop.f32.mrb[6].mxu1  ;;  %22292 = vtanh.f32 %v16405_v0  ;;  %v16547_v54 = vld [vmem:[#allocation5 + $0x30] sm:$0xff] }
 0xa30   : > { %v22275_v3 = vpop.eup %22274  ;;  %v16584_v12 = vmul.f32 %v16577_v44, %v27149_v48  ;;  %v16550_v46 = vmul.f32 %v22273_v35, %v16543_v63  ;;  %v16291_v40 = vpop.f32.mrb[7].mxu1  ;;  %22294 = vpow2.f32 %v20432_v17  ;;  %v16407_v14 = vadd.f32 %v20972_v33, %v26509_v8  ;;  %v16546_v8 = vld [vmem:[#allocation5 + $0x28] sm:$0xff] }
 0xa31   : > { %16597 = vst [vmem:[#allocation4 + $0x8] sm:$0xff] %v16583_v6  ;;  %v16551_v45 = vmul.f32 %v22275_v3, %v16544_v62  ;;  %v22277_v61 = vpop.eup %22276  ;;  %22296 = vpow2.f32 %v20425_v56  ;;  %v16400_v2 = vadd.f32 %v26503_v53, %v16291_v40  ;;  %v27153_v40 = vld [vmem:[#allocation11_spill] sm:$0xff] }
 0xa32   : > { %16598 = vst [vmem:[#allocation4 + $0x10] sm:$0xff] %v16584_v12  ;;  %v16564_v7 = vadd.f32 %v16557_v9, %v16550_v46  ;;  %v22279_v42 = vpop.eup %22278  ;;  %22298 = vtanh.f32 %v16406_v37  ;;  %v27152_v12 = vld [vmem:[#allocation10_spill] sm:$0xff] }
 0xa33   : > { %v16565_v49 = vadd.f32 %v16558_v26, %v16551_v45  ;;  %v22281_v58 = vpop.eup %22280  ;;  %v16433_v22 = vadd.f32 1.0, %v22279_v42  ;;  %v20439_v60 = vmul.f32 -1.442695, %v16400_v2 }
 0xa34   : > { %22300 = vtanh.f32 %v16564_v7  ;;  %16592 = vst [vmem:[#allocation5 + $0x10] sm:$0xff] %v16564_v7  ;;  %v22283_v16 = vpop.eup %22282  ;;  %v16434_v1 = vadd.f32 1.0, %v22281_v58 }
 0xa35   : > { %22302 = vtanh.f32 %v16565_v49  ;;  %16593 = vst [vmem:[#allocation5 + $0x18] sm:$0xff] %v16565_v49  ;;  %v22285_v18 = vpop.eup %22284  ;;  %v16475_v38 = vadd.f32 1.0, %v22283_v16  ;;  %v27154_v49 = vld [vmem:[#allocation15_spill] sm:$0xff] }
 0xa36   : > { %22304 = vrcp.f32 %v16433_v22  ;;  %v22287_v5 = vpop.eup %22286  ;;  %v16476_v57 = vadd.f32 1.0, %v22285_v18  ;;  %v22405_v18 = vmov (!%p20440_p8), 0.0  }
 0xa37   : > { %22306 = vrcp.f32 %v16434_v1  ;;  %v22289_v19 = vpop.eup %22288  ;;  %16795 = vmatprep.mubr.f32.mxu1 (!%p20440_p8), %v22405_v18  ;;  %16724 = vmatprep.mubr.f32.mxu0 (!%p20440_p8), %v22405_v18 }
 0xa38   : > { %22308 = vrcp.f32 %v16475_v38  ;;  %v22291_v41 = vpop.eup %22290  ;;  %v16517_v29 = vadd.f32 1.0, %v22289_v19  ;;  %v26560_v2 = vld [vmem:[#allocation4 + $0x8] sm:$0xff] (!%p20440_p8) }
 0xa39   : > { %22310 = vrcp.f32 %v16476_v57  ;;  %v22293_v34 = vpop.eup %22292  ;;  %v16518_v50 = vadd.f32 1.0, %v22291_v41  ;;  %16629 = vrot.lane.b32.xlu1 (!%p20440_p8), %v26560_v2, %s22404_s19  ;;  %v26566_v1 = vld [vmem:[#allocation4 + $0x10] sm:$0xff] (!%p20440_p8) }
 0xa3a   : > { %v22295_v30 = vpop.eup %22294  ;;  %22312 = vpow2.f32 %v20439_v60  ;;  %v18213_v60 = vld [vmem:[#allocation4 + $0x40] sm:$0xff] (!%p20440_p8) }
 0xa3b   : > { %v22297_v53 = vpop.eup %22296  ;;  %v16477_v21 = vadd.f32 1.0, %v22295_v30  ;;  %22314 = vtanh.f32 %v16407_v14 }
 0xa3c   : > { %v22299_v52 = vpop.eup %22298  ;;  %v16435_v47 = vadd.f32 1.0, %v22297_v53 }
 0xa3d   : > { %22316 = vrcp.f32 %v16477_v21  ;;  %16631 = vrot.lane.b32.xlu1 (!%p20440_p8), %v26566_v1, %s22404_s19 }
 0xa3e   : > { %v22301_v11 = vpop.eup %22300  ;;  %22318 = vrcp.f32 %v16435_v47 }
 0xa3f   : > { %v22303_v15 = vpop.eup %22302  ;;  %v16578_v36 = vmul.f32 %v22301_v11, %v22277_v61  ;;  %22320 = vrcp.f32 %v16517_v29  ;;  %v20441_v11 = vld [vmem:[%s26843_s10 + $0x8] sm:$0xff] (!%p20440_p8) }
 0xa40   : > { %v22305_v31 = vpop.eup %22304  ;;  %v16579_v25 = vmul.f32 %v22303_v15, %v22287_v5  ;;  %22322 = vrcp.f32 %v16518_v50  ;;  %v16609_v5 = vld [vmem:[#allocation4] sm:$0xff] (!%p20440_p8) }
 0xa41   : > { %v22307_v28 = vpop.eup %22306  ;;  %v16585_v51 = vmul.f32 %v16578_v36, %v27150_v23  ;;  %v16559_v32 = vmul.f32 %v22305_v31, %v22293_v34  ;;  %v22413_v34 = vmov (!%p20440_p8), 0   ;;  %v16608_v50 = vld [vmem:[%s26843_s10] sm:$0xff] (!%p20440_p8) }
 0xa42   : > { %v22309_v9 = vpop.eup %22308  ;;  %v16586_v24 = vmul.f32 %v16579_v25, %v27151_v27  ;;  %v16560_v13 = vmul.f32 %v22307_v28, %v22299_v52  ;;  %22351 = vset.pattern.permute.xlu0 (!%p20440_p8), %v22413_v34 }
 0xa43   : > { %v22311_v0 = vpop.eup %22310  ;;  %16599 = vst [vmem:[#allocation4 + $0x18] sm:$0xff] %v16585_v51  ;;  %v16552_v59 = vmul.f32 %v22309_v9, %v16545_v4 }
 0xa44   : > { %16600 = vst [vmem:[#allocation4 + $0x20] sm:$0xff] %v16586_v24  ;;  %v16553_v20 = vmul.f32 %v22311_v0, %v16546_v8  ;;  %v22313_v39 = vpop.eup %22312  ;;  %v19520_v8 = vld [vmem:[%s26844_s11] sm:$0xff] (!%p20440_p8) }
 0xa45   : > { %v16566_v55 = vadd.f32 %v16559_v32, %v16552_v59  ;;  %v22315_v10 = vpop.eup %22314  ;;  %v16519_v17 = vadd.f32 1.0, %v22313_v39 }
 0xa46   : > { %v16567_v63 = vadd.f32 %v16560_v13, %v16553_v20 }
 0xa47   : > { %22324 = vtanh.f32 %v16566_v55  ;;  %16594 = vst [vmem:[#allocation5 + $0x20] sm:$0xff] %v16566_v55  ;;  %v22317_v44 = vpop.eup %22316 }
 0xa48   : > { %22326 = vtanh.f32 %v16567_v63  ;;  %16595 = vst [vmem:[#allocation5 + $0x28] sm:$0xff] %v16567_v63  ;;  %v22319_v62 = vpop.eup %22318  ;;  %v16554_v37 = vmul.f32 %v22317_v44, %v16547_v54 }
 0xa49   : > { %v16561_v35 = vmul.f32 %v22319_v62, %v22315_v10  ;;  %22328 = vrcp.f32 %v16519_v17  ;;  %v22321_v6 = vpop.eup %22320 }
 0xa4a   : > { %v22323_v26 = vpop.eup %22322  ;;  %v26558_v22 = vld [vmem:[#allocation4 + $0x18] sm:$0xff] (!%p20440_p8) }
 0xa4b   : > { %v16568_v43 = vadd.f32 %v16561_v35, %v16554_v37  ;;  %16633 = vrot.lane.b32.xlu0 (!%p20440_p8), %v26558_v22, %s22404_s19  ;;  %v26564_v16 = vld [vmem:[#allocation4 + $0x20] sm:$0xff] (!%p20440_p8) }
 0xa4d   : > { %22330 = vtanh.f32 %v16568_v43  ;;  %16596 = vst [vmem:[#allocation5 + $0x30] sm:$0xff] %v16568_v43 }
 0xa4f   : > { %16635 = vrot.lane.b32.xlu0 (!%p20440_p8), %v26564_v16, %s22404_s19 }
 0xa51   : > { %v22325_v56 = vpop.eup %22324 }
 0xa52   : > { %v22327_v33 = vpop.eup %22326  ;;  %v16580_v3 = vmul.f32 %v22325_v56, %v22321_v6  ;;  %v20450_v6 = vld [vmem:[%s26843_s10 + $0x10] sm:$0xff] (!%p20440_p8) }
 0xa53   : > { %v16581_v48 = vmul.f32 %v22327_v33, %v22323_v26  ;;  %v22329_v61 = vpop.eup %22328  ;;  %16627 = vrot.lane.b32.xlu0 (!%p20440_p8), %v16609_v5, %s22404_s19 }
 0xa54   : > { %v16587_v46 = vmul.f32 %v16580_v3, %v27152_v12 }
 0xa55   : > { %v16588_v45 = vmul.f32 %v16581_v48, %v27153_v40 }
 0xa56   : > { %16601 = vst [vmem:[#allocation4 + $0x28] sm:$0xff] %v16587_v46  ;;  %16607 = sbr.rel (%p20440_p8) target bundleno = 3108 (0xc24), region = 76 }
 0xa57   : > { %16602 = vst [vmem:[#allocation4 + $0x30] sm:$0xff] %v16588_v45  ;;  %v22331_v7 = vpop.eup %22330 }
 0xa58   : > { %v16582_v42 = vmul.f32 %v22331_v7, %v22329_v61 }
 0xa5a   : > { %v16589_v58 = vmul.f32 %v16582_v42, %v27154_v49 }
 0xa5c   : > { %16603 = vst [vmem:[#allocation4 + $0x38] sm:$0xff] %v16589_v58 }
 0xa5d   : > { %v26572_v38 = vld [vmem:[#allocation4 + $0x28] sm:$0xff] }
 0xa5e   : > { %16637 = vrot.lane.b32.xlu1 %v26572_v38, %s22404_s19  ;;  %v26577_v19 = vld [vmem:[#allocation4 + $0x30] sm:$0xff] }
 0xa5f   : > { %16639 = vrot.lane.b32.xlu0 %v26577_v19, %s22404_s19 }
 0xa63   : > { %v26575_v57 = vld [vmem:[#allocation4 + $0x38] sm:$0xff]  ;;  %16949 = vrot.lane.b32.xlu0 %v26558_v22, %s22406_s21 }
 0xa64   : > { %16641 = vrot.lane.b32.xlu1 %v26575_v57, %s22404_s19 }
 0xa67   : > { %16945 = vrot.lane.b32.xlu0 %v26560_v2, %s22406_s21 }
 0xa68   : > { %16951 = vrot.lane.b32.xlu1 %v26564_v16, %s22406_s21 }
 0xa6b   : > { %16943 = vrot.lane.b32.xlu0 %v16609_v5, %s22406_s21 }
 0xa6c   : > { %16947 = vrot.lane.b32.xlu1 %v26566_v1, %s22406_s21 }
 0xa6f   : > { %16955 = vrot.lane.b32.xlu0 %v26577_v19, %s22406_s21 }
 0xa70   : > { %16953 = vrot.lane.b32.xlu1 %v26572_v38, %s22406_s21 }
 0xa73   : > { %17267 = vrot.lane.b32.xlu0 %v26558_v22, %s22407_s13 }
 0xa74   : > { %16957 = vrot.lane.b32.xlu1 %v26575_v57, %s22406_s21 }
 0xa77   : > { %17263 = vrot.lane.b32.xlu0 %v26560_v2, %s22407_s13 }
 0xa78   : > { %17269 = vrot.lane.b32.xlu1 %v26564_v16, %s22407_s13 }
 0xa7b   : > { %17261 = vrot.lane.b32.xlu0 %v16609_v5, %s22407_s13 }
 0xa7c   : > { %17265 = vrot.lane.b32.xlu1 %v26566_v1, %s22407_s13 }
 0xa7f   : > { %17273 = vrot.lane.b32.xlu0 %v26577_v19, %s22407_s13 }
 0xa80   : > { %17271 = vrot.lane.b32.xlu1 %v26572_v38, %s22407_s13 }
 0xa83   : > { %17592 = vrot.lane.b32.xlu0 %v26558_v22, %s22408_s28 }
 0xa84   : > { %17275 = vrot.lane.b32.xlu1 %v26575_v57, %s22407_s13 }
 0xa87   : > { %17588 = vrot.lane.b32.xlu0 %v26560_v2, %s22408_s28 }
 0xa88   : > { %17594 = vrot.lane.b32.xlu1 %v26564_v16, %s22408_s28 }
 0xa8b   : > { %17586 = vrot.lane.b32.xlu0 %v16609_v5, %s22408_s28 }
 0xa8c   : > { %17590 = vrot.lane.b32.xlu1 %v26566_v1, %s22408_s28 }
 0xa8f   : > { %17598 = vrot.lane.b32.xlu0 %v26577_v19, %s22408_s28 }
 0xa90   : > { %17596 = vrot.lane.b32.xlu1 %v26572_v38, %s22408_s28 }
 0xa93   : > { %18228 = vrot.lane.b32.xlu0 %v26564_v16, %s22409_s27 }
 0xa94   : > { %17600 = vrot.lane.b32.xlu1 %v26575_v57, %s22408_s28 }
 0xa97   : > { %18224 = vrot.lane.b32.xlu0 %v26566_v1, %s22409_s27 }
 0xa98   : > { %18230 = vrot.lane.b32.xlu1 %v26572_v38, %s22409_s27 }
 0xa9b   : > { %18222 = vrot.lane.b32.xlu0 %v26560_v2, %s22409_s27 }
 0xa9c   : > { %18226 = vrot.lane.b32.xlu1 %v26558_v22, %s22409_s27 }
 0xa9f   : > { %18234 = vrot.lane.b32.xlu0 %v26575_v57, %s22409_s27 }
 0xaa0   : > { %18232 = vrot.lane.b32.xlu1 %v26577_v19, %s22409_s27 }
 0xaa3   : > { %18553 = vrot.lane.b32.xlu0 %v26564_v16, %s22410_s15 }
 0xaa4   : > { %18236 = vrot.lane.b32.xlu1 %v18213_v60, %s22409_s27 }
 0xaa7   : > { %18549 = vrot.lane.b32.xlu0 %v26566_v1, %s22410_s15 }
 0xaa8   : > { %18555 = vrot.lane.b32.xlu1 %v26572_v38, %s22410_s15 }
 0xaab   : > { %18547 = vrot.lane.b32.xlu0 %v26560_v2, %s22410_s15  ;;  %v16630_v14 = vpop.permute.xlu1 %16629 }
 0xaac   : > { %18551 = vrot.lane.b32.xlu1 %v26558_v22, %s22410_s15 }
 0xaaf   : > { %18559 = vrot.lane.b32.xlu0 %v26575_v57, %s22410_s15  ;;  %v16632_v53 = vpop.permute.xlu1 %16631 }
 0xab0   : > { %18557 = vrot.lane.b32.xlu1 %v26577_v19, %s22410_s15  ;;  %v16644_v52 = vsel %vm840_vm2, %v16630_v14, %v16632_v53 }
 0xab1   : > { %16660 = vmatprep.subr.mxu0 %v16644_v52 }
 0xab3   : > { %18878 = vrot.lane.b32.xlu0 %v26564_v16, %s22411_s16 }
 0xab4   : > { %18561 = vrot.lane.b32.xlu1 %v18213_v60, %s22410_s15 }
 0xab7   : > { %18874 = vrot.lane.b32.xlu0 %v26566_v1, %s22411_s16 }
 0xab8   : > { %18880 = vrot.lane.b32.xlu1 %v26572_v38, %s22411_s16 }
 0xabb   : > { %18872 = vrot.lane.b32.xlu0 %v26560_v2, %s22411_s16 }
 0xabc   : > { %18876 = vrot.lane.b32.xlu1 %v26558_v22, %s22411_s16 }
 0xabd   : > { %v16634_v41 = vpop.permute.xlu0 %16633 }
 0xabe   : > { %v16645_v47 = vsel %vm840_vm2, %v16632_v53, %v16634_v41 }
 0xabf   : > { %18884 = vrot.lane.b32.xlu0 %v26575_v57, %s22411_s16 }
 0xac0   : > { %18882 = vrot.lane.b32.xlu1 %v26577_v19, %s22411_s16 }
 0xac1   : > { %v16636_v30 = vpop.permute.xlu0 %16635 }
 0xac2   : > { %v16646_v21 = vsel %vm840_vm2, %v16634_v41, %v16636_v30 }
 0xac3   : > { %19203 = vrot.lane.b32.xlu0 %v26564_v16, %s22412_s14  ;;  %16731 = vmatprep.subr.mxu1 %v16646_v21 }
 0xac4   : > { %18886 = vrot.lane.b32.xlu1 %v18213_v60, %s22411_s16  ;;  %16732 = vmatpush1.msra.mxu1 %v16645_v47 }
 0xac5   : > { %v16628_v36 = vpop.permute.xlu0 %16627  ;;  %20973 = vmatprep.subr.mxu1 %v22405_v18  ;;  %20443 = vmatmul.mubr.msk.f32.vlgmr.msra.gmra.mrb[0].mxu1 %vm4706_vm10, %v20441_v11 }
 0xac6   : > { %v16643_v31 = vsel %vm840_vm2, %v16628_v36, %v16630_v14  ;;  %20975 = vmatprep.mubr.msk.f32.mxu1 %vm22414_vm11, %v22405_v18 }
 0xac7   : > { %19199 = vrot.lane.b32.xlu0 %v26566_v1, %s22412_s14  ;;  %16661 = vmatpush1.msra.mxu0 %v16643_v31 }
 0xac8   : > { %19205 = vrot.lane.b32.xlu1 %v26572_v38, %s22412_s14  ;;  %20442 = vmatmul.mubr.msk.f32.vlgmr.msra.gmra.mrb[0].mxu0 %vm4706_vm10, %v20441_v11 }
 0xac9   : > { %16866 = vmatprep.mubr.f32.mxu0 %v22405_v18 }
 0xacb   : > { %19197 = vrot.lane.b32.xlu0 %v26560_v2, %s22412_s14 }
 0xacc   : > { %19201 = vrot.lane.b32.xlu1 %v26558_v22, %s22412_s14 }
 0xacf   : > { %19209 = vrot.lane.b32.xlu0 %v26575_v57, %s22412_s14 }
 0xad0   : > { %19207 = vrot.lane.b32.xlu1 %v26577_v19, %s22412_s14  ;;  %v16638_v15 = vpop.permute.xlu1 %16637 }
 0xad1   : > { %v16640_v4 = vpop.permute.xlu0 %16639  ;;  %v16647_v51 = vsel %vm840_vm2, %v16636_v30, %v16638_v15 }
 0xad2   : > { %v16648_v23 = vsel %vm840_vm2, %v16638_v15, %v16640_v4 }
 0xad3   : > { %16802 = vmatprep.subr.mxu0 %v16648_v23  ;;  %19523 = vperm.xlu0 %22351, %v19520_v8  }
 0xad4   : > { %19211 = vrot.lane.b32.xlu1 %v18213_v60, %s22412_s14  ;;  %16803 = vmatpush1.msra.mxu0 %v16647_v51  ;;  %v20455_v60 = vld [vmem:[%s26843_s10 + $0x18] sm:$0xff] }
 0xad5   : > { %v16950_v32 = vpop.permute.xlu0 %16949  ;;  %20444 = vmatmul.mubr.msk.f32.vlgmr.msra.gmra.mrb[2].mxu0 %vm4706_vm10, %v20441_v11 }
 0xad6   : > { %v16642_v25 = vpop.permute.xlu1 %16641  ;;  %17040 = vmatprep.mubr.f32.mxu0 %v22405_v18 }
 0xad7   : > { %v16649_v28 = vsel %vm840_vm2, %v16640_v4, %v16642_v25  ;;  %v20460_v25 = vld [vmem:[%s26843_s10 + $0x20] sm:$0xff] }
 0xad8   : > { %20974 = vmatpush3.msra.mxu1 %v16649_v28 }
 0xad9   : > { %20976 = vmatmul.mubr.msk.f32.vlgmr.msra.gmra.mrb[2].mxu1 %vm4706_vm10, %v20441_v11  ;;  %v16946_v24 = vpop.permute.xlu0 %16945 }
 0xada   : > { %v16952_v29 = vpop.permute.xlu1 %16951  ;;  %17111 = vmatprep.mubr.f32.mxu1 %v22405_v18 }
 0xadb   : > { %v16962_v9 = vsel %vm1243_vm3, %v16950_v32, %v16952_v29 }
 0xadc   : > { %17047 = vmatprep.subr.mxu1 %v16962_v9 }
 0xadd   : > { %v16944_v20 = vpop.permute.xlu0 %16943 }
 0xade   : > { %v16948_v27 = vpop.permute.xlu1 %16947  ;;  %v16959_v55 = vsel %vm1243_vm3, %v16944_v20, %v16946_v24 }
 0xadf   : > { %v16961_v13 = vsel %vm1243_vm3, %v16948_v27, %v16950_v32  ;;  %v16960_v0 = vsel %vm1243_vm3, %v16946_v24, %v16948_v27 }
 0xae0   : > { %16976 = vmatprep.subr.mxu0 %v16960_v0  ;;  %17048 = vmatpush1.msra.mxu1 %v16961_v13  ;;  %v20470_v0 = vld [vmem:[%s26843_s10 + $0x30] sm:$0xff] }
 0xae1   : > { %20978 = vmatprep.subr.mxu1 %v22405_v18  ;;  %20447 = vmatmul.mubr.msk.f32.vlgmr.msra.gmra.mrb[0].mxu1 %vm4706_vm10, %v16608_v50  ;;  %v16956_v63 = vpop.permute.xlu0 %16955 }
 0xae2   : > { %v16954_v59 = vpop.permute.xlu1 %16953  ;;  %20980 = vmatprep.mubr.msk.f32.mxu1 %vm22414_vm11, %v22405_v18  ;;  %16977 = vmatpush1.msra.mxu0 %v16959_v55 }
 0xae3   : > { %20446 = vmatmul.mubr.msk.f32.vlgmr.msra.gmra.mrb[0].mxu0 %vm4706_vm10, %v16608_v50  ;;  %v16964_v10 = vsel %vm1243_vm3, %v16954_v59, %v16956_v63  ;;  %v16963_v44 = vsel %vm1243_vm3, %v16952_v29, %v16954_v59 }
 0xae4   : > { %17182 = vmatprep.mubr.f32.mxu0 %v22405_v18  ;;  %17118 = vmatprep.subr.mxu0 %v16964_v10 }
 0xae5   : > { %17119 = vmatpush1.msra.mxu0 %v16963_v44  ;;  %v17268_v37 = vpop.permute.xlu0 %17267 }
 0xae6   : > { %v16958_v39 = vpop.permute.xlu1 %16957 }
 0xae7   : > { %v16965_v54 = vsel %vm1243_vm3, %v16956_v63, %v16958_v39  ;;  %20448 = vmatmul.mubr.msk.f32.vlgmr.msra.gmra.mrb[2].mxu0 %vm4706_vm10, %v16608_v50 }
 0xae8   : > { %20979 = vmatpush3.msra.mxu1 %v16965_v54  ;;  %17358 = vmatprep.mubr.f32.mxu0 %v22405_v18 }
 0xae9   : > { %20981 = vmatmul.mubr.msk.f32.vlgmr.msra.gmra.mrb[4].mxu1 %vm4706_vm10, %v16608_v50  ;;  %v17264_v43 = vpop.permute.xlu0 %17263 }
 0xaea   : > { %v17270_v62 = vpop.permute.xlu1 %17269  ;;  %17429 = vmatprep.mubr.f32.mxu1 %v22405_v18 }
 0xaeb   : > { %v17280_v17 = vsel %vm1650_vm4, %v17268_v37, %v17270_v62 }
 0xaec   : > { %17365 = vmatprep.subr.mxu1 %v17280_v17 }
 0xaed   : > { %v17262_v3 = vpop.permute.xlu0 %17261 }
 0xaee   : > { %v17266_v35 = vpop.permute.xlu1 %17265  ;;  %v17277_v48 = vsel %vm1650_vm4, %v17262_v3, %v17264_v43 }
 0xaef   : > { %v17279_v26 = vsel %vm1650_vm4, %v17266_v35, %v17268_v37  ;;  %v17278_v56 = vsel %vm1650_vm4, %v17264_v43, %v17266_v35 }
 0xaf0   : > { %17294 = vmatprep.subr.mxu0 %v17278_v56  ;;  %17366 = vmatpush1.msra.mxu1 %v17279_v26  ;;  %v20475_v56 = vld [vmem:[%s26843_s10 + $0x38] sm:$0xff] }
 0xaf1   : > { %20983 = vmatprep.subr.mxu1 %v22405_v18  ;;  %20452 = vmatmul.mubr.msk.f32.vlgmr.msra.gmra.mrb[0].mxu1 %vm4706_vm10, %v20450_v6  ;;  %v17274_v46 = vpop.permute.xlu0 %17273 }
 0xaf2   : > { %v17272_v33 = vpop.permute.xlu1 %17271  ;;  %20985 = vmatprep.mubr.msk.f32.mxu1 %vm22414_vm11, %v22405_v18  ;;  %17295 = vmatpush1.msra.mxu0 %v17277_v48 }
 0xaf3   : > { %20451 = vmatmul.mubr.msk.f32.vlgmr.msra.gmra.mrb[0].mxu0 %vm4706_vm10, %v20450_v6  ;;  %v17282_v45 = vsel %vm1650_vm4, %v17272_v33, %v17274_v46  ;;  %v17281_v61 = vsel %vm1650_vm4, %v17270_v62, %v17272_v33 }
 0xaf4   : > { %17500 = vmatprep.mubr.f32.mxu0 %v22405_v18  ;;  %17436 = vmatprep.subr.mxu0 %v17282_v45 }
 0xaf5   : > { %17437 = vmatpush1.msra.mxu0 %v17281_v61  ;;  %v17593_v42 = vpop.permute.xlu0 %17592 }
 0xaf6   : > { %v17276_v12 = vpop.permute.xlu1 %17275 }
 0xaf7   : > { %v17283_v40 = vsel %vm1650_vm4, %v17274_v46, %v17276_v12  ;;  %20453 = vmatmul.mubr.msk.f32.vlgmr.msra.gmra.mrb[2].mxu0 %vm4706_vm10, %v20450_v6 }
 0xaf8   : > { %20984 = vmatpush3.msra.mxu1 %v17283_v40  ;;  %17683 = vmatprep.mubr.f32.mxu0 %v22405_v18 }
 0xaf9   : > { %20986 = vmatmul.mubr.msk.f32.vlgmr.msra.gmra.mrb[6].mxu1 %vm4706_vm10, %v20450_v6  ;;  %v17589_v5 = vpop.permute.xlu0 %17588 }
 0xafa   : > { %v17595_v7 = vpop.permute.xlu1 %17594  ;;  %17754 = vmatprep.mubr.f32.mxu1 %v22405_v18 }
 0xafb   : > { %v17605_v49 = vsel %vm2085_vm5, %v17593_v42, %v17595_v7 }
 0xafc   : > { %17690 = vmatprep.subr.mxu1 %v17605_v49 }
 0xafd   : > { %v17587_v30 = vpop.permute.xlu0 %17586 }
 0xafe   : > { %v17591_v58 = vpop.permute.xlu1 %17590  ;;  %v17602_v53 = vsel %vm2085_vm5, %v17587_v30, %v17589_v5 }
 0xaff   : > { %v17604_v41 = vsel %vm2085_vm5, %v17591_v58, %v17593_v42  ;;  %v17603_v14 = vsel %vm2085_vm5, %v17589_v5, %v17591_v58 }
 0xb00   : > { %17619 = vmatprep.subr.mxu0 %v17603_v14  ;;  %17691 = vmatpush1.msra.mxu1 %v17604_v41  ;;  %v20480_v14 = vld [vmem:[%s26843_s10 + $0x40] sm:$0xff] }
 0xb01   : > { %20457 = vmatmul.mubr.msk.f32.vlgmr.msra.gmra.mrb[0].mxu1 %vm4706_vm10, %v20455_v60  ;;  %20988 = vmatprep.subr.mxu1 %v22405_v18  ;;  %v17599_v52 = vpop.permute.xlu0 %17598 }
 0xb02   : > { %v17597_v34 = vpop.permute.xlu1 %17596  ;;  %20990 = vmatprep.mubr.msk.f32.mxu1 %vm22414_vm11, %v22405_v18  ;;  %17620 = vmatpush1.msra.mxu0 %v17602_v53 }
 0xb03   : > { %20456 = vmatmul.mubr.msk.f32.vlgmr.msra.gmra.mrb[0].mxu0 %vm4706_vm10, %v20455_v60  ;;  %v17607_v11 = vsel %vm2085_vm5, %v17597_v34, %v17599_v52  ;;  %v17606_v15 = vsel %vm2085_vm5, %v17595_v7, %v17597_v34 }
 0xb04   : > { %17825 = vmatprep.mubr.f32.mxu0 %v22405_v18  ;;  %17761 = vmatprep.subr.mxu0 %v17607_v11 }
 0xb05   : > { %17762 = vmatpush1.msra.mxu0 %v17606_v15  ;;  %v18229_v31 = vpop.permute.xlu0 %18228 }
 0xb06   : > { %v17601_v21 = vpop.permute.xlu1 %17600  ;;  %17914 = vmatprep.subr.mxu0 %v26566_v1 }
 0xb07   : > { %v17608_v47 = vsel %vm2085_vm5, %v17599_v52, %v17601_v21  ;;  %20458 = vmatmul.mubr.msk.f32.vlgmr.msra.gmra.mrb[2].mxu0 %vm4706_vm10, %v20455_v60 }
 0xb08   : > { %20989 = vmatpush3.msra.mxu1 %v17608_v47  ;;  %17915 = vmatpush1.msra.mxu0 %v26560_v2 }
 0xb09   : > { %20991 = vmatmul.mubr.msk.f32.vlgmr.msra.gmra.mrb[8].mxu1 %vm4706_vm10, %v20455_v60  ;;  %17985 = vmatprep.subr.mxu1 %v26564_v16  ;;  %v18225_v4 = vpop.permute.xlu0 %18224 }
 0xb0a   : > { %v18231_v36 = vpop.permute.xlu1 %18230  ;;  %17986 = vmatpush1.msra.mxu1 %v26558_v22  ;;  %18049 = vmatprep.mubr.f32.mxu1 %v22405_v18 }
 0xb0b   : > { %20993 = vmatprep.subr.mxu1 %v22405_v18  ;;  %17978 = vmatprep.mubr.f32.mxu0 %v22405_v18  ;;  %v18241_v28 = vsel %vm2932_vm6, %v18229_v31, %v18231_v36 }
 0xb0c   : > { %18056 = vmatprep.subr.mxu0 %v26577_v19  ;;  %20461 = vmatmul.mubr.msk.f32.vlgmr.msra.gmra.mrb[0].mxu0 %vm4706_vm10, %v20460_v25  ;;  %v20465_v19 = vld [vmem:[%s26843_s10 + $0x28] sm:$0xff] }
 0xb0d   : > { %20462 = vmatmul.mubr.msk.f32.vlgmr.msra.gmra.mrb[0].mxu1 %vm4706_vm10, %v20460_v25  ;;  %18057 = vmatpush1.msra.mxu0 %v26572_v38 }
 0xb0e   : > { %20994 = vmatpush3.msra.mxu1 %v26575_v57  ;;  %v18227_v16 = vpop.permute.xlu1 %18226  ;;  %20995 = vmatprep.mubr.msk.f32.mxu1 %vm22414_vm11, %v22405_v18  ;;  %v18223_v57 = vpop.permute.xlu0 %18222 }
 0xb0f   : > { %v18240_v22 = vsel %vm2932_vm6, %v18227_v16, %v18229_v31  ;;  %18326 = vmatprep.subr.mxu1 %v18241_v28  ;;  %v18239_v1 = vsel %vm2932_vm6, %v18225_v4, %v18227_v16  ;;  %v18238_v23 = vsel %vm2932_vm6, %v18223_v57, %v18225_v4  ;;  %18120 = vmatprep.mubr.f32.mxu0 %v22405_v18 }
 0xb10   : > { %18255 = vmatprep.subr.mxu0 %v18239_v1  ;;  %20463 = vmatmul.mubr.msk.f32.vlgmr.msra.gmra.mrb[2].mxu0 %vm4706_vm10, %v20460_v25 }
 0xb11   : > { %20996 = vmatmul.mubr.msk.f32.vlgmr.msra.gmra.mrb[10].mxu1 %vm4706_vm10, %v20460_v25  ;;  %18256 = vmatpush1.msra.mxu0 %v18238_v23 }
 0xb12   : > { %18327 = vmatpush1.msra.mxu1 %v18240_v22  ;;  %v18233_v2 = vpop.permute.xlu1 %18232  ;;  %18390 = vmatprep.mubr.f32.mxu1 %v22405_v18  ;;  %v18235_v51 = vpop.permute.xlu0 %18234 }
 0xb13   : > { %20998 = vmatprep.subr.mxu1 %v22405_v18  ;;  %18319 = vmatprep.mubr.f32.mxu0 %v22405_v18  ;;  %v18243_v29 = vsel %vm2932_vm6, %v18233_v2, %v18235_v51  ;;  %v18242_v32 = vsel %vm2932_vm6, %v18231_v36, %v18233_v2 }
 0xb14   : > { %18397 = vmatprep.subr.mxu0 %v18243_v29  ;;  %20466 = vmatmul.mubr.msk.f32.vlgmr.msra.gmra.mrb[0].mxu0 %vm4706_vm10, %v20465_v19 }
 0xb15   : > { %20467 = vmatmul.mubr.msk.f32.vlgmr.msra.gmra.mrb[0].mxu1 %vm4706_vm10, %v20465_v19  ;;  %18398 = vmatpush1.msra.mxu0 %v18242_v32 }
 0xb16   : > { %v18237_v38 = vpop.permute.xlu1 %18236  ;;  %21000 = vmatprep.mubr.msk.f32.mxu1 %vm22414_vm11, %v22405_v18  ;;  %v18554_v27 = vpop.permute.xlu0 %18553  ;;  %18461 = vmatprep.mubr.f32.mxu0 %v22405_v18 }
 0xb17   : > { %v18244_v8 = vsel %vm2932_vm6, %v18235_v51, %v18237_v38 }
 0xb18   : > { %20999 = vmatpush3.msra.mxu1 %v18244_v8  ;;  %20468 = vmatmul.mubr.msk.f32.vlgmr.msra.gmra.mrb[2].mxu0 %vm4706_vm10, %v20465_v19 }
 0xb19   : > { %21001 = vmatmul.mubr.msk.f32.vlgmr.msra.gmra.mrb[12].mxu1 %vm4706_vm10, %v20465_v19  ;;  %18644 = vmatprep.mubr.f32.mxu0 %v22405_v18 }
 0xb1a   : > { %v18556_v9 = vpop.permute.xlu1 %18555  ;;  %18715 = vmatprep.mubr.f32.mxu1 %v22405_v18  ;;  %v18550_v13 = vpop.permute.xlu0 %18549 }
 0xb1b   : > { %v18566_v24 = vsel %vm3367_vm7, %v18554_v27, %v18556_v9 }
 0xb1c   : > { %18651 = vmatprep.subr.mxu1 %v18566_v24 }
 0xb1e   : > { %v18552_v50 = vpop.permute.xlu1 %18551  ;;  %v18548_v39 = vpop.permute.xlu0 %18547 }
 0xb1f   : > { %v18565_v59 = vsel %vm3367_vm7, %v18552_v50, %v18554_v27  ;;  %v18564_v20 = vsel %vm3367_vm7, %v18550_v13, %v18552_v50  ;;  %v18563_v63 = vsel %vm3367_vm7, %v18548_v39, %v18550_v13 }
 0xb20   : > { %18580 = vmatprep.subr.mxu0 %v18564_v20  ;;  %18652 = vmatpush1.msra.mxu1 %v18565_v59 }
 0xb21   : > { %20472 = vmatmul.mubr.msk.f32.vlgmr.msra.gmra.mrb[0].mxu1 %vm4706_vm10, %v20470_v0  ;;  %21003 = vmatprep.subr.mxu1 %v22405_v18 }
 0xb22   : > { %v18558_v55 = vpop.permute.xlu1 %18557  ;;  %21005 = vmatprep.mubr.msk.f32.mxu1 %vm22414_vm11, %v22405_v18  ;;  %18581 = vmatpush1.msra.mxu0 %v18563_v63  ;;  %v18560_v10 = vpop.permute.xlu0 %18559 }
 0xb23   : > { %20471 = vmatmul.mubr.msk.f32.vlgmr.msra.gmra.mrb[0].mxu0 %vm4706_vm10, %v20470_v0  ;;  %v18568_v62 = vsel %vm3367_vm7, %v18558_v55, %v18560_v10  ;;  %v18567_v37 = vsel %vm3367_vm7, %v18556_v9, %v18558_v55 }
 0xb24   : > { %18786 = vmatprep.mubr.f32.mxu0 %v22405_v18  ;;  %18722 = vmatprep.subr.mxu0 %v18568_v62 }
 0xb25   : > { %18723 = vmatpush1.msra.mxu0 %v18567_v37 }
 0xb26   : > { %v18562_v54 = vpop.permute.xlu1 %18561  ;;  %v18879_v35 = vpop.permute.xlu0 %18878 }
 0xb27   : > { %v18569_v44 = vsel %vm3367_vm7, %v18560_v10, %v18562_v54  ;;  %20473 = vmatmul.mubr.msk.f32.vlgmr.msra.gmra.mrb[2].mxu0 %vm4706_vm10, %v20470_v0 }
 0xb28   : > { %21004 = vmatpush3.msra.mxu1 %v18569_v44  ;;  %18969 = vmatprep.mubr.f32.mxu0 %v22405_v18 }
 0xb29   : > { %21006 = vmatmul.mubr.msk.f32.vlgmr.msra.gmra.mrb[14].mxu1 %vm4706_vm10, %v20470_v0 }
 0xb2a   : > { %v18881_v17 = vpop.permute.xlu1 %18880  ;;  %19040 = vmatprep.mubr.f32.mxu1 %v22405_v18  ;;  %v18875_v26 = vpop.permute.xlu0 %18874 }
 0xb2b   : > { %v18891_v43 = vsel %vm3802_vm8, %v18879_v35, %v18881_v17 }
 0xb2c   : > { %18976 = vmatprep.subr.mxu1 %v18891_v43 }
 0xb2e   : > { %v18877_v6 = vpop.permute.xlu1 %18876  ;;  %v18873_v12 = vpop.permute.xlu0 %18872 }
 0xb2f   : > { %v18890_v33 = vsel %vm3802_vm8, %v18877_v6, %v18879_v35  ;;  %v18889_v3 = vsel %vm3802_vm8, %v18875_v26, %v18877_v6  ;;  %v18888_v46 = vsel %vm3802_vm8, %v18873_v12, %v18875_v26 }
 0xb30   : > { %18905 = vmatprep.subr.mxu0 %v18889_v3  ;;  %18977 = vmatpush1.msra.mxu1 %v18890_v33 }
 0xb31   : > { %20477 = vmatmul.mubr.msk.f32.vlgmr.msra.gmra.mrb[0].mxu1 %vm4706_vm10, %v20475_v56  ;;  %21008 = vmatprep.subr.mxu1 %v22405_v18 }
 0xb32   : > { %v18883_v48 = vpop.permute.xlu1 %18882  ;;  %21010 = vmatprep.mubr.msk.f32.mxu1 %vm22414_vm11, %v22405_v18  ;;  %18906 = vmatpush1.msra.mxu0 %v18888_v46  ;;  %v18885_v45 = vpop.permute.xlu0 %18884 }
 0xb33   : > { %20476 = vmatmul.mubr.msk.f32.vlgmr.msra.gmra.mrb[0].mxu0 %vm4706_vm10, %v20475_v56  ;;  %v18893_v7 = vsel %vm3802_vm8, %v18883_v48, %v18885_v45  ;;  %v18892_v42 = vsel %vm3802_vm8, %v18881_v17, %v18883_v48 }
 0xb34   : > { %19111 = vmatprep.mubr.f32.mxu0 %v22405_v18  ;;  %19047 = vmatprep.subr.mxu0 %v18893_v7 }
 0xb35   : > { %19048 = vmatpush1.msra.mxu0 %v18892_v42 }
 0xb36   : > { %v18887_v40 = vpop.permute.xlu1 %18886  ;;  %v19204_v58 = vpop.permute.xlu0 %19203 }
 0xb37   : > { %v18894_v61 = vsel %vm3802_vm8, %v18885_v45, %v18887_v40  ;;  %20478 = vmatmul.mubr.msk.f32.vlgmr.msra.gmra.mrb[2].mxu0 %vm4706_vm10, %v20475_v56 }
 0xb38   : > { %21009 = vmatpush3.msra.mxu1 %v18894_v61  ;;  %19294 = vmatprep.mubr.f32.mxu0 %v22405_v18 }
 0xb39   : > { %21011 = vmatmul.mubr.msk.f32.vlgmr.msra.gmra.mrb[16].mxu1 %vm4706_vm10, %v20475_v56 }
 0xb3a   : > { %v19206_v49 = vpop.permute.xlu1 %19205  ;;  %19365 = vmatprep.mubr.f32.mxu1 %v22405_v18  ;;  %v19200_v41 = vpop.permute.xlu0 %19199 }
 0xb3b   : > { %v19216_v5 = vsel %vm4237_vm9, %v19204_v58, %v19206_v49 }
 0xb3c   : > { %19301 = vmatprep.subr.mxu1 %v19216_v5 }
 0xb3e   : > { %v19202_v60 = vpop.permute.xlu1 %19201  ;;  %v19198_v21 = vpop.permute.xlu0 %19197 }
 0xb3f   : > { %v19215_v34 = vsel %vm4237_vm9, %v19202_v60, %v19204_v58  ;;  %v19214_v30 = vsel %vm4237_vm9, %v19200_v41, %v19202_v60  ;;  %v19213_v52 = vsel %vm4237_vm9, %v19198_v21, %v19200_v41 }
 0xb40   : > { %19230 = vmatprep.subr.mxu0 %v19214_v30  ;;  %19302 = vmatpush1.msra.mxu1 %v19215_v34 }
 0xb41   : > { %20482 = vmatmul.mubr.msk.f32.vlgmr.msra.gmra.mrb[0].mxu1 %vm4706_vm10, %v20480_v14  ;;  %21013 = vmatprep.subr.mxu1 %v22405_v18 }
 0xb42   : > { %v19208_v53 = vpop.permute.xlu1 %19207  ;;  %21015 = vmatprep.mubr.msk.f32.mxu1 %vm22414_vm11, %v22405_v18  ;;  %19231 = vmatpush1.msra.mxu0 %v19213_v52  ;;  %v19210_v11 = vpop.permute.xlu0 %19209 }
 0xb43   : > { %20481 = vmatmul.mubr.msk.f32.vlgmr.msra.gmra.mrb[0].mxu0 %vm4706_vm10, %v20480_v14  ;;  %v19218_v36 = vsel %vm4237_vm9, %v19208_v53, %v19210_v11  ;;  %v19217_v31 = vsel %vm4237_vm9, %v19206_v49, %v19208_v53 }
 0xb44   : > { %19436 = vmatprep.mubr.f32.mxu0 %v22405_v18  ;;  %19372 = vmatprep.subr.mxu0 %v19218_v36 }
 0xb45   : > { %19373 = vmatpush1.msra.mxu0 %v19217_v31 }
 0xb46   : > { %v19212_v47 = vpop.permute.xlu1 %19211 }
 0xb47   : > { %v19219_v15 = vsel %vm4237_vm9, %v19210_v11, %v19212_v47  ;;  %20483 = vmatmul.mubr.msk.f32.vlgmr.msra.gmra.mrb[2].mxu0 %vm4706_vm10, %v20480_v14 }
 0xb48   : > { %21014 = vmatpush3.msra.mxu1 %v19219_v15 }
 0xb49   : > { %21016 = vmatmul.mubr.msk.f32.vlgmr.msra.gmra.mrb[18].mxu1 %vm4706_vm10, %v20480_v14 }
 0xb52   : > { %v19524_v20 = vpop.permute.xlu0 %19523 }
 0xbac   : > { %v16939_v25 = vpop.f32.mrb[2].mxu1 }
 0xbad   : > { %v20977_v16 = vpop.f32.mrb[3].mxu1 }
 0xbbc   : > { %v17255_v4 = vpop.f32.mrb[4].mxu1 }
 0xbbd   : > { %v17256_v28 = vadd.f32 %v17255_v4, %v16939_v25  ;;  %v20982_v22 = vpop.f32.mrb[5].mxu1 }
 0xbcc   : > { %v17573_v1 = vpop.f32.mrb[6].mxu1 }
 0xbcd   : > { %v17583_v18 = vadd.f32 %v17573_v1, %v17256_v28  ;;  %v20987_v2 = vpop.f32.mrb[7].mxu1 }
 0xbdc   : > { %v17898_v57 = vpop.f32.mrb[8].mxu1 }
 0xbdd   : > { %v17908_v19 = vadd.f32 %v17898_v57, %v17583_v18  ;;  %v20992_v23 = vpop.f32.mrb[9].mxu1 }
 0xbe4   : > { %v18193_v38 = vpop.f32.mrb[10].mxu1 }
 0xbe5   : > { %v18203_v51 = vadd.f32 %v18193_v38, %v17908_v19  ;;  %v20997_v8 = vpop.f32.mrb[11].mxu1 }
 0xbec   : > { %v18534_v29 = vpop.f32.mrb[12].mxu1 }
 0xbed   : > { %v18544_v32 = vadd.f32 %v18534_v29, %v18203_v51  ;;  %v21002_v9 = vpop.f32.mrb[13].mxu1 }
 0xbfc   : > { %v18859_v27 = vpop.f32.mrb[14].mxu1 }
 0xbfd   : > { %v18869_v24 = vadd.f32 %v18859_v27, %v18544_v32  ;;  %v21007_v50 = vpop.f32.mrb[15].mxu1 }
 0xc0c   : > { %v19184_v13 = vpop.f32.mrb[16].mxu1 }
 0xc0d   : > { %v19194_v0 = vadd.f32 %v19184_v13, %v18869_v24  ;;  %v21012_v59 = vpop.f32.mrb[17].mxu1 }
 0xc14   : > { %v19367_v55 = vpop.f32.mrb[0].mxu1 }
 0xc15   : > { %v19528_v39 = vadd.f32 %v19524_v20, %v19367_v55  ;;  %v19369_v63 = vpop.f32.mrb[1].mxu1 }
 0xc16   : > { %v19529_v54 = vadd.f32 %v19524_v20, %v19369_v63  ;;  %v19296_v62 = vpop.f32.mrb[0].mxu0 }
 0xc17   : > { %v19535_v10 = vmax.f32 %v19528_v39, 0.0  ;;  %v19526_v37 = vadd.f32 %v19524_v20, %v19296_v62  ;;  %v19298_v17 = vpop.f32.mrb[1].mxu0 }
 0xc18   : > { %v19536_v44 = vmax.f32 %v19529_v54, 0.0  ;;  %v19527_v35 = vadd.f32 %v19524_v20, %v19298_v17 }
 0xc19   : > { %19542 = vst [vmem:[%s22517_s18 + $0x10] sm:$0xff] %v19535_v10  ;;  %v19533_v43 = vmax.f32 %v19526_v37, 0.0 }
 0xc1a   : > { %19543 = vst [vmem:[%s22517_s18 + $0x18] sm:$0xff] %v19536_v44  ;;  %v19534_v6 = vmax.f32 %v19527_v35, 0.0  ;;  %v19438_v33 = vpop.f32.mrb[2].mxu0 }
 0xc1b   : > { %19540 = vst [vmem:[%s22517_s18] sm:$0xff] %v19533_v43  ;;  %v19530_v48 = vadd.f32 %v19524_v20, %v19438_v33  ;;  %v19440_v12 = vpop.f32.mrb[3].mxu0 }
 0xc1c   : > { %v19509_v26 = vpop.f32.mrb[18].mxu1  ;;  %19541 = vst [vmem:[%s22517_s18 + $0x8] sm:$0xff] %v19534_v6  ;;  %v19531_v40 = vadd.f32 %v19524_v20, %v19440_v12 }
 0xc1d   : > { %v19519_v56 = vadd.f32 %v19509_v26, %v19194_v0  ;;  %v21017_v3 = vpop.f32.mrb[19].mxu1  ;;  %v19537_v45 = vmax.f32 %v19530_v48, 0.0 }
 0xc1e   : > { %v19538_v7 = vmax.f32 %v19531_v40, 0.0 }
 0xc1f   : > { %v19532_v46 = vadd.f32 %v19524_v20, %v19519_v56  ;;  %19544 = vst [vmem:[%s22517_s18 + $0x20] sm:$0xff] %v19537_v45 }
 0xc20   : > { %19545 = vst [vmem:[%s22517_s18 + $0x28] sm:$0xff] %v19538_v7 }
 0xc21   : > { %v19539_v61 = vmax.f32 %v19532_v46, 0.0 }
 0xc23   : > { %19546 = vst [vmem:[%s22517_s18 + $0x30] sm:$0xff] %v19539_v61 }
 0xc24 PF: > { %s22_s25 = sadd.s32 1, %s22390_s25   ;;  %s27155_s13 = sld [smem:[#allocation6_spill]] }
 0xc25   : > { %p19_p9 = scmp.ge.s32.totalorder %s22_s25, 10   ;;  %s27156_s21 = smov %s22382_s23 }
 0xc26   : > { %s27157_s22 = smov %s22386_s24  ;;  %s27158_s23 = smov %s27161_s26 }
 0xc27   :  { %21 = sbr.rel (!%p19_p9) target bundleno = 3 (0x3), region = 146 }
 0xc2a   : > { %s27159_s24 = smov %s27155_s13 }

</bundles_post_ra>
